<compile_context>
chip_gen: v7x
topology: tpu7x:2x2x1
jax: 0.10.0
libtpu: 0.0.40
codegen_flags: <defaults>
</compile_context>

<pallas_src>
import functools

import numpy as np
import jax
import jax.numpy as jnp
from jax.experimental import pallas as pl
from jax.experimental.pallas import tpu as pltpu


# ------------------------------ fused kernel --------------------------------

def _fused_groupresnet_kernel(x_ref, masks_ref, w_ref, pool_ref, lwt_ref,
                              lbt_ref, o_ref, stk_ref,
                              *, offsets, n_blocks, m_len, width):
    """Whole GroupResNet forward on VMEM-resident, lane-dense [C, M] tensors."""
    k_rows = 9 * width                       # first row of the bias/zero tail
    tail = stk_ref.shape[0] - k_rows         # 1 bias row + zero padding rows

    # Constant tail of the stacked operand: one row of 1s (the BN shift is a
    # folded weight column) followed by zero padding rows; written once, then
    # reused by all 7 convs.
    row_id = jax.lax.broadcasted_iota(jnp.int32, (tail, m_len), 0)
    stk_ref[pl.ds(k_rows, tail), :] = jnp.where(row_id == 0, 1.0,
                                                0.0).astype(jnp.float32)

    def conv3x3(act, conv_idx):
        # Stack the 9 spatially-shifted, border-masked taps into VMEM, then do
        # a single K=9*C+1 MXU matmul against the fused (BN-folded) weight.
        for t in range(9):
            off = offsets[t]
            if off == 0:                     # centre tap: no shift, mask == 1
                tap = act
            else:
                tap = pltpu.roll(act, (-off) % m_len, axis=1) * masks_ref[t]
            stk_ref[pl.ds(t * width, width), :] = tap
        return jnp.dot(w_ref[conv_idx], stk_ref[...],
                       preferred_element_type=jnp.float32)

    # stem: conv1 -> bn1 (folded into weights) -> relu
    act = jnp.maximum(conv3x3(x_ref[...], 0), 0.0)

    # GroupBasicblocks (identity shortcut).  The in_list / out_list channel
    # index_selects and BN scale+shift are folded into the fused weights.
    for b in range(n_blocks):
        residual = act
        y = jnp.maximum(conv3x3(act, 1 + 2 * b), 0.0)
        y = conv3x3(y, 2 + 2 * b)
        act = jnp.maximum(y + residual, 0.0)

    # global average pool + linear head, both on the MXU
    pooled = jnp.dot(act, pool_ref[...],
                     preferred_element_type=jnp.float32)           # [C, N]
    logits_t = jnp.dot(lwt_ref[...], pooled,
                       preferred_element_type=jnp.float32) + lbt_ref[...]
    o_ref[...] = logits_t.astype(o_ref.dtype)                      # [cls, N]


# --------------------------- trace-time preprocessing ------------------------

def _full_block_spec(shape):
    nd = len(shape)
    return pl.BlockSpec(shape, lambda i, _nd=nd: (0,) * _nd)


def _fold_bn(bn, eps=1e-5):
    scale = bn['gamma'] / jnp.sqrt(bn['var'] + eps)
    shift = bn['beta'] - bn['mean'] * scale
    return scale, shift


def _conv_to_fused(w_oihw, bn_scale, bn_shift, cin_full, k_pad,
                   in_idx=None, out_perm=None):
    """OIHW conv weight -> fused GEMM matrix [Cout, k_pad].

    Folds (a) the post-conv out_list output-channel index_select, (b) the
    pre-conv in_list input-channel index_select (as a zero-scatter over the
    full channel space), (c) the BatchNorm scale, and (d) the BatchNorm shift
    as a bias column (paired with the ones row of the stacked operand).
    Column order is tap-major (t = dh*3+dw), matching the row layout of the
    stacked operand built in the kernel.
    """
    w = w_oihw
    if out_perm is not None:
        w = jnp.take(w, out_perm, axis=0)
    w = w * bn_scale[:, None, None, None]
    co, ci, kh, kw = w.shape
    if in_idx is None:
        in_idx = jnp.arange(ci)
    w_full = jnp.zeros((co, cin_full, kh, kw), jnp.float32)
    w_full = w_full.at[:, in_idx, :, :].set(w)
    w_taps = jnp.transpose(w_full, (2, 3, 1, 0)).reshape(kh * kw * cin_full, co).T
    fused = jnp.concatenate([w_taps, bn_shift[:, None]], axis=1)  # [co, 9*ci+1]
    return jnp.pad(fused, ((0, 0), (0, k_pad - fused.shape[1])))


def _make_masks_offsets(n, h, w, width):
    """Per-tap flat lane offset and [9, width, M] 0/1 validity masks."""
    m_len = n * h * w
    hh = (np.arange(m_len) // w) % h
    ww = np.arange(m_len) % w
    masks, offsets = [], []
    for dh in range(3):
        for dw in range(3):
            hs, ws = hh + (dh - 1), ww + (dw - 1)
            masks.append(((hs >= 0) & (hs < h) & (ws >= 0) & (ws < w)
                          ).astype(np.float32))
            offsets.append((dh - 1) * w + (dw - 1))
    masks = np.broadcast_to(np.stack(masks)[:, None, :], (9, width, m_len))
    return jnp.asarray(np.ascontiguousarray(masks)), tuple(offsets)


def group_resnet_forward(x_nchw, params):
    n, cin, h, w = x_nchw.shape
    m_len = n * h * w
    hw = h * w
    blocks = (list(params['layer1']) + list(params['layer2'])
              + list(params['layer3']))
    n_blocks = len(blocks)
    width = params['conv1_w'].shape[0]
    num_classes = params['lin_w'].shape[1]

    k_dim = 9 * width + 1                    # 9 taps x width channels + bias
    k_pad = ((k_dim + 7) // 8) * 8           # sublane-aligned stacked operand

    masks, offsets = _make_masks_offsets(n, h, w, width)

    # Fold BN scale+shift and channel-select lists into fused per-conv weights.
    s0, b0 = _fold_bn(params['bn1'])
    w_list = [_conv_to_fused(params['conv1_w'], s0, b0, width, k_pad)]
    for blk in blocks:
        s1, b1 = _fold_bn(blk['bn1'])
        s2, b2 = _fold_bn(blk['bn2'])
        w_list.append(_conv_to_fused(blk['conv1_w'], s1, b1, width, k_pad,
                                     in_idx=blk['in_list0'],
                                     out_perm=blk['out_list0']))
        w_list.append(_conv_to_fused(blk['conv2_w'], s2, b2, width, k_pad,
                                     in_idx=blk['in_list1'],
                                     out_perm=blk['out_list1']))
    w_all = jnp.stack(w_list, axis=0)                       # [7, C, k_pad]

    # MXU pooling matrix: pool[m, i] = 1/hw iff lane m belongs to image i.
    pool_np = np.zeros((m_len, n), np.float32)
    for i in range(n):
        pool_np[i * hw:(i + 1) * hw, i] = 1.0 / hw
    pool_mat = jnp.asarray(pool_np)

    # linear head, transposed so the kernel's matmuls stay lhs-major
    lin_wt = jnp.transpose(params['lin_w'])                 # [cls, C]
    lin_bt = jnp.transpose(params['lin_b'])                 # [cls, 1]

    # input NCHW -> channel-major [width, N*H*W]: lane-dense spatial axis; the
    # stem channels are zero-padded to the block width so every conv shares
    # one fused-weight shape and one stacked-operand scratch.
    x_cm = jnp.transpose(x_nchw, (1, 0, 2, 3)).reshape(cin, m_len)
    x_cm = jnp.pad(x_cm, ((0, width - cin), (0, 0)))

    kernel = functools.partial(_fused_groupresnet_kernel, offsets=offsets,
                               n_blocks=n_blocks, m_len=m_len, width=width)
    operands = (x_cm, masks, w_all, pool_mat, lin_wt, lin_bt)

    # TODO(synk): at larger batch/resolution, tile M over an image-parallel
    #             grid axis (uses v7x's second TensorCore) instead of grid=(1,).
    logits_t = pl.pallas_call(
        kernel,
        out_shape=jax.ShapeDtypeStruct((num_classes, n), jnp.float32),
        grid=(1,),
        in_specs=[_full_block_spec(op.shape) for op in operands],
        out_specs=_full_block_spec((num_classes, n)),
        scratch_shapes=[pltpu.VMEM((k_pad, m_len), jnp.float32)],
        compiler_params=pltpu.CompilerParams(
            dimension_semantics=("arbitrary",)),
    )(*operands)
    return jnp.transpose(logits_t)                           # [N, classes]


# ------------------------- deterministic parameters --------------------------

def init_params(key, width=16, keep=12, num_classes=10):
    keys = iter(jax.random.split(key, 128))

    def conv_w(co, ci, k=3):
        return jax.random.normal(next(keys), (co, ci, k, k), jnp.float32) * 0.1

    def bn(c):
        return dict(
            gamma=jax.random.uniform(next(keys), (c,), jnp.float32, 0.5, 1.5),
            beta=jax.random.normal(next(keys), (c,), jnp.float32) * 0.05,
            mean=jax.random.normal(next(keys), (c,), jnp.float32) * 0.05,
            var=jax.random.uniform(next(keys), (c,), jnp.float32, 0.5, 1.5))

    def block(c):
        return dict(
            in_list0=jnp.sort(jax.random.permutation(next(keys), c)[:keep]),
            in_list1=jnp.sort(jax.random.permutation(next(keys), c)[:keep]),
            out_list0=jax.random.permutation(next(keys), c),
            out_list1=jax.random.permutation(next(keys), c),
            conv1_w=conv_w(c, keep),
            conv2_w=conv_w(c, keep),
            bn1=bn(c),
            bn2=bn(c))

    return dict(
        conv1_w=conv_w(width, 3),
        bn1=bn(width),
        layer1=[block(width)],
        layer2=[block(width)],
        layer3=[block(width)],
        lin_w=jax.random.normal(next(keys), (width, num_classes), jnp.float32) * 0.1,
        lin_b=jnp.zeros((1, num_classes), jnp.float32))


# ------------------------------ pure-JAX reference ---------------------------

def _conv_ref(x_nhwc, w_oihw):
    return jax.lax.conv_general_dilated(
        x_nhwc, jnp.transpose(w_oihw, (2, 3, 1, 0)),
        window_strides=(1, 1), padding='SAME',
        dimension_numbers=('NHWC', 'HWIO', 'NHWC'))


def _bn_ref(x, bn, eps=1e-5):
    return (x - bn['mean']) / jnp.sqrt(bn['var'] + eps) * bn['gamma'] + bn['beta']


def reference_forward(x_nchw, params):
    x = jnp.transpose(x_nchw, (0, 2, 3, 1))
    x = jax.nn.relu(_bn_ref(_conv_ref(x, params['conv1_w']), params['bn1']))
    for blk in params['layer1'] + params['layer2'] + params['layer3']:
        residual = x
        out = jnp.take(x, blk['in_list0'], axis=-1)
        out = _conv_ref(out, blk['conv1_w'])
        out = jnp.take(out, blk['out_list0'], axis=-1)
        out = jax.nn.relu(_bn_ref(out, blk['bn1']))
        out = jnp.take(out, blk['in_list1'], axis=-1)
        out = _conv_ref(out, blk['conv2_w'])
        out = jnp.take(out, blk['out_list1'], axis=-1)
        out = _bn_ref(out, blk['bn2'])
        x = jax.nn.relu(out + residual)
    pooled = jnp.mean(x, axis=(1, 2))
    return pooled @ params['lin_w'] + params['lin_b']


# ------------------------------------ main -----------------------------------

if __name__ == "__main__":
    key = jax.random.PRNGKey(0)
    k_x, k_p = jax.random.split(key)
    x = jax.random.normal(k_x, (2, 3, 16, 16), jnp.float32)   # NCHW input
    params = init_params(k_p)

    fwd = jax.jit(lambda inp: group_resnet_forward(inp, params))
    out = jax.block_until_ready(fwd(x))
    ref = jax.block_until_ready(reference_forward(x, params))

    assert out.shape == (2, 10), out.shape
    err = np.max(np.abs(np.asarray(out) - np.asarray(ref)))
    assert np.allclose(np.asarray(out), np.asarray(ref), atol=5e-2, rtol=5e-2), err
    print("KERNEL_OK")
</pallas_src>

<mosaic_0001>
module attributes {stable_mosaic.version = 11 : i64} {
  func.func @_fused_groupresnet_kernel(%arg0: i32, %arg1: memref<16x512xf32, #tpu.memory_space<vmem>>, %arg2: memref<9x16x512xf32, #tpu.memory_space<vmem>>, %arg3: memref<7x16x152xf32, #tpu.memory_space<vmem>>, %arg4: memref<512x2xf32, #tpu.memory_space<vmem>>, %arg5: memref<10x16xf32, #tpu.memory_space<vmem>>, %arg6: memref<10x1xf32, #tpu.memory_space<vmem>>, %arg7: memref<10x2xf32, #tpu.memory_space<vmem>>, %arg8: memref<152x512xf32, #tpu.memory_space<vmem>>) attributes {dimension_semantics = [#tpu.dimension_semantics<arbitrary>], iteration_bounds = array<i64: 1>, scalar_prefetch = 0 : i64, scratch_operands = 1 : i64, tpu.core_type = #tpu.core_type<tc>, window_params = [{pipeline_mode = #tpu.pipeline_mode<synchronous>, transform_indices = @transform_0, window_bounds = array<i64: 16, 512>}, {pipeline_mode = #tpu.pipeline_mode<synchronous>, transform_indices = @transform_1, window_bounds = array<i64: 9, 16, 512>}, {pipeline_mode = #tpu.pipeline_mode<synchronous>, transform_indices = @transform_2, window_bounds = array<i64: 7, 16, 152>}, {pipeline_mode = #tpu.pipeline_mode<synchronous>, transform_indices = @transform_3, window_bounds = array<i64: 512, 2>}, {pipeline_mode = #tpu.pipeline_mode<synchronous>, transform_indices = @transform_4, window_bounds = array<i64: 10, 16>}, {pipeline_mode = #tpu.pipeline_mode<synchronous>, transform_indices = @transform_5, window_bounds = array<i64: 10, 1>}, {pipeline_mode = #tpu.pipeline_mode<synchronous>, transform_indices = @transform_6, window_bounds = array<i64: 10, 2>}]} {
    %0 = tpu.iota {dimensions = array<i32: 0>} : vector<8x512xi32>
    %c0_i32 = arith.constant 0 : i32
    %1 = vector.broadcast %c0_i32 : i32 to vector<8x512xi32>
    %2 = arith.cmpi eq, %0, %1 : vector<8x512xi32>
    %cst = arith.constant 1.000000e+00 : f32
    %cst_0 = arith.constant 0.000000e+00 : f32
    %3 = vector.broadcast %cst : f32 to vector<8x512xf32>
    %4 = vector.broadcast %cst_0 : f32 to vector<8x512xf32>
    %5 = arith.select %2, %3, %4 : vector<8x512xi1>, vector<8x512xf32>
    %c144 = arith.constant 144 : index
    %c0 = arith.constant 0 : index
    %6 = vector.load %arg8[%c144, %c0] : memref<152x512xf32, #tpu.memory_space<vmem>>, vector<8x512xf32>
    tpu.vector_store %arg8[%c144, %c0], %5 {strides = array<i32>} : memref<152x512xf32, #tpu.memory_space<vmem>>, vector<8x512xf32>,
    %c0_1 = arith.constant 0 : index
    %c0_2 = arith.constant 0 : index
    %7 = vector.load %arg1[%c0_1, %c0_2] : memref<16x512xf32, #tpu.memory_space<vmem>>, vector<16x512xf32>
    %c17_i32 = arith.constant 17 : i32
    %8 = tpu.dynamic_rotate %7 by %c17_i32 dim 1 : vector<16x512xf32>, i32 -> vector<16x512xf32>
    %c0_3 = arith.constant 0 : index
    %c0_4 = arith.constant 0 : index
    %c0_5 = arith.constant 0 : index
    %9 = vector.load %arg2[%c0_3, %c0_4, %c0_5] : memref<9x16x512xf32, #tpu.memory_space<vmem>>, vector<1x16x512xf32>
    %10 = vector.shape_cast %9 : vector<1x16x512xf32> to vector<16x512xf32>
    %11 = arith.mulf %8, %10 : vector<16x512xf32>
    %c0_6 = arith.constant 0 : index
    %c0_7 = arith.constant 0 : index
    %12 = vector.load %arg8[%c0_6, %c0_7] : memref<152x512xf32, #tpu.memory_space<vmem>>, vector<16x512xf32>
    tpu.vector_store %arg8[%c0_6, %c0_7], %11 {strides = array<i32>} : memref<152x512xf32, #tpu.memory_space<vmem>>, vector<16x512xf32>,
    %c16_i32 = arith.constant 16 : i32
    %13 = tpu.dynamic_rotate %7 by %c16_i32 dim 1 : vector<16x512xf32>, i32 -> vector<16x512xf32>
    %c1 = arith.constant 1 : index
    %c0_8 = arith.constant 0 : index
    %c0_9 = arith.constant 0 : index
    %14 = vector.load %arg2[%c1, %c0_8, %c0_9] : memref<9x16x512xf32, #tpu.memory_space<vmem>>, vector<1x16x512xf32>
    %15 = vector.shape_cast %14 : vector<1x16x512xf32> to vector<16x512xf32>
    %16 = arith.mulf %13, %15 : vector<16x512xf32>
    %c16 = arith.constant 16 : index
    %c0_10 = arith.constant 0 : index
    %17 = vector.load %arg8[%c16, %c0_10] : memref<152x512xf32, #tpu.memory_space<vmem>>, vector<16x512xf32>
    tpu.vector_store %arg8[%c16, %c0_10], %16 {strides = array<i32>} : memref<152x512xf32, #tpu.memory_space<vmem>>, vector<16x512xf32>,
    %c15_i32 = arith.constant 15 : i32
    %18 = tpu.dynamic_rotate %7 by %c15_i32 dim 1 : vector<16x512xf32>, i32 -> vector<16x512xf32>
    %c2 = arith.constant 2 : index
    %c0_11 = arith.constant 0 : index
    %c0_12 = arith.constant 0 : index
    %19 = vector.load %arg2[%c2, %c0_11, %c0_12] : memref<9x16x512xf32, #tpu.memory_space<vmem>>, vector<1x16x512xf32>
    %20 = vector.shape_cast %19 : vector<1x16x512xf32> to vector<16x512xf32>
    %21 = arith.mulf %18, %20 : vector<16x512xf32>
    %c32 = arith.constant 32 : index
    %c0_13 = arith.constant 0 : index
    %22 = vector.load %arg8[%c32, %c0_13] : memref<152x512xf32, #tpu.memory_space<vmem>>, vector<16x512xf32>
    tpu.vector_store %arg8[%c32, %c0_13], %21 {strides = array<i32>} : memref<152x512xf32, #tpu.memory_space<vmem>>, vector<16x512xf32>,
    %c1_i32 = arith.constant 1 : i32
    %23 = tpu.dynamic_rotate %7 by %c1_i32 dim 1 : vector<16x512xf32>, i32 -> vector<16x512xf32>
    %c3 = arith.constant 3 : index
    %c0_14 = arith.constant 0 : index
    %c0_15 = arith.constant 0 : index
    %24 = vector.load %arg2[%c3, %c0_14, %c0_15] : memref<9x16x512xf32, #tpu.memory_space<vmem>>, vector<1x16x512xf32>
    %25 = vector.shape_cast %24 : vector<1x16x512xf32> to vector<16x512xf32>
    %26 = arith.mulf %23, %25 : vector<16x512xf32>
    %c48 = arith.constant 48 : index
    %c0_16 = arith.constant 0 : index
    %27 = vector.load %arg8[%c48, %c0_16] : memref<152x512xf32, #tpu.memory_space<vmem>>, vector<16x512xf32>
    tpu.vector_store %arg8[%c48, %c0_16], %26 {strides = array<i32>} : memref<152x512xf32, #tpu.memory_space<vmem>>, vector<16x512xf32>,
    %c64 = arith.constant 64 : index
    %c0_17 = arith.constant 0 : index
    %28 = vector.load %arg8[%c64, %c0_17] : memref<152x512xf32, #tpu.memory_space<vmem>>, vector<16x512xf32>
    tpu.vector_store %arg8[%c64, %c0_17], %7 {strides = array<i32>} : memref<152x512xf32, #tpu.memory_space<vmem>>, vector<16x512xf32>,
    %c511_i32 = arith.constant 511 : i32
    %29 = tpu.dynamic_rotate %7 by %c511_i32 dim 1 : vector<16x512xf32>, i32 -> vector<16x512xf32>
    %c5 = arith.constant 5 : index
    %c0_18 = arith.constant 0 : index
    %c0_19 = arith.constant 0 : index
    %30 = vector.load %arg2[%c5, %c0_18, %c0_19] : memref<9x16x512xf32, #tpu.memory_space<vmem>>, vector<1x16x512xf32>
    %31 = vector.shape_cast %30 : vector<1x16x512xf32> to vector<16x512xf32>
    %32 = arith.mulf %29, %31 : vector<16x512xf32>
    %c80 = arith.constant 80 : index
    %c0_20 = arith.constant 0 : index
    %33 = vector.load %arg8[%c80, %c0_20] : memref<152x512xf32, #tpu.memory_space<vmem>>, vector<16x512xf32>
    tpu.vector_store %arg8[%c80, %c0_20], %32 {strides = array<i32>} : memref<152x512xf32, #tpu.memory_space<vmem>>, vector<16x512xf32>,
    %c497_i32 = arith.constant 497 : i32
    %34 = tpu.dynamic_rotate %7 by %c497_i32 dim 1 : vector<16x512xf32>, i32 -> vector<16x512xf32>
    %c6 = arith.constant 6 : index
    %c0_21 = arith.constant 0 : index
    %c0_22 = arith.constant 0 : index
    %35 = vector.load %arg2[%c6, %c0_21, %c0_22] : memref<9x16x512xf32, #tpu.memory_space<vmem>>, vector<1x16x512xf32>
    %36 = vector.shape_cast %35 : vector<1x16x512xf32> to vector<16x512xf32>
    %37 = arith.mulf %34, %36 : vector<16x512xf32>
    %c96 = arith.constant 96 : index
    %c0_23 = arith.constant 0 : index
    %38 = vector.load %arg8[%c96, %c0_23] : memref<152x512xf32, #tpu.memory_space<vmem>>, vector<16x512xf32>
    tpu.vector_store %arg8[%c96, %c0_23], %37 {strides = array<i32>} : memref<152x512xf32, #tpu.memory_space<vmem>>, vector<16x512xf32>,
    %c496_i32 = arith.constant 496 : i32
    %39 = tpu.dynamic_rotate %7 by %c496_i32 dim 1 : vector<16x512xf32>, i32 -> vector<16x512xf32>
    %c7 = arith.constant 7 : index
    %c0_24 = arith.constant 0 : index
    %c0_25 = arith.constant 0 : index
    %40 = vector.load %arg2[%c7, %c0_24, %c0_25] : memref<9x16x512xf32, #tpu.memory_space<vmem>>, vector<1x16x512xf32>
    %41 = vector.shape_cast %40 : vector<1x16x512xf32> to vector<16x512xf32>
    %42 = arith.mulf %39, %41 : vector<16x512xf32>
    %c112 = arith.constant 112 : index
    %c0_26 = arith.constant 0 : index
    %43 = vector.load %arg8[%c112, %c0_26] : memref<152x512xf32, #tpu.memory_space<vmem>>, vector<16x512xf32>
    tpu.vector_store %arg8[%c112, %c0_26], %42 {strides = array<i32>} : memref<152x512xf32, #tpu.memory_space<vmem>>, vector<16x512xf32>,
    %c495_i32 = arith.constant 495 : i32
    %44 = tpu.dynamic_rotate %7 by %c495_i32 dim 1 : vector<16x512xf32>, i32 -> vector<16x512xf32>
    %c8 = arith.constant 8 : index
    %c0_27 = arith.constant 0 : index
    %c0_28 = arith.constant 0 : index
    %45 = vector.load %arg2[%c8, %c0_27, %c0_28] : memref<9x16x512xf32, #tpu.memory_space<vmem>>, vector<1x16x512xf32>
    %46 = vector.shape_cast %45 : vector<1x16x512xf32> to vector<16x512xf32>
    %47 = arith.mulf %44, %46 : vector<16x512xf32>
    %c128 = arith.constant 128 : index
    %c0_29 = arith.constant 0 : index
    %48 = vector.load %arg8[%c128, %c0_29] : memref<152x512xf32, #tpu.memory_space<vmem>>, vector<16x512xf32>
    tpu.vector_store %arg8[%c128, %c0_29], %47 {strides = array<i32>} : memref<152x512xf32, #tpu.memory_space<vmem>>, vector<16x512xf32>,
    %c0_30 = arith.constant 0 : index
    %c0_31 = arith.constant 0 : index
    %c0_32 = arith.constant 0 : index
    %49 = vector.load %arg3[%c0_30, %c0_31, %c0_32] : memref<7x16x152xf32, #tpu.memory_space<vmem>>, vector<1x16x152xf32>
    %50 = vector.shape_cast %49 : vector<1x16x152xf32> to vector<16x152xf32>
    %c0_33 = arith.constant 0 : index
    %c0_34 = arith.constant 0 : index
    %51 = vector.load %arg8[%c0_33, %c0_34] : memref<152x512xf32, #tpu.memory_space<vmem>>, vector<152x512xf32>
    %cst_35 = arith.constant dense<0.000000e+00> : vector<16x512xf32>
    %52 = tpu.matmul %50, %51, %cst_35 {dimension_numbers = #tpu.dot_dimension_numbers<[1], [0], [0], [1], [0, 0, 1, 1], [], []>} : vector<16x152xf32>, vector<152x512xf32>, vector<16x512xf32> -> vector<16x512xf32>
    %cst_36 = arith.constant 0.000000e+00 : f32
    %53 = vector.broadcast %cst_36 : f32 to vector<16x512xf32>
    %54 = arith.maximumf %52, %53 : vector<16x512xf32>
    %c17_i32_37 = arith.constant 17 : i32
    %55 = tpu.dynamic_rotate %54 by %c17_i32_37 dim 1 : vector<16x512xf32>, i32 -> vector<16x512xf32>
    %c0_38 = arith.constant 0 : index
    %c0_39 = arith.constant 0 : index
    %c0_40 = arith.constant 0 : index
    %56 = vector.load %arg2[%c0_38, %c0_39, %c0_40] : memref<9x16x512xf32, #tpu.memory_space<vmem>>, vector<1x16x512xf32>
    %57 = vector.shape_cast %56 : vector<1x16x512xf32> to vector<16x512xf32>
    %58 = arith.mulf %55, %57 : vector<16x512xf32>
    %c0_41 = arith.constant 0 : index
    %c0_42 = arith.constant 0 : index
    %59 = vector.load %arg8[%c0_41, %c0_42] : memref<152x512xf32, #tpu.memory_space<vmem>>, vector<16x512xf32>
    tpu.vector_store %arg8[%c0_41, %c0_42], %58 {strides = array<i32>} : memref<152x512xf32, #tpu.memory_space<vmem>>, vector<16x512xf32>,
    %c16_i32_43 = arith.constant 16 : i32
    %60 = tpu.dynamic_rotate %54 by %c16_i32_43 dim 1 : vector<16x512xf32>, i32 -> vector<16x512xf32>
    %c1_44 = arith.constant 1 : index
    %c0_45 = arith.constant 0 : index
    %c0_46 = arith.constant 0 : index
    %61 = vector.load %arg2[%c1_44, %c0_45, %c0_46] : memref<9x16x512xf32, #tpu.memory_space<vmem>>, vector<1x16x512xf32>
    %62 = vector.shape_cast %61 : vector<1x16x512xf32> to vector<16x512xf32>
    %63 = arith.mulf %60, %62 : vector<16x512xf32>
    %c16_47 = arith.constant 16 : index
    %c0_48 = arith.constant 0 : index
    %64 = vector.load %arg8[%c16_47, %c0_48] : memref<152x512xf32, #tpu.memory_space<vmem>>, vector<16x512xf32>
    tpu.vector_store %arg8[%c16_47, %c0_48], %63 {strides = array<i32>} : memref<152x512xf32, #tpu.memory_space<vmem>>, vector<16x512xf32>,
    %c15_i32_49 = arith.constant 15 : i32
    %65 = tpu.dynamic_rotate %54 by %c15_i32_49 dim 1 : vector<16x512xf32>, i32 -> vector<16x512xf32>
    %c2_50 = arith.constant 2 : index
    %c0_51 = arith.constant 0 : index
    %c0_52 = arith.constant 0 : index
    %66 = vector.load %arg2[%c2_50, %c0_51, %c0_52] : memref<9x16x512xf32, #tpu.memory_space<vmem>>, vector<1x16x512xf32>
    %67 = vector.shape_cast %66 : vector<1x16x512xf32> to vector<16x512xf32>
    %68 = arith.mulf %65, %67 : vector<16x512xf32>
    %c32_53 = arith.constant 32 : index
    %c0_54 = arith.constant 0 : index
    %69 = vector.load %arg8[%c32_53, %c0_54] : memref<152x512xf32, #tpu.memory_space<vmem>>, vector<16x512xf32>
    tpu.vector_store %arg8[%c32_53, %c0_54], %68 {strides = array<i32>} : memref<152x512xf32, #tpu.memory_space<vmem>>, vector<16x512xf32>,
    %c1_i32_55 = arith.constant 1 : i32
    %70 = tpu.dynamic_rotate %54 by %c1_i32_55 dim 1 : vector<16x512xf32>, i32 -> vector<16x512xf32>
    %c3_56 = arith.constant 3 : index
    %c0_57 = arith.constant 0 : index
    %c0_58 = arith.constant 0 : index
    %71 = vector.load %arg2[%c3_56, %c0_57, %c0_58] : memref<9x16x512xf32, #tpu.memory_space<vmem>>, vector<1x16x512xf32>
    %72 = vector.shape_cast %71 : vector<1x16x512xf32> to vector<16x512xf32>
    %73 = arith.mulf %70, %72 : vector<16x512xf32>
    %c48_59 = arith.constant 48 : index
    %c0_60 = arith.constant 0 : index
    %74 = vector.load %arg8[%c48_59, %c0_60] : memref<152x512xf32, #tpu.memory_space<vmem>>, vector<16x512xf32>
    tpu.vector_store %arg8[%c48_59, %c0_60], %73 {strides = array<i32>} : memref<152x512xf32, #tpu.memory_space<vmem>>, vector<16x512xf32>,
    %c64_61 = arith.constant 64 : index
    %c0_62 = arith.constant 0 : index
    %75 = vector.load %arg8[%c64_61, %c0_62] : memref<152x512xf32, #tpu.memory_space<vmem>>, vector<16x512xf32>
    tpu.vector_store %arg8[%c64_61, %c0_62], %54 {strides = array<i32>} : memref<152x512xf32, #tpu.memory_space<vmem>>, vector<16x512xf32>,
    %c511_i32_63 = arith.constant 511 : i32
    %76 = tpu.dynamic_rotate %54 by %c511_i32_63 dim 1 : vector<16x512xf32>, i32 -> vector<16x512xf32>
    %c5_64 = arith.constant 5 : index
    %c0_65 = arith.constant 0 : index
    %c0_66 = arith.constant 0 : index
    %77 = vector.load %arg2[%c5_64, %c0_65, %c0_66] : memref<9x16x512xf32, #tpu.memory_space<vmem>>, vector<1x16x512xf32>
    %78 = vector.shape_cast %77 : vector<1x16x512xf32> to vector<16x512xf32>
    %79 = arith.mulf %76, %78 : vector<16x512xf32>
    %c80_67 = arith.constant 80 : index
    %c0_68 = arith.constant 0 : index
    %80 = vector.load %arg8[%c80_67, %c0_68] : memref<152x512xf32, #tpu.memory_space<vmem>>, vector<16x512xf32>
    tpu.vector_store %arg8[%c80_67, %c0_68], %79 {strides = array<i32>} : memref<152x512xf32, #tpu.memory_space<vmem>>, vector<16x512xf32>,
    %c497_i32_69 = arith.constant 497 : i32
    %81 = tpu.dynamic_rotate %54 by %c497_i32_69 dim 1 : vector<16x512xf32>, i32 -> vector<16x512xf32>
    %c6_70 = arith.constant 6 : index
    %c0_71 = arith.constant 0 : index
    %c0_72 = arith.constant 0 : index
    %82 = vector.load %arg2[%c6_70, %c0_71, %c0_72] : memref<9x16x512xf32, #tpu.memory_space<vmem>>, vector<1x16x512xf32>
    %83 = vector.shape_cast %82 : vector<1x16x512xf32> to vector<16x512xf32>
    %84 = arith.mulf %81, %83 : vector<16x512xf32>
    %c96_73 = arith.constant 96 : index
    %c0_74 = arith.constant 0 : index
    %85 = vector.load %arg8[%c96_73, %c0_74] : memref<152x512xf32, #tpu.memory_space<vmem>>, vector<16x512xf32>
    tpu.vector_store %arg8[%c96_73, %c0_74], %84 {strides = array<i32>} : memref<152x512xf32, #tpu.memory_space<vmem>>, vector<16x512xf32>,
    %c496_i32_75 = arith.constant 496 : i32
    %86 = tpu.dynamic_rotate %54 by %c496_i32_75 dim 1 : vector<16x512xf32>, i32 -> vector<16x512xf32>
    %c7_76 = arith.constant 7 : index
    %c0_77 = arith.constant 0 : index
    %c0_78 = arith.constant 0 : index
    %87 = vector.load %arg2[%c7_76, %c0_77, %c0_78] : memref<9x16x512xf32, #tpu.memory_space<vmem>>, vector<1x16x512xf32>
    %88 = vector.shape_cast %87 : vector<1x16x512xf32> to vector<16x512xf32>
    %89 = arith.mulf %86, %88 : vector<16x512xf32>
    %c112_79 = arith.constant 112 : index
    %c0_80 = arith.constant 0 : index
    %90 = vector.load %arg8[%c112_79, %c0_80] : memref<152x512xf32, #tpu.memory_space<vmem>>, vector<16x512xf32>
    tpu.vector_store %arg8[%c112_79, %c0_80], %89 {strides = array<i32>} : memref<152x512xf32, #tpu.memory_space<vmem>>, vector<16x512xf32>,
    %c495_i32_81 = arith.constant 495 : i32
    %91 = tpu.dynamic_rotate %54 by %c495_i32_81 dim 1 : vector<16x512xf32>, i32 -> vector<16x512xf32>
    %c8_82 = arith.constant 8 : index
    %c0_83 = arith.constant 0 : index
    %c0_84 = arith.constant 0 : index
    %92 = vector.load %arg2[%c8_82, %c0_83, %c0_84] : memref<9x16x512xf32, #tpu.memory_space<vmem>>, vector<1x16x512xf32>
    %93 = vector.shape_cast %92 : vector<1x16x512xf32> to vector<16x512xf32>
    %94 = arith.mulf %91, %93 : vector<16x512xf32>
    %c128_85 = arith.constant 128 : index
    %c0_86 = arith.constant 0 : index
    %95 = vector.load %arg8[%c128_85, %c0_86] : memref<152x512xf32, #tpu.memory_space<vmem>>, vector<16x512xf32>
    tpu.vector_store %arg8[%c128_85, %c0_86], %94 {strides = array<i32>} : memref<152x512xf32, #tpu.memory_space<vmem>>, vector<16x512xf32>,
    %c1_87 = arith.constant 1 : index
    %c0_88 = arith.constant 0 : index
    %c0_89 = arith.constant 0 : index
    %96 = vector.load %arg3[%c1_87, %c0_88, %c0_89] : memref<7x16x152xf32, #tpu.memory_space<vmem>>, vector<1x16x152xf32>
    %97 = vector.shape_cast %96 : vector<1x16x152xf32> to vector<16x152xf32>
    %c0_90 = arith.constant 0 : index
    %c0_91 = arith.constant 0 : index
    %98 = vector.load %arg8[%c0_90, %c0_91] : memref<152x512xf32, #tpu.memory_space<vmem>>, vector<152x512xf32>
    %cst_92 = arith.constant dense<0.000000e+00> : vector<16x512xf32>
    %99 = tpu.matmul %97, %98, %cst_92 {dimension_numbers = #tpu.dot_dimension_numbers<[1], [0], [0], [1], [0, 0, 1, 1], [], []>} : vector<16x152xf32>, vector<152x512xf32>, vector<16x512xf32> -> vector<16x512xf32>
    %cst_93 = arith.constant 0.000000e+00 : f32
    %100 = vector.broadcast %cst_93 : f32 to vector<16x512xf32>
    %101 = arith.maximumf %99, %100 : vector<16x512xf32>
    %c17_i32_94 = arith.constant 17 : i32
    %102 = tpu.dynamic_rotate %101 by %c17_i32_94 dim 1 : vector<16x512xf32>, i32 -> vector<16x512xf32>
    %c0_95 = arith.constant 0 : index
    %c0_96 = arith.constant 0 : index
    %c0_97 = arith.constant 0 : index
    %103 = vector.load %arg2[%c0_95, %c0_96, %c0_97] : memref<9x16x512xf32, #tpu.memory_space<vmem>>, vector<1x16x512xf32>
    %104 = vector.shape_cast %103 : vector<1x16x512xf32> to vector<16x512xf32>
    %105 = arith.mulf %102, %104 : vector<16x512xf32>
    %c0_98 = arith.constant 0 : index
    %c0_99 = arith.constant 0 : index
    %106 = vector.load %arg8[%c0_98, %c0_99] : memref<152x512xf32, #tpu.memory_space<vmem>>, vector<16x512xf32>
    tpu.vector_store %arg8[%c0_98, %c0_99], %105 {strides = array<i32>} : memref<152x512xf32, #tpu.memory_space<vmem>>, vector<16x512xf32>,
    %c16_i32_100 = arith.constant 16 : i32
    %107 = tpu.dynamic_rotate %101 by %c16_i32_100 dim 1 : vector<16x512xf32>, i32 -> vector<16x512xf32>
    %c1_101 = arith.constant 1 : index
    %c0_102 = arith.constant 0 : index
    %c0_103 = arith.constant 0 : index
    %108 = vector.load %arg2[%c1_101, %c0_102, %c0_103] : memref<9x16x512xf32, #tpu.memory_space<vmem>>, vector<1x16x512xf32>
    %109 = vector.shape_cast %108 : vector<1x16x512xf32> to vector<16x512xf32>
    %110 = arith.mulf %107, %109 : vector<16x512xf32>
    %c16_104 = arith.constant 16 : index
    %c0_105 = arith.constant 0 : index
    %111 = vector.load %arg8[%c16_104, %c0_105] : memref<152x512xf32, #tpu.memory_space<vmem>>, vector<16x512xf32>
    tpu.vector_store %arg8[%c16_104, %c0_105], %110 {strides = array<i32>} : memref<152x512xf32, #tpu.memory_space<vmem>>, vector<16x512xf32>,
    %c15_i32_106 = arith.constant 15 : i32
    %112 = tpu.dynamic_rotate %101 by %c15_i32_106 dim 1 : vector<16x512xf32>, i32 -> vector<16x512xf32>
    %c2_107 = arith.constant 2 : index
    %c0_108 = arith.constant 0 : index
    %c0_109 = arith.constant 0 : index
    %113 = vector.load %arg2[%c2_107, %c0_108, %c0_109] : memref<9x16x512xf32, #tpu.memory_space<vmem>>, vector<1x16x512xf32>
    %114 = vector.shape_cast %113 : vector<1x16x512xf32> to vector<16x512xf32>
    %115 = arith.mulf %112, %114 : vector<16x512xf32>
    %c32_110 = arith.constant 32 : index
    %c0_111 = arith.constant 0 : index
    %116 = vector.load %arg8[%c32_110, %c0_111] : memref<152x512xf32, #tpu.memory_space<vmem>>, vector<16x512xf32>
    tpu.vector_store %arg8[%c32_110, %c0_111], %115 {strides = array<i32>} : memref<152x512xf32, #tpu.memory_space<vmem>>, vector<16x512xf32>,
    %c1_i32_112 = arith.constant 1 : i32
    %117 = tpu.dynamic_rotate %101 by %c1_i32_112 dim 1 : vector<16x512xf32>, i32 -> vector<16x512xf32>
    %c3_113 = arith.constant 3 : index
    %c0_114 = arith.constant 0 : index
    %c0_115 = arith.constant 0 : index
    %118 = vector.load %arg2[%c3_113, %c0_114, %c0_115] : memref<9x16x512xf32, #tpu.memory_space<vmem>>, vector<1x16x512xf32>
    %119 = vector.shape_cast %118 : vector<1x16x512xf32> to vector<16x512xf32>
    %120 = arith.mulf %117, %119 : vector<16x512xf32>
    %c48_116 = arith.constant 48 : index
    %c0_117 = arith.constant 0 : index
    %121 = vector.load %arg8[%c48_116, %c0_117] : memref<152x512xf32, #tpu.memory_space<vmem>>, vector<16x512xf32>
    tpu.vector_store %arg8[%c48_116, %c0_117], %120 {strides = array<i32>} : memref<152x512xf32, #tpu.memory_space<vmem>>, vector<16x512xf32>,
    %c64_118 = arith.constant 64 : index
    %c0_119 = arith.constant 0 : index
    %122 = vector.load %arg8[%c64_118, %c0_119] : memref<152x512xf32, #tpu.memory_space<vmem>>, vector<16x512xf32>
    tpu.vector_store %arg8[%c64_118, %c0_119], %101 {strides = array<i32>} : memref<152x512xf32, #tpu.memory_space<vmem>>, vector<16x512xf32>,
    %c511_i32_120 = arith.constant 511 : i32
    %123 = tpu.dynamic_rotate %101 by %c511_i32_120 dim 1 : vector<16x512xf32>, i32 -> vector<16x512xf32>
    %c5_121 = arith.constant 5 : index
    %c0_122 = arith.constant 0 : index
    %c0_123 = arith.constant 0 : index
    %124 = vector.load %arg2[%c5_121, %c0_122, %c0_123] : memref<9x16x512xf32, #tpu.memory_space<vmem>>, vector<1x16x512xf32>
    %125 = vector.shape_cast %124 : vector<1x16x512xf32> to vector<16x512xf32>
    %126 = arith.mulf %123, %125 : vector<16x512xf32>
    %c80_124 = arith.constant 80 : index
    %c0_125 = arith.constant 0 : index
    %127 = vector.load %arg8[%c80_124, %c0_125] : memref<152x512xf32, #tpu.memory_space<vmem>>, vector<16x512xf32>
    tpu.vector_store %arg8[%c80_124, %c0_125], %126 {strides = array<i32>} : memref<152x512xf32, #tpu.memory_space<vmem>>, vector<16x512xf32>,
    %c497_i32_126 = arith.constant 497 : i32
    %128 = tpu.dynamic_rotate %101 by %c497_i32_126 dim 1 : vector<16x512xf32>, i32 -> vector<16x512xf32>
    %c6_127 = arith.constant 6 : index
    %c0_128 = arith.constant 0 : index
    %c0_129 = arith.constant 0 : index
    %129 = vector.load %arg2[%c6_127, %c0_128, %c0_129] : memref<9x16x512xf32, #tpu.memory_space<vmem>>, vector<1x16x512xf32>
    %130 = vector.shape_cast %129 : vector<1x16x512xf32> to vector<16x512xf32>
    %131 = arith.mulf %128, %130 : vector<16x512xf32>
    %c96_130 = arith.constant 96 : index
    %c0_131 = arith.constant 0 : index
    %132 = vector.load %arg8[%c96_130, %c0_131] : memref<152x512xf32, #tpu.memory_space<vmem>>, vector<16x512xf32>
    tpu.vector_store %arg8[%c96_130, %c0_131], %131 {strides = array<i32>} : memref<152x512xf32, #tpu.memory_space<vmem>>, vector<16x512xf32>,
    %c496_i32_132 = arith.constant 496 : i32
    %133 = tpu.dynamic_rotate %101 by %c496_i32_132 dim 1 : vector<16x512xf32>, i32 -> vector<16x512xf32>
    %c7_133 = arith.constant 7 : index
    %c0_134 = arith.constant 0 : index
    %c0_135 = arith.constant 0 : index
    %134 = vector.load %arg2[%c7_133, %c0_134, %c0_135] : memref<9x16x512xf32, #tpu.memory_space<vmem>>, vector<1x16x512xf32>
    %135 = vector.shape_cast %134 : vector<1x16x512xf32> to vector<16x512xf32>
    %136 = arith.mulf %133, %135 : vector<16x512xf32>
    %c112_136 = arith.constant 112 : index
    %c0_137 = arith.constant 0 : index
    %137 = vector.load %arg8[%c112_136, %c0_137] : memref<152x512xf32, #tpu.memory_space<vmem>>, vector<16x512xf32>
    tpu.vector_store %arg8[%c112_136, %c0_137], %136 {strides = array<i32>} : memref<152x512xf32, #tpu.memory_space<vmem>>, vector<16x512xf32>,
    %c495_i32_138 = arith.constant 495 : i32
    %138 = tpu.dynamic_rotate %101 by %c495_i32_138 dim 1 : vector<16x512xf32>, i32 -> vector<16x512xf32>
    %c8_139 = arith.constant 8 : index
    %c0_140 = arith.constant 0 : index
    %c0_141 = arith.constant 0 : index
    %139 = vector.load %arg2[%c8_139, %c0_140, %c0_141] : memref<9x16x512xf32, #tpu.memory_space<vmem>>, vector<1x16x512xf32>
    %140 = vector.shape_cast %139 : vector<1x16x512xf32> to vector<16x512xf32>
    %141 = arith.mulf %138, %140 : vector<16x512xf32>
    %c128_142 = arith.constant 128 : index
    %c0_143 = arith.constant 0 : index
    %142 = vector.load %arg8[%c128_142, %c0_143] : memref<152x512xf32, #tpu.memory_space<vmem>>, vector<16x512xf32>
    tpu.vector_store %arg8[%c128_142, %c0_143], %141 {strides = array<i32>} : memref<152x512xf32, #tpu.memory_space<vmem>>, vector<16x512xf32>,
    %c2_144 = arith.constant 2 : index
    %c0_145 = arith.constant 0 : index
    %c0_146 = arith.constant 0 : index
    %143 = vector.load %arg3[%c2_144, %c0_145, %c0_146] : memref<7x16x152xf32, #tpu.memory_space<vmem>>, vector<1x16x152xf32>
    %144 = vector.shape_cast %143 : vector<1x16x152xf32> to vector<16x152xf32>
    %c0_147 = arith.constant 0 : index
    %c0_148 = arith.constant 0 : index
    %145 = vector.load %arg8[%c0_147, %c0_148] : memref<152x512xf32, #tpu.memory_space<vmem>>, vector<152x512xf32>
    %cst_149 = arith.constant dense<0.000000e+00> : vector<16x512xf32>
    %146 = tpu.matmul %144, %145, %cst_149 {dimension_numbers = #tpu.dot_dimension_numbers<[1], [0], [0], [1], [0, 0, 1, 1], [], []>} : vector<16x152xf32>, vector<152x512xf32>, vector<16x512xf32> -> vector<16x512xf32>
    %147 = arith.addf %146, %54 : vector<16x512xf32>
    %cst_150 = arith.constant 0.000000e+00 : f32
    %148 = vector.broadcast %cst_150 : f32 to vector<16x512xf32>
    %149 = arith.maximumf %147, %148 : vector<16x512xf32>
    %c17_i32_151 = arith.constant 17 : i32
    %150 = tpu.dynamic_rotate %149 by %c17_i32_151 dim 1 : vector<16x512xf32>, i32 -> vector<16x512xf32>
    %c0_152 = arith.constant 0 : index
    %c0_153 = arith.constant 0 : index
    %c0_154 = arith.constant 0 : index
    %151 = vector.load %arg2[%c0_152, %c0_153, %c0_154] : memref<9x16x512xf32, #tpu.memory_space<vmem>>, vector<1x16x512xf32>
    %152 = vector.shape_cast %151 : vector<1x16x512xf32> to vector<16x512xf32>
    %153 = arith.mulf %150, %152 : vector<16x512xf32>
    %c0_155 = arith.constant 0 : index
    %c0_156 = arith.constant 0 : index
    %154 = vector.load %arg8[%c0_155, %c0_156] : memref<152x512xf32, #tpu.memory_space<vmem>>, vector<16x512xf32>
    tpu.vector_store %arg8[%c0_155, %c0_156], %153 {strides = array<i32>} : memref<152x512xf32, #tpu.memory_space<vmem>>, vector<16x512xf32>,
    %c16_i32_157 = arith.constant 16 : i32
    %155 = tpu.dynamic_rotate %149 by %c16_i32_157 dim 1 : vector<16x512xf32>, i32 -> vector<16x512xf32>
    %c1_158 = arith.constant 1 : index
    %c0_159 = arith.constant 0 : index
    %c0_160 = arith.constant 0 : index
    %156 = vector.load %arg2[%c1_158, %c0_159, %c0_160] : memref<9x16x512xf32, #tpu.memory_space<vmem>>, vector<1x16x512xf32>
    %157 = vector.shape_cast %156 : vector<1x16x512xf32> to vector<16x512xf32>
    %158 = arith.mulf %155, %157 : vector<16x512xf32>
    %c16_161 = arith.constant 16 : index
    %c0_162 = arith.constant 0 : index
    %159 = vector.load %arg8[%c16_161, %c0_162] : memref<152x512xf32, #tpu.memory_space<vmem>>, vector<16x512xf32>
    tpu.vector_store %arg8[%c16_161, %c0_162], %158 {strides = array<i32>} : memref<152x512xf32, #tpu.memory_space<vmem>>, vector<16x512xf32>,
    %c15_i32_163 = arith.constant 15 : i32
    %160 = tpu.dynamic_rotate %149 by %c15_i32_163 dim 1 : vector<16x512xf32>, i32 -> vector<16x512xf32>
    %c2_164 = arith.constant 2 : index
    %c0_165 = arith.constant 0 : index
    %c0_166 = arith.constant 0 : index
    %161 = vector.load %arg2[%c2_164, %c0_165, %c0_166] : memref<9x16x512xf32, #tpu.memory_space<vmem>>, vector<1x16x512xf32>
    %162 = vector.shape_cast %161 : vector<1x16x512xf32> to vector<16x512xf32>
    %163 = arith.mulf %160, %162 : vector<16x512xf32>
    %c32_167 = arith.constant 32 : index
    %c0_168 = arith.constant 0 : index
    %164 = vector.load %arg8[%c32_167, %c0_168] : memref<152x512xf32, #tpu.memory_space<vmem>>, vector<16x512xf32>
    tpu.vector_store %arg8[%c32_167, %c0_168], %163 {strides = array<i32>} : memref<152x512xf32, #tpu.memory_space<vmem>>, vector<16x512xf32>,
    %c1_i32_169 = arith.constant 1 : i32
    %165 = tpu.dynamic_rotate %149 by %c1_i32_169 dim 1 : vector<16x512xf32>, i32 -> vector<16x512xf32>
    %c3_170 = arith.constant 3 : index
    %c0_171 = arith.constant 0 : index
    %c0_172 = arith.constant 0 : index
    %166 = vector.load %arg2[%c3_170, %c0_171, %c0_172] : memref<9x16x512xf32, #tpu.memory_space<vmem>>, vector<1x16x512xf32>
    %167 = vector.shape_cast %166 : vector<1x16x512xf32> to vector<16x512xf32>
    %168 = arith.mulf %165, %167 : vector<16x512xf32>
    %c48_173 = arith.constant 48 : index
    %c0_174 = arith.constant 0 : index
    %169 = vector.load %arg8[%c48_173, %c0_174] : memref<152x512xf32, #tpu.memory_space<vmem>>, vector<16x512xf32>
    tpu.vector_store %arg8[%c48_173, %c0_174], %168 {strides = array<i32>} : memref<152x512xf32, #tpu.memory_space<vmem>>, vector<16x512xf32>,
    %c64_175 = arith.constant 64 : index
    %c0_176 = arith.constant 0 : index
    %170 = vector.load %arg8[%c64_175, %c0_176] : memref<152x512xf32, #tpu.memory_space<vmem>>, vector<16x512xf32>
    tpu.vector_store %arg8[%c64_175, %c0_176], %149 {strides = array<i32>} : memref<152x512xf32, #tpu.memory_space<vmem>>, vector<16x512xf32>,
    %c511_i32_177 = arith.constant 511 : i32
    %171 = tpu.dynamic_rotate %149 by %c511_i32_177 dim 1 : vector<16x512xf32>, i32 -> vector<16x512xf32>
    %c5_178 = arith.constant 5 : index
    %c0_179 = arith.constant 0 : index
    %c0_180 = arith.constant 0 : index
    %172 = vector.load %arg2[%c5_178, %c0_179, %c0_180] : memref<9x16x512xf32, #tpu.memory_space<vmem>>, vector<1x16x512xf32>
    %173 = vector.shape_cast %172 : vector<1x16x512xf32> to vector<16x512xf32>
    %174 = arith.mulf %171, %173 : vector<16x512xf32>
    %c80_181 = arith.constant 80 : index
    %c0_182 = arith.constant 0 : index
    %175 = vector.load %arg8[%c80_181, %c0_182] : memref<152x512xf32, #tpu.memory_space<vmem>>, vector<16x512xf32>
    tpu.vector_store %arg8[%c80_181, %c0_182], %174 {strides = array<i32>} : memref<152x512xf32, #tpu.memory_space<vmem>>, vector<16x512xf32>,
    %c497_i32_183 = arith.constant 497 : i32
    %176 = tpu.dynamic_rotate %149 by %c497_i32_183 dim 1 : vector<16x512xf32>, i32 -> vector<16x512xf32>
    %c6_184 = arith.constant 6 : index
    %c0_185 = arith.constant 0 : index
    %c0_186 = arith.constant 0 : index
    %177 = vector.load %arg2[%c6_184, %c0_185, %c0_186] : memref<9x16x512xf32, #tpu.memory_space<vmem>>, vector<1x16x512xf32>
    %178 = vector.shape_cast %177 : vector<1x16x512xf32> to vector<16x512xf32>
    %179 = arith.mulf %176, %178 : vector<16x512xf32>
    %c96_187 = arith.constant 96 : index
    %c0_188 = arith.constant 0 : index
    %180 = vector.load %arg8[%c96_187, %c0_188] : memref<152x512xf32, #tpu.memory_space<vmem>>, vector<16x512xf32>
    tpu.vector_store %arg8[%c96_187, %c0_188], %179 {strides = array<i32>} : memref<152x512xf32, #tpu.memory_space<vmem>>, vector<16x512xf32>,
    %c496_i32_189 = arith.constant 496 : i32
    %181 = tpu.dynamic_rotate %149 by %c496_i32_189 dim 1 : vector<16x512xf32>, i32 -> vector<16x512xf32>
    %c7_190 = arith.constant 7 : index
    %c0_191 = arith.constant 0 : index
    %c0_192 = arith.constant 0 : index
    %182 = vector.load %arg2[%c7_190, %c0_191, %c0_192] : memref<9x16x512xf32, #tpu.memory_space<vmem>>, vector<1x16x512xf32>
    %183 = vector.shape_cast %182 : vector<1x16x512xf32> to vector<16x512xf32>
    %184 = arith.mulf %181, %183 : vector<16x512xf32>
    %c112_193 = arith.constant 112 : index
    %c0_194 = arith.constant 0 : index
    %185 = vector.load %arg8[%c112_193, %c0_194] : memref<152x512xf32, #tpu.memory_space<vmem>>, vector<16x512xf32>
    tpu.vector_store %arg8[%c112_193, %c0_194], %184 {strides = array<i32>} : memref<152x512xf32, #tpu.memory_space<vmem>>, vector<16x512xf32>,
    %c495_i32_195 = arith.constant 495 : i32
    %186 = tpu.dynamic_rotate %149 by %c495_i32_195 dim 1 : vector<16x512xf32>, i32 -> vector<16x512xf32>
    %c8_196 = arith.constant 8 : index
    %c0_197 = arith.constant 0 : index
    %c0_198 = arith.constant 0 : index
    %187 = vector.load %arg2[%c8_196, %c0_197, %c0_198] : memref<9x16x512xf32, #tpu.memory_space<vmem>>, vector<1x16x512xf32>
    %188 = vector.shape_cast %187 : vector<1x16x512xf32> to vector<16x512xf32>
    %189 = arith.mulf %186, %188 : vector<16x512xf32>
    %c128_199 = arith.constant 128 : index
    %c0_200 = arith.constant 0 : index
    %190 = vector.load %arg8[%c128_199, %c0_200] : memref<152x512xf32, #tpu.memory_space<vmem>>, vector<16x512xf32>
    tpu.vector_store %arg8[%c128_199, %c0_200], %189 {strides = array<i32>} : memref<152x512xf32, #tpu.memory_space<vmem>>, vector<16x512xf32>,
    %c3_201 = arith.constant 3 : index
    %c0_202 = arith.constant 0 : index
    %c0_203 = arith.constant 0 : index
    %191 = vector.load %arg3[%c3_201, %c0_202, %c0_203] : memref<7x16x152xf32, #tpu.memory_space<vmem>>, vector<1x16x152xf32>
    %192 = vector.shape_cast %191 : vector<1x16x152xf32> to vector<16x152xf32>
    %c0_204 = arith.constant 0 : index
    %c0_205 = arith.constant 0 : index
    %193 = vector.load %arg8[%c0_204, %c0_205] : memref<152x512xf32, #tpu.memory_space<vmem>>, vector<152x512xf32>
    %cst_206 = arith.constant dense<0.000000e+00> : vector<16x512xf32>
    %194 = tpu.matmul %192, %193, %cst_206 {dimension_numbers = #tpu.dot_dimension_numbers<[1], [0], [0], [1], [0, 0, 1, 1], [], []>} : vector<16x152xf32>, vector<152x512xf32>, vector<16x512xf32> -> vector<16x512xf32>
    %cst_207 = arith.constant 0.000000e+00 : f32
    %195 = vector.broadcast %cst_207 : f32 to vector<16x512xf32>
    %196 = arith.maximumf %194, %195 : vector<16x512xf32>
    %c17_i32_208 = arith.constant 17 : i32
    %197 = tpu.dynamic_rotate %196 by %c17_i32_208 dim 1 : vector<16x512xf32>, i32 -> vector<16x512xf32>
    %c0_209 = arith.constant 0 : index
    %c0_210 = arith.constant 0 : index
    %c0_211 = arith.constant 0 : index
    %198 = vector.load %arg2[%c0_209, %c0_210, %c0_211] : memref<9x16x512xf32, #tpu.memory_space<vmem>>, vector<1x16x512xf32>
    %199 = vector.shape_cast %198 : vector<1x16x512xf32> to vector<16x512xf32>
    %200 = arith.mulf %197, %199 : vector<16x512xf32>
    %c0_212 = arith.constant 0 : index
    %c0_213 = arith.constant 0 : index
    %201 = vector.load %arg8[%c0_212, %c0_213] : memref<152x512xf32, #tpu.memory_space<vmem>>, vector<16x512xf32>
    tpu.vector_store %arg8[%c0_212, %c0_213], %200 {strides = array<i32>} : memref<152x512xf32, #tpu.memory_space<vmem>>, vector<16x512xf32>,
    %c16_i32_214 = arith.constant 16 : i32
    %202 = tpu.dynamic_rotate %196 by %c16_i32_214 dim 1 : vector<16x512xf32>, i32 -> vector<16x512xf32>
    %c1_215 = arith.constant 1 : index
    %c0_216 = arith.constant 0 : index
    %c0_217 = arith.constant 0 : index
    %203 = vector.load %arg2[%c1_215, %c0_216, %c0_217] : memref<9x16x512xf32, #tpu.memory_space<vmem>>, vector<1x16x512xf32>
    %204 = vector.shape_cast %203 : vector<1x16x512xf32> to vector<16x512xf32>
    %205 = arith.mulf %202, %204 : vector<16x512xf32>
    %c16_218 = arith.constant 16 : index
    %c0_219 = arith.constant 0 : index
    %206 = vector.load %arg8[%c16_218, %c0_219] : memref<152x512xf32, #tpu.memory_space<vmem>>, vector<16x512xf32>
    tpu.vector_store %arg8[%c16_218, %c0_219], %205 {strides = array<i32>} : memref<152x512xf32, #tpu.memory_space<vmem>>, vector<16x512xf32>,
    %c15_i32_220 = arith.constant 15 : i32
    %207 = tpu.dynamic_rotate %196 by %c15_i32_220 dim 1 : vector<16x512xf32>, i32 -> vector<16x512xf32>
    %c2_221 = arith.constant 2 : index
    %c0_222 = arith.constant 0 : index
    %c0_223 = arith.constant 0 : index
    %208 = vector.load %arg2[%c2_221, %c0_222, %c0_223] : memref<9x16x512xf32, #tpu.memory_space<vmem>>, vector<1x16x512xf32>
    %209 = vector.shape_cast %208 : vector<1x16x512xf32> to vector<16x512xf32>
    %210 = arith.mulf %207, %209 : vector<16x512xf32>
    %c32_224 = arith.constant 32 : index
    %c0_225 = arith.constant 0 : index
    %211 = vector.load %arg8[%c32_224, %c0_225] : memref<152x512xf32, #tpu.memory_space<vmem>>, vector<16x512xf32>
    tpu.vector_store %arg8[%c32_224, %c0_225], %210 {strides = array<i32>} : memref<152x512xf32, #tpu.memory_space<vmem>>, vector<16x512xf32>,
    %c1_i32_226 = arith.constant 1 : i32
    %212 = tpu.dynamic_rotate %196 by %c1_i32_226 dim 1 : vector<16x512xf32>, i32 -> vector<16x512xf32>
    %c3_227 = arith.constant 3 : index
    %c0_228 = arith.constant 0 : index
    %c0_229 = arith.constant 0 : index
    %213 = vector.load %arg2[%c3_227, %c0_228, %c0_229] : memref<9x16x512xf32, #tpu.memory_space<vmem>>, vector<1x16x512xf32>
    %214 = vector.shape_cast %213 : vector<1x16x512xf32> to vector<16x512xf32>
    %215 = arith.mulf %212, %214 : vector<16x512xf32>
    %c48_230 = arith.constant 48 : index
    %c0_231 = arith.constant 0 : index
    %216 = vector.load %arg8[%c48_230, %c0_231] : memref<152x512xf32, #tpu.memory_space<vmem>>, vector<16x512xf32>
    tpu.vector_store %arg8[%c48_230, %c0_231], %215 {strides = array<i32>} : memref<152x512xf32, #tpu.memory_space<vmem>>, vector<16x512xf32>,
    %c64_232 = arith.constant 64 : index
    %c0_233 = arith.constant 0 : index
    %217 = vector.load %arg8[%c64_232, %c0_233] : memref<152x512xf32, #tpu.memory_space<vmem>>, vector<16x512xf32>
    tpu.vector_store %arg8[%c64_232, %c0_233], %196 {strides = array<i32>} : memref<152x512xf32, #tpu.memory_space<vmem>>, vector<16x512xf32>,
    %c511_i32_234 = arith.constant 511 : i32
    %218 = tpu.dynamic_rotate %196 by %c511_i32_234 dim 1 : vector<16x512xf32>, i32 -> vector<16x512xf32>
    %c5_235 = arith.constant 5 : index
    %c0_236 = arith.constant 0 : index
    %c0_237 = arith.constant 0 : index
    %219 = vector.load %arg2[%c5_235, %c0_236, %c0_237] : memref<9x16x512xf32, #tpu.memory_space<vmem>>, vector<1x16x512xf32>
    %220 = vector.shape_cast %219 : vector<1x16x512xf32> to vector<16x512xf32>
    %221 = arith.mulf %218, %220 : vector<16x512xf32>
    %c80_238 = arith.constant 80 : index
    %c0_239 = arith.constant 0 : index
    %222 = vector.load %arg8[%c80_238, %c0_239] : memref<152x512xf32, #tpu.memory_space<vmem>>, vector<16x512xf32>
    tpu.vector_store %arg8[%c80_238, %c0_239], %221 {strides = array<i32>} : memref<152x512xf32, #tpu.memory_space<vmem>>, vector<16x512xf32>,
    %c497_i32_240 = arith.constant 497 : i32
    %223 = tpu.dynamic_rotate %196 by %c497_i32_240 dim 1 : vector<16x512xf32>, i32 -> vector<16x512xf32>
    %c6_241 = arith.constant 6 : index
    %c0_242 = arith.constant 0 : index
    %c0_243 = arith.constant 0 : index
    %224 = vector.load %arg2[%c6_241, %c0_242, %c0_243] : memref<9x16x512xf32, #tpu.memory_space<vmem>>, vector<1x16x512xf32>
    %225 = vector.shape_cast %224 : vector<1x16x512xf32> to vector<16x512xf32>
    %226 = arith.mulf %223, %225 : vector<16x512xf32>
    %c96_244 = arith.constant 96 : index
    %c0_245 = arith.constant 0 : index
    %227 = vector.load %arg8[%c96_244, %c0_245] : memref<152x512xf32, #tpu.memory_space<vmem>>, vector<16x512xf32>
    tpu.vector_store %arg8[%c96_244, %c0_245], %226 {strides = array<i32>} : memref<152x512xf32, #tpu.memory_space<vmem>>, vector<16x512xf32>,
    %c496_i32_246 = arith.constant 496 : i32
    %228 = tpu.dynamic_rotate %196 by %c496_i32_246 dim 1 : vector<16x512xf32>, i32 -> vector<16x512xf32>
    %c7_247 = arith.constant 7 : index
    %c0_248 = arith.constant 0 : index
    %c0_249 = arith.constant 0 : index
    %229 = vector.load %arg2[%c7_247, %c0_248, %c0_249] : memref<9x16x512xf32, #tpu.memory_space<vmem>>, vector<1x16x512xf32>
    %230 = vector.shape_cast %229 : vector<1x16x512xf32> to vector<16x512xf32>
    %231 = arith.mulf %228, %230 : vector<16x512xf32>
    %c112_250 = arith.constant 112 : index
    %c0_251 = arith.constant 0 : index
    %232 = vector.load %arg8[%c112_250, %c0_251] : memref<152x512xf32, #tpu.memory_space<vmem>>, vector<16x512xf32>
    tpu.vector_store %arg8[%c112_250, %c0_251], %231 {strides = array<i32>} : memref<152x512xf32, #tpu.memory_space<vmem>>, vector<16x512xf32>,
    %c495_i32_252 = arith.constant 495 : i32
    %233 = tpu.dynamic_rotate %196 by %c495_i32_252 dim 1 : vector<16x512xf32>, i32 -> vector<16x512xf32>
    %c8_253 = arith.constant 8 : index
    %c0_254 = arith.constant 0 : index
    %c0_255 = arith.constant 0 : index
    %234 = vector.load %arg2[%c8_253, %c0_254, %c0_255] : memref<9x16x512xf32, #tpu.memory_space<vmem>>, vector<1x16x512xf32>
    %235 = vector.shape_cast %234 : vector<1x16x512xf32> to vector<16x512xf32>
    %236 = arith.mulf %233, %235 : vector<16x512xf32>
    %c128_256 = arith.constant 128 : index
    %c0_257 = arith.constant 0 : index
    %237 = vector.load %arg8[%c128_256, %c0_257] : memref<152x512xf32, #tpu.memory_space<vmem>>, vector<16x512xf32>
    tpu.vector_store %arg8[%c128_256, %c0_257], %236 {strides = array<i32>} : memref<152x512xf32, #tpu.memory_space<vmem>>, vector<16x512xf32>,
    %c4 = arith.constant 4 : index
    %c0_258 = arith.constant 0 : index
    %c0_259 = arith.constant 0 : index
    %238 = vector.load %arg3[%c4, %c0_258, %c0_259] : memref<7x16x152xf32, #tpu.memory_space<vmem>>, vector<1x16x152xf32>
    %239 = vector.shape_cast %238 : vector<1x16x152xf32> to vector<16x152xf32>
    %c0_260 = arith.constant 0 : index
    %c0_261 = arith.constant 0 : index
    %240 = vector.load %arg8[%c0_260, %c0_261] : memref<152x512xf32, #tpu.memory_space<vmem>>, vector<152x512xf32>
    %cst_262 = arith.constant dense<0.000000e+00> : vector<16x512xf32>
    %241 = tpu.matmul %239, %240, %cst_262 {dimension_numbers = #tpu.dot_dimension_numbers<[1], [0], [0], [1], [0, 0, 1, 1], [], []>} : vector<16x152xf32>, vector<152x512xf32>, vector<16x512xf32> -> vector<16x512xf32>
    %242 = arith.addf %241, %149 : vector<16x512xf32>
    %cst_263 = arith.constant 0.000000e+00 : f32
    %243 = vector.broadcast %cst_263 : f32 to vector<16x512xf32>
    %244 = arith.maximumf %242, %243 : vector<16x512xf32>
    %c17_i32_264 = arith.constant 17 : i32
    %245 = tpu.dynamic_rotate %244 by %c17_i32_264 dim 1 : vector<16x512xf32>, i32 -> vector<16x512xf32>
    %c0_265 = arith.constant 0 : index
    %c0_266 = arith.constant 0 : index
    %c0_267 = arith.constant 0 : index
    %246 = vector.load %arg2[%c0_265, %c0_266, %c0_267] : memref<9x16x512xf32, #tpu.memory_space<vmem>>, vector<1x16x512xf32>
    %247 = vector.shape_cast %246 : vector<1x16x512xf32> to vector<16x512xf32>
    %248 = arith.mulf %245, %247 : vector<16x512xf32>
    %c0_268 = arith.constant 0 : index
    %c0_269 = arith.constant 0 : index
    %249 = vector.load %arg8[%c0_268, %c0_269] : memref<152x512xf32, #tpu.memory_space<vmem>>, vector<16x512xf32>
    tpu.vector_store %arg8[%c0_268, %c0_269], %248 {strides = array<i32>} : memref<152x512xf32, #tpu.memory_space<vmem>>, vector<16x512xf32>,
    %c16_i32_270 = arith.constant 16 : i32
    %250 = tpu.dynamic_rotate %244 by %c16_i32_270 dim 1 : vector<16x512xf32>, i32 -> vector<16x512xf32>
    %c1_271 = arith.constant 1 : index
    %c0_272 = arith.constant 0 : index
    %c0_273 = arith.constant 0 : index
    %251 = vector.load %arg2[%c1_271, %c0_272, %c0_273] : memref<9x16x512xf32, #tpu.memory_space<vmem>>, vector<1x16x512xf32>
    %252 = vector.shape_cast %251 : vector<1x16x512xf32> to vector<16x512xf32>
    %253 = arith.mulf %250, %252 : vector<16x512xf32>
    %c16_274 = arith.constant 16 : index
    %c0_275 = arith.constant 0 : index
    %254 = vector.load %arg8[%c16_274, %c0_275] : memref<152x512xf32, #tpu.memory_space<vmem>>, vector<16x512xf32>
    tpu.vector_store %arg8[%c16_274, %c0_275], %253 {strides = array<i32>} : memref<152x512xf32, #tpu.memory_space<vmem>>, vector<16x512xf32>,
    %c15_i32_276 = arith.constant 15 : i32
    %255 = tpu.dynamic_rotate %244 by %c15_i32_276 dim 1 : vector<16x512xf32>, i32 -> vector<16x512xf32>
    %c2_277 = arith.constant 2 : index
    %c0_278 = arith.constant 0 : index
    %c0_279 = arith.constant 0 : index
    %256 = vector.load %arg2[%c2_277, %c0_278, %c0_279] : memref<9x16x512xf32, #tpu.memory_space<vmem>>, vector<1x16x512xf32>
    %257 = vector.shape_cast %256 : vector<1x16x512xf32> to vector<16x512xf32>
    %258 = arith.mulf %255, %257 : vector<16x512xf32>
    %c32_280 = arith.constant 32 : index
    %c0_281 = arith.constant 0 : index
    %259 = vector.load %arg8[%c32_280, %c0_281] : memref<152x512xf32, #tpu.memory_space<vmem>>, vector<16x512xf32>
    tpu.vector_store %arg8[%c32_280, %c0_281], %258 {strides = array<i32>} : memref<152x512xf32, #tpu.memory_space<vmem>>, vector<16x512xf32>,
    %c1_i32_282 = arith.constant 1 : i32
    %260 = tpu.dynamic_rotate %244 by %c1_i32_282 dim 1 : vector<16x512xf32>, i32 -> vector<16x512xf32>
    %c3_283 = arith.constant 3 : index
    %c0_284 = arith.constant 0 : index
    %c0_285 = arith.constant 0 : index
    %261 = vector.load %arg2[%c3_283, %c0_284, %c0_285] : memref<9x16x512xf32, #tpu.memory_space<vmem>>, vector<1x16x512xf32>
    %262 = vector.shape_cast %261 : vector<1x16x512xf32> to vector<16x512xf32>
    %263 = arith.mulf %260, %262 : vector<16x512xf32>
    %c48_286 = arith.constant 48 : index
    %c0_287 = arith.constant 0 : index
    %264 = vector.load %arg8[%c48_286, %c0_287] : memref<152x512xf32, #tpu.memory_space<vmem>>, vector<16x512xf32>
    tpu.vector_store %arg8[%c48_286, %c0_287], %263 {strides = array<i32>} : memref<152x512xf32, #tpu.memory_space<vmem>>, vector<16x512xf32>,
    %c64_288 = arith.constant 64 : index
    %c0_289 = arith.constant 0 : index
    %265 = vector.load %arg8[%c64_288, %c0_289] : memref<152x512xf32, #tpu.memory_space<vmem>>, vector<16x512xf32>
    tpu.vector_store %arg8[%c64_288, %c0_289], %244 {strides = array<i32>} : memref<152x512xf32, #tpu.memory_space<vmem>>, vector<16x512xf32>,
    %c511_i32_290 = arith.constant 511 : i32
    %266 = tpu.dynamic_rotate %244 by %c511_i32_290 dim 1 : vector<16x512xf32>, i32 -> vector<16x512xf32>
    %c5_291 = arith.constant 5 : index
    %c0_292 = arith.constant 0 : index
    %c0_293 = arith.constant 0 : index
    %267 = vector.load %arg2[%c5_291, %c0_292, %c0_293] : memref<9x16x512xf32, #tpu.memory_space<vmem>>, vector<1x16x512xf32>
    %268 = vector.shape_cast %267 : vector<1x16x512xf32> to vector<16x512xf32>
    %269 = arith.mulf %266, %268 : vector<16x512xf32>
    %c80_294 = arith.constant 80 : index
    %c0_295 = arith.constant 0 : index
    %270 = vector.load %arg8[%c80_294, %c0_295] : memref<152x512xf32, #tpu.memory_space<vmem>>, vector<16x512xf32>
    tpu.vector_store %arg8[%c80_294, %c0_295], %269 {strides = array<i32>} : memref<152x512xf32, #tpu.memory_space<vmem>>, vector<16x512xf32>,
    %c497_i32_296 = arith.constant 497 : i32
    %271 = tpu.dynamic_rotate %244 by %c497_i32_296 dim 1 : vector<16x512xf32>, i32 -> vector<16x512xf32>
    %c6_297 = arith.constant 6 : index
    %c0_298 = arith.constant 0 : index
    %c0_299 = arith.constant 0 : index
    %272 = vector.load %arg2[%c6_297, %c0_298, %c0_299] : memref<9x16x512xf32, #tpu.memory_space<vmem>>, vector<1x16x512xf32>
    %273 = vector.shape_cast %272 : vector<1x16x512xf32> to vector<16x512xf32>
    %274 = arith.mulf %271, %273 : vector<16x512xf32>
    %c96_300 = arith.constant 96 : index
    %c0_301 = arith.constant 0 : index
    %275 = vector.load %arg8[%c96_300, %c0_301] : memref<152x512xf32, #tpu.memory_space<vmem>>, vector<16x512xf32>
    tpu.vector_store %arg8[%c96_300, %c0_301], %274 {strides = array<i32>} : memref<152x512xf32, #tpu.memory_space<vmem>>, vector<16x512xf32>,
    %c496_i32_302 = arith.constant 496 : i32
    %276 = tpu.dynamic_rotate %244 by %c496_i32_302 dim 1 : vector<16x512xf32>, i32 -> vector<16x512xf32>
    %c7_303 = arith.constant 7 : index
    %c0_304 = arith.constant 0 : index
    %c0_305 = arith.constant 0 : index
    %277 = vector.load %arg2[%c7_303, %c0_304, %c0_305] : memref<9x16x512xf32, #tpu.memory_space<vmem>>, vector<1x16x512xf32>
    %278 = vector.shape_cast %277 : vector<1x16x512xf32> to vector<16x512xf32>
    %279 = arith.mulf %276, %278 : vector<16x512xf32>
    %c112_306 = arith.constant 112 : index
    %c0_307 = arith.constant 0 : index
    %280 = vector.load %arg8[%c112_306, %c0_307] : memref<152x512xf32, #tpu.memory_space<vmem>>, vector<16x512xf32>
    tpu.vector_store %arg8[%c112_306, %c0_307], %279 {strides = array<i32>} : memref<152x512xf32, #tpu.memory_space<vmem>>, vector<16x512xf32>,
    %c495_i32_308 = arith.constant 495 : i32
    %281 = tpu.dynamic_rotate %244 by %c495_i32_308 dim 1 : vector<16x512xf32>, i32 -> vector<16x512xf32>
    %c8_309 = arith.constant 8 : index
    %c0_310 = arith.constant 0 : index
    %c0_311 = arith.constant 0 : index
    %282 = vector.load %arg2[%c8_309, %c0_310, %c0_311] : memref<9x16x512xf32, #tpu.memory_space<vmem>>, vector<1x16x512xf32>
    %283 = vector.shape_cast %282 : vector<1x16x512xf32> to vector<16x512xf32>
    %284 = arith.mulf %281, %283 : vector<16x512xf32>
    %c128_312 = arith.constant 128 : index
    %c0_313 = arith.constant 0 : index
    %285 = vector.load %arg8[%c128_312, %c0_313] : memref<152x512xf32, #tpu.memory_space<vmem>>, vector<16x512xf32>
    tpu.vector_store %arg8[%c128_312, %c0_313], %284 {strides = array<i32>} : memref<152x512xf32, #tpu.memory_space<vmem>>, vector<16x512xf32>,
    %c5_314 = arith.constant 5 : index
    %c0_315 = arith.constant 0 : index
    %c0_316 = arith.constant 0 : index
    %286 = vector.load %arg3[%c5_314, %c0_315, %c0_316] : memref<7x16x152xf32, #tpu.memory_space<vmem>>, vector<1x16x152xf32>
    %287 = vector.shape_cast %286 : vector<1x16x152xf32> to vector<16x152xf32>
    %c0_317 = arith.constant 0 : index
    %c0_318 = arith.constant 0 : index
    %288 = vector.load %arg8[%c0_317, %c0_318] : memref<152x512xf32, #tpu.memory_space<vmem>>, vector<152x512xf32>
    %cst_319 = arith.constant dense<0.000000e+00> : vector<16x512xf32>
    %289 = tpu.matmul %287, %288, %cst_319 {dimension_numbers = #tpu.dot_dimension_numbers<[1], [0], [0], [1], [0, 0, 1, 1], [], []>} : vector<16x152xf32>, vector<152x512xf32>, vector<16x512xf32> -> vector<16x512xf32>
    %cst_320 = arith.constant 0.000000e+00 : f32
    %290 = vector.broadcast %cst_320 : f32 to vector<16x512xf32>
    %291 = arith.maximumf %289, %290 : vector<16x512xf32>
    %c17_i32_321 = arith.constant 17 : i32
    %292 = tpu.dynamic_rotate %291 by %c17_i32_321 dim 1 : vector<16x512xf32>, i32 -> vector<16x512xf32>
    %c0_322 = arith.constant 0 : index
    %c0_323 = arith.constant 0 : index
    %c0_324 = arith.constant 0 : index
    %293 = vector.load %arg2[%c0_322, %c0_323, %c0_324] : memref<9x16x512xf32, #tpu.memory_space<vmem>>, vector<1x16x512xf32>
    %294 = vector.shape_cast %293 : vector<1x16x512xf32> to vector<16x512xf32>
    %295 = arith.mulf %292, %294 : vector<16x512xf32>
    %c0_325 = arith.constant 0 : index
    %c0_326 = arith.constant 0 : index
    %296 = vector.load %arg8[%c0_325, %c0_326] : memref<152x512xf32, #tpu.memory_space<vmem>>, vector<16x512xf32>
    tpu.vector_store %arg8[%c0_325, %c0_326], %295 {strides = array<i32>} : memref<152x512xf32, #tpu.memory_space<vmem>>, vector<16x512xf32>,
    %c16_i32_327 = arith.constant 16 : i32
    %297 = tpu.dynamic_rotate %291 by %c16_i32_327 dim 1 : vector<16x512xf32>, i32 -> vector<16x512xf32>
    %c1_328 = arith.constant 1 : index
    %c0_329 = arith.constant 0 : index
    %c0_330 = arith.constant 0 : index
    %298 = vector.load %arg2[%c1_328, %c0_329, %c0_330] : memref<9x16x512xf32, #tpu.memory_space<vmem>>, vector<1x16x512xf32>
    %299 = vector.shape_cast %298 : vector<1x16x512xf32> to vector<16x512xf32>
    %300 = arith.mulf %297, %299 : vector<16x512xf32>
    %c16_331 = arith.constant 16 : index
    %c0_332 = arith.constant 0 : index
    %301 = vector.load %arg8[%c16_331, %c0_332] : memref<152x512xf32, #tpu.memory_space<vmem>>, vector<16x512xf32>
    tpu.vector_store %arg8[%c16_331, %c0_332], %300 {strides = array<i32>} : memref<152x512xf32, #tpu.memory_space<vmem>>, vector<16x512xf32>,
    %c15_i32_333 = arith.constant 15 : i32
    %302 = tpu.dynamic_rotate %291 by %c15_i32_333 dim 1 : vector<16x512xf32>, i32 -> vector<16x512xf32>
    %c2_334 = arith.constant 2 : index
    %c0_335 = arith.constant 0 : index
    %c0_336 = arith.constant 0 : index
    %303 = vector.load %arg2[%c2_334, %c0_335, %c0_336] : memref<9x16x512xf32, #tpu.memory_space<vmem>>, vector<1x16x512xf32>
    %304 = vector.shape_cast %303 : vector<1x16x512xf32> to vector<16x512xf32>
    %305 = arith.mulf %302, %304 : vector<16x512xf32>
    %c32_337 = arith.constant 32 : index
    %c0_338 = arith.constant 0 : index
    %306 = vector.load %arg8[%c32_337, %c0_338] : memref<152x512xf32, #tpu.memory_space<vmem>>, vector<16x512xf32>
    tpu.vector_store %arg8[%c32_337, %c0_338], %305 {strides = array<i32>} : memref<152x512xf32, #tpu.memory_space<vmem>>, vector<16x512xf32>,
    %c1_i32_339 = arith.constant 1 : i32
    %307 = tpu.dynamic_rotate %291 by %c1_i32_339 dim 1 : vector<16x512xf32>, i32 -> vector<16x512xf32>
    %c3_340 = arith.constant 3 : index
    %c0_341 = arith.constant 0 : index
    %c0_342 = arith.constant 0 : index
    %308 = vector.load %arg2[%c3_340, %c0_341, %c0_342] : memref<9x16x512xf32, #tpu.memory_space<vmem>>, vector<1x16x512xf32>
    %309 = vector.shape_cast %308 : vector<1x16x512xf32> to vector<16x512xf32>
    %310 = arith.mulf %307, %309 : vector<16x512xf32>
    %c48_343 = arith.constant 48 : index
    %c0_344 = arith.constant 0 : index
    %311 = vector.load %arg8[%c48_343, %c0_344] : memref<152x512xf32, #tpu.memory_space<vmem>>, vector<16x512xf32>
    tpu.vector_store %arg8[%c48_343, %c0_344], %310 {strides = array<i32>} : memref<152x512xf32, #tpu.memory_space<vmem>>, vector<16x512xf32>,
    %c64_345 = arith.constant 64 : index
    %c0_346 = arith.constant 0 : index
    %312 = vector.load %arg8[%c64_345, %c0_346] : memref<152x512xf32, #tpu.memory_space<vmem>>, vector<16x512xf32>
    tpu.vector_store %arg8[%c64_345, %c0_346], %291 {strides = array<i32>} : memref<152x512xf32, #tpu.memory_space<vmem>>, vector<16x512xf32>,
    %c511_i32_347 = arith.constant 511 : i32
    %313 = tpu.dynamic_rotate %291 by %c511_i32_347 dim 1 : vector<16x512xf32>, i32 -> vector<16x512xf32>
    %c5_348 = arith.constant 5 : index
    %c0_349 = arith.constant 0 : index
    %c0_350 = arith.constant 0 : index
    %314 = vector.load %arg2[%c5_348, %c0_349, %c0_350] : memref<9x16x512xf32, #tpu.memory_space<vmem>>, vector<1x16x512xf32>
    %315 = vector.shape_cast %314 : vector<1x16x512xf32> to vector<16x512xf32>
    %316 = arith.mulf %313, %315 : vector<16x512xf32>
    %c80_351 = arith.constant 80 : index
    %c0_352 = arith.constant 0 : index
    %317 = vector.load %arg8[%c80_351, %c0_352] : memref<152x512xf32, #tpu.memory_space<vmem>>, vector<16x512xf32>
    tpu.vector_store %arg8[%c80_351, %c0_352], %316 {strides = array<i32>} : memref<152x512xf32, #tpu.memory_space<vmem>>, vector<16x512xf32>,
    %c497_i32_353 = arith.constant 497 : i32
    %318 = tpu.dynamic_rotate %291 by %c497_i32_353 dim 1 : vector<16x512xf32>, i32 -> vector<16x512xf32>
    %c6_354 = arith.constant 6 : index
    %c0_355 = arith.constant 0 : index
    %c0_356 = arith.constant 0 : index
    %319 = vector.load %arg2[%c6_354, %c0_355, %c0_356] : memref<9x16x512xf32, #tpu.memory_space<vmem>>, vector<1x16x512xf32>
    %320 = vector.shape_cast %319 : vector<1x16x512xf32> to vector<16x512xf32>
    %321 = arith.mulf %318, %320 : vector<16x512xf32>
    %c96_357 = arith.constant 96 : index
    %c0_358 = arith.constant 0 : index
    %322 = vector.load %arg8[%c96_357, %c0_358] : memref<152x512xf32, #tpu.memory_space<vmem>>, vector<16x512xf32>
    tpu.vector_store %arg8[%c96_357, %c0_358], %321 {strides = array<i32>} : memref<152x512xf32, #tpu.memory_space<vmem>>, vector<16x512xf32>,
    %c496_i32_359 = arith.constant 496 : i32
    %323 = tpu.dynamic_rotate %291 by %c496_i32_359 dim 1 : vector<16x512xf32>, i32 -> vector<16x512xf32>
    %c7_360 = arith.constant 7 : index
    %c0_361 = arith.constant 0 : index
    %c0_362 = arith.constant 0 : index
    %324 = vector.load %arg2[%c7_360, %c0_361, %c0_362] : memref<9x16x512xf32, #tpu.memory_space<vmem>>, vector<1x16x512xf32>
    %325 = vector.shape_cast %324 : vector<1x16x512xf32> to vector<16x512xf32>
    %326 = arith.mulf %323, %325 : vector<16x512xf32>
    %c112_363 = arith.constant 112 : index
    %c0_364 = arith.constant 0 : index
    %327 = vector.load %arg8[%c112_363, %c0_364] : memref<152x512xf32, #tpu.memory_space<vmem>>, vector<16x512xf32>
    tpu.vector_store %arg8[%c112_363, %c0_364], %326 {strides = array<i32>} : memref<152x512xf32, #tpu.memory_space<vmem>>, vector<16x512xf32>,
    %c495_i32_365 = arith.constant 495 : i32
    %328 = tpu.dynamic_rotate %291 by %c495_i32_365 dim 1 : vector<16x512xf32>, i32 -> vector<16x512xf32>
    %c8_366 = arith.constant 8 : index
    %c0_367 = arith.constant 0 : index
    %c0_368 = arith.constant 0 : index
    %329 = vector.load %arg2[%c8_366, %c0_367, %c0_368] : memref<9x16x512xf32, #tpu.memory_space<vmem>>, vector<1x16x512xf32>
    %330 = vector.shape_cast %329 : vector<1x16x512xf32> to vector<16x512xf32>
    %331 = arith.mulf %328, %330 : vector<16x512xf32>
    %c128_369 = arith.constant 128 : index
    %c0_370 = arith.constant 0 : index
    %332 = vector.load %arg8[%c128_369, %c0_370] : memref<152x512xf32, #tpu.memory_space<vmem>>, vector<16x512xf32>
    tpu.vector_store %arg8[%c128_369, %c0_370], %331 {strides = array<i32>} : memref<152x512xf32, #tpu.memory_space<vmem>>, vector<16x512xf32>,
    %c6_371 = arith.constant 6 : index
    %c0_372 = arith.constant 0 : index
    %c0_373 = arith.constant 0 : index
    %333 = vector.load %arg3[%c6_371, %c0_372, %c0_373] : memref<7x16x152xf32, #tpu.memory_space<vmem>>, vector<1x16x152xf32>
    %334 = vector.shape_cast %333 : vector<1x16x152xf32> to vector<16x152xf32>
    %c0_374 = arith.constant 0 : index
    %c0_375 = arith.constant 0 : index
    %335 = vector.load %arg8[%c0_374, %c0_375] : memref<152x512xf32, #tpu.memory_space<vmem>>, vector<152x512xf32>
    %cst_376 = arith.constant dense<0.000000e+00> : vector<16x512xf32>
    %336 = tpu.matmul %334, %335, %cst_376 {dimension_numbers = #tpu.dot_dimension_numbers<[1], [0], [0], [1], [0, 0, 1, 1], [], []>} : vector<16x152xf32>, vector<152x512xf32>, vector<16x512xf32> -> vector<16x512xf32>
    %337 = arith.addf %336, %244 : vector<16x512xf32>
    %cst_377 = arith.constant 0.000000e+00 : f32
    %338 = vector.broadcast %cst_377 : f32 to vector<16x512xf32>
    %339 = arith.maximumf %337, %338 : vector<16x512xf32>
    %c0_378 = arith.constant 0 : index
    %c0_379 = arith.constant 0 : index
    %340 = vector.load %arg4[%c0_378, %c0_379] : memref<512x2xf32, #tpu.memory_space<vmem>>, vector<512x2xf32>
    %cst_380 = arith.constant dense<0.000000e+00> : vector<16x2xf32>
    %341 = tpu.matmul %339, %340, %cst_380 {dimension_numbers = #tpu.dot_dimension_numbers<[1], [0], [0], [1], [0, 0, 1, 1], [], []>} : vector<16x512xf32>, vector<512x2xf32>, vector<16x2xf32> -> vector<16x2xf32>
    %c0_381 = arith.constant 0 : index
    %c0_382 = arith.constant 0 : index
    %342 = vector.load %arg5[%c0_381, %c0_382] : memref<10x16xf32, #tpu.memory_space<vmem>>, vector<10x16xf32>
    %cst_383 = arith.constant dense<0.000000e+00> : vector<10x2xf32>
    %343 = tpu.matmul %342, %341, %cst_383 {dimension_numbers = #tpu.dot_dimension_numbers<[1], [0], [0], [1], [0, 0, 1, 1], [], []>} : vector<10x16xf32>, vector<16x2xf32>, vector<10x2xf32> -> vector<10x2xf32>
    %c0_384 = arith.constant 0 : index
    %c0_385 = arith.constant 0 : index
    %344 = vector.load %arg6[%c0_384, %c0_385] : memref<10x1xf32, #tpu.memory_space<vmem>>, vector<10x1xf32>
    %345 = vector.broadcast %344 : vector<10x1xf32> to vector<10x2xf32>
    %346 = arith.addf %343, %345 : vector<10x2xf32>
    %c0_386 = arith.constant 0 : index
    %c0_387 = arith.constant 0 : index
    %347 = vector.load %arg7[%c0_386, %c0_387] : memref<10x2xf32, #tpu.memory_space<vmem>>, vector<10x2xf32>
    tpu.vector_store %arg7[%c0_386, %c0_387], %346 {strides = array<i32>} : memref<10x2xf32, #tpu.memory_space<vmem>>, vector<10x2xf32>,
    return
  }
  func.func @transform_0(%arg0: i32) -> (i32, i32) {
    %c0_i32 = arith.constant 0 : i32
    %c0_i32_0 = arith.constant 0 : i32
    %c0_i32_1 = arith.constant 0 : i32
    return %c0_i32, %c0_i32_0 : i32, i32
  }
  func.func @transform_1(%arg0: i32) -> (i32, i32, i32) {
    %c0_i32 = arith.constant 0 : i32
    %c0_i32_0 = arith.constant 0 : i32
    %c0_i32_1 = arith.constant 0 : i32
    %c0_i32_2 = arith.constant 0 : i32
    return %c0_i32, %c0_i32_0, %c0_i32_1 : i32, i32, i32
  }
  func.func @transform_2(%arg0: i32) -> (i32, i32, i32) {
    %c0_i32 = arith.constant 0 : i32
    %c0_i32_0 = arith.constant 0 : i32
    %c0_i32_1 = arith.constant 0 : i32
    %c0_i32_2 = arith.constant 0 : i32
    return %c0_i32, %c0_i32_0, %c0_i32_1 : i32, i32, i32
  }
  func.func @transform_3(%arg0: i32) -> (i32, i32) {
    %c0_i32 = arith.constant 0 : i32
    %c0_i32_0 = arith.constant 0 : i32
    %c0_i32_1 = arith.constant 0 : i32
    return %c0_i32, %c0_i32_0 : i32, i32
  }
  func.func @transform_4(%arg0: i32) -> (i32, i32) {
    %c0_i32 = arith.constant 0 : i32
    %c0_i32_0 = arith.constant 0 : i32
    %c0_i32_1 = arith.constant 0 : i32
    return %c0_i32, %c0_i32_0 : i32, i32
  }
  func.func @transform_5(%arg0: i32) -> (i32, i32) {
    %c0_i32 = arith.constant 0 : i32
    %c0_i32_0 = arith.constant 0 : i32
    %c0_i32_1 = arith.constant 0 : i32
    return %c0_i32, %c0_i32_0 : i32, i32
  }
  func.func @transform_6(%arg0: i32) -> (i32, i32) {
    %c0_i32 = arith.constant 0 : i32
    %c0_i32_0 = arith.constant 0 : i32
    %c0_i32_1 = arith.constant 0 : i32
    return %c0_i32, %c0_i32_0 : i32, i32
  }
}

</mosaic_0001>

<bundles_post_ra>
// kernel: _lambda_.1
= control target key start
LH: loop header
LB: loop body
LE: loop exit
PB: predicated region body
PF: predicated region fallthrough
CT: control target
= control target key end

     0   :  { %s6006_s25 = smov 17   ;;  %s6007_s14 = smov 16   ;;  %v10727_v8 = vlaneseq  ;;  %vm528_vm1 = vcmask 195584   ;;  %vm4771_vm10 = vcmask 130048   ;;  %vm4855_vm11 = vcmask 9216   ;;  %s10720_s0 = inlined_call_operand.vmem [shape: f32[16,512], index: 0, kind: input, shape index: {}]   ;;  %s10721_s1 = inlined_call_operand.vmem [shape: f32[9,16,512], index: 1, kind: input, shape index: {}]   ;;  %s10722_s2 = inlined_call_operand.vmem [shape: f32[7,16,152], index: 2, kind: input, shape index: {}]   ;;  %s10723_s3 = inlined_call_operand.vmem [shape: f32[512,2], index: 3, kind: input, shape index: {}]   ;;  %s10724_s4 = inlined_call_operand.vmem [shape: f32[10,16], index: 4, kind: input, shape index: {}]   ;;  %s10725_s5 = inlined_call_operand.vmem [shape: f32[10,1], index: 5, kind: input, shape index: {}]   ;;  %s10726_s6 = inlined_call_operand.vmem [shape: f32[10,2], index: 6, kind: output, shape index: {}]  }
   0x1   :  { %v6054_v0 = vld [vmem:[%s10720_s0 + $0x8] sm:$0xff]  ;;  %v6059_v1 = vld [vmem:[%s10720_s0] sm:$0xff]  ;;  %v6082_v4 = vld [vmem:[%s10720_s0 + $0x30] sm:$0xff]  ;;  %s6009_s15 = smov 1   ;;  %s6010_s16 = smov 127   ;;  %vm4853_vm12 = vcmask 15360  }
   0x2   :  { %43 = vrot.lane.b32.xlu1 %v6054_v0, %s6006_s25  ;;  %39 = vrot.lane.b32.xlu0 %v6059_v1, %s6006_s25  ;;  %v6068_v2 = vld [vmem:[%s10720_s0 + $0x28] sm:$0xff]  ;;  %v6073_v3 = vld [vmem:[%s10720_s0 + $0x20] sm:$0xff]  ;;  %s6011_s17 = smov 113   ;;  %s6012_s18 = smov 112   ;;  %v6204_v9 = vand.u32 127, %v10727_v8 }
   0x3   :  { %v6087_v5 = vld [vmem:[%s10720_s0 + $0x10] sm:$0xff]  ;;  %v6096_v6 = vld [vmem:[%s10720_s0 + $0x38] sm:$0xff]  ;;  %s6013_s19 = smov 111   ;;  %v6220_v13 = vld [vmem:[%s10721_s1 + $0x8] sm:$0xff] }
   0x4   :  { %v6101_v7 = vld [vmem:[%s10720_s0 + $0x18] sm:$0xff]  ;;  %s6008_s0 = smov 15   ;;  %vm57_vm0 = vcmp.lt.s32.totalorder %v6204_v9, 17  ;;  %v6225_v14 = vld [vmem:[%s10721_s1 + $0x28] sm:$0xff]  ;;  %v6247_v26 = vld [vmem:[%s10721_s1 + $0x10] sm:$0xff]  ;;  %vm106_vm2 = vcmp.lt.s32.totalorder %v6204_v9, 16 }
   0x5   :  { %v449_v15 = vld [vmem:[%s10722_s2 + $0x8] sm:$0xff]  ;;  %v6252_v27 = vld [vmem:[%s10721_s1 + $0x30] sm:$0xff]  ;;  %v6261_v28 = vld [vmem:[%s10721_s1] sm:$0xff]  ;;  %vm156_vm3 = vcmp.lt.s32.totalorder %v6204_v9, 15  ;;  %vm206_vm4 = vcmp.lt.s32.totalorder %v6204_v9, 1  ;;  %vm264_vm5 = vcmp.lt.s32.totalorder %v6204_v9, 127 }
   0x6   :  { %45 = vrot.lane.b32.xlu1 %v6068_v2, %s6006_s25  ;;  %41 = vrot.lane.b32.xlu0 %v6073_v3, %s6006_s25  ;;  %v6266_v29 = vld [vmem:[%s10721_s1 + $0x20] sm:$0xff]  ;;  %v6271_v30 = vld [vmem:[%s10721_s1 + $0x18] sm:$0xff]  ;;  %vm314_vm6 = vcmp.lt.s32.totalorder %v6204_v9, 113  ;;  %vm364_vm7 = vcmp.lt.s32.totalorder %v6204_v9, 112  ;;  %vm414_vm8 = vcmp.lt.s32.totalorder %v6204_v9, 111 }
   0x7   :  { %4917 = vmatprep.mubr.msk.f32.mxu0 %vm528_vm1, %v449_v15  ;;  %4919 = vmatprep.mubr.msk.f32.mxu1 %vm528_vm1, %v449_v15  ;;  %v6276_v31 = vld [vmem:[%s10721_s1 + $0x38] sm:$0xff]  ;;  %v6296_v49 = vld [vmem:[%s10721_s1 + $0x68] sm:$0xff]  ;;  %v6312_v60 = vld [vmem:[%s10721_s1 + $0x70] sm:$0xff] }
   0x8   :  { %v6301_v50 = vld [vmem:[%s10721_s1 + $0x48] sm:$0xff]  ;;  %v6319_v62 = vld [vmem:[%s10721_s1 + $0x50] sm:$0xff]  ;;  %v6341_v15 = vld [vmem:[%s10721_s1 + $0x58] sm:$0xff] }
   0x9   :  { %v4544_v9 = vld [vmem:[%s10723_s3 + $0x8] sm:$0xff] }
   0xa   :  { %49 = vrot.lane.b32.xlu1 %v6082_v4, %s6006_s25  ;;  %47 = vrot.lane.b32.xlu0 %v6087_v5, %s6006_s25 }
   0xe   :  { %53 = vrot.lane.b32.xlu1 %v6096_v6, %s6006_s25  ;;  %51 = vrot.lane.b32.xlu0 %v6101_v7, %s6006_s25 }
  0x12   :  { %92 = vrot.lane.b32.xlu1 %v6073_v3, %s6007_s14  ;;  %90 = vrot.lane.b32.xlu0 %v6059_v1, %s6007_s14 }
  0x16   :  { %96 = vrot.lane.b32.xlu1 %v6068_v2, %s6007_s14  ;;  %94 = vrot.lane.b32.xlu0 %v6054_v0, %s6007_s14 }
  0x1a   :  { %100 = vrot.lane.b32.xlu1 %v6082_v4, %s6007_s14  ;;  %98 = vrot.lane.b32.xlu0 %v6087_v5, %s6007_s14 }
  0x1e   :  { %104 = vrot.lane.b32.xlu1 %v6096_v6, %s6007_s14  ;;  %102 = vrot.lane.b32.xlu0 %v6101_v7, %s6007_s14 }
  0x22   :  { %142 = vrot.lane.b32.xlu1 %v6073_v3, %s6008_s0  ;;  %140 = vrot.lane.b32.xlu0 %v6059_v1, %s6008_s0 }
  0x26   :  { %146 = vrot.lane.b32.xlu1 %v6068_v2, %s6008_s0  ;;  %144 = vrot.lane.b32.xlu0 %v6054_v0, %s6008_s0 }
  0x2a   :  { %150 = vrot.lane.b32.xlu1 %v6082_v4, %s6008_s0  ;;  %148 = vrot.lane.b32.xlu0 %v6087_v5, %s6008_s0 }
  0x2e   :  { %154 = vrot.lane.b32.xlu1 %v6096_v6, %s6008_s0  ;;  %152 = vrot.lane.b32.xlu0 %v6101_v7, %s6008_s0 }
  0x32   :  { %192 = vrot.lane.b32.xlu1 %v6073_v3, %s6009_s15  ;;  %190 = vrot.lane.b32.xlu0 %v6059_v1, %s6009_s15 }
  0x36   :  { %196 = vrot.lane.b32.xlu1 %v6068_v2, %s6009_s15  ;;  %194 = vrot.lane.b32.xlu0 %v6054_v0, %s6009_s15 }
  0x3a   :  { %200 = vrot.lane.b32.xlu1 %v6082_v4, %s6009_s15  ;;  %198 = vrot.lane.b32.xlu0 %v6087_v5, %s6009_s15 }
  0x3e   :  { %204 = vrot.lane.b32.xlu1 %v6096_v6, %s6009_s15  ;;  %202 = vrot.lane.b32.xlu0 %v6101_v7, %s6009_s15 }
  0x42   :  { %250 = vrot.lane.b32.xlu1 %v6073_v3, %s6010_s16  ;;  %248 = vrot.lane.b32.xlu0 %v6059_v1, %s6010_s16 }
  0x46   :  { %254 = vrot.lane.b32.xlu1 %v6068_v2, %s6010_s16  ;;  %252 = vrot.lane.b32.xlu0 %v6054_v0, %s6010_s16 }
  0x4a   :  { %258 = vrot.lane.b32.xlu1 %v6082_v4, %s6010_s16  ;;  %256 = vrot.lane.b32.xlu0 %v6087_v5, %s6010_s16 }
  0x4e   :  { %262 = vrot.lane.b32.xlu1 %v6096_v6, %s6010_s16  ;;  %260 = vrot.lane.b32.xlu0 %v6101_v7, %s6010_s16 }
  0x52   :  { %300 = vrot.lane.b32.xlu1 %v6073_v3, %s6011_s17  ;;  %298 = vrot.lane.b32.xlu0 %v6059_v1, %s6011_s17 }
  0x56   :  { %304 = vrot.lane.b32.xlu1 %v6068_v2, %s6011_s17  ;;  %302 = vrot.lane.b32.xlu0 %v6054_v0, %s6011_s17 }
  0x5a   :  { %308 = vrot.lane.b32.xlu1 %v6082_v4, %s6011_s17  ;;  %306 = vrot.lane.b32.xlu0 %v6087_v5, %s6011_s17 }
  0x5e   :  { %312 = vrot.lane.b32.xlu1 %v6096_v6, %s6011_s17  ;;  %310 = vrot.lane.b32.xlu0 %v6101_v7, %s6011_s17 }
  0x62   :  { %350 = vrot.lane.b32.xlu1 %v6073_v3, %s6012_s18  ;;  %348 = vrot.lane.b32.xlu0 %v6059_v1, %s6012_s18 }
  0x66   :  { %354 = vrot.lane.b32.xlu1 %v6068_v2, %s6012_s18  ;;  %352 = vrot.lane.b32.xlu0 %v6054_v0, %s6012_s18 }
  0x6a   :  { %358 = vrot.lane.b32.xlu1 %v6082_v4, %s6012_s18  ;;  %356 = vrot.lane.b32.xlu0 %v6087_v5, %s6012_s18 }
  0x6e   :  { %362 = vrot.lane.b32.xlu1 %v6096_v6, %s6012_s18  ;;  %360 = vrot.lane.b32.xlu0 %v6101_v7, %s6012_s18 }
  0x72   :  { %400 = vrot.lane.b32.xlu1 %v6073_v3, %s6013_s19  ;;  %398 = vrot.lane.b32.xlu0 %v6059_v1, %s6013_s19 }
  0x74   :  { %v44_v10 = vpop.permute.xlu1 %43  ;;  %v40_v11 = vpop.permute.xlu0 %39 }
  0x75   :  { %v62_v12 = vsel %vm57_vm0, %v40_v11, %v44_v10 }
  0x76   :  { %404 = vrot.lane.b32.xlu1 %v6068_v2, %s6013_s19  ;;  %402 = vrot.lane.b32.xlu0 %v6054_v0, %s6013_s19  ;;  %v75_v19 = vmul.f32 %v6220_v13, %v62_v12  ;;  %v6336_v12 = vld [vmem:[%s10721_s1 + $0x40] sm:$0xff] }
  0x78   :  { %v46_v16 = vpop.permute.xlu1 %45  ;;  %v42_v17 = vpop.permute.xlu0 %41 }
  0x79   :  { %v63_v18 = vsel %vm57_vm0, %v42_v17, %v46_v16 }
  0x7a   :  { %408 = vrot.lane.b32.xlu1 %v6082_v4, %s6013_s19  ;;  %406 = vrot.lane.b32.xlu0 %v6087_v5, %s6013_s19  ;;  %v79_v20 = vmul.f32 %v6225_v14, %v63_v18 }
  0x7c   :  { %v50_v21 = vpop.permute.xlu1 %49  ;;  %v48_v22 = vpop.permute.xlu0 %47  ;;  %v5422_v23 = vpack.c.bf16 %v79_v20, %v75_v19 }
  0x7d   :  { %v61_v24 = vsel %vm57_vm0, %v46_v16, %v50_v21  ;;  %v60_v25 = vsel %vm57_vm0, %v44_v10, %v48_v22  ;;  %v6326_v10 = vld [vmem:[%s10721_s1 + $0x60] sm:$0xff] }
  0x7e   :  { %412 = vrot.lane.b32.xlu1 %v6096_v6, %s6013_s19  ;;  %410 = vrot.lane.b32.xlu0 %v6101_v7, %s6013_s19  ;;  %v76_v34 = vmul.f32 %v6247_v26, %v60_v25  ;;  %v80_v35 = vmul.f32 %v6252_v27, %v61_v24 }
  0x7f   :  { %5423 = vmatprep.subr.bf16.mxu0 %v5422_v23 }
  0x80   :  { %v54_v32 = vpop.permute.xlu1 %53  ;;  %v52_v33 = vpop.permute.xlu0 %51  ;;  %v5460_v48 = vpack.c.bf16 %v80_v35, %v76_v34 }
  0x81   :  { %v65_v36 = vsel %vm57_vm0, %v54_v32, %v42_v17  ;;  %v64_v37 = vsel %vm57_vm0, %v52_v33, %v40_v11  ;;  %v58_v38 = vsel %vm57_vm0, %v48_v22, %v52_v33  ;;  %v59_v39 = vsel %vm57_vm0, %v50_v21, %v54_v32  ;;  %v6331_v11 = vld [vmem:[%s10721_s1 + $0x78] sm:$0xff] }
  0x82   :  { %v74_v40 = vmul.f32 %v6261_v28, %v64_v37  ;;  %v78_v41 = vmul.f32 %v6266_v29, %v65_v36  ;;  %v77_v42 = vmul.f32 %v6271_v30, %v58_v38  ;;  %v81_v43 = vmul.f32 %v6276_v31, %v59_v39  ;;  %v6361_v39 = vld [vmem:[%s10721_s1 + $0xa8] sm:$0xff] }
  0x84   :  { %v93_v44 = vpop.permute.xlu1 %92  ;;  %v91_v45 = vpop.permute.xlu0 %90  ;;  %v5424_v46 = vpack.c.bf16 %v78_v41, %v74_v40  ;;  %v5458_v47 = vpack.c.bf16 %v81_v43, %v77_v42  ;;  %v6366_v40 = vld [vmem:[%s10721_s1 + $0x88] sm:$0xff] }
  0x86   :  { %5425 = vmatpush1.bf16.msra.mxu0 %v5424_v46  ;;  %5459 = vmatprep.subr.bf16.mxu1 %v5458_v47 }
  0x87   :  { %5461 = vmatpush1.bf16.msra.mxu1 %v5460_v48 }
  0x88   :  { %v97_v51 = vpop.permute.xlu1 %96  ;;  %v95_v52 = vpop.permute.xlu0 %94 }
  0x89   :  { %v112_v53 = vsel %vm106_vm2, %v93_v44, %v97_v51  ;;  %v111_v54 = vsel %vm106_vm2, %v91_v45, %v95_v52 }
  0x8a   :  { %v129_v55 = vmul.f32 %v6296_v49, %v112_v53  ;;  %v125_v56 = vmul.f32 %v6301_v50, %v111_v54  ;;  %v6384_v54 = vld [vmem:[%s10721_s1 + $0x90] sm:$0xff] }
  0x8c   :  { %v101_v57 = vpop.permute.xlu1 %100  ;;  %v99_v58 = vpop.permute.xlu0 %98  ;;  %v5426_v59 = vpack.c.bf16 %v129_v55, %v125_v56  ;;  %v6391_v56 = vld [vmem:[%s10721_s1 + $0xa0] sm:$0xff] }
  0x8d   :  { %v110_v61 = vsel %vm106_vm2, %v97_v51, %v101_v57  ;;  %v109_v63 = vsel %vm106_vm2, %v95_v52, %v99_v58  ;;  %v6377_v52 = vld [vmem:[%s10721_s1 + $0xb0] sm:$0xff] }
  0x8e   :  { %5427 = vmatprep.subr.bf16.mxu0 %v5426_v59  ;;  %v130_v16 = vmul.f32 %v6312_v60, %v110_v61  ;;  %v126_v17 = vmul.f32 %v6319_v62, %v109_v63  ;;  %v6406_v59 = vld [vmem:[%s10721_s1 + $0x98] sm:$0xff] }
  0x90   :  { %v105_v18 = vpop.permute.xlu1 %104  ;;  %v103_v19 = vpop.permute.xlu0 %102  ;;  %v5464_v38 = vpack.c.bf16 %v130_v16, %v126_v17 }
  0x91   :  { %v108_v20 = vsel %vm106_vm2, %v101_v57, %v105_v18  ;;  %v114_v21 = vsel %vm106_vm2, %v105_v18, %v93_v44  ;;  %v107_v22 = vsel %vm106_vm2, %v99_v58, %v103_v19  ;;  %v113_v23 = vsel %vm106_vm2, %v103_v19, %v91_v45  ;;  %v6396_v57 = vld [vmem:[%s10721_s1 + $0xb8] sm:$0xff]  ;;  %v6401_v58 = vld [vmem:[%s10721_s1 + $0x80] sm:$0xff] }
  0x92   :  { %v128_v24 = vmul.f32 %v6326_v10, %v114_v21  ;;  %v131_v25 = vmul.f32 %v6331_v11, %v108_v20  ;;  %v124_v32 = vmul.f32 %v6336_v12, %v113_v23  ;;  %v127_v33 = vmul.f32 %v6341_v15, %v107_v22 }
  0x94   :  { %v143_v34 = vpop.permute.xlu1 %142  ;;  %v141_v35 = vpop.permute.xlu0 %140  ;;  %v5428_v36 = vpack.c.bf16 %v128_v24, %v124_v32  ;;  %v5462_v37 = vpack.c.bf16 %v131_v25, %v127_v33 }
  0x96   :  { %5429 = vmatpush1.bf16.msra.mxu0 %v5428_v36  ;;  %5463 = vmatprep.subr.bf16.mxu1 %v5462_v37 }
  0x97   :  { %5465 = vmatpush1.bf16.msra.mxu1 %v5464_v38 }
  0x98   :  { %v147_v41 = vpop.permute.xlu1 %146  ;;  %v145_v42 = vpop.permute.xlu0 %144 }
  0x99   :  { %v162_v43 = vsel %vm156_vm3, %v143_v34, %v147_v41  ;;  %v161_v44 = vsel %vm156_vm3, %v141_v35, %v145_v42 }
  0x9a   :  { %v179_v45 = vmul.f32 %v6361_v39, %v162_v43  ;;  %v175_v46 = vmul.f32 %v6366_v40, %v161_v44 }
  0x9c   :  { %v151_v47 = vpop.permute.xlu1 %150  ;;  %v149_v48 = vpop.permute.xlu0 %148  ;;  %v5430_v51 = vpack.c.bf16 %v179_v45, %v175_v46 }
  0x9d   :  { %v160_v53 = vsel %vm156_vm3, %v147_v41, %v151_v47  ;;  %v159_v55 = vsel %vm156_vm3, %v145_v42, %v149_v48 }
  0x9e   :  { %5431 = vmatprep.subr.bf16.mxu0 %v5430_v51  ;;  %v180_v61 = vmul.f32 %v6377_v52, %v160_v53  ;;  %v176_v63 = vmul.f32 %v6384_v54, %v159_v55  ;;  %v6442_v53 = vld [vmem:[%s10721_s1 + $0xf0] sm:$0xff] }
  0xa0   :  { %v155_v16 = vpop.permute.xlu1 %154  ;;  %v153_v17 = vpop.permute.xlu0 %152  ;;  %v5468_v38 = vpack.c.bf16 %v180_v61, %v176_v63  ;;  %v6449_v61 = vld [vmem:[%s10721_s1 + $0xd0] sm:$0xff] }
  0xa1   :  { %v158_v18 = vsel %vm156_vm3, %v151_v47, %v155_v16  ;;  %v164_v19 = vsel %vm156_vm3, %v155_v16, %v143_v34  ;;  %v157_v20 = vsel %vm156_vm3, %v149_v48, %v153_v17  ;;  %v163_v21 = vsel %vm156_vm3, %v153_v17, %v141_v35  ;;  %v6426_v34 = vld [vmem:[%s10721_s1 + $0xe8] sm:$0xff]  ;;  %10929 = vst [vmem:[#allocation3_spill] sm:$0xff] %v6449_v61  ;;  %v6456_v16 = vld [vmem:[%s10721_s1 + $0xe0] sm:$0xff]  ;;  %v6461_v17 = vld [vmem:[%s10721_s1 + $0xf8] sm:$0xff] }
  0xa2   :  { %v178_v22 = vmul.f32 %v6391_v56, %v164_v19  ;;  %v181_v23 = vmul.f32 %v6396_v57, %v158_v18  ;;  %v174_v24 = vmul.f32 %v6401_v58, %v163_v21  ;;  %v177_v25 = vmul.f32 %v6406_v59, %v157_v20  ;;  %v6431_v35 = vld [vmem:[%s10721_s1 + $0xc8] sm:$0xff]  ;;  %v6466_v18 = vld [vmem:[%s10721_s1 + $0xc0] sm:$0xff]  ;;  %v6471_v19 = vld [vmem:[%s10721_s1 + $0xd8] sm:$0xff] }
  0xa4   :  { %v193_v32 = vpop.permute.xlu1 %192  ;;  %v191_v33 = vpop.permute.xlu0 %190  ;;  %v5432_v36 = vpack.c.bf16 %v178_v22, %v174_v24  ;;  %v5466_v37 = vpack.c.bf16 %v181_v23, %v177_v25 }
  0xa6   :  { %5433 = vmatpush1.bf16.msra.mxu0 %v5432_v36  ;;  %5467 = vmatprep.subr.bf16.mxu1 %v5466_v37 }
  0xa7   :  { %5469 = vmatpush1.bf16.msra.mxu1 %v5468_v38 }
  0xa8   :  { %v197_v41 = vpop.permute.xlu1 %196  ;;  %v195_v42 = vpop.permute.xlu0 %194 }
  0xa9   :  { %v212_v43 = vsel %vm206_vm4, %v193_v32, %v197_v41  ;;  %v211_v44 = vsel %vm206_vm4, %v191_v33, %v195_v42 }
  0xaa   :  { %v229_v45 = vmul.f32 %v6426_v34, %v212_v43  ;;  %v225_v46 = vmul.f32 %v6431_v35, %v211_v44  ;;  %v5438_v44 = vpack.c.bf16 %v6068_v2, %v6054_v0  ;;  %v5476_v0 = vpack.c.bf16 %v6082_v4, %v6087_v5  ;;  %v6513_v4 = vld [vmem:[%s10721_s1 + $0x168] sm:$0xff] }
  0xab   :  { %10932 = vst [vmem:[#allocation6_spill] sm:$0xff] %v6513_v4  ;;  %v6518_v5 = vld [vmem:[%s10721_s1 + $0x148] sm:$0xff] }
  0xac   :  { %v201_v47 = vpop.permute.xlu1 %200  ;;  %v199_v48 = vpop.permute.xlu0 %198  ;;  %v5434_v51 = vpack.c.bf16 %v229_v45, %v225_v46  ;;  %10933 = vst [vmem:[#allocation7_spill] sm:$0xff] %v6518_v5 }
  0xad   :  { %v210_v55 = vsel %vm206_vm4, %v197_v41, %v201_v47  ;;  %v209_v63 = vsel %vm206_vm4, %v195_v42, %v199_v48 }
  0xae   :  { %5435 = vmatprep.subr.bf16.mxu0 %v5434_v51  ;;  %v230_v20 = vmul.f32 %v6442_v53, %v210_v55  ;;  %v226_v21 = vmul.f32 %v6449_v61, %v209_v63 }
  0xb0   :  { %v205_v22 = vpop.permute.xlu1 %204  ;;  %v203_v23 = vpop.permute.xlu0 %202  ;;  %v5472_v51 = vpack.c.bf16 %v230_v20, %v226_v21 }
  0xb1   :  { %v208_v24 = vsel %vm206_vm4, %v201_v47, %v205_v22  ;;  %v214_v25 = vsel %vm206_vm4, %v205_v22, %v193_v32  ;;  %v207_v36 = vsel %vm206_vm4, %v199_v48, %v203_v23  ;;  %v213_v37 = vsel %vm206_vm4, %v203_v23, %v191_v33 }
  0xb2   :  { %v228_v38 = vmul.f32 %v6456_v16, %v214_v25  ;;  %v231_v41 = vmul.f32 %v6461_v17, %v208_v24  ;;  %v224_v42 = vmul.f32 %v6466_v18, %v213_v37  ;;  %v227_v43 = vmul.f32 %v6471_v19, %v207_v36  ;;  %v6531_v37 = vld [vmem:[%s10721_s1 + $0x170] sm:$0xff] }
  0xb3   :  { %v5474_v48 = vpack.c.bf16 %v6096_v6, %v6101_v7  ;;  %v5440_v33 = vpack.c.bf16 %v6073_v3, %v6059_v1  ;;  %v6499_v6 = vld [vmem:[%s10721_s1 + $0x160] sm:$0xff]  ;;  %10934 = vst [vmem:[#allocation8_spill] sm:$0xff] %v6531_v37 }
  0xb4   :  { %v251_v45 = vpop.permute.xlu1 %250  ;;  %v249_v46 = vpop.permute.xlu0 %248  ;;  %v5436_v32 = vpack.c.bf16 %v228_v38, %v224_v42  ;;  %v5470_v47 = vpack.c.bf16 %v231_v41, %v227_v43  ;;  %10930 = vst [vmem:[#allocation4_spill] sm:$0xff] %v6499_v6  ;;  %v6506_v1 = vld [vmem:[%s10721_s1 + $0x140] sm:$0xff]  ;;  %v6536_v38 = vld [vmem:[%s10721_s1 + $0x178] sm:$0xff]  ;;  %v6541_v41 = vld [vmem:[%s10721_s1 + $0x150] sm:$0xff] }
  0xb5   :  { %10931 = vst [vmem:[#allocation5_spill] sm:$0xff] %v6506_v1  ;;  %10935 = vst [vmem:[#allocation9_spill] sm:$0xff] %v6536_v38  ;;  %v6546_v42 = vld [vmem:[%s10721_s1 + $0x158] sm:$0xff] }
  0xb6   :  { %5437 = vmatpush1.bf16.msra.mxu0 %v5436_v32  ;;  %5471 = vmatprep.subr.bf16.mxu1 %v5470_v47  ;;  %10936 = vst [vmem:[#allocation10_spill] sm:$0xff] %v6541_v41  ;;  %10937 = vst [vmem:[#allocation11_spill] sm:$0xff] %v6546_v42 }
  0xb7   :  { %5473 = vmatpush1.bf16.msra.mxu1 %v5472_v51  ;;  %5439 = vmatprep.subr.bf16.mxu0 %v5438_v44 }
  0xb8   :  { %v255_v2 = vpop.permute.xlu1 %254  ;;  %v253_v55 = vpop.permute.xlu0 %252  ;;  %5475 = vmatprep.subr.bf16.mxu1 %v5474_v48 }
  0xb9   :  { %v270_v7 = vsel %vm264_vm5, %v251_v45, %v255_v2  ;;  %v269_v3 = vsel %vm264_vm5, %v249_v46, %v253_v55 }
  0xba   :  { %5441 = vmatpush1.bf16.msra.mxu0 %v5440_v33  ;;  %v286_v63 = vmul.f32 %v6499_v6, %v270_v7  ;;  %v282_v20 = vmul.f32 %v6506_v1, %v269_v3 }
  0xbb   :  { %5477 = vmatpush1.bf16.msra.mxu1 %v5476_v0 }
  0xbc   :  { %v259_v21 = vpop.permute.xlu1 %258  ;;  %v257_v22 = vpop.permute.xlu0 %256  ;;  %v5444_v47 = vpack.c.bf16 %v286_v63, %v282_v20 }
  0xbd   :  { %v268_v23 = vsel %vm264_vm5, %v255_v2, %v259_v21  ;;  %v267_v24 = vsel %vm264_vm5, %v253_v55, %v257_v22 }
  0xbe   :  { %v287_v25 = vmul.f32 %v6513_v4, %v268_v23  ;;  %v283_v36 = vmul.f32 %v6518_v5, %v267_v24  ;;  %v6564_v23 = vld [vmem:[%s10721_s1 + $0x1a0] sm:$0xff] }
  0xbf   :  { %10938 = vst [vmem:[#allocation12_spill] sm:$0xff] %v6564_v23 }
  0xc0   :  { %v263_v43 = vpop.permute.xlu1 %262  ;;  %v261_v44 = vpop.permute.xlu0 %260  ;;  %v5442_v32 = vpack.c.bf16 %v287_v25, %v283_v36  ;;  %v6571_v25 = vld [vmem:[%s10721_s1 + $0x180] sm:$0xff] }
  0xc1   :  { %v266_v48 = vsel %vm264_vm5, %v259_v21, %v263_v43  ;;  %v272_v51 = vsel %vm264_vm5, %v263_v43, %v251_v45  ;;  %v265_v33 = vsel %vm264_vm5, %v257_v22, %v261_v44  ;;  %v271_v0 = vsel %vm264_vm5, %v261_v44, %v249_v46  ;;  %10939 = vst [vmem:[#allocation13_spill] sm:$0xff] %v6571_v25  ;;  %v6578_v43 = vld [vmem:[%s10721_s1 + $0x1a8] sm:$0xff] }
  0xc2   :  { %v288_v2 = vmul.f32 %v6531_v37, %v266_v48  ;;  %v289_v55 = vmul.f32 %v6536_v38, %v272_v51  ;;  %v284_v7 = vmul.f32 %v6541_v41, %v265_v33  ;;  %v285_v3 = vmul.f32 %v6546_v42, %v271_v0  ;;  %5443 = vmatprep.subr.bf16.mxu0 %v5442_v32  ;;  %v6583_v44 = vld [vmem:[%s10721_s1 + $0x188] sm:$0xff] }
  0xc3   :  { %5445 = vmatpush1.bf16.msra.mxu0 %v5444_v47  ;;  %10940 = vst [vmem:[#allocation14_spill] sm:$0xff] %v6578_v43  ;;  %10941 = vst [vmem:[#allocation15_spill] sm:$0xff] %v6583_v44 }
  0xc4   :  { %v301_v63 = vpop.permute.xlu1 %300  ;;  %v299_v20 = vpop.permute.xlu0 %298  ;;  %v5478_v21 = vpack.c.bf16 %v289_v55, %v285_v3  ;;  %v5480_v45 = vpack.c.bf16 %v288_v2, %v284_v7  ;;  %v6596_v7 = vld [vmem:[%s10721_s1 + $0x1b0] sm:$0xff]  ;;  %v6601_v3 = vld [vmem:[%s10721_s1 + $0x1b8] sm:$0xff] }
  0xc5   :  { %10942 = vst [vmem:[#allocation16_spill] sm:$0xff] %v6596_v7  ;;  %10943 = vst [vmem:[#allocation17_spill] sm:$0xff] %v6601_v3 }
  0xc6   :  { %5479 = vmatprep.subr.bf16.mxu1 %v5478_v21  ;;  %v6606_v21 = vld [vmem:[%s10721_s1 + $0x190] sm:$0xff] }
  0xc7   :  { %5481 = vmatpush1.bf16.msra.mxu1 %v5480_v45  ;;  %10944 = vst [vmem:[#allocation18_spill] sm:$0xff] %v6606_v21  ;;  %v6611_v45 = vld [vmem:[%s10721_s1 + $0x198] sm:$0xff] }
  0xc8   :  { %v305_v22 = vpop.permute.xlu1 %304  ;;  %v303_v46 = vpop.permute.xlu0 %302  ;;  %10945 = vst [vmem:[#allocation19_spill] sm:$0xff] %v6611_v45 }
  0xc9   :  { %v320_v24 = vsel %vm314_vm6, %v301_v63, %v305_v22  ;;  %v319_v36 = vsel %vm314_vm6, %v299_v20, %v303_v46 }
  0xca   :  { %v336_v32 = vmul.f32 %v6564_v23, %v320_v24  ;;  %v332_v47 = vmul.f32 %v6571_v25, %v319_v36 }
  0xcc   :  { %v309_v48 = vpop.permute.xlu1 %308  ;;  %v307_v51 = vpop.permute.xlu0 %306  ;;  %v5448_v36 = vpack.c.bf16 %v336_v32, %v332_v47 }
  0xcd   :  { %v318_v33 = vsel %vm314_vm6, %v305_v22, %v309_v48  ;;  %v317_v0 = vsel %vm314_vm6, %v303_v46, %v307_v51 }
  0xce   :  { %v337_v2 = vmul.f32 %v6578_v43, %v318_v33  ;;  %v333_v55 = vmul.f32 %v6583_v44, %v317_v0 }
  0xd0   :  { %v313_v22 = vpop.permute.xlu1 %312  ;;  %v311_v46 = vpop.permute.xlu0 %310  ;;  %v5446_v24 = vpack.c.bf16 %v337_v2, %v333_v55  ;;  %v6629_v55 = vld [vmem:[%s10721_s1 + $0x1e0] sm:$0xff] }
  0xd1   :  { %v316_v33 = vsel %vm314_vm6, %v309_v48, %v313_v22  ;;  %v322_v0 = vsel %vm314_vm6, %v313_v22, %v301_v63  ;;  %v315_v8 = vsel %vm314_vm6, %v307_v51, %v311_v46  ;;  %v321_v43 = vsel %vm314_vm6, %v311_v46, %v299_v20  ;;  %10946 = vst [vmem:[#allocation20_spill] sm:$0xff] %v6629_v55 }
  0xd2   :  { %v338_v23 = vmul.f32 %v6596_v7, %v316_v33  ;;  %v339_v44 = vmul.f32 %v6601_v3, %v322_v0  ;;  %v334_v25 = vmul.f32 %v6606_v21, %v315_v8  ;;  %v335_v32 = vmul.f32 %v6611_v45, %v321_v43  ;;  %5447 = vmatprep.subr.bf16.mxu0 %v5446_v24  ;;  %v6636_v43 = vld [vmem:[%s10721_s1 + $0x1c0] sm:$0xff] }
  0xd3   :  { %5449 = vmatpush1.bf16.msra.mxu0 %v5448_v36  ;;  %10947 = vst [vmem:[#allocation21_spill] sm:$0xff] %v6636_v43 }
  0xd4   :  { %v351_v47 = vpop.permute.xlu1 %350  ;;  %v349_v48 = vpop.permute.xlu0 %348  ;;  %v5482_v2 = vpack.c.bf16 %v339_v44, %v335_v32  ;;  %v5484_v63 = vpack.c.bf16 %v338_v23, %v334_v25  ;;  %v6643_v25 = vld [vmem:[%s10721_s1 + $0x1e8] sm:$0xff] }
  0xd5   :  { %10948 = vst [vmem:[#allocation22_spill] sm:$0xff] %v6643_v25  ;;  %v6648_v44 = vld [vmem:[%s10721_s1 + $0x1c8] sm:$0xff] }
  0xd6   :  { %5483 = vmatprep.subr.bf16.mxu1 %v5482_v2  ;;  %10949 = vst [vmem:[#allocation23_spill] sm:$0xff] %v6648_v44 }
  0xd7   :  { %5485 = vmatpush1.bf16.msra.mxu1 %v5484_v63  ;;  %v6661_v63 = vld [vmem:[%s10721_s1 + $0x1f0] sm:$0xff] }
  0xd8   :  { %v355_v51 = vpop.permute.xlu1 %354  ;;  %v353_v20 = vpop.permute.xlu0 %352  ;;  %10950 = vst [vmem:[#allocation24_spill] sm:$0xff] %v6661_v63 }
  0xd9   :  { %v370_v8 = vsel %vm364_vm7, %v351_v47, %v355_v51  ;;  %v369_v23 = vsel %vm364_vm7, %v349_v48, %v353_v20 }
  0xda   :  { %v386_v22 = vmul.f32 %v6629_v55, %v370_v8  ;;  %v382_v46 = vmul.f32 %v6636_v43, %v369_v23  ;;  %v6666_v8 = vld [vmem:[%s10721_s1 + $0x1f8] sm:$0xff] }
  0xdb   :  { %10951 = vst [vmem:[#allocation25_spill] sm:$0xff] %v6666_v8 }
  0xdc   :  { %v359_v24 = vpop.permute.xlu1 %358  ;;  %v357_v36 = vpop.permute.xlu0 %356 }
  0xdd   :  { %v368_v33 = vsel %vm364_vm7, %v355_v51, %v359_v24  ;;  %v367_v0 = vsel %vm364_vm7, %v353_v20, %v357_v36  ;;  %v6671_v51 = vld [vmem:[%s10721_s1 + $0x1d0] sm:$0xff]  ;;  %v6676_v20 = vld [vmem:[%s10721_s1 + $0x1d8] sm:$0xff] }
  0xde   :  { %v387_v32 = vmul.f32 %v6643_v25, %v368_v33  ;;  %v383_v2 = vmul.f32 %v6648_v44, %v367_v0  ;;  %10952 = vst [vmem:[#allocation26_spill] sm:$0xff] %v6671_v51  ;;  %10953 = vst [vmem:[#allocation27_spill] sm:$0xff] %v6676_v20  ;;  %v5452_v25 = vpack.c.bf16 %v386_v22, %v382_v46 }
  0xe0   :  { %v363_v23 = vpop.permute.xlu1 %362  ;;  %v361_v33 = vpop.permute.xlu0 %360  ;;  %v5450_v0 = vpack.c.bf16 %v387_v32, %v383_v2 }
  0xe1   :  { %v366_v55 = vsel %vm364_vm7, %v359_v24, %v363_v23  ;;  %v372_v44 = vsel %vm364_vm7, %v363_v23, %v351_v47  ;;  %v365_v43 = vsel %vm364_vm7, %v357_v36, %v361_v33  ;;  %v371_v3 = vsel %vm364_vm7, %v361_v33, %v349_v48 }
  0xe2   :  { %v388_v7 = vmul.f32 %v6661_v63, %v366_v55  ;;  %v389_v45 = vmul.f32 %v6666_v8, %v372_v44  ;;  %v384_v21 = vmul.f32 %v6671_v51, %v365_v43  ;;  %v385_v22 = vmul.f32 %v6676_v20, %v371_v3  ;;  %5451 = vmatprep.subr.bf16.mxu0 %v5450_v0  ;;  %v6694_v55 = vld [vmem:[%s10721_s1 + $0x220] sm:$0xff] }
  0xe3   :  { %5453 = vmatpush1.bf16.msra.mxu0 %v5452_v25  ;;  %10954 = vst [vmem:[#allocation28_spill] sm:$0xff] %v6694_v55  ;;  %v6701_v43 = vld [vmem:[%s10721_s1 + $0x200] sm:$0xff]  ;;  %v10958_v33 = vlaneseq }
  0xe4   :  { %v401_v46 = vpop.permute.xlu1 %400  ;;  %v399_v24 = vpop.permute.xlu0 %398  ;;  %v5486_v32 = vpack.c.bf16 %v389_v45, %v385_v22  ;;  %v5488_v47 = vpack.c.bf16 %v388_v7, %v384_v21  ;;  %10955 = vst [vmem:[#allocation29_spill] sm:$0xff] %v6701_v43  ;;  %v6708_v21 = vld [vmem:[%s10721_s1 + $0x228] sm:$0xff] }
  0xe5   :  { %10956 = vst [vmem:[#allocation30_spill] sm:$0xff] %v6708_v21  ;;  %v6713_v45 = vld [vmem:[%s10721_s1 + $0x208] sm:$0xff]  ;;  %v6718_v0 = vshrl.u32 %v10958_v33, 7 }
  0xe6   :  { %5487 = vmatprep.subr.bf16.mxu1 %v5486_v32  ;;  %10957 = vst [vmem:[#allocation31_spill] sm:$0xff] %v6713_v45 }
  0xe7   :  { %5489 = vmatpush1.bf16.msra.mxu1 %v5488_v47  ;;  %10959 = vst [vmem:[#allocation32_spill] sm:$0xff] %v6718_v0  ;;  %vm25_vm9 = vcmp.eq.s32.totalorder %v6718_v0, 0 }
  0xe8   :  { %v405_v36 = vpop.permute.xlu1 %404  ;;  %v403_v48 = vpop.permute.xlu0 %402 }
  0xe9   :  { %v420_v3 = vsel %vm414_vm8, %v401_v46, %v405_v36  ;;  %v419_v7 = vsel %vm414_vm8, %v399_v24, %v403_v48 }
  0xea   :  { %v436_v25 = vmul.f32 %v6694_v55, %v420_v3  ;;  %v432_v44 = vmul.f32 %v6701_v43, %v419_v7  ;;  %v6729_v3 = vld [vmem:[%s10721_s1 + $0x230] sm:$0xff]  ;;  %v6734_v7 = vld [vmem:[%s10721_s1 + $0x238] sm:$0xff] }
  0xeb   :  { %10960 = vst [vmem:[#allocation33_spill] sm:$0xff] %v6729_v3  ;;  %10961 = vst [vmem:[#allocation34_spill] sm:$0xff] %v6734_v7 }
  0xec   :  { %v409_v2 = vpop.permute.xlu1 %408  ;;  %v407_v23 = vpop.permute.xlu0 %406 }
  0xed   :  { %v418_v22 = vsel %vm414_vm8, %v405_v36, %v409_v2  ;;  %v417_v32 = vsel %vm414_vm8, %v403_v48, %v407_v23  ;;  %v6739_v36 = vld [vmem:[%s10721_s1 + $0x210] sm:$0xff]  ;;  %v6744_v48 = vld [vmem:[%s10721_s1 + $0x218] sm:$0xff] }
  0xee   :  { %v437_v47 = vmul.f32 %v6708_v21, %v418_v22  ;;  %v433_v8 = vmul.f32 %v6713_v45, %v417_v32  ;;  %10962 = vst [vmem:[#allocation35_spill] sm:$0xff] %v6739_v36  ;;  %10963 = vst [vmem:[#allocation36_spill] sm:$0xff] %v6744_v48  ;;  %v5456_v21 = vpack.c.bf16 %v436_v25, %v432_v44  ;;  %v10748_v44 = vmov 1.0  }
  0xf0   :  { %v413_v33 = vpop.permute.xlu1 %412  ;;  %v411_v22 = vpop.permute.xlu0 %410  ;;  %v5454_v32 = vpack.c.bf16 %v437_v47, %v433_v8 }
  0xf1   :  { %v416_v55 = vsel %vm414_vm8, %v409_v2, %v413_v33  ;;  %v422_v45 = vsel %vm414_vm8, %v413_v33, %v401_v46  ;;  %v415_v43 = vsel %vm414_vm8, %v407_v23, %v411_v22  ;;  %v421_v63 = vsel %vm414_vm8, %v411_v22, %v399_v24  ;;  %v448_v24 = vld [vmem:[%s10722_s2] sm:$0xff] }
  0xf2   :  { %v438_v20 = vmul.f32 %v6729_v3, %v416_v55  ;;  %v439_v51 = vmul.f32 %v6734_v7, %v422_v45  ;;  %v434_v8 = vmul.f32 %v6739_v36, %v415_v43  ;;  %v435_v25 = vmul.f32 %v6744_v48, %v421_v63  ;;  %5455 = vmatprep.subr.bf16.mxu0 %v5454_v32  ;;  %v451_v55 = vld [vmem:[%s10722_s2 + $0x18] sm:$0xff]  ;;  %v450_v63 = vld [vmem:[%s10722_s2 + $0x10] sm:$0xff] }
  0xf3   :  { %5457 = vmatpush1.bf16.msra.mxu0 %v5456_v21 }
  0xf4   :  { %5307 = vmatprep.subr.msk.mxu0 %vm25_vm9, %v10748_v44  ;;  %v5490_v46 = vpack.c.bf16 %v439_v51, %v435_v25  ;;  %v5492_v2 = vpack.c.bf16 %v438_v20, %v434_v8 }
  0xf6   :  { %5491 = vmatprep.subr.bf16.mxu1 %v5490_v46 }
  0xf7   :  { %5308 = vmatpush1.msk.msra.mxu0 %vm25_vm9, %v10748_v44  ;;  %5493 = vmatpush1.bf16.msra.mxu1 %v5492_v2 }
  0xf8   :  { %600 = vmatmul.mubr.f32.vlgmr.msra.gmra.mrb[0].mxu0 %v448_v24  ;;  %5309 = vmatprep.subr.msk.mxu1 %vm25_vm9, %v10748_v44 }
  0xf9   :  { %4918 = vmatprep.mubr.msk.f32.mxu0 %vm528_vm1, %v451_v55 }
  0xfb   :  { %5310 = vmatpush1.msk.msra.mxu1 %vm25_vm9, %v10748_v44 }
  0xfc   :  { %606 = vmatmul.mubr.f32.gmra.mrb[2].mxu0 %v450_v63  ;;  %677 = vmatmul.mubr.f32.vlgmr.msra.gmra.mrb[0].mxu1 %v448_v24 }
  0xfd   :  { %4920 = vmatprep.mubr.msk.f32.mxu1 %vm528_vm1, %v451_v55 }
 0x100   :  { %683 = vmatmul.mubr.f32.gmra.mrb[2].mxu1 %v450_v63 }
 0x1cb   :  { %v601_v51 = vpop.f32.mrb[0].mxu0 }
 0x1cc   :  { %v6782_v20 = vmax.f32 %v601_v51, 0.0  ;;  %v603_v43 = vpop.f32.mrb[1].mxu0 }
 0x1cd   :  { %v6852_v46 = vmax.f32 %v603_v43, 0.0 }
 0x1ce   :  { %10964 = vst [vmem:[#allocation37_spill] sm:$0xff] %v6782_v20  ;;  %697 = vrot.lane.b32.xlu0 %v6782_v20, %s6006_s25 }
 0x1cf   :  { %v607_v21 = vpop.f32.mrb[2].mxu0  ;;  %v678_v45 = vpop.f32.mrb[0].mxu1  ;;  %10968 = vst [vmem:[#allocation41_spill] sm:$0xff] %v6852_v46 }
 0x1d0   :  { %v6786_v23 = vmax.f32 %v607_v21, 0.0  ;;  %v6788_v47 = vmax.f32 %v678_v45, 0.0  ;;  %v609_v33 = vpop.f32.mrb[3].mxu0  ;;  %v680_v22 = vpop.f32.mrb[1].mxu1  ;;  %v4978_v21 = vld [vmem:[%s10722_s2 + $0x28] sm:$0xff] }
 0x1d1   :  { %v6858_v2 = vmax.f32 %v609_v33, 0.0  ;;  %v6860_v24 = vmax.f32 %v680_v22, 0.0  ;;  %4981 = vmatprep.mubr.msk.f32.mxu0 %vm528_vm1, %v4978_v21  ;;  %4983 = vmatprep.mubr.msk.f32.mxu1 %vm528_vm1, %v4978_v21 }
 0x1d2   :  { %10965 = vst [vmem:[#allocation38_spill] sm:$0xff] %v6786_v23  ;;  %10966 = vst [vmem:[#allocation39_spill] sm:$0xff] %v6788_v47  ;;  %705 = vrot.lane.b32.xlu0 %v6788_v47, %s6006_s25  ;;  %699 = vrot.lane.b32.xlu1 %v6786_v23, %s6006_s25 }
 0x1d3   :  { %v684_v32 = vpop.f32.mrb[2].mxu1  ;;  %10969 = vst [vmem:[#allocation42_spill] sm:$0xff] %v6858_v2  ;;  %10970 = vst [vmem:[#allocation43_spill] sm:$0xff] %v6860_v24 }
 0x1d4   :  { %v6794_v8 = vmax.f32 %v684_v32, 0.0  ;;  %v686_v25 = vpop.f32.mrb[3].mxu1 }
 0x1d5   :  { %v6866_v55 = vmax.f32 %v686_v25, 0.0 }
 0x1d6   :  { %10967 = vst [vmem:[#allocation40_spill] sm:$0xff] %v6794_v8  ;;  %745 = vrot.lane.b32.xlu0 %v6782_v20, %s6007_s14  ;;  %707 = vrot.lane.b32.xlu1 %v6794_v8, %s6006_s25 }
 0x1d7   :  { %10971 = vst [vmem:[#allocation44_spill] sm:$0xff] %v6866_v55 }
 0x1da   :  { %753 = vrot.lane.b32.xlu0 %v6788_v47, %s6007_s14  ;;  %747 = vrot.lane.b32.xlu1 %v6786_v23, %s6007_s14 }
 0x1de   :  { %793 = vrot.lane.b32.xlu0 %v6782_v20, %s6008_s0  ;;  %755 = vrot.lane.b32.xlu1 %v6794_v8, %s6007_s14 }
 0x1e2   :  { %801 = vrot.lane.b32.xlu0 %v6788_v47, %s6008_s0  ;;  %795 = vrot.lane.b32.xlu1 %v6786_v23, %s6008_s0 }
 0x1e6   :  { %841 = vrot.lane.b32.xlu0 %v6782_v20, %s6009_s15  ;;  %803 = vrot.lane.b32.xlu1 %v6794_v8, %s6008_s0 }
 0x1ea   :  { %849 = vrot.lane.b32.xlu0 %v6788_v47, %s6009_s15  ;;  %843 = vrot.lane.b32.xlu1 %v6786_v23, %s6009_s15 }
 0x1ee   :  { %897 = vrot.lane.b32.xlu0 %v6782_v20, %s6010_s16  ;;  %851 = vrot.lane.b32.xlu1 %v6794_v8, %s6009_s15 }
 0x1f2   :  { %905 = vrot.lane.b32.xlu0 %v6788_v47, %s6010_s16  ;;  %899 = vrot.lane.b32.xlu1 %v6786_v23, %s6010_s16 }
 0x1f6   :  { %945 = vrot.lane.b32.xlu0 %v6782_v20, %s6011_s17  ;;  %907 = vrot.lane.b32.xlu1 %v6794_v8, %s6010_s16 }
 0x1fa   :  { %953 = vrot.lane.b32.xlu0 %v6788_v47, %s6011_s17  ;;  %947 = vrot.lane.b32.xlu1 %v6786_v23, %s6011_s17 }
 0x1fe   :  { %993 = vrot.lane.b32.xlu0 %v6782_v20, %s6012_s18  ;;  %955 = vrot.lane.b32.xlu1 %v6794_v8, %s6011_s17 }
 0x202   :  { %1001 = vrot.lane.b32.xlu0 %v6788_v47, %s6012_s18  ;;  %995 = vrot.lane.b32.xlu1 %v6786_v23, %s6012_s18 }
 0x206   :  { %1041 = vrot.lane.b32.xlu0 %v6782_v20, %s6013_s19  ;;  %1003 = vrot.lane.b32.xlu1 %v6794_v8, %s6012_s18 }
 0x20a   :  { %1049 = vrot.lane.b32.xlu0 %v6788_v47, %s6013_s19  ;;  %1043 = vrot.lane.b32.xlu1 %v6786_v23, %s6013_s19 }
 0x20e   :  { %701 = vrot.lane.b32.xlu0 %v6852_v46, %s6006_s25  ;;  %1051 = vrot.lane.b32.xlu1 %v6794_v8, %s6013_s19 }
 0x212   :  { %709 = vrot.lane.b32.xlu0 %v6860_v24, %s6006_s25  ;;  %703 = vrot.lane.b32.xlu1 %v6858_v2, %s6006_s25 }
 0x216   :  { %749 = vrot.lane.b32.xlu0 %v6852_v46, %s6007_s14  ;;  %711 = vrot.lane.b32.xlu1 %v6866_v55, %s6006_s25 }
 0x21a   :  { %757 = vrot.lane.b32.xlu0 %v6860_v24, %s6007_s14  ;;  %751 = vrot.lane.b32.xlu1 %v6858_v2, %s6007_s14 }
 0x21e   :  { %797 = vrot.lane.b32.xlu0 %v6852_v46, %s6008_s0  ;;  %759 = vrot.lane.b32.xlu1 %v6866_v55, %s6007_s14 }
 0x222   :  { %805 = vrot.lane.b32.xlu0 %v6860_v24, %s6008_s0  ;;  %799 = vrot.lane.b32.xlu1 %v6858_v2, %s6008_s0 }
 0x226   :  { %845 = vrot.lane.b32.xlu0 %v6852_v46, %s6009_s15  ;;  %807 = vrot.lane.b32.xlu1 %v6866_v55, %s6008_s0 }
 0x22a   :  { %853 = vrot.lane.b32.xlu0 %v6860_v24, %s6009_s15  ;;  %847 = vrot.lane.b32.xlu1 %v6858_v2, %s6009_s15 }
 0x22e   :  { %901 = vrot.lane.b32.xlu0 %v6852_v46, %s6010_s16  ;;  %855 = vrot.lane.b32.xlu1 %v6866_v55, %s6009_s15 }
 0x232   :  { %909 = vrot.lane.b32.xlu0 %v6860_v24, %s6010_s16  ;;  %903 = vrot.lane.b32.xlu1 %v6858_v2, %s6010_s16 }
 0x236   :  { %949 = vrot.lane.b32.xlu0 %v6852_v46, %s6011_s17  ;;  %911 = vrot.lane.b32.xlu1 %v6866_v55, %s6010_s16 }
 0x23a   :  { %957 = vrot.lane.b32.xlu0 %v6860_v24, %s6011_s17  ;;  %951 = vrot.lane.b32.xlu1 %v6858_v2, %s6011_s17 }
 0x23e   :  { %997 = vrot.lane.b32.xlu0 %v6852_v46, %s6012_s18  ;;  %959 = vrot.lane.b32.xlu1 %v6866_v55, %s6011_s17 }
 0x240   :  { %v698_v63 = vpop.permute.xlu0 %697 }
 0x242   :  { %1005 = vrot.lane.b32.xlu0 %v6860_v24, %s6012_s18  ;;  %999 = vrot.lane.b32.xlu1 %v6858_v2, %s6012_s18 }
 0x244   :  { %v706_v51 = vpop.permute.xlu0 %705  ;;  %v700_v43 = vpop.permute.xlu1 %699 }
 0x246   :  { %1045 = vrot.lane.b32.xlu0 %v6852_v46, %s6013_s19  ;;  %1007 = vrot.lane.b32.xlu1 %v6866_v55, %s6012_s18 }
 0x248   :  { %v6923_v45 = vpop.permute.xlu0 %745  ;;  %v708_v33 = vpop.permute.xlu1 %707 }
 0x24a   :  { %1053 = vrot.lane.b32.xlu0 %v6860_v24, %s6013_s19  ;;  %1047 = vrot.lane.b32.xlu1 %v6858_v2, %s6013_s19 }
 0x24c   :  { %v6931_v22 = vpop.permute.xlu0 %753  ;;  %v6933_v32 = vpop.permute.xlu1 %747 }
 0x24e   :  { %1055 = vrot.lane.b32.xlu1 %v6866_v55, %s6013_s19 }
 0x250   :  { %v6937_v25 = vpop.permute.xlu0 %793  ;;  %v6939_v44 = vpop.permute.xlu1 %755 }
 0x254   :  { %v6941_v0 = vpop.permute.xlu0 %801  ;;  %v6943_v21 = vpop.permute.xlu1 %795 }
 0x258   :  { %v6945_v7 = vpop.permute.xlu0 %841  ;;  %v6947_v3 = vpop.permute.xlu1 %803 }
 0x25c   :  { %v6949_v48 = vpop.permute.xlu0 %849  ;;  %v6951_v36 = vpop.permute.xlu1 %843 }
 0x260   :  { %v6953_v38 = vpop.permute.xlu0 %897  ;;  %v6955_v37 = vpop.permute.xlu1 %851 }
 0x261   :  { %10972 = vst [vmem:[#allocation45_spill] sm:$0xff] %v6953_v38 }
 0x264   :  { %v6957_v42 = vpop.permute.xlu0 %905  ;;  %v6959_v41 = vpop.permute.xlu1 %899 }
 0x265   :  { %10973 = vst [vmem:[#allocation46_spill] sm:$0xff] %v6959_v41 }
 0x268   :  { %v6961_v8 = vpop.permute.xlu0 %945  ;;  %v6963_v47 = vpop.permute.xlu1 %907 }
 0x269   :  { %10974 = vst [vmem:[#allocation47_spill] sm:$0xff] %v6961_v8  ;;  %10975 = vst [vmem:[#allocation48_spill] sm:$0xff] %v6963_v47 }
 0x26c   :  { %v6965_v1 = vpop.permute.xlu0 %953  ;;  %v6967_v23 = vpop.permute.xlu1 %947 }
 0x26d   :  { %10976 = vst [vmem:[#allocation49_spill] sm:$0xff] %v6965_v1  ;;  %10977 = vst [vmem:[#allocation50_spill] sm:$0xff] %v6967_v23 }
 0x270   :  { %v6969_v20 = vpop.permute.xlu0 %993  ;;  %v6971_v6 = vpop.permute.xlu1 %955 }
 0x271   :  { %10978 = vst [vmem:[#allocation51_spill] sm:$0xff] %v6969_v20  ;;  %10979 = vst [vmem:[#allocation52_spill] sm:$0xff] %v6971_v6 }
 0x274   :  { %v6973_v55 = vpop.permute.xlu0 %1001  ;;  %v6975_v24 = vpop.permute.xlu1 %995 }
 0x275   :  { %10980 = vst [vmem:[#allocation53_spill] sm:$0xff] %v6973_v55  ;;  %10981 = vst [vmem:[#allocation54_spill] sm:$0xff] %v6975_v24 }
 0x278   :  { %v6977_v4 = vpop.permute.xlu0 %1041  ;;  %v6979_v5 = vpop.permute.xlu1 %1003 }
 0x279   :  { %10982 = vst [vmem:[#allocation55_spill] sm:$0xff] %v6977_v4  ;;  %10983 = vst [vmem:[#allocation56_spill] sm:$0xff] %v6979_v5 }
 0x27c   :  { %v6981_v38 = vpop.permute.xlu0 %1049  ;;  %v6983_v8 = vpop.permute.xlu1 %1043 }
 0x27d   :  { %10984 = vst [vmem:[#allocation57_spill] sm:$0xff] %v6981_v38  ;;  %10985 = vst [vmem:[#allocation58_spill] sm:$0xff] %v6983_v8 }
 0x280   :  { %v702_v2 = vpop.permute.xlu0 %701  ;;  %v6985_v1 = vpop.permute.xlu1 %1051 }
 0x281   :  { %10986 = vst [vmem:[#allocation59_spill] sm:$0xff] %v6985_v1  ;;  %v717_v20 = vsel %vm57_vm0, %v698_v63, %v702_v2  ;;  %v715_v47 = vsel %vm57_vm0, %v702_v2, %v706_v51 }
 0x282   :  { %v730_v24 = vmul.f32 %v717_v20, %v6220_v13 }
 0x284   :  { %v710_v23 = vpop.permute.xlu0 %709  ;;  %v704_v6 = vpop.permute.xlu1 %703 }
 0x285   :  { %v718_v55 = vsel %vm57_vm0, %v700_v43, %v704_v6  ;;  %v719_v4 = vsel %vm57_vm0, %v710_v23, %v698_v63  ;;  %v713_v8 = vsel %vm57_vm0, %v706_v51, %v710_v23  ;;  %v716_v1 = vsel %vm57_vm0, %v704_v6, %v708_v33 }
 0x286   :  { %v734_v38 = vmul.f32 %v718_v55, %v6225_v14  ;;  %v729_v61 = vmul.f32 %v719_v4, %v6261_v28  ;;  %v732_v20 = vmul.f32 %v713_v8, %v6271_v30  ;;  %v735_v23 = vmul.f32 %v716_v1, %v6252_v27 }
 0x287   :  { %v731_v28 = vmul.f32 %v715_v47, %v6247_v26 }
 0x288   :  { %v750_v5 = vpop.permute.xlu0 %749  ;;  %v712_v46 = vpop.permute.xlu1 %711  ;;  %v5494_v41 = vpack.c.bf16 %v734_v38, %v730_v24 }
 0x289   :  { %v714_v13 = vsel %vm57_vm0, %v708_v33, %v712_v46  ;;  %v720_v14 = vsel %vm57_vm0, %v712_v46, %v700_v43  ;;  %v765_v38 = vsel %vm106_vm2, %v6923_v45, %v750_v5  ;;  %v5532_v27 = vpack.c.bf16 %v735_v23, %v731_v28 }
 0x28a   :  { %v733_v6 = vmul.f32 %v720_v14, %v6266_v29  ;;  %v736_v55 = vmul.f32 %v714_v13, %v6276_v31  ;;  %5495 = vmatprep.subr.bf16.mxu0 %v5494_v41  ;;  %v778_v29 = vmul.f32 %v6301_v50, %v765_v38  ;;  %v763_v8 = vsel %vm106_vm2, %v750_v5, %v6931_v22 }
 0x28b   :  { %v779_v5 = vmul.f32 %v6319_v62, %v763_v8 }
 0x28c   :  { %v5496_v4 = vpack.c.bf16 %v733_v6, %v729_v61  ;;  %v758_v2 = vpop.permute.xlu0 %757  ;;  %v752_v24 = vpop.permute.xlu1 %751  ;;  %v5530_v63 = vpack.c.bf16 %v736_v55, %v732_v20 }
 0x28d   :  { %v766_v30 = vsel %vm106_vm2, %v6933_v32, %v752_v24  ;;  %v767_v31 = vsel %vm106_vm2, %v758_v2, %v6923_v45  ;;  %v761_v26 = vsel %vm106_vm2, %v6931_v22, %v758_v2  ;;  %v764_v61 = vsel %vm106_vm2, %v752_v24, %v6939_v44 }
 0x28e   :  { %v782_v1 = vmul.f32 %v6296_v49, %v766_v30  ;;  %5497 = vmatpush1.bf16.msra.mxu0 %v5496_v4  ;;  %5531 = vmatprep.subr.bf16.mxu1 %v5530_v63  ;;  %v777_v49 = vmul.f32 %v6336_v12, %v767_v31  ;;  %v780_v43 = vmul.f32 %v6341_v15, %v761_v26 }
 0x28f   :  { %5533 = vmatpush1.bf16.msra.mxu1 %v5532_v27  ;;  %v783_v45 = vmul.f32 %v6312_v60, %v764_v61 }
 0x290   :  { %v798_v41 = vpop.permute.xlu0 %797  ;;  %v760_v47 = vpop.permute.xlu1 %759  ;;  %v5498_v50 = vpack.c.bf16 %v782_v1, %v778_v29 }
 0x291   :  { %v762_v46 = vsel %vm106_vm2, %v6939_v44, %v760_v47  ;;  %v768_v51 = vsel %vm106_vm2, %v760_v47, %v6933_v32  ;;  %v813_v12 = vsel %vm156_vm3, %v6937_v25, %v798_v41  ;;  %v5536_v60 = vpack.c.bf16 %v783_v45, %v779_v5  ;;  %v10992_v5 = vld [vmem:[#allocation45_spill] sm:$0xff] }
 0x292   :  { %v781_v33 = vmul.f32 %v6326_v10, %v768_v51  ;;  %v784_v13 = vmul.f32 %v6331_v11, %v762_v46  ;;  %5499 = vmatprep.subr.bf16.mxu0 %v5498_v50  ;;  %v826_v10 = vmul.f32 %v6366_v40, %v813_v12 }
 0x294   :  { %v5500_v44 = vpack.c.bf16 %v781_v33, %v777_v49  ;;  %v806_v22 = vpop.permute.xlu0 %805  ;;  %v800_v14 = vpop.permute.xlu1 %799  ;;  %v5534_v20 = vpack.c.bf16 %v784_v13, %v780_v43  ;;  %v10991_v33 = vld [vmem:[#allocation42_spill] sm:$0xff] }
 0x295   :  { %v814_v15 = vsel %vm156_vm3, %v6943_v21, %v800_v14  ;;  %v815_v11 = vsel %vm156_vm3, %v806_v22, %v6937_v25  ;;  %v809_v62 = vsel %vm156_vm3, %v6941_v0, %v806_v22  ;;  %v812_v23 = vsel %vm156_vm3, %v800_v14, %v6947_v3  ;;  %v10993_v22 = vld [vmem:[#allocation7_spill] sm:$0xff] }
 0x296   :  { %v830_v32 = vmul.f32 %v6361_v39, %v814_v15  ;;  %5501 = vmatpush1.bf16.msra.mxu0 %v5500_v44  ;;  %5535 = vmatprep.subr.bf16.mxu1 %v5534_v20  ;;  %v811_v25 = vsel %vm156_vm3, %v798_v41, %v6941_v0  ;;  %v825_v39 = vmul.f32 %v6401_v58, %v815_v11  ;;  %v10994_v20 = vld [vmem:[#allocation6_spill] sm:$0xff]  ;;  %v10995_v11 = vld [vmem:[#allocation43_spill] sm:$0xff] }
 0x297   :  { %5537 = vmatpush1.bf16.msra.mxu1 %v5536_v60  ;;  %v828_v4 = vmul.f32 %v6406_v59, %v809_v62  ;;  %v831_v2 = vmul.f32 %v6377_v52, %v812_v23  ;;  %v827_v0 = vmul.f32 %v6384_v54, %v811_v25  ;;  %v10997_v23 = vld [vmem:[#allocation4_spill] sm:$0xff]  ;;  %v10998_v25 = vld [vmem:[#allocation37_spill] sm:$0xff] }
 0x298   :  { %v846_v6 = vpop.permute.xlu0 %845  ;;  %v808_v55 = vpop.permute.xlu1 %807  ;;  %v5502_v40 = vpack.c.bf16 %v830_v32, %v826_v10  ;;  %v10996_v32 = vld [vmem:[#allocation44_spill] sm:$0xff] }
 0x299   :  { %v810_v38 = vsel %vm156_vm3, %v6947_v3, %v808_v55  ;;  %v816_v28 = vsel %vm156_vm3, %v808_v55, %v6943_v21  ;;  %v861_v58 = vsel %vm206_vm4, %v6945_v7, %v846_v6  ;;  %v5540_v52 = vpack.c.bf16 %v831_v2, %v827_v0 }
 0x29a   :  { %v829_v24 = vmul.f32 %v6391_v56, %v816_v28  ;;  %v832_v63 = vmul.f32 %v6396_v57, %v810_v38  ;;  %5503 = vmatprep.subr.bf16.mxu0 %v5502_v40  ;;  %v874_v56 = vmul.f32 %v6431_v35, %v861_v58  ;;  %v5546_v62 = vpack.c.bf16 %v10996_v32, %v10995_v11  ;;  %v11002_v58 = vld [vmem:[#allocation40_spill] sm:$0xff]  ;;  %v7518_v32 = vld [vmem:[%s10721_s1 + $0x20] sm:$0xff]  ;;  %v7528_v11 = vld [vmem:[%s10721_s1 + $0x10] sm:$0xff] }
 0x29b   :  { %11048 = vst [vmem:[#allocation45_spill] sm:$0xff] %v7528_v11 }
 0x29c   :  { %v5504_v3 = vpack.c.bf16 %v829_v24, %v825_v39  ;;  %v854_v30 = vpop.permute.xlu0 %853  ;;  %v848_v27 = vpop.permute.xlu1 %847  ;;  %v5538_v29 = vpack.c.bf16 %v832_v63, %v828_v4  ;;  %v10999_v39 = vld [vmem:[#allocation38_spill] sm:$0xff]  ;;  %v11000_v4 = vld [vmem:[#allocation5_spill] sm:$0xff]  ;;  %v11001_v63 = vld [vmem:[#allocation39_spill] sm:$0xff] }
 0x29d   :  { %v862_v59 = vsel %vm206_vm4, %v6951_v36, %v848_v27  ;;  %v863_v57 = vsel %vm206_vm4, %v854_v30, %v6945_v7  ;;  %v857_v54 = vsel %vm206_vm4, %v6949_v48, %v854_v30  ;;  %v860_v31 = vsel %vm206_vm4, %v848_v27, %v6955_v37  ;;  %v11004_v27 = vld [vmem:[#allocation11_spill] sm:$0xff] }
 0x29e   :  { %v878_v21 = vmul.f32 %v6426_v34, %v862_v59  ;;  %5505 = vmatpush1.bf16.msra.mxu0 %v5504_v3  ;;  %5539 = vmatprep.subr.bf16.mxu1 %v5538_v29  ;;  %v859_v7 = vsel %vm206_vm4, %v846_v6, %v6949_v48  ;;  %v873_v34 = vmul.f32 %v6466_v18, %v863_v57  ;;  %v10987_v48 = vld [vmem:[#allocation3_spill] sm:$0xff]  ;;  %v11003_v3 = vld [vmem:[#allocation10_spill] sm:$0xff]  ;;  %v11005_v59 = vld [vmem:[#allocation8_spill] sm:$0xff] }
 0x29f   :  { %5541 = vmatpush1.bf16.msra.mxu1 %v5540_v52  ;;  %v876_v47 = vmul.f32 %v6471_v19, %v857_v54  ;;  %v879_v50 = vmul.f32 %v6442_v53, %v860_v31  ;;  %v875_v46 = vmul.f32 %v10987_v48, %v859_v7  ;;  %v10989_v53 = vld [vmem:[#allocation46_spill] sm:$0xff]  ;;  %v5512_v38 = vpack.c.bf16 %v10999_v39, %v10998_v25  ;;  %v11008_v31 = vld [vmem:[#allocation47_spill] sm:$0xff] }
 0x2a0   :  { %v902_v1 = vpop.permute.xlu0 %901  ;;  %v856_v26 = vpop.permute.xlu1 %855  ;;  %v5506_v35 = vpack.c.bf16 %v878_v21, %v874_v56  ;;  %v5548_v0 = vpack.c.bf16 %v11002_v58, %v11001_v63  ;;  %v11006_v56 = vld [vmem:[#allocation9_spill] sm:$0xff]  ;;  %v11012_v48 = vld [vmem:[#allocation15_spill] sm:$0xff] }
 0x2a1   :  { %v858_v61 = vsel %vm206_vm4, %v6955_v37, %v856_v26  ;;  %v864_v41 = vsel %vm206_vm4, %v856_v26, %v6951_v36  ;;  %v915_v18 = vsel %vm264_vm5, %v902_v1, %v6957_v42  ;;  %v10988_v36 = vld [vmem:[#allocation48_spill] sm:$0xff]  ;;  %v5544_v12 = vpack.c.bf16 %v879_v50, %v875_v46  ;;  %v11007_v21 = vld [vmem:[#allocation49_spill] sm:$0xff]  ;;  %v11010_v50 = vld [vmem:[#allocation50_spill] sm:$0xff] }
 0x2a2   :  { %v877_v8 = vmul.f32 %v6456_v16, %v864_v41  ;;  %v880_v49 = vmul.f32 %v6461_v17, %v858_v61  ;;  %5507 = vmatprep.subr.bf16.mxu0 %v5506_v35  ;;  %v10990_v17 = vld [vmem:[#allocation41_spill] sm:$0xff]  ;;  %v917_v44 = vsel %vm264_vm5, %v10992_v5, %v902_v1  ;;  %v930_v14 = vmul.f32 %v10993_v22, %v915_v18  ;;  %v11009_v41 = vld [vmem:[#allocation52_spill] sm:$0xff]  ;;  %v11015_v22 = vld [vmem:[#allocation18_spill] sm:$0xff] }
 0x2a3   :  { %v5510_v13 = vpack.c.bf16 %v10991_v33, %v10990_v17 }
 0x2a4   :  { %v5508_v37 = vpack.c.bf16 %v877_v8, %v873_v34  ;;  %v910_v51 = vpop.permute.xlu0 %909  ;;  %v904_v43 = vpop.permute.xlu1 %903  ;;  %v5542_v45 = vpack.c.bf16 %v880_v49, %v876_v47  ;;  %v11011_v49 = vld [vmem:[#allocation13_spill] sm:$0xff] }
 0x2a5   :  { %v916_v19 = vsel %vm264_vm5, %v904_v43, %v10988_v36  ;;  %v918_v16 = vsel %vm264_vm5, %v10989_v53, %v904_v43  ;;  %v913_v60 = vsel %vm264_vm5, %v6957_v42, %v910_v51  ;;  %v919_v10 = vsel %vm264_vm5, %v910_v51, %v10992_v5  ;;  %v11014_v43 = vld [vmem:[#allocation14_spill] sm:$0xff] }
 0x2a6   :  { %v934_v15 = vmul.f32 %v10994_v20, %v916_v19  ;;  %5509 = vmatpush1.bf16.msra.mxu0 %v5508_v37  ;;  %5543 = vmatprep.subr.bf16.mxu1 %v5542_v45  ;;  %v933_v6 = vmul.f32 %v10997_v23, %v918_v16  ;;  %v929_v42 = vmul.f32 %v11000_v4, %v917_v44  ;;  %v11013_v37 = vld [vmem:[#allocation12_spill] sm:$0xff]  ;;  %v11016_v20 = vld [vmem:[#allocation19_spill] sm:$0xff] }
 0x2a7   :  { %5511 = vmatprep.subr.bf16.mxu0 %v5510_v13  ;;  %5545 = vmatpush1.bf16.msra.mxu1 %v5544_v12  ;;  %v931_v30 = vmul.f32 %v11003_v3, %v913_v60  ;;  %v932_v29 = vmul.f32 %v11004_v27, %v919_v10  ;;  %v11017_v60 = vld [vmem:[#allocation16_spill] sm:$0xff]  ;;  %v11022_v3 = vld [vmem:[#allocation54_spill] sm:$0xff]  ;;  %v11023_v27 = vld [vmem:[#allocation21_spill] sm:$0xff] }
 0x2a8   :  { %v950_v55 = vpop.permute.xlu0 %949  ;;  %v912_v40 = vpop.permute.xlu1 %911  ;;  %v5514_v28 = vpack.c.bf16 %v934_v15, %v930_v14  ;;  %5547 = vmatprep.subr.bf16.mxu1 %v5546_v62  ;;  %v5516_v26 = vpack.c.bf16 %v933_v6, %v929_v42  ;;  %v11018_v62 = vld [vmem:[#allocation17_spill] sm:$0xff] }
 0x2a9   :  { %v914_v2 = vsel %vm264_vm5, %v10988_v36, %v912_v40  ;;  %v920_v24 = vsel %vm264_vm5, %v912_v40, %v10989_v53  ;;  %v963_v54 = vsel %vm314_vm6, %v950_v55, %v11007_v21  ;;  %v965_v1 = vsel %vm314_vm6, %v11008_v31, %v950_v55  ;;  %v11019_v6 = vld [vmem:[#allocation53_spill] sm:$0xff]  ;;  %v11020_v40 = vld [vmem:[#allocation51_spill] sm:$0xff] }
 0x2aa   :  { %v935_v52 = vmul.f32 %v11005_v59, %v914_v2  ;;  %v936_v57 = vmul.f32 %v11006_v56, %v920_v24  ;;  %5513 = vmatpush1.bf16.msra.mxu0 %v5512_v38  ;;  %v977_v18 = vmul.f32 %v11011_v49, %v965_v1  ;;  %v978_v46 = vmul.f32 %v11012_v48, %v963_v54  ;;  %v11021_v24 = vld [vmem:[#allocation56_spill] sm:$0xff]  ;;  %v11024_v59 = vld [vmem:[#allocation23_spill] sm:$0xff] }
 0x2ab   :  { %5515 = vmatprep.subr.bf16.mxu0 %v5514_v28  ;;  %5549 = vmatpush1.bf16.msra.mxu1 %v5548_v0  ;;  %v11025_v56 = vld [vmem:[#allocation20_spill] sm:$0xff] }
 0x2ac   :  { %v5552_v35 = vpack.c.bf16 %v935_v52, %v931_v30  ;;  %v958_v7 = vpop.permute.xlu0 %957  ;;  %v952_v34 = vpop.permute.xlu1 %951  ;;  %v5550_v61 = vpack.c.bf16 %v936_v57, %v932_v29 }
 0x2ad   :  { %v964_v47 = vsel %vm314_vm6, %v952_v34, %v11009_v41  ;;  %v966_v8 = vsel %vm314_vm6, %v11010_v50, %v952_v34  ;;  %v961_v36 = vsel %vm314_vm6, %v11007_v21, %v958_v7  ;;  %v967_v19 = vsel %vm314_vm6, %v958_v7, %v11008_v31  ;;  %v11026_v21 = vld [vmem:[#allocation22_spill] sm:$0xff] }
 0x2ae   :  { %v981_v51 = vmul.f32 %v11013_v37, %v966_v8  ;;  %v982_v45 = vmul.f32 %v11014_v43, %v964_v47  ;;  %5517 = vmatpush1.bf16.msra.mxu0 %v5516_v26  ;;  %5551 = vmatprep.subr.bf16.mxu1 %v5550_v61  ;;  %v979_v14 = vmul.f32 %v11015_v22, %v961_v36  ;;  %v11027_v47 = vld [vmem:[#allocation26_spill] sm:$0xff]  ;;  %v11028_v8 = vld [vmem:[#allocation27_spill] sm:$0xff] }
 0x2af   :  { %5553 = vmatpush1.bf16.msra.mxu1 %v5552_v35  ;;  %v980_v15 = vmul.f32 %v11016_v20, %v967_v19 }
 0x2b0   :  { %v5520_v53 = vpack.c.bf16 %v981_v51, %v977_v18  ;;  %v998_v16 = vpop.permute.xlu0 %997  ;;  %v960_v13 = vpop.permute.xlu1 %959  ;;  %v5518_v12 = vpack.c.bf16 %v982_v45, %v978_v46  ;;  %v11029_v18 = vld [vmem:[#allocation24_spill] sm:$0xff]  ;;  %v11030_v46 = vld [vmem:[#allocation25_spill] sm:$0xff]  ;;  %v11032_v45 = vld [vmem:[#allocation55_spill] sm:$0xff] }
 0x2b1   :  { %v962_v5 = vsel %vm314_vm6, %v11009_v41, %v960_v13  ;;  %v968_v44 = vsel %vm314_vm6, %v960_v13, %v11010_v50  ;;  %v1011_v55 = vsel %vm364_vm7, %v998_v16, %v11019_v6  ;;  %v1013_v38 = vsel %vm364_vm7, %v11020_v40, %v998_v16  ;;  %v11031_v51 = vld [vmem:[#allocation57_spill] sm:$0xff] }
 0x2b2   :  { %v983_v10 = vmul.f32 %v11017_v60, %v962_v5  ;;  %v984_v23 = vmul.f32 %v11018_v62, %v968_v44  ;;  %5519 = vmatprep.subr.bf16.mxu0 %v5518_v12  ;;  %v1025_v29 = vmul.f32 %v11023_v27, %v1013_v38  ;;  %v1026_v52 = vmul.f32 %v11024_v59, %v1011_v55  ;;  %v11033_v12 = vld [vmem:[#allocation59_spill] sm:$0xff]  ;;  %v11034_v44 = vld [vmem:[#allocation58_spill] sm:$0xff]  ;;  %v11041_v27 = vld [vmem:[#allocation33_spill] sm:$0xff] }
 0x2b3   :  { %5521 = vmatpush1.bf16.msra.mxu0 %v5520_v53  ;;  %v11042_v59 = vld [vmem:[#allocation34_spill] sm:$0xff] }
 0x2b4   :  { %v5556_v28 = vpack.c.bf16 %v983_v10, %v979_v14  ;;  %v1006_v4 = vpop.permute.xlu0 %1005  ;;  %v1000_v42 = vpop.permute.xlu1 %999  ;;  %v5554_v2 = vpack.c.bf16 %v984_v23, %v980_v15  ;;  %v11035_v14 = vld [vmem:[#allocation29_spill] sm:$0xff]  ;;  %v11036_v15 = vld [vmem:[#allocation31_spill] sm:$0xff]  ;;  %v11037_v10 = vld [vmem:[#allocation28_spill] sm:$0xff] }
 0x2b5   :  { %v1012_v0 = vsel %vm364_vm7, %v1000_v42, %v11021_v24  ;;  %v1014_v30 = vsel %vm364_vm7, %v11022_v3, %v1000_v42  ;;  %v1009_v31 = vsel %vm364_vm7, %v11019_v6, %v1006_v4  ;;  %v1015_v1 = vsel %vm364_vm7, %v1006_v4, %v11020_v40  ;;  %v11038_v23 = vld [vmem:[#allocation30_spill] sm:$0xff] }
 0x2b6   :  { %v1029_v57 = vmul.f32 %v11025_v56, %v1014_v30  ;;  %v1030_v54 = vmul.f32 %v11026_v21, %v1012_v0  ;;  %5555 = vmatprep.subr.bf16.mxu1 %v5554_v2  ;;  %v1027_v50 = vmul.f32 %v11027_v47, %v1009_v31  ;;  %v1028_v49 = vmul.f32 %v11028_v8, %v1015_v1  ;;  %v4977_v31 = vld [vmem:[%s10722_s2 + $0x20] sm:$0xff]  ;;  %v4980_v1 = vld [vmem:[%s10722_s2 + $0x38] sm:$0xff] }
 0x2b7   :  { %5557 = vmatpush1.bf16.msra.mxu1 %v5556_v28 }
 0x2b8   :  { %v5524_v26 = vpack.c.bf16 %v1029_v57, %v1025_v29  ;;  %v1046_v35 = vpop.permute.xlu0 %1045  ;;  %v1008_v7 = vpop.permute.xlu1 %1007  ;;  %v5522_v34 = vpack.c.bf16 %v1030_v54, %v1026_v52  ;;  %v11043_v57 = vmov 1.0  }
 0x2b9   :  { %v1010_v61 = vsel %vm364_vm7, %v11021_v24, %v1008_v7  ;;  %v1016_v41 = vsel %vm364_vm7, %v1008_v7, %v11022_v3  ;;  %v1059_v43 = vsel %vm414_vm8, %v1046_v35, %v11031_v51  ;;  %v1061_v36 = vsel %vm414_vm8, %v11032_v45, %v1046_v35  ;;  %v11039_v24 = vld [vmem:[#allocation35_spill] sm:$0xff]  ;;  %v11040_v3 = vld [vmem:[#allocation36_spill] sm:$0xff] }
 0x2ba   :  { %v1031_v48 = vmul.f32 %v11029_v18, %v1010_v61  ;;  %v1032_v37 = vmul.f32 %v11030_v46, %v1016_v41  ;;  %5523 = vmatprep.subr.bf16.mxu0 %v5522_v34  ;;  %v1073_v20 = vmul.f32 %v11035_v14, %v1061_v36  ;;  %v1074_v60 = vmul.f32 %v11036_v15, %v1059_v43 }
 0x2bb   :  { %5525 = vmatpush1.bf16.msra.mxu0 %v5524_v26  ;;  %v4979_v26 = vld [vmem:[%s10722_s2 + $0x30] sm:$0xff] }
 0x2bc   :  { %v5560_v19 = vpack.c.bf16 %v1031_v48, %v1027_v50  ;;  %v1054_v53 = vpop.permute.xlu0 %1053  ;;  %v1048_v16 = vpop.permute.xlu1 %1047  ;;  %v5558_v13 = vpack.c.bf16 %v1032_v37, %v1028_v49 }
 0x2bd   :  { %v1060_v5 = vsel %vm414_vm8, %v1048_v16, %v11033_v12  ;;  %v1062_v22 = vsel %vm414_vm8, %v11034_v44, %v1048_v16  ;;  %v1057_v55 = vsel %vm414_vm8, %v11031_v51, %v1054_v53  ;;  %v1063_v40 = vsel %vm414_vm8, %v1054_v53, %v11032_v45 }
 0x2be   :  { %v1077_v62 = vmul.f32 %v11037_v10, %v1062_v22  ;;  %v1078_v6 = vmul.f32 %v11038_v23, %v1060_v5  ;;  %5559 = vmatprep.subr.bf16.mxu1 %v5558_v13  ;;  %v1075_v0 = vmul.f32 %v11039_v24, %v1057_v55  ;;  %v1076_v30 = vmul.f32 %v11040_v3, %v1063_v40 }
 0x2bf   :  { %5561 = vmatpush1.bf16.msra.mxu1 %v5560_v19 }
 0x2c0   :  { %v5528_v38 = vpack.c.bf16 %v1077_v62, %v1073_v20  ;;  %v1056_v28 = vpop.permute.xlu1 %1055  ;;  %v5526_v4 = vpack.c.bf16 %v1078_v6, %v1074_v60 }
 0x2c1   :  { %v1058_v42 = vsel %vm414_vm8, %v11033_v12, %v1056_v28  ;;  %v1064_v2 = vsel %vm414_vm8, %v1056_v28, %v11034_v44  ;;  %v5042_v12 = vld [vmem:[%s10722_s2 + $0x48] sm:$0xff] }
 0x2c2   :  { %v1079_v29 = vmul.f32 %v11041_v27, %v1058_v42  ;;  %v1080_v52 = vmul.f32 %v11042_v59, %v1064_v2  ;;  %5527 = vmatprep.subr.bf16.mxu0 %v5526_v4 }
 0x2c3   :  { %5529 = vmatpush1.bf16.msra.mxu0 %v5528_v38 }
 0x2c4   :  { %v5564_v56 = vpack.c.bf16 %v1079_v29, %v1075_v0  ;;  %5311 = vmatprep.subr.msk.mxu0 %vm25_vm9, %v11043_v57  ;;  %v5562_v54 = vpack.c.bf16 %v1080_v52, %v1076_v30 }
 0x2c6   :  { %5563 = vmatprep.subr.bf16.mxu1 %v5562_v54 }
 0x2c7   :  { %5312 = vmatpush1.msk.msra.mxu0 %vm25_vm9, %v11043_v57  ;;  %5565 = vmatpush1.bf16.msra.mxu1 %v5564_v56 }
 0x2c8   :  { %1241 = vmatmul.mubr.f32.vlgmr.msra.gmra.mrb[4].mxu0 %v4977_v31  ;;  %5313 = vmatprep.subr.msk.mxu1 %vm25_vm9, %v11043_v57 }
 0x2c9   :  { %4982 = vmatprep.mubr.msk.f32.mxu0 %vm528_vm1, %v4980_v1 }
 0x2cb   :  { %5314 = vmatpush1.msk.msra.mxu1 %vm25_vm9, %v11043_v57 }
 0x2cc   :  { %1247 = vmatmul.mubr.f32.gmra.mrb[6].mxu0 %v4979_v26  ;;  %1318 = vmatmul.mubr.f32.vlgmr.msra.gmra.mrb[4].mxu1 %v4977_v31 }
 0x2cd   :  { %4984 = vmatprep.mubr.msk.f32.mxu1 %vm528_vm1, %v4980_v1  ;;  %5045 = vmatprep.mubr.msk.f32.mxu0 %vm528_vm1, %v5042_v12 }
 0x2d0   :  { %1324 = vmatmul.mubr.f32.gmra.mrb[6].mxu1 %v4979_v26  ;;  %v7480_v26 = vld [vmem:[%s10721_s1 + $0x8] sm:$0xff] }
 0x2d1   :  { %5047 = vmatprep.mubr.msk.f32.mxu1 %vm528_vm1, %v5042_v12  ;;  %11045 = vst [vmem:[#allocation3_spill] sm:$0xff] %v7480_v26 }
 0x39b   :  { %v1242_v35 = vpop.f32.mrb[4].mxu0 }
 0x39c   :  { %v7266_v7 = vmax.f32 %v1242_v35, 0.0  ;;  %v1244_v34 = vpop.f32.mrb[5].mxu0 }
 0x39d   :  { %v7340_v43 = vmax.f32 %v1244_v34, 0.0  ;;  %v7487_v34 = vld [vmem:[%s10721_s1 + $0x28] sm:$0xff] }
 0x39e   :  { %1338 = vrot.lane.b32.xlu0 %v7266_v7, %s6006_s25  ;;  %11046 = vst [vmem:[#allocation48_spill] sm:$0xff] %v7487_v34 }
 0x39f   :  { %v1248_v61 = vpop.f32.mrb[6].mxu0  ;;  %v1319_v41 = vpop.f32.mrb[4].mxu1 }
 0x3a0   :  { %v7270_v47 = vmax.f32 %v1248_v61, 0.0  ;;  %v7272_v50 = vmax.f32 %v1319_v41, 0.0  ;;  %v1250_v8 = vpop.f32.mrb[7].mxu0  ;;  %v1321_v49 = vpop.f32.mrb[5].mxu1 }
 0x3a1   :  { %v7346_v45 = vmax.f32 %v1250_v8, 0.0  ;;  %v7348_v36 = vmax.f32 %v1321_v49, 0.0 }
 0x3a2   :  { %1346 = vrot.lane.b32.xlu0 %v7272_v50, %s6006_s25  ;;  %1340 = vrot.lane.b32.xlu1 %v7270_v47, %s6006_s25 }
 0x3a3   :  { %v1325_v48 = vpop.f32.mrb[6].mxu1 }
 0x3a4   :  { %v7280_v46 = vmax.f32 %v1325_v48, 0.0  ;;  %v1327_v37 = vpop.f32.mrb[7].mxu1  ;;  %v7496_v48 = vld [vmem:[%s10721_s1] sm:$0xff] }
 0x3a5   :  { %v7354_v19 = vmax.f32 %v1327_v37, 0.0  ;;  %v7501_v37 = vld [vmem:[%s10721_s1 + $0x18] sm:$0xff] }
 0x3a6   :  { %1386 = vrot.lane.b32.xlu0 %v7266_v7, %s6007_s14  ;;  %1348 = vrot.lane.b32.xlu1 %v7280_v46, %s6006_s25 }
 0x3aa   :  { %1394 = vrot.lane.b32.xlu0 %v7272_v50, %s6007_s14  ;;  %1388 = vrot.lane.b32.xlu1 %v7270_v47, %s6007_s14 }
 0x3ae   :  { %1434 = vrot.lane.b32.xlu0 %v7266_v7, %s6008_s0  ;;  %1396 = vrot.lane.b32.xlu1 %v7280_v46, %s6007_s14 }
 0x3b2   :  { %1442 = vrot.lane.b32.xlu0 %v7272_v50, %s6008_s0  ;;  %1436 = vrot.lane.b32.xlu1 %v7270_v47, %s6008_s0 }
 0x3b6   :  { %1482 = vrot.lane.b32.xlu0 %v7266_v7, %s6009_s15  ;;  %1444 = vrot.lane.b32.xlu1 %v7280_v46, %s6008_s0 }
 0x3ba   :  { %1490 = vrot.lane.b32.xlu0 %v7272_v50, %s6009_s15  ;;  %1484 = vrot.lane.b32.xlu1 %v7270_v47, %s6009_s15 }
 0x3be   :  { %1538 = vrot.lane.b32.xlu0 %v7266_v7, %s6010_s16  ;;  %1492 = vrot.lane.b32.xlu1 %v7280_v46, %s6009_s15 }
 0x3c2   :  { %1546 = vrot.lane.b32.xlu0 %v7272_v50, %s6010_s16  ;;  %1540 = vrot.lane.b32.xlu1 %v7270_v47, %s6010_s16 }
 0x3c6   :  { %1586 = vrot.lane.b32.xlu0 %v7266_v7, %s6011_s17  ;;  %1548 = vrot.lane.b32.xlu1 %v7280_v46, %s6010_s16 }
 0x3ca   :  { %1594 = vrot.lane.b32.xlu0 %v7272_v50, %s6011_s17  ;;  %1588 = vrot.lane.b32.xlu1 %v7270_v47, %s6011_s17 }
 0x3ce   :  { %1634 = vrot.lane.b32.xlu0 %v7266_v7, %s6012_s18  ;;  %1596 = vrot.lane.b32.xlu1 %v7280_v46, %s6011_s17 }
 0x3d2   :  { %1642 = vrot.lane.b32.xlu0 %v7272_v50, %s6012_s18  ;;  %1636 = vrot.lane.b32.xlu1 %v7270_v47, %s6012_s18 }
 0x3d6   :  { %1682 = vrot.lane.b32.xlu0 %v7266_v7, %s6013_s19  ;;  %1644 = vrot.lane.b32.xlu1 %v7280_v46, %s6012_s18 }
 0x3da   :  { %1690 = vrot.lane.b32.xlu0 %v7272_v50, %s6013_s19  ;;  %1684 = vrot.lane.b32.xlu1 %v7270_v47, %s6013_s19 }
 0x3de   :  { %1342 = vrot.lane.b32.xlu0 %v7340_v43, %s6006_s25  ;;  %1692 = vrot.lane.b32.xlu1 %v7280_v46, %s6013_s19 }
 0x3e2   :  { %1350 = vrot.lane.b32.xlu0 %v7348_v36, %s6006_s25  ;;  %1344 = vrot.lane.b32.xlu1 %v7346_v45, %s6006_s25 }
 0x3e6   :  { %1390 = vrot.lane.b32.xlu0 %v7340_v43, %s6007_s14  ;;  %1352 = vrot.lane.b32.xlu1 %v7354_v19, %s6006_s25 }
 0x3ea   :  { %1398 = vrot.lane.b32.xlu0 %v7348_v36, %s6007_s14  ;;  %1392 = vrot.lane.b32.xlu1 %v7346_v45, %s6007_s14 }
 0x3ee   :  { %1438 = vrot.lane.b32.xlu0 %v7340_v43, %s6008_s0  ;;  %1400 = vrot.lane.b32.xlu1 %v7354_v19, %s6007_s14 }
 0x3f2   :  { %1446 = vrot.lane.b32.xlu0 %v7348_v36, %s6008_s0  ;;  %1440 = vrot.lane.b32.xlu1 %v7346_v45, %s6008_s0 }
 0x3f6   :  { %1486 = vrot.lane.b32.xlu0 %v7340_v43, %s6009_s15  ;;  %1448 = vrot.lane.b32.xlu1 %v7354_v19, %s6008_s0 }
 0x3fa   :  { %1494 = vrot.lane.b32.xlu0 %v7348_v36, %s6009_s15  ;;  %1488 = vrot.lane.b32.xlu1 %v7346_v45, %s6009_s15 }
 0x3fe   :  { %1542 = vrot.lane.b32.xlu0 %v7340_v43, %s6010_s16  ;;  %1496 = vrot.lane.b32.xlu1 %v7354_v19, %s6009_s15 }
 0x402   :  { %1550 = vrot.lane.b32.xlu0 %v7348_v36, %s6010_s16  ;;  %1544 = vrot.lane.b32.xlu1 %v7346_v45, %s6010_s16 }
 0x406   :  { %1590 = vrot.lane.b32.xlu0 %v7340_v43, %s6011_s17  ;;  %1552 = vrot.lane.b32.xlu1 %v7354_v19, %s6010_s16 }
 0x40a   :  { %1598 = vrot.lane.b32.xlu0 %v7348_v36, %s6011_s17  ;;  %1592 = vrot.lane.b32.xlu1 %v7346_v45, %s6011_s17 }
 0x40e   :  { %1638 = vrot.lane.b32.xlu0 %v7340_v43, %s6012_s18  ;;  %1600 = vrot.lane.b32.xlu1 %v7354_v19, %s6011_s17 }
 0x410   :  { %v1339_v53 = vpop.permute.xlu0 %1338 }
 0x412   :  { %1646 = vrot.lane.b32.xlu0 %v7348_v36, %s6012_s18  ;;  %1640 = vrot.lane.b32.xlu1 %v7346_v45, %s6012_s18 }
 0x414   :  { %v1347_v16 = vpop.permute.xlu0 %1346  ;;  %v7404_v13 = vpop.permute.xlu1 %1340 }
 0x416   :  { %1686 = vrot.lane.b32.xlu0 %v7340_v43, %s6013_s19  ;;  %1648 = vrot.lane.b32.xlu1 %v7354_v19, %s6012_s18 }
 0x418   :  { %v7413_v5 = vpop.permute.xlu0 %1386  ;;  %v1349_v44 = vpop.permute.xlu1 %1348 }
 0x41a   :  { %1694 = vrot.lane.b32.xlu0 %v7348_v36, %s6013_s19  ;;  %1688 = vrot.lane.b32.xlu1 %v7346_v45, %s6013_s19 }
 0x41c   :  { %v7421_v22 = vpop.permute.xlu0 %1394  ;;  %v7423_v14 = vpop.permute.xlu1 %1388 }
 0x41e   :  { %1696 = vrot.lane.b32.xlu1 %v7354_v19, %s6013_s19 }
 0x420   :  { %v7427_v20 = vpop.permute.xlu0 %1434  ;;  %v7429_v15 = vpop.permute.xlu1 %1396 }
 0x424   :  { %v7431_v60 = vpop.permute.xlu0 %1442  ;;  %v7433_v10 = vpop.permute.xlu1 %1436 }
 0x428   :  { %v7435_v62 = vpop.permute.xlu0 %1482  ;;  %v7437_v23 = vpop.permute.xlu1 %1444 }
 0x42c   :  { %v7439_v6 = vpop.permute.xlu0 %1490  ;;  %v7441_v55 = vpop.permute.xlu1 %1484 }
 0x430   :  { %v7443_v40 = vpop.permute.xlu0 %1538  ;;  %v7445_v38 = vpop.permute.xlu1 %1492 }
 0x434   :  { %v7447_v28 = vpop.permute.xlu0 %1546  ;;  %v7449_v4 = vpop.permute.xlu1 %1540 }
 0x438   :  { %v7451_v42 = vpop.permute.xlu0 %1586  ;;  %v7453_v2 = vpop.permute.xlu1 %1548 }
 0x43c   :  { %v7455_v24 = vpop.permute.xlu0 %1594  ;;  %v7457_v0 = vpop.permute.xlu1 %1588 }
 0x440   :  { %v7459_v3 = vpop.permute.xlu0 %1634  ;;  %v7461_v30 = vpop.permute.xlu1 %1596 }
 0x444   :  { %v7463_v27 = vpop.permute.xlu0 %1642  ;;  %v7465_v29 = vpop.permute.xlu1 %1636 }
 0x448   :  { %v7467_v59 = vpop.permute.xlu0 %1682  ;;  %v7469_v52 = vpop.permute.xlu1 %1644 }
 0x44c   :  { %v7471_v56 = vpop.permute.xlu0 %1690  ;;  %v7473_v54 = vpop.permute.xlu1 %1684 }
 0x450   :  { %v1343_v31 = vpop.permute.xlu0 %1342  ;;  %v7475_v1 = vpop.permute.xlu1 %1692 }
 0x451   :  { %v1358_v35 = vsel %vm57_vm0, %v1339_v53, %v1343_v31 }
 0x452   :  { %v1371_v49 = vmul.f32 %v7480_v26, %v1358_v35  ;;  %v7511_v35 = vld [vmem:[%s10721_s1 + $0x30] sm:$0xff] }
 0x454   :  { %v1351_v61 = vpop.permute.xlu0 %1350  ;;  %v1345_v41 = vpop.permute.xlu1 %1344 }
 0x455   :  { %v1359_v8 = vsel %vm57_vm0, %v7404_v13, %v1345_v41  ;;  %v1360_v12 = vsel %vm57_vm0, %v1351_v61, %v1339_v53  ;;  %v1354_v18 = vsel %vm57_vm0, %v1347_v16, %v1351_v61  ;;  %v1357_v26 = vsel %vm57_vm0, %v1345_v41, %v1349_v44  ;;  %v7523_v53 = vld [vmem:[%s10721_s1 + $0x38] sm:$0xff] }
 0x456   :  { %v1375_v51 = vmul.f32 %v7487_v34, %v1359_v8  ;;  %11047 = vst [vmem:[#allocation46_spill] sm:$0xff] %v7523_v53  ;;  %v1356_v41 = vsel %vm57_vm0, %v1343_v31, %v1347_v16  ;;  %v1370_v33 = vmul.f32 %v7496_v48, %v1360_v12  ;;  %v1373_v63 = vmul.f32 %v7501_v37, %v1354_v18  ;;  %v7545_v16 = vld [vmem:[%s10721_s1 + $0x48] sm:$0xff] }
 0x457   :  { %11049 = vst [vmem:[#allocation7_spill] sm:$0xff] %v7545_v16  ;;  %v7553_v18 = vld [vmem:[%s10721_s1 + $0x68] sm:$0xff] }
 0x458   :  { %v1391_v8 = vpop.permute.xlu0 %1390  ;;  %v1353_v61 = vpop.permute.xlu1 %1352  ;;  %v5566_v34 = vpack.c.bf16 %v1375_v51, %v1371_v49  ;;  %v1376_v51 = vmul.f32 %v7511_v35, %v1357_v26  ;;  %11050 = vst [vmem:[#allocation6_spill] sm:$0xff] %v7553_v18 }
 0x459   :  { %v1355_v17 = vsel %vm57_vm0, %v1349_v44, %v1353_v61  ;;  %v1361_v58 = vsel %vm57_vm0, %v1353_v61, %v7404_v13  ;;  %v1406_v44 = vsel %vm106_vm2, %v7413_v5, %v1391_v8  ;;  %v1372_v13 = vmul.f32 %v7528_v11, %v1356_v41  ;;  %v7568_v41 = vld [vmem:[%s10721_s1 + $0x58] sm:$0xff] }
 0x45a   :  { %v1374_v49 = vmul.f32 %v7518_v32, %v1361_v58  ;;  %v1377_v39 = vmul.f32 %v7523_v53, %v1355_v17  ;;  %5567 = vmatprep.subr.bf16.mxu0 %v5566_v34  ;;  %v1419_v61 = vmul.f32 %v7545_v16, %v1406_v44  ;;  %v7563_v53 = vld [vmem:[%s10721_s1 + $0x40] sm:$0xff]  ;;  %v7593_v44 = vld [vmem:[%s10721_s1 + $0x78] sm:$0xff] }
 0x45b   :  { %v5604_v12 = vpack.c.bf16 %v1376_v51, %v1372_v13  ;;  %v7580_v51 = vld [vmem:[%s10721_s1 + $0x70] sm:$0xff]  ;;  %11051 = vst [vmem:[#allocation4_spill] sm:$0xff] %v7593_v44 }
 0x45c   :  { %v5568_v58 = vpack.c.bf16 %v1374_v49, %v1370_v33  ;;  %v1399_v31 = vpop.permute.xlu0 %1398  ;;  %v1393_v17 = vpop.permute.xlu1 %1392  ;;  %v5602_v26 = vpack.c.bf16 %v1377_v39, %v1373_v63 }
 0x45d   :  { %v1407_v34 = vsel %vm106_vm2, %v7423_v14, %v1393_v17  ;;  %v1408_v33 = vsel %vm106_vm2, %v1399_v31, %v7413_v5  ;;  %v1402_v63 = vsel %vm106_vm2, %v7421_v22, %v1399_v31  ;;  %v1405_v49 = vsel %vm106_vm2, %v1393_v17, %v7429_v15  ;;  %v7588_v5 = vld [vmem:[%s10721_s1 + $0x60] sm:$0xff] }
 0x45e   :  { %v1423_v39 = vmul.f32 %v7553_v18, %v1407_v34  ;;  %5569 = vmatpush1.bf16.msra.mxu0 %v5568_v58  ;;  %5603 = vmatprep.subr.bf16.mxu1 %v5602_v26  ;;  %v7598_v34 = vld [vmem:[%s10721_s1 + $0x50] sm:$0xff]  ;;  %v1404_v17 = vsel %vm106_vm2, %v1391_v8, %v7421_v22  ;;  %v1418_v26 = vmul.f32 %v7563_v53, %v1408_v33  ;;  %v7617_v22 = vld [vmem:[%s10721_s1 + $0x88] sm:$0xff] }
 0x45f   :  { %5605 = vmatpush1.bf16.msra.mxu1 %v5604_v12  ;;  %11052 = vst [vmem:[#allocation37_spill] sm:$0xff] %v7598_v34  ;;  %11053 = vst [vmem:[#allocation5_spill] sm:$0xff] %v7617_v22  ;;  %v1420_v8 = vmul.f32 %v7598_v34, %v1404_v17  ;;  %v7640_v17 = vld [vmem:[%s10721_s1 + $0x98] sm:$0xff] }
 0x460   :  { %v1439_v13 = vpop.permute.xlu0 %1438  ;;  %v1401_v58 = vpop.permute.xlu1 %1400  ;;  %v5570_v31 = vpack.c.bf16 %v1423_v39, %v1419_v61  ;;  %v1421_v61 = vmul.f32 %v7568_v41, %v1402_v63  ;;  %v1424_v39 = vmul.f32 %v7580_v51, %v1405_v49 }
 0x461   :  { %v1403_v18 = vsel %vm106_vm2, %v7429_v15, %v1401_v58  ;;  %v1409_v12 = vsel %vm106_vm2, %v1401_v58, %v7423_v14  ;;  %v1454_v15 = vsel %vm156_vm3, %v7427_v20, %v1439_v13  ;;  %v7625_v14 = vld [vmem:[%s10721_s1 + $0xa8] sm:$0xff] }
 0x462   :  { %v1422_v16 = vmul.f32 %v7588_v5, %v1409_v12  ;;  %v1425_v11 = vmul.f32 %v7593_v44, %v1403_v18  ;;  %5571 = vmatprep.subr.bf16.mxu0 %v5570_v31  ;;  %11054 = vst [vmem:[#allocation10_spill] sm:$0xff] %v7625_v14  ;;  %v5608_v31 = vpack.c.bf16 %v1424_v39, %v1420_v8  ;;  %v7635_v44 = vld [vmem:[%s10721_s1 + $0x80] sm:$0xff] }
 0x463   :  { %v1467_v12 = vmul.f32 %v7617_v22, %v1454_v15  ;;  %v7665_v15 = vld [vmem:[%s10721_s1 + $0xb8] sm:$0xff] }
 0x464   :  { %v5572_v33 = vpack.c.bf16 %v1422_v16, %v1418_v26  ;;  %v1447_v63 = vpop.permute.xlu0 %1446  ;;  %v1441_v18 = vpop.permute.xlu1 %1440  ;;  %v5606_v49 = vpack.c.bf16 %v1425_v11, %v1421_v61  ;;  %v7652_v61 = vld [vmem:[%s10721_s1 + $0xb0] sm:$0xff]  ;;  %11055 = vst [vmem:[#allocation11_spill] sm:$0xff] %v7665_v15 }
 0x465   :  { %v1455_v58 = vsel %vm156_vm3, %v7433_v10, %v1441_v18  ;;  %v1456_v11 = vsel %vm156_vm3, %v1447_v63, %v7427_v20  ;;  %v1450_v26 = vsel %vm156_vm3, %v7431_v60, %v1447_v63  ;;  %v1453_v39 = vsel %vm156_vm3, %v1441_v18, %v7437_v23  ;;  %v7660_v20 = vld [vmem:[%s10721_s1 + $0xa0] sm:$0xff] }
 0x466   :  { %v1471_v16 = vmul.f32 %v7625_v14, %v1455_v58  ;;  %5573 = vmatpush1.bf16.msra.mxu0 %v5572_v33  ;;  %5607 = vmatprep.subr.bf16.mxu1 %v5606_v49  ;;  %v7670_v58 = vld [vmem:[%s10721_s1 + $0x90] sm:$0xff]  ;;  %v1452_v18 = vsel %vm156_vm3, %v1439_v13, %v7431_v60  ;;  %v1466_v49 = vmul.f32 %v7635_v44, %v1456_v11  ;;  %v7689_v60 = vld [vmem:[%s10721_s1 + $0xc8] sm:$0xff] }
 0x467   :  { %5609 = vmatpush1.bf16.msra.mxu1 %v5608_v31  ;;  %11056 = vst [vmem:[#allocation8_spill] sm:$0xff] %v7670_v58  ;;  %11057 = vst [vmem:[#allocation9_spill] sm:$0xff] %v7689_v60  ;;  %v1468_v13 = vmul.f32 %v7670_v58, %v1452_v18  ;;  %v7712_v18 = vld [vmem:[%s10721_s1 + $0xd8] sm:$0xff] }
 0x468   :  { %v1487_v8 = vpop.permute.xlu0 %1486  ;;  %v1449_v33 = vpop.permute.xlu1 %1448  ;;  %v5574_v63 = vpack.c.bf16 %v1471_v16, %v1467_v12  ;;  %v1469_v12 = vmul.f32 %v7640_v17, %v1450_v26  ;;  %v1472_v16 = vmul.f32 %v7652_v61, %v1453_v39 }
 0x469   :  { %v1451_v14 = vsel %vm156_vm3, %v7437_v23, %v1449_v33  ;;  %v1457_v31 = vsel %vm156_vm3, %v1449_v33, %v7433_v10  ;;  %v1502_v23 = vsel %vm206_vm4, %v7435_v62, %v1487_v8  ;;  %v7697_v10 = vld [vmem:[%s10721_s1 + $0xe8] sm:$0xff] }
 0x46a   :  { %v1470_v22 = vmul.f32 %v7660_v20, %v1457_v31  ;;  %v1473_v34 = vmul.f32 %v7665_v15, %v1451_v14  ;;  %5575 = vmatprep.subr.bf16.mxu0 %v5574_v63  ;;  %11058 = vst [vmem:[#allocation49_spill] sm:$0xff] %v7697_v10  ;;  %v5612_v63 = vpack.c.bf16 %v1472_v16, %v1468_v13  ;;  %v7707_v15 = vld [vmem:[%s10721_s1 + $0xc0] sm:$0xff] }
 0x46b   :  { %v1515_v31 = vmul.f32 %v7689_v60, %v1502_v23  ;;  %v7737_v23 = vld [vmem:[%s10721_s1 + $0xf8] sm:$0xff] }
 0x46c   :  { %v5576_v11 = vpack.c.bf16 %v1470_v22, %v1466_v49  ;;  %v1495_v26 = vpop.permute.xlu0 %1494  ;;  %v1489_v14 = vpop.permute.xlu1 %1488  ;;  %v5610_v39 = vpack.c.bf16 %v1473_v34, %v1469_v12  ;;  %v7724_v12 = vld [vmem:[%s10721_s1 + $0xf0] sm:$0xff] }
 0x46d   :  { %v1503_v33 = vsel %vm206_vm4, %v7441_v55, %v1489_v14  ;;  %v1504_v34 = vsel %vm206_vm4, %v1495_v26, %v7435_v62  ;;  %v1498_v49 = vsel %vm206_vm4, %v7439_v6, %v1495_v26  ;;  %v1501_v16 = vsel %vm206_vm4, %v1489_v14, %v7445_v38  ;;  %v7732_v62 = vld [vmem:[%s10721_s1 + $0xe0] sm:$0xff] }
 0x46e   :  { %v1519_v22 = vmul.f32 %v7697_v10, %v1503_v33  ;;  %5577 = vmatpush1.bf16.msra.mxu0 %v5576_v11  ;;  %5611 = vmatprep.subr.bf16.mxu1 %v5610_v39  ;;  %v7742_v33 = vld [vmem:[%s10721_s1 + $0xd0] sm:$0xff]  ;;  %v1500_v14 = vsel %vm206_vm4, %v1487_v8, %v7439_v6  ;;  %v1514_v39 = vmul.f32 %v7707_v15, %v1504_v34  ;;  %v7761_v6 = vld [vmem:[%s10721_s1 + $0x148] sm:$0xff] }
 0x46f   :  { %5613 = vmatpush1.bf16.msra.mxu1 %v5612_v63  ;;  %11059 = vst [vmem:[#allocation47_spill] sm:$0xff] %v7742_v33  ;;  %v1516_v8 = vmul.f32 %v7742_v33, %v1500_v14  ;;  %v5582_v14 = vpack.c.bf16 %v7346_v45, %v7340_v43  ;;  %v7797_v33 = vld [vmem:[%s10721_s1 + $0x150] sm:$0xff]  ;;  %v7803_v43 = vld [vmem:[%s10721_s1 + $0x158] sm:$0xff] }
 0x470   :  { %v1543_v13 = vpop.permute.xlu0 %1542  ;;  %v1497_v11 = vpop.permute.xlu1 %1496  ;;  %v5578_v26 = vpack.c.bf16 %v1519_v22, %v1515_v31  ;;  %v1517_v31 = vmul.f32 %v7712_v18, %v1498_v49  ;;  %v1520_v22 = vmul.f32 %v7724_v12, %v1501_v16  ;;  %11061 = vst [vmem:[#allocation50_spill] sm:$0xff] %v7797_v33  ;;  %11062 = vst [vmem:[#allocation13_spill] sm:$0xff] %v7803_v43 }
 0x471   :  { %v1499_v10 = vsel %vm206_vm4, %v7445_v38, %v1497_v11  ;;  %v1505_v63 = vsel %vm206_vm4, %v1497_v11, %v7441_v55  ;;  %v1556_v38 = vsel %vm264_vm5, %v1543_v13, %v7447_v28  ;;  %v7769_v55 = vld [vmem:[%s10721_s1 + $0x168] sm:$0xff]  ;;  %v7775_v11 = vld [vmem:[%s10721_s1 + $0x160] sm:$0xff] }
 0x472   :  { %v1518_v60 = vmul.f32 %v7732_v62, %v1505_v63  ;;  %v1521_v58 = vmul.f32 %v7737_v23, %v1499_v10  ;;  %5579 = vmatprep.subr.bf16.mxu0 %v5578_v26 }
 0x474   :  { %v5580_v34 = vpack.c.bf16 %v1518_v60, %v1514_v39  ;;  %v1551_v49 = vpop.permute.xlu0 %1550  ;;  %v1545_v10 = vpop.permute.xlu1 %1544  ;;  %v5614_v16 = vpack.c.bf16 %v1521_v58, %v1517_v31  ;;  %v5616_v60 = vpack.c.bf16 %v1520_v22, %v1516_v8  ;;  %v7788_v58 = vld [vmem:[%s10721_s1 + $0x140] sm:$0xff]  ;;  %v1558_v39 = vsel %vm264_vm5, %v7443_v40, %v1543_v13  ;;  %v7821_v8 = vld [vmem:[%s10721_s1 + $0x178] sm:$0xff] }
 0x475   :  { %v1557_v26 = vsel %vm264_vm5, %v1545_v10, %v7453_v2  ;;  %v1559_v63 = vsel %vm264_vm5, %v7449_v4, %v1545_v10  ;;  %11060 = vst [vmem:[#allocation52_spill] sm:$0xff] %v7788_v58  ;;  %v1571_v31 = vmul.f32 %v7761_v6, %v1556_v38  ;;  %v1554_v45 = vsel %vm264_vm5, %v7447_v28, %v1551_v49  ;;  %v7816_v38 = vld [vmem:[%s10721_s1 + $0x170] sm:$0xff] }
 0x476   :  { %v1575_v10 = vmul.f32 %v7769_v55, %v1557_v26  ;;  %5581 = vmatpush1.bf16.msra.mxu0 %v5580_v34  ;;  %v1560_v13 = vsel %vm264_vm5, %v1551_v49, %v7443_v40  ;;  %5615 = vmatprep.subr.bf16.mxu1 %v5614_v16  ;;  %v5618_v22 = vpack.c.bf16 %v7354_v19, %v7348_v36 }
 0x477   :  { %5583 = vmatprep.subr.bf16.mxu0 %v5582_v14  ;;  %11063 = vst [vmem:[#allocation15_spill] sm:$0xff] %v7816_v38  ;;  %11064 = vst [vmem:[#allocation12_spill] sm:$0xff] %v7821_v8  ;;  %v1574_v28 = vmul.f32 %v7775_v11, %v1559_v63  ;;  %5617 = vmatpush1.bf16.msra.mxu1 %v5616_v60  ;;  %v1570_v16 = vmul.f32 %v7788_v58, %v1558_v39  ;;  %v7836_v63 = vld [vmem:[%s10721_s1 + $0x180] sm:$0xff] }
 0x478   :  { %v1591_v34 = vpop.permute.xlu0 %1590  ;;  %v1553_v40 = vpop.permute.xlu1 %1552  ;;  %v5586_v49 = vpack.c.bf16 %v1575_v10, %v1571_v31  ;;  %5619 = vmatprep.subr.bf16.mxu1 %v5618_v22  ;;  %v1572_v26 = vmul.f32 %v7797_v33, %v1554_v45  ;;  %v1573_v14 = vmul.f32 %v7803_v43, %v1560_v13  ;;  %11065 = vst [vmem:[#allocation14_spill] sm:$0xff] %v7836_v63  ;;  %v7857_v45 = vld [vmem:[%s10721_s1 + $0x1a0] sm:$0xff] }
 0x479   :  { %v1555_v36 = vsel %vm264_vm5, %v7453_v2, %v1553_v40  ;;  %v1561_v19 = vsel %vm264_vm5, %v1553_v40, %v7449_v4  ;;  %v11066_v2 = vpack.c.bf16 %v7270_v47, %v7266_v7  ;;  %v7846_v4 = vld [vmem:[%s10721_s1 + $0x188] sm:$0xff]  ;;  %v1604_v31 = vsel %vm314_vm6, %v1591_v34, %v7455_v24  ;;  %11068 = vst [vmem:[#allocation19_spill] sm:$0xff] %v7857_v45 }
 0x47a   :  { %v1576_v60 = vmul.f32 %v7816_v38, %v1555_v36  ;;  %v1577_v39 = vmul.f32 %v7821_v8, %v1561_v19  ;;  %11067 = vst [vmem:[#allocation18_spill] sm:$0xff] %v7846_v4  ;;  %v1606_v10 = vsel %vm314_vm6, %v7451_v42, %v1591_v34  ;;  %v7862_v7 = vld [vmem:[%s10721_s1 + $0x1a8] sm:$0xff]  ;;  %v5588_v47 = vpack.c.bf16 %v1574_v28, %v1570_v16 }
 0x47b   :  { %5585 = vmatpush1.bf16.msra.mxu0 %v11066_v2  ;;  %11069 = vst [vmem:[#allocation16_spill] sm:$0xff] %v7862_v7  ;;  %v11070_v22 = vpack.c.bf16 %v7280_v46, %v7272_v50  ;;  %v1618_v2 = vmul.f32 %v7836_v63, %v1606_v10  ;;  %v1619_v28 = vmul.f32 %v7846_v4, %v1604_v31  ;;  %v7878_v50 = vld [vmem:[%s10721_s1 + $0x190] sm:$0xff]  ;;  %v7901_v31 = vld [vmem:[%s10721_s1 + $0x1b8] sm:$0xff] }
 0x47c   :  { %5587 = vmatprep.subr.bf16.mxu0 %v5586_v49  ;;  %v5624_v13 = vpack.c.bf16 %v1576_v60, %v1572_v26  ;;  %v1599_v40 = vpop.permute.xlu0 %1598  ;;  %v1593_v36 = vpop.permute.xlu1 %1592  ;;  %v5622_v34 = vpack.c.bf16 %v1577_v39, %v1573_v14  ;;  %11071 = vst [vmem:[#allocation17_spill] sm:$0xff] %v7878_v50  ;;  %v7885_v26 = vld [vmem:[%s10721_s1 + $0x198] sm:$0xff]  ;;  %v7896_v39 = vld [vmem:[%s10721_s1 + $0x1b0] sm:$0xff]  ;;  %11074 = vst [vmem:[#allocation56_spill] sm:$0xff] %v7901_v31 }
 0x47d   :  { %5621 = vmatpush1.bf16.msra.mxu1 %v11070_v22  ;;  %v1605_v49 = vsel %vm314_vm6, %v1593_v36, %v7461_v30  ;;  %v1607_v19 = vsel %vm314_vm6, %v7457_v0, %v1593_v36  ;;  %11072 = vst [vmem:[#allocation53_spill] sm:$0xff] %v7885_v26  ;;  %v1602_v14 = vsel %vm314_vm6, %v7455_v24, %v1599_v40  ;;  %11073 = vst [vmem:[#allocation51_spill] sm:$0xff] %v7896_v39 }
 0x47e   :  { %v1622_v46 = vmul.f32 %v7857_v45, %v1607_v19  ;;  %v1623_v16 = vmul.f32 %v7862_v7, %v1605_v49  ;;  %v1608_v60 = vsel %vm314_vm6, %v1599_v40, %v7451_v42  ;;  %5623 = vmatprep.subr.bf16.mxu1 %v5622_v34  ;;  %v1620_v36 = vmul.f32 %v7878_v50, %v1602_v14  ;;  %v7914_v49 = vld [vmem:[%s10721_s1 + $0x1c0] sm:$0xff] }
 0x47f   :  { %5589 = vmatpush1.bf16.msra.mxu0 %v5588_v47  ;;  %v1621_v34 = vmul.f32 %v7885_v26, %v1608_v60  ;;  %11075 = vst [vmem:[#allocation54_spill] sm:$0xff] %v7914_v49 }
 0x480   :  { %v5592_v10 = vpack.c.bf16 %v1622_v46, %v1618_v2  ;;  %v1639_v47 = vpop.permute.xlu0 %1638  ;;  %v1601_v22 = vpop.permute.xlu1 %1600  ;;  %v5590_v24 = vpack.c.bf16 %v1623_v16, %v1619_v28  ;;  %v7932_v28 = vld [vmem:[%s10721_s1 + $0x1e0] sm:$0xff]  ;;  %v7937_v46 = vld [vmem:[%s10721_s1 + $0x1e8] sm:$0xff] }
 0x481   :  { %5625 = vmatpush1.bf16.msra.mxu1 %v5624_v13  ;;  %v1603_v42 = vsel %vm314_vm6, %v7461_v30, %v1601_v22  ;;  %v1609_v40 = vsel %vm314_vm6, %v1601_v22, %v7457_v0  ;;  %v7921_v30 = vld [vmem:[%s10721_s1 + $0x1c8] sm:$0xff]  ;;  %v1652_v0 = vsel %vm364_vm7, %v1639_v47, %v7463_v27  ;;  %v1654_v2 = vsel %vm364_vm7, %v7459_v3, %v1639_v47 }
 0x482   :  { %v1624_v13 = vmul.f32 %v7896_v39, %v1603_v42  ;;  %v1625_v19 = vmul.f32 %v7901_v31, %v1609_v40  ;;  %5591 = vmatprep.subr.bf16.mxu0 %v5590_v24  ;;  %11076 = vst [vmem:[#allocation21_spill] sm:$0xff] %v7921_v30  ;;  %11077 = vst [vmem:[#allocation23_spill] sm:$0xff] %v7932_v28  ;;  %v1666_v47 = vmul.f32 %v7914_v49, %v1654_v2  ;;  %v7950_v40 = vld [vmem:[%s10721_s1 + $0x1d0] sm:$0xff] }
 0x483   :  { %5593 = vmatpush1.bf16.msra.mxu0 %v5592_v10  ;;  %11078 = vst [vmem:[#allocation20_spill] sm:$0xff] %v7937_v46  ;;  %v1667_v42 = vmul.f32 %v7921_v30, %v1652_v0  ;;  %11079 = vst [vmem:[#allocation22_spill] sm:$0xff] %v7950_v40  ;;  %v7968_v2 = vld [vmem:[%s10721_s1 + $0x1f0] sm:$0xff] }
 0x484   :  { %v5628_v16 = vpack.c.bf16 %v1624_v13, %v1620_v36  ;;  %v1647_v14 = vpop.permute.xlu0 %1646  ;;  %v1641_v60 = vpop.permute.xlu1 %1640  ;;  %v5626_v22 = vpack.c.bf16 %v1625_v19, %v1621_v34  ;;  %v7957_v13 = vld [vmem:[%s10721_s1 + $0x1d8] sm:$0xff]  ;;  %11081 = vst [vmem:[#allocation27_spill] sm:$0xff] %v7968_v2 }
 0x485   :  { %v1653_v24 = vsel %vm364_vm7, %v1641_v60, %v7469_v52  ;;  %v1655_v10 = vsel %vm364_vm7, %v7465_v29, %v1641_v60  ;;  %11080 = vst [vmem:[#allocation26_spill] sm:$0xff] %v7957_v13  ;;  %v1650_v19 = vsel %vm364_vm7, %v7463_v27, %v1647_v14  ;;  %v1656_v0 = vsel %vm364_vm7, %v1647_v14, %v7459_v3  ;;  %v7973_v60 = vld [vmem:[%s10721_s1 + $0x1f8] sm:$0xff] }
 0x486   :  { %v1670_v36 = vmul.f32 %v7932_v28, %v1655_v10  ;;  %v1671_v34 = vmul.f32 %v7937_v46, %v1653_v24  ;;  %5627 = vmatprep.subr.bf16.mxu1 %v5626_v22  ;;  %11082 = vst [vmem:[#allocation24_spill] sm:$0xff] %v7973_v60  ;;  %v1669_v14 = vmul.f32 %v7957_v13, %v1656_v0  ;;  %v7986_v28 = vld [vmem:[%s10721_s1 + $0x200] sm:$0xff] }
 0x487   :  { %5629 = vmatpush1.bf16.msra.mxu1 %v5628_v16  ;;  %v1668_v16 = vmul.f32 %v7950_v40, %v1650_v19  ;;  %11083 = vst [vmem:[#allocation25_spill] sm:$0xff] %v7986_v28 }
 0x488   :  { %v5596_v22 = vpack.c.bf16 %v1670_v36, %v1666_v47  ;;  %v1687_v24 = vpop.permute.xlu0 %1686  ;;  %v1649_v10 = vpop.permute.xlu1 %1648  ;;  %v5594_v46 = vpack.c.bf16 %v1671_v34, %v1667_v42  ;;  %v8004_v34 = vld [vmem:[%s10721_s1 + $0x220] sm:$0xff] }
 0x489   :  { %v1651_v27 = vsel %vm364_vm7, %v7469_v52, %v1649_v10  ;;  %v1657_v3 = vsel %vm364_vm7, %v1649_v10, %v7465_v29  ;;  %v7993_v52 = vld [vmem:[%s10721_s1 + $0x208] sm:$0xff]  ;;  %v1700_v29 = vsel %vm414_vm8, %v1687_v24, %v7471_v56  ;;  %v1702_v36 = vsel %vm414_vm8, %v7467_v59, %v1687_v24  ;;  %11085 = vst [vmem:[#allocation55_spill] sm:$0xff] %v8004_v34 }
 0x48a   :  { %v1672_v47 = vmul.f32 %v7968_v2, %v1651_v27  ;;  %v1673_v42 = vmul.f32 %v7973_v60, %v1657_v3  ;;  %5595 = vmatprep.subr.bf16.mxu0 %v5594_v46  ;;  %11084 = vst [vmem:[#allocation57_spill] sm:$0xff] %v7993_v52  ;;  %v8009_v46 = vld [vmem:[%s10721_s1 + $0x228] sm:$0xff]  ;;  %v1714_v24 = vmul.f32 %v7986_v28, %v1702_v36  ;;  %v8022_v2 = vld [vmem:[%s10721_s1 + $0x210] sm:$0xff] }
 0x48b   :  { %5597 = vmatpush1.bf16.msra.mxu0 %v5596_v22  ;;  %11086 = vst [vmem:[#allocation59_spill] sm:$0xff] %v8009_v46  ;;  %v1715_v60 = vmul.f32 %v7993_v52, %v1700_v29  ;;  %11087 = vst [vmem:[#allocation58_spill] sm:$0xff] %v8022_v2  ;;  %v8040_v36 = vld [vmem:[%s10721_s1 + $0x230] sm:$0xff] }
 0x48c   :  { %v5632_v19 = vpack.c.bf16 %v1672_v47, %v1668_v16  ;;  %v1695_v0 = vpop.permute.xlu0 %1694  ;;  %v1689_v10 = vpop.permute.xlu1 %1688  ;;  %v5630_v27 = vpack.c.bf16 %v1673_v42, %v1669_v14  ;;  %v8029_v47 = vld [vmem:[%s10721_s1 + $0x218] sm:$0xff]  ;;  %11089 = vst [vmem:[#allocation31_spill] sm:$0xff] %v8040_v36 }
 0x48d   :  { %v1701_v3 = vsel %vm414_vm8, %v1689_v10, %v7475_v1  ;;  %v1703_v22 = vsel %vm414_vm8, %v7473_v54, %v1689_v10  ;;  %11088 = vst [vmem:[#allocation29_spill] sm:$0xff] %v8029_v47  ;;  %v1698_v42 = vsel %vm414_vm8, %v7471_v56, %v1695_v0  ;;  %v1704_v29 = vsel %vm414_vm8, %v1695_v0, %v7467_v59  ;;  %v8045_v10 = vld [vmem:[%s10721_s1 + $0x238] sm:$0xff] }
 0x48e   :  { %v1718_v16 = vmul.f32 %v8004_v34, %v1703_v22  ;;  %v1719_v14 = vmul.f32 %v8009_v46, %v1701_v3  ;;  %5631 = vmatprep.subr.bf16.mxu1 %v5630_v27  ;;  %11090 = vst [vmem:[#allocation28_spill] sm:$0xff] %v8045_v10  ;;  %v1717_v0 = vmul.f32 %v8029_v47, %v1704_v29 }
 0x48f   :  { %5633 = vmatpush1.bf16.msra.mxu1 %v5632_v19  ;;  %v1716_v19 = vmul.f32 %v8022_v2, %v1698_v42 }
 0x490   :  { %v5600_v27 = vpack.c.bf16 %v1718_v16, %v1714_v24  ;;  %v1697_v3 = vpop.permute.xlu1 %1696  ;;  %v5598_v22 = vpack.c.bf16 %v1719_v14, %v1715_v60  ;;  %v5044_v60 = vld [vmem:[%s10722_s2 + $0x58] sm:$0xff] }
 0x491   :  { %v1699_v56 = vsel %vm414_vm8, %v7475_v1, %v1697_v3  ;;  %v1705_v59 = vsel %vm414_vm8, %v1697_v3, %v7473_v54  ;;  %v5041_v54 = vld [vmem:[%s10722_s2 + $0x40] sm:$0xff]  ;;  %v11091_v3 = vld [vmem:[#allocation38_spill] sm:$0xff] }
 0x492   :  { %v1720_v46 = vmul.f32 %v8040_v36, %v1699_v56  ;;  %v1721_v34 = vmul.f32 %v8045_v10, %v1705_v59  ;;  %5599 = vmatprep.subr.bf16.mxu0 %v5598_v22  ;;  %v11092_v56 = vld [vmem:[#allocation39_spill] sm:$0xff] }
 0x493   :  { %5601 = vmatpush1.bf16.msra.mxu0 %v5600_v27 }
 0x494   :  { %v5636_v24 = vpack.c.bf16 %v1720_v46, %v1716_v19  ;;  %5315 = vmatprep.subr.msk.mxu0 %vm25_vm9, %v11043_v57  ;;  %v5634_v1 = vpack.c.bf16 %v1721_v34, %v1717_v0  ;;  %v5043_v34 = vld [vmem:[%s10722_s2 + $0x50] sm:$0xff] }
 0x496   :  { %5635 = vmatprep.subr.bf16.mxu1 %v5634_v1 }
 0x497   :  { %5316 = vmatpush1.msk.msra.mxu0 %vm25_vm9, %v11043_v57  ;;  %5637 = vmatpush1.bf16.msra.mxu1 %v5636_v24 }
 0x498   :  { %1882 = vmatmul.mubr.f32.vlgmr.msra.gmra.mrb[8].mxu0 %v5041_v54  ;;  %5317 = vmatprep.subr.msk.mxu1 %vm25_vm9, %v11043_v57 }
 0x499   :  { %5046 = vmatprep.mubr.msk.f32.mxu0 %vm528_vm1, %v5044_v60 }
 0x49b   :  { %5318 = vmatpush1.msk.msra.mxu1 %vm25_vm9, %v11043_v57 }
 0x49c   :  { %1888 = vmatmul.mubr.f32.gmra.mrb[10].mxu0 %v5043_v34  ;;  %1959 = vmatmul.mubr.f32.vlgmr.msra.gmra.mrb[8].mxu1 %v5041_v54 }
 0x49d   :  { %5048 = vmatprep.mubr.msk.f32.mxu1 %vm528_vm1, %v5044_v60 }
 0x4a0   :  { %1965 = vmatmul.mubr.f32.gmra.mrb[10].mxu1 %v5043_v34 }
 0x56b   :  { %v1883_v46 = vpop.f32.mrb[8].mxu0 }
 0x56c   :  { %v1884_v16 = vadd.f32 %v1883_v46, %v10998_v25  ;;  %v1885_v14 = vpop.f32.mrb[9].mxu0  ;;  %v11095_v25 = vld [vmem:[#allocation40_spill] sm:$0xff] }
 0x56e   :  { %v8081_v42 = vmax.f32 %v1884_v16, 0.0  ;;  %v11097_v16 = vld [vmem:[#allocation41_spill] sm:$0xff] }
 0x56f   :  { %v1889_v29 = vpop.f32.mrb[10].mxu0  ;;  %v1960_v27 = vpop.f32.mrb[8].mxu1 }
 0x570   :  { %v1890_v22 = vadd.f32 %v1889_v29, %v11091_v3  ;;  %v1961_v59 = vadd.f32 %v1960_v27, %v11092_v56  ;;  %v1891_v19 = vpop.f32.mrb[11].mxu0  ;;  %v1962_v0 = vpop.f32.mrb[9].mxu1  ;;  %1979 = vrot.lane.b32.xlu0 %v8081_v42, %s6006_s25  ;;  %v1886_v29 = vadd.f32 %v1885_v14, %v11097_v16  ;;  %v11099_v3 = vld [vmem:[#allocation42_spill] sm:$0xff]  ;;  %v11100_v56 = vld [vmem:[#allocation43_spill] sm:$0xff] }
 0x572   :  { %v8087_v24 = vmax.f32 %v1890_v22, 0.0  ;;  %v8089_v1 = vmax.f32 %v1961_v59, 0.0  ;;  %v8155_v27 = vmax.f32 %v1886_v29, 0.0  ;;  %v1892_v22 = vadd.f32 %v1891_v19, %v11099_v3  ;;  %v5106_v29 = vld [vmem:[%s10722_s2 + $0x68] sm:$0xff] }
 0x573   :  { %v1966_v54 = vpop.f32.mrb[10].mxu1  ;;  %v1963_v59 = vadd.f32 %v1962_v0, %v11100_v56  ;;  %5109 = vmatprep.mubr.msk.f32.mxu0 %vm528_vm1, %v5106_v29  ;;  %5111 = vmatprep.mubr.msk.f32.mxu1 %vm528_vm1, %v5106_v29 }
 0x574   :  { %11093 = vst [vmem:[#allocation30_spill] sm:$0xff] %v8087_v24  ;;  %11094 = vst [vmem:[#allocation35_spill] sm:$0xff] %v8089_v1  ;;  %v1967_v60 = vadd.f32 %v1966_v54, %v11095_v25  ;;  %v1968_v34 = vpop.f32.mrb[11].mxu1  ;;  %1981 = vrot.lane.b32.xlu1 %v8087_v24, %s6006_s25  ;;  %1987 = vrot.lane.b32.xlu0 %v8089_v1, %s6006_s25  ;;  %v8163_v54 = vmax.f32 %v1892_v22, 0.0  ;;  %v11103_v25 = vld [vmem:[#allocation44_spill] sm:$0xff] }
 0x575   :  { %11098 = vst [vmem:[#allocation33_spill] sm:$0xff] %v8155_v27  ;;  %v8165_v14 = vmax.f32 %v1963_v59, 0.0 }
 0x576   :  { %v8096_v46 = vmax.f32 %v1967_v60, 0.0  ;;  %11101 = vst [vmem:[#allocation34_spill] sm:$0xff] %v8163_v54  ;;  %v1969_v60 = vadd.f32 %v1968_v34, %v11103_v25 }
 0x577   :  { %11102 = vst [vmem:[#allocation38_spill] sm:$0xff] %v8165_v14 }
 0x578   :  { %11096 = vst [vmem:[#allocation36_spill] sm:$0xff] %v8096_v46  ;;  %1989 = vrot.lane.b32.xlu1 %v8096_v46, %s6006_s25  ;;  %2027 = vrot.lane.b32.xlu0 %v8081_v42, %s6007_s14  ;;  %v8172_v19 = vmax.f32 %v1969_v60, 0.0 }
 0x57a   :  { %11104 = vst [vmem:[#allocation39_spill] sm:$0xff] %v8172_v19 }
 0x57c   :  { %2029 = vrot.lane.b32.xlu1 %v8087_v24, %s6007_s14  ;;  %2035 = vrot.lane.b32.xlu0 %v8089_v1, %s6007_s14 }
 0x580   :  { %2037 = vrot.lane.b32.xlu1 %v8096_v46, %s6007_s14  ;;  %2075 = vrot.lane.b32.xlu0 %v8081_v42, %s6008_s0 }
 0x584   :  { %2077 = vrot.lane.b32.xlu1 %v8087_v24, %s6008_s0  ;;  %2083 = vrot.lane.b32.xlu0 %v8089_v1, %s6008_s0 }
 0x588   :  { %2085 = vrot.lane.b32.xlu1 %v8096_v46, %s6008_s0  ;;  %2123 = vrot.lane.b32.xlu0 %v8081_v42, %s6009_s15 }
 0x58c   :  { %2125 = vrot.lane.b32.xlu1 %v8087_v24, %s6009_s15  ;;  %2131 = vrot.lane.b32.xlu0 %v8089_v1, %s6009_s15 }
 0x590   :  { %2133 = vrot.lane.b32.xlu1 %v8096_v46, %s6009_s15  ;;  %2179 = vrot.lane.b32.xlu0 %v8081_v42, %s6010_s16 }
 0x594   :  { %2181 = vrot.lane.b32.xlu1 %v8087_v24, %s6010_s16  ;;  %2187 = vrot.lane.b32.xlu0 %v8089_v1, %s6010_s16 }
 0x598   :  { %2189 = vrot.lane.b32.xlu1 %v8096_v46, %s6010_s16  ;;  %2227 = vrot.lane.b32.xlu0 %v8081_v42, %s6011_s17 }
 0x59c   :  { %2229 = vrot.lane.b32.xlu1 %v8087_v24, %s6011_s17  ;;  %2235 = vrot.lane.b32.xlu0 %v8089_v1, %s6011_s17 }
 0x5a0   :  { %2237 = vrot.lane.b32.xlu1 %v8096_v46, %s6011_s17  ;;  %2275 = vrot.lane.b32.xlu0 %v8081_v42, %s6012_s18 }
 0x5a4   :  { %2277 = vrot.lane.b32.xlu1 %v8087_v24, %s6012_s18  ;;  %2283 = vrot.lane.b32.xlu0 %v8089_v1, %s6012_s18 }
 0x5a8   :  { %2285 = vrot.lane.b32.xlu1 %v8096_v46, %s6012_s18  ;;  %2323 = vrot.lane.b32.xlu0 %v8081_v42, %s6013_s19 }
 0x5ac   :  { %2325 = vrot.lane.b32.xlu1 %v8087_v24, %s6013_s19  ;;  %2331 = vrot.lane.b32.xlu0 %v8089_v1, %s6013_s19 }
 0x5b0   :  { %2333 = vrot.lane.b32.xlu1 %v8096_v46, %s6013_s19  ;;  %1983 = vrot.lane.b32.xlu0 %v8155_v27, %s6006_s25 }
 0x5b4   :  { %1985 = vrot.lane.b32.xlu1 %v8163_v54, %s6006_s25  ;;  %1991 = vrot.lane.b32.xlu0 %v8165_v14, %s6006_s25 }
 0x5b8   :  { %1993 = vrot.lane.b32.xlu1 %v8172_v19, %s6006_s25  ;;  %2031 = vrot.lane.b32.xlu0 %v8155_v27, %s6007_s14 }
 0x5bc   :  { %2033 = vrot.lane.b32.xlu1 %v8163_v54, %s6007_s14  ;;  %2039 = vrot.lane.b32.xlu0 %v8165_v14, %s6007_s14 }
 0x5c0   :  { %2041 = vrot.lane.b32.xlu1 %v8172_v19, %s6007_s14  ;;  %2079 = vrot.lane.b32.xlu0 %v8155_v27, %s6008_s0 }
 0x5c4   :  { %2081 = vrot.lane.b32.xlu1 %v8163_v54, %s6008_s0  ;;  %2087 = vrot.lane.b32.xlu0 %v8165_v14, %s6008_s0 }
 0x5c8   :  { %2089 = vrot.lane.b32.xlu1 %v8172_v19, %s6008_s0  ;;  %2127 = vrot.lane.b32.xlu0 %v8155_v27, %s6009_s15 }
 0x5cc   :  { %2129 = vrot.lane.b32.xlu1 %v8163_v54, %s6009_s15  ;;  %2135 = vrot.lane.b32.xlu0 %v8165_v14, %s6009_s15 }
 0x5d0   :  { %2137 = vrot.lane.b32.xlu1 %v8172_v19, %s6009_s15  ;;  %2183 = vrot.lane.b32.xlu0 %v8155_v27, %s6010_s16 }
 0x5d4   :  { %2185 = vrot.lane.b32.xlu1 %v8163_v54, %s6010_s16  ;;  %2191 = vrot.lane.b32.xlu0 %v8165_v14, %s6010_s16 }
 0x5d8   :  { %2193 = vrot.lane.b32.xlu1 %v8172_v19, %s6010_s16  ;;  %2231 = vrot.lane.b32.xlu0 %v8155_v27, %s6011_s17 }
 0x5dc   :  { %2233 = vrot.lane.b32.xlu1 %v8163_v54, %s6011_s17  ;;  %2239 = vrot.lane.b32.xlu0 %v8165_v14, %s6011_s17 }
 0x5e0   :  { %2241 = vrot.lane.b32.xlu1 %v8172_v19, %s6011_s17  ;;  %2279 = vrot.lane.b32.xlu0 %v8155_v27, %s6012_s18 }
 0x5e2   :  { %v1980_v0 = vpop.permute.xlu0 %1979 }
 0x5e4   :  { %2281 = vrot.lane.b32.xlu1 %v8163_v54, %s6012_s18  ;;  %2287 = vrot.lane.b32.xlu0 %v8165_v14, %s6012_s18 }
 0x5e6   :  { %v1982_v34 = vpop.permute.xlu1 %1981  ;;  %v1988_v16 = vpop.permute.xlu0 %1987 }
 0x5e8   :  { %2289 = vrot.lane.b32.xlu1 %v8172_v19, %s6012_s18  ;;  %2327 = vrot.lane.b32.xlu0 %v8155_v27, %s6013_s19 }
 0x5ea   :  { %v1990_v3 = vpop.permute.xlu1 %1989  ;;  %v8229_v22 = vpop.permute.xlu0 %2027 }
 0x5ec   :  { %2329 = vrot.lane.b32.xlu1 %v8163_v54, %s6013_s19  ;;  %2335 = vrot.lane.b32.xlu0 %v8165_v14, %s6013_s19 }
 0x5ee   :  { %v8237_v56 = vpop.permute.xlu1 %2029  ;;  %v8239_v59 = vpop.permute.xlu0 %2035 }
 0x5f0   :  { %2337 = vrot.lane.b32.xlu1 %v8172_v19, %s6013_s19 }
 0x5f2   :  { %v8243_v25 = vpop.permute.xlu1 %2037  ;;  %v8245_v60 = vpop.permute.xlu0 %2075 }
 0x5f6   :  { %v8247_v21 = vpop.permute.xlu1 %2077  ;;  %v8249_v29 = vpop.permute.xlu0 %2083 }
 0x5fa   :  { %v8251_v57 = vpop.permute.xlu1 %2085  ;;  %v8253_v10 = vpop.permute.xlu0 %2123 }
 0x5fe   :  { %v8255_v36 = vpop.permute.xlu1 %2125  ;;  %v8257_v47 = vpop.permute.xlu0 %2131 }
 0x602   :  { %v8259_v2 = vpop.permute.xlu1 %2133  ;;  %v8261_v52 = vpop.permute.xlu0 %2179 }
 0x606   :  { %v8263_v28 = vpop.permute.xlu1 %2181  ;;  %v8265_v13 = vpop.permute.xlu0 %2187 }
 0x60a   :  { %v8267_v40 = vpop.permute.xlu1 %2189  ;;  %v8269_v30 = vpop.permute.xlu0 %2227 }
 0x60b   :  { %11105 = vst [vmem:[#allocation40_spill] sm:$0xff] %v8269_v30 }
 0x60e   :  { %v8271_v49 = vpop.permute.xlu1 %2229  ;;  %v8273_v31 = vpop.permute.xlu0 %2235 }
 0x60f   :  { %11106 = vst [vmem:[#allocation41_spill] sm:$0xff] %v8271_v49  ;;  %11107 = vst [vmem:[#allocation42_spill] sm:$0xff] %v8273_v31 }
 0x612   :  { %v8275_v39 = vpop.permute.xlu1 %2237  ;;  %v8277_v26 = vpop.permute.xlu0 %2275 }
 0x613   :  { %11108 = vst [vmem:[#allocation43_spill] sm:$0xff] %v8275_v39  ;;  %11109 = vst [vmem:[#allocation44_spill] sm:$0xff] %v8277_v26 }
 0x616   :  { %v8279_v50 = vpop.permute.xlu1 %2277  ;;  %v8281_v7 = vpop.permute.xlu0 %2283 }
 0x617   :  { %11110 = vst [vmem:[#allocation60_spill] sm:$0xff] %v8279_v50  ;;  %11111 = vst [vmem:[#allocation61_spill] sm:$0xff] %v8281_v7  ;;  %v11117_v7 = vld [vmem:[#allocation3_spill] sm:$0xff] }
 0x61a   :  { %v8283_v45 = vpop.permute.xlu1 %2285  ;;  %v8285_v4 = vpop.permute.xlu0 %2323 }
 0x61b   :  { %11112 = vst [vmem:[#allocation62_spill] sm:$0xff] %v8283_v45  ;;  %11113 = vst [vmem:[#allocation63_spill] sm:$0xff] %v8285_v4  ;;  %v11118_v45 = vld [vmem:[#allocation48_spill] sm:$0xff] }
 0x61e   :  { %v8287_v63 = vpop.permute.xlu1 %2325  ;;  %v8289_v8 = vpop.permute.xlu0 %2331 }
 0x61f   :  { %11114 = vst [vmem:[#allocation64_spill] sm:$0xff] %v8287_v63  ;;  %11115 = vst [vmem:[#allocation65_spill] sm:$0xff] %v8289_v8 }
 0x622   :  { %v8291_v30 = vpop.permute.xlu1 %2333  ;;  %v1984_v49 = vpop.permute.xlu0 %1983 }
 0x623   :  { %11116 = vst [vmem:[#allocation66_spill] sm:$0xff] %v8291_v30  ;;  %v1999_v39 = vsel %vm57_vm0, %v1980_v0, %v1984_v49  ;;  %v1997_v1 = vsel %vm57_vm0, %v1984_v49, %v1988_v16 }
 0x624   :  { %v2012_v38 = vmul.f32 %v1999_v39, %v11117_v7 }
 0x626   :  { %v1986_v31 = vpop.permute.xlu1 %1985  ;;  %v1992_v26 = vpop.permute.xlu0 %1991 }
 0x627   :  { %v2000_v50 = vsel %vm57_vm0, %v1982_v34, %v1986_v31  ;;  %v1998_v4 = vsel %vm57_vm0, %v1986_v31, %v1990_v3  ;;  %v1995_v8 = vsel %vm57_vm0, %v1988_v16, %v1992_v26  ;;  %v2001_v30 = vsel %vm57_vm0, %v1992_v26, %v1980_v0  ;;  %v11119_v31 = vld [vmem:[#allocation46_spill] sm:$0xff] }
 0x628   :  { %v2016_v63 = vmul.f32 %v2000_v50, %v11118_v45  ;;  %v2017_v58 = vmul.f32 %v1998_v4, %v7511_v35  ;;  %v2011_v50 = vmul.f32 %v2001_v30, %v7496_v48  ;;  %v2014_v39 = vmul.f32 %v1995_v8, %v7501_v37  ;;  %v11120_v35 = vld [vmem:[#allocation45_spill] sm:$0xff]  ;;  %v11122_v30 = vld [vmem:[#allocation6_spill] sm:$0xff] }
 0x62a   :  { %v1994_v43 = vpop.permute.xlu1 %1993  ;;  %v2032_v33 = vpop.permute.xlu0 %2031  ;;  %v5638_v46 = vpack.c.bf16 %v2016_v63, %v2012_v38  ;;  %v2013_v63 = vmul.f32 %v1997_v1, %v11120_v35  ;;  %v11123_v35 = vld [vmem:[#allocation4_spill] sm:$0xff] }
 0x62b   :  { %v1996_v7 = vsel %vm57_vm0, %v1990_v3, %v1994_v43  ;;  %v2002_v45 = vsel %vm57_vm0, %v1994_v43, %v1982_v34  ;;  %v2047_v38 = vsel %vm106_vm2, %v8229_v22, %v2032_v33  ;;  %v11121_v43 = vld [vmem:[#allocation7_spill] sm:$0xff] }
 0x62c   :  { %v2015_v26 = vmul.f32 %v2002_v45, %v7518_v32  ;;  %v2018_v0 = vmul.f32 %v1996_v7, %v11119_v31  ;;  %5639 = vmatprep.subr.bf16.mxu0 %v5638_v46  ;;  %v5676_v37 = vpack.c.bf16 %v2017_v58, %v2013_v63  ;;  %v2060_v32 = vmul.f32 %v11121_v43, %v2047_v38 }
 0x62e   :  { %v5640_v4 = vpack.c.bf16 %v2015_v26, %v2011_v50  ;;  %v2034_v49 = vpop.permute.xlu1 %2033  ;;  %v2040_v16 = vpop.permute.xlu0 %2039  ;;  %v5674_v3 = vpack.c.bf16 %v2018_v0, %v2014_v39  ;;  %v2045_v50 = vsel %vm106_vm2, %v2032_v33, %v8239_v59  ;;  %v11124_v33 = vld [vmem:[#allocation37_spill] sm:$0xff] }
 0x62f   :  { %v2048_v48 = vsel %vm106_vm2, %v8237_v56, %v2034_v49  ;;  %v2046_v8 = vsel %vm106_vm2, %v2034_v49, %v8243_v25  ;;  %v2043_v1 = vsel %vm106_vm2, %v8239_v59, %v2040_v16  ;;  %v2049_v34 = vsel %vm106_vm2, %v2040_v16, %v8229_v22 }
 0x630   :  { %v2064_v46 = vmul.f32 %v11122_v30, %v2048_v48  ;;  %5641 = vmatpush1.bf16.msra.mxu0 %v5640_v4  ;;  %5675 = vmatprep.subr.bf16.mxu1 %v5674_v3  ;;  %v2065_v39 = vmul.f32 %v7580_v51, %v2046_v8  ;;  %v2059_v22 = vmul.f32 %v7563_v53, %v2049_v34  ;;  %v11126_v48 = vld [vmem:[#allocation10_spill] sm:$0xff] }
 0x631   :  { %5677 = vmatpush1.bf16.msra.mxu1 %v5676_v37  ;;  %v2062_v0 = vmul.f32 %v7568_v41, %v2043_v1  ;;  %v2061_v59 = vmul.f32 %v11124_v33, %v2045_v50 }
 0x632   :  { %v2042_v58 = vpop.permute.xlu1 %2041  ;;  %v2080_v7 = vpop.permute.xlu0 %2079  ;;  %v5642_v45 = vpack.c.bf16 %v2064_v46, %v2060_v32 }
 0x633   :  { %v2044_v26 = vsel %vm106_vm2, %v8243_v25, %v2042_v58  ;;  %v2050_v31 = vsel %vm106_vm2, %v2042_v58, %v8237_v56  ;;  %v2095_v51 = vsel %vm156_vm3, %v8245_v60, %v2080_v7  ;;  %v5680_v41 = vpack.c.bf16 %v2065_v39, %v2061_v59  ;;  %v11125_v56 = vld [vmem:[#allocation5_spill] sm:$0xff] }
 0x634   :  { %v2063_v38 = vmul.f32 %v7588_v5, %v2050_v31  ;;  %v2066_v63 = vmul.f32 %v11123_v35, %v2044_v26  ;;  %5643 = vmatprep.subr.bf16.mxu0 %v5642_v45  ;;  %v2108_v5 = vmul.f32 %v11125_v56, %v2095_v51  ;;  %v2093_v1 = vsel %vm156_vm3, %v2080_v7, %v8249_v29  ;;  %v11127_v26 = vld [vmem:[#allocation11_spill] sm:$0xff] }
 0x636   :  { %v5644_v25 = vpack.c.bf16 %v2063_v38, %v2059_v22  ;;  %v2082_v4 = vpop.permute.xlu1 %2081  ;;  %v2088_v49 = vpop.permute.xlu0 %2087  ;;  %v5678_v16 = vpack.c.bf16 %v2066_v63, %v2062_v0  ;;  %v11130_v63 = vld [vmem:[#allocation49_spill] sm:$0xff] }
 0x637   :  { %v2096_v53 = vsel %vm156_vm3, %v8247_v21, %v2082_v4  ;;  %v2094_v3 = vsel %vm156_vm3, %v2082_v4, %v8251_v57  ;;  %v2091_v43 = vsel %vm156_vm3, %v8249_v29, %v2088_v49  ;;  %v2097_v32 = vsel %vm156_vm3, %v2088_v49, %v8245_v60  ;;  %v11128_v29 = vld [vmem:[#allocation8_spill] sm:$0xff] }
 0x638   :  { %v2112_v37 = vmul.f32 %v11126_v48, %v2096_v53  ;;  %5645 = vmatpush1.bf16.msra.mxu0 %v5644_v25  ;;  %5679 = vmatprep.subr.bf16.mxu1 %v5678_v16  ;;  %v2113_v34 = vmul.f32 %v7652_v61, %v2094_v3  ;;  %v2107_v60 = vmul.f32 %v7635_v44, %v2097_v32 }
 0x639   :  { %5681 = vmatpush1.bf16.msra.mxu1 %v5680_v41  ;;  %v2110_v50 = vmul.f32 %v7640_v17, %v2091_v43  ;;  %v2109_v7 = vmul.f32 %v11128_v29, %v2093_v1  ;;  %v11129_v17 = vld [vmem:[#allocation9_spill] sm:$0xff]  ;;  %v11135_v29 = vld [vmem:[#allocation50_spill] sm:$0xff] }
 0x63a   :  { %v2090_v8 = vpop.permute.xlu1 %2089  ;;  %v2128_v30 = vpop.permute.xlu0 %2127  ;;  %v5646_v46 = vpack.c.bf16 %v2112_v37, %v2108_v5 }
 0x63b   :  { %v2092_v58 = vsel %vm156_vm3, %v8251_v57, %v2090_v8  ;;  %v2098_v45 = vsel %vm156_vm3, %v2090_v8, %v8247_v21  ;;  %v2143_v61 = vsel %vm206_vm4, %v8253_v10, %v2128_v30  ;;  %v5684_v44 = vpack.c.bf16 %v2113_v34, %v2109_v7 }
 0x63c   :  { %v2111_v39 = vmul.f32 %v7660_v20, %v2098_v45  ;;  %v2114_v31 = vmul.f32 %v11127_v26, %v2092_v58  ;;  %5647 = vmatprep.subr.bf16.mxu0 %v5646_v46  ;;  %v2156_v20 = vmul.f32 %v11129_v17, %v2143_v61  ;;  %v2141_v16 = vsel %vm206_vm4, %v2128_v30, %v8257_v47  ;;  %v11139_v17 = vld [vmem:[#allocation42_spill] sm:$0xff] }
 0x63d   :  { %v5690_v58 = vpack.c.bf16 %v8172_v19, %v8165_v14  ;;  %v8824_v19 = vld [vmem:[%s10721_s1 + $0x20] sm:$0xff]  ;;  %v8834_v14 = vld [vmem:[%s10721_s1 + $0x10] sm:$0xff] }
 0x63e   :  { %v5648_v57 = vpack.c.bf16 %v2111_v39, %v2107_v60  ;;  %v2130_v22 = vpop.permute.xlu1 %2129  ;;  %v2136_v0 = vpop.permute.xlu0 %2135  ;;  %v5682_v38 = vpack.c.bf16 %v2114_v31, %v2110_v50  ;;  %v11132_v39 = vld [vmem:[#allocation52_spill] sm:$0xff]  ;;  %v11133_v31 = vld [vmem:[#allocation35_spill] sm:$0xff]  ;;  %11180 = vst [vmem:[#allocation45_spill] sm:$0xff] %v8834_v14 }
 0x63f   :  { %v2144_v21 = vsel %vm206_vm4, %v8255_v36, %v2130_v22  ;;  %v2142_v35 = vsel %vm206_vm4, %v2130_v22, %v8259_v2  ;;  %v2139_v33 = vsel %vm206_vm4, %v8257_v47, %v2136_v0  ;;  %v2145_v59 = vsel %vm206_vm4, %v2136_v0, %v8253_v10  ;;  %v11131_v47 = vld [vmem:[#allocation47_spill] sm:$0xff] }
 0x640   :  { %v2160_v51 = vmul.f32 %v11130_v63, %v2144_v21  ;;  %5649 = vmatpush1.bf16.msra.mxu0 %v5648_v57  ;;  %5683 = vmatprep.subr.bf16.mxu1 %v5682_v38  ;;  %v2161_v53 = vmul.f32 %v7724_v12, %v2142_v35  ;;  %v2155_v10 = vmul.f32 %v7707_v15, %v2145_v59  ;;  %v11136_v57 = vld [vmem:[#allocation13_spill] sm:$0xff]  ;;  %v11137_v0 = vld [vmem:[#allocation15_spill] sm:$0xff]  ;;  %v11138_v21 = vld [vmem:[#allocation12_spill] sm:$0xff] }
 0x641   :  { %5685 = vmatpush1.bf16.msra.mxu1 %v5684_v44  ;;  %v2158_v5 = vmul.f32 %v7712_v18, %v2139_v33  ;;  %v2157_v37 = vmul.f32 %v11131_v47, %v2141_v16 }
 0x642   :  { %v2138_v25 = vpop.permute.xlu1 %2137  ;;  %v2184_v4 = vpop.permute.xlu0 %2183  ;;  %v5650_v49 = vpack.c.bf16 %v2160_v51, %v2156_v20  ;;  %v11140_v20 = vld [vmem:[#allocation40_spill] sm:$0xff] }
 0x643   :  { %v2140_v41 = vsel %vm206_vm4, %v8259_v2, %v2138_v25  ;;  %v2146_v56 = vsel %vm206_vm4, %v2138_v25, %v8255_v36  ;;  %v2197_v12 = vsel %vm264_vm5, %v2184_v4, %v8265_v13  ;;  %v2199_v36 = vsel %vm264_vm5, %v8261_v52, %v2184_v4  ;;  %v11141_v25 = vld [vmem:[#allocation43_spill] sm:$0xff] }
 0x644   :  { %v2159_v3 = vmul.f32 %v7732_v62, %v2146_v56  ;;  %v2162_v48 = vmul.f32 %v7737_v23, %v2140_v41  ;;  %5651 = vmatprep.subr.bf16.mxu0 %v5650_v49  ;;  %v5654_v62 = vpack.c.bf16 %v8163_v54, %v8155_v27  ;;  %v5688_v23 = vpack.c.bf16 %v2161_v53, %v2157_v37  ;;  %v11142_v49 = vld [vmem:[#allocation41_spill] sm:$0xff]  ;;  %v11143_v53 = vld [vmem:[#allocation14_spill] sm:$0xff] }
 0x645   :  { %v2212_v30 = vmul.f32 %v7761_v6, %v2197_v12  ;;  %v11144_v56 = vld [vmem:[#allocation18_spill] sm:$0xff] }
 0x646   :  { %v5652_v2 = vpack.c.bf16 %v2159_v3, %v2155_v10  ;;  %v2186_v43 = vpop.permute.xlu1 %2185  ;;  %v2192_v32 = vpop.permute.xlu0 %2191  ;;  %v5686_v8 = vpack.c.bf16 %v2162_v48, %v2158_v5  ;;  %v11145_v5 = vld [vmem:[#allocation19_spill] sm:$0xff]  ;;  %v11146_v48 = vld [vmem:[#allocation16_spill] sm:$0xff] }
 0x647   :  { %v2198_v15 = vsel %vm264_vm5, %v2186_v43, %v8267_v40  ;;  %v2200_v18 = vsel %vm264_vm5, %v8263_v28, %v2186_v43  ;;  %v2195_v1 = vsel %vm264_vm5, %v8265_v13, %v2192_v32  ;;  %v2201_v34 = vsel %vm264_vm5, %v2192_v32, %v8261_v52 }
 0x648   :  { %v2216_v46 = vmul.f32 %v7769_v55, %v2198_v15  ;;  %5653 = vmatpush1.bf16.msra.mxu0 %v5652_v2  ;;  %5687 = vmatprep.subr.bf16.mxu1 %v5686_v8  ;;  %v2215_v45 = vmul.f32 %v7775_v11, %v2200_v18  ;;  %v5656_v55 = vpack.c.bf16 %v8087_v24, %v8081_v42  ;;  %v11134_v11 = vld [vmem:[#allocation36_spill] sm:$0xff] }
 0x649   :  { %5655 = vmatprep.subr.bf16.mxu0 %v5654_v62  ;;  %5689 = vmatpush1.bf16.msra.mxu1 %v5688_v23  ;;  %v2211_v13 = vmul.f32 %v11132_v39, %v2199_v36  ;;  %v5692_v61 = vpack.c.bf16 %v11134_v11, %v11133_v31  ;;  %v2213_v7 = vmul.f32 %v11135_v29, %v2195_v1  ;;  %v11147_v62 = vld [vmem:[#allocation17_spill] sm:$0xff]  ;;  %v11154_v29 = vld [vmem:[#allocation60_spill] sm:$0xff] }
 0x64a   :  { %v2194_v6 = vpop.permute.xlu1 %2193  ;;  %v2232_v60 = vpop.permute.xlu0 %2231  ;;  %v5658_v50 = vpack.c.bf16 %v2216_v46, %v2212_v30  ;;  %5691 = vmatprep.subr.bf16.mxu1 %v5690_v58  ;;  %v2214_v22 = vmul.f32 %v11136_v57, %v2201_v34  ;;  %v11148_v36 = vld [vmem:[#allocation53_spill] sm:$0xff]  ;;  %v11149_v46 = vld [vmem:[#allocation51_spill] sm:$0xff]  ;;  %v11150_v34 = vld [vmem:[#allocation56_spill] sm:$0xff] }
 0x64b   :  { %v2196_v52 = vsel %vm264_vm5, %v8267_v40, %v2194_v6  ;;  %v2202_v26 = vsel %vm264_vm5, %v2194_v6, %v8263_v28  ;;  %v2245_v40 = vsel %vm314_vm6, %v2232_v60, %v11139_v17  ;;  %v2247_v28 = vsel %vm314_vm6, %v11140_v20, %v2232_v60  ;;  %v11152_v60 = vld [vmem:[#allocation44_spill] sm:$0xff]  ;;  %v11155_v57 = vld [vmem:[#allocation54_spill] sm:$0xff] }
 0x64c   :  { %v2217_v38 = vmul.f32 %v11137_v0, %v2196_v52  ;;  %v2218_v44 = vmul.f32 %v11138_v21, %v2202_v26  ;;  %5657 = vmatpush1.bf16.msra.mxu0 %v5656_v55  ;;  %v5660_v35 = vpack.c.bf16 %v2215_v45, %v2211_v13  ;;  %v2259_v41 = vmul.f32 %v11143_v53, %v2247_v28  ;;  %v11151_v45 = vld [vmem:[#allocation61_spill] sm:$0xff]  ;;  %v11153_v26 = vld [vmem:[#allocation62_spill] sm:$0xff]  ;;  %v11157_v21 = vld [vmem:[#allocation23_spill] sm:$0xff] }
 0x64d   :  { %5659 = vmatprep.subr.bf16.mxu0 %v5658_v50  ;;  %5693 = vmatpush1.bf16.msra.mxu1 %v5692_v61  ;;  %v2260_v10 = vmul.f32 %v11144_v56, %v2245_v40  ;;  %v11156_v0 = vld [vmem:[#allocation21_spill] sm:$0xff] }
 0x64e   :  { %v5696_v63 = vpack.c.bf16 %v2217_v38, %v2213_v7  ;;  %v2234_v51 = vpop.permute.xlu1 %2233  ;;  %v2240_v33 = vpop.permute.xlu0 %2239  ;;  %v5694_v59 = vpack.c.bf16 %v2218_v44, %v2214_v22 }
 0x64f   :  { %v2246_v4 = vsel %vm314_vm6, %v2234_v51, %v11141_v25  ;;  %v2248_v16 = vsel %vm314_vm6, %v11142_v49, %v2234_v51  ;;  %v2243_v47 = vsel %vm314_vm6, %v11139_v17, %v2240_v33  ;;  %v2249_v37 = vsel %vm314_vm6, %v2240_v33, %v11140_v20  ;;  %v11158_v17 = vld [vmem:[#allocation20_spill] sm:$0xff] }
 0x650   :  { %v2263_v3 = vmul.f32 %v11145_v5, %v2248_v16  ;;  %v2264_v12 = vmul.f32 %v11146_v48, %v2246_v4  ;;  %5661 = vmatpush1.bf16.msra.mxu0 %v5660_v35  ;;  %5695 = vmatprep.subr.bf16.mxu1 %v5694_v59  ;;  %v2261_v23 = vmul.f32 %v11147_v62, %v2243_v47  ;;  %v11159_v4 = vld [vmem:[#allocation22_spill] sm:$0xff] }
 0x651   :  { %5697 = vmatpush1.bf16.msra.mxu1 %v5696_v63  ;;  %v2262_v30 = vmul.f32 %v11148_v36, %v2249_v37  ;;  %v11160_v16 = vld [vmem:[#allocation26_spill] sm:$0xff] }
 0x652   :  { %v5664_v2 = vpack.c.bf16 %v2263_v3, %v2259_v41  ;;  %v2242_v43 = vpop.permute.xlu1 %2241  ;;  %v2280_v32 = vpop.permute.xlu0 %2279  ;;  %v5662_v8 = vpack.c.bf16 %v2264_v12, %v2260_v10  ;;  %v11161_v41 = vld [vmem:[#allocation27_spill] sm:$0xff]  ;;  %v11162_v10 = vld [vmem:[#allocation24_spill] sm:$0xff]  ;;  %v11163_v3 = vld [vmem:[#allocation65_spill] sm:$0xff] }
 0x653   :  { %v2244_v15 = vsel %vm314_vm6, %v11141_v25, %v2242_v43  ;;  %v2250_v18 = vsel %vm314_vm6, %v2242_v43, %v11142_v49  ;;  %v2293_v6 = vsel %vm364_vm7, %v2280_v32, %v11151_v45  ;;  %v2295_v55 = vsel %vm364_vm7, %v11152_v60, %v2280_v32  ;;  %v11164_v12 = vld [vmem:[#allocation63_spill] sm:$0xff] }
 0x654   :  { %v2265_v1 = vmul.f32 %v11149_v46, %v2244_v15  ;;  %v2266_v58 = vmul.f32 %v11150_v34, %v2250_v18  ;;  %5663 = vmatprep.subr.bf16.mxu0 %v5662_v8  ;;  %v2307_v22 = vmul.f32 %v11155_v57, %v2295_v55  ;;  %v2308_v38 = vmul.f32 %v11156_v0, %v2293_v6  ;;  %v11165_v8 = vld [vmem:[#allocation66_spill] sm:$0xff]  ;;  %v11166_v18 = vld [vmem:[#allocation64_spill] sm:$0xff]  ;;  %v11173_v57 = vld [vmem:[#allocation31_spill] sm:$0xff] }
 0x655   :  { %5665 = vmatpush1.bf16.msra.mxu0 %v5664_v2  ;;  %v11174_v0 = vld [vmem:[#allocation28_spill] sm:$0xff] }
 0x656   :  { %v5700_v50 = vpack.c.bf16 %v2265_v1, %v2261_v23  ;;  %v2282_v39 = vpop.permute.xlu1 %2281  ;;  %v2288_v13 = vpop.permute.xlu0 %2287  ;;  %v5698_v52 = vpack.c.bf16 %v2266_v58, %v2262_v30  ;;  %v11167_v23 = vld [vmem:[#allocation25_spill] sm:$0xff]  ;;  %v11169_v1 = vld [vmem:[#allocation55_spill] sm:$0xff] }
 0x657   :  { %v2294_v61 = vsel %vm364_vm7, %v2282_v39, %v11153_v26  ;;  %v2296_v7 = vsel %vm364_vm7, %v11154_v29, %v2282_v39  ;;  %v2291_v20 = vsel %vm364_vm7, %v11151_v45, %v2288_v13  ;;  %v2297_v28 = vsel %vm364_vm7, %v2288_v13, %v11152_v60  ;;  %v11168_v30 = vld [vmem:[#allocation57_spill] sm:$0xff]  ;;  %v11170_v58 = vld [vmem:[#allocation59_spill] sm:$0xff] }
 0x658   :  { %v2311_v44 = vmul.f32 %v11157_v21, %v2296_v7  ;;  %v2312_v40 = vmul.f32 %v11158_v17, %v2294_v61  ;;  %5699 = vmatprep.subr.bf16.mxu1 %v5698_v52  ;;  %v2309_v49 = vmul.f32 %v11159_v4, %v2291_v20  ;;  %v2310_v53 = vmul.f32 %v11160_v16, %v2297_v28  ;;  %v5105_v20 = vld [vmem:[%s10722_s2 + $0x60] sm:$0xff]  ;;  %v5108_v28 = vld [vmem:[%s10722_s2 + $0x78] sm:$0xff] }
 0x659   :  { %5701 = vmatpush1.bf16.msra.mxu1 %v5700_v50 }
 0x65a   :  { %v5668_v35 = vpack.c.bf16 %v2311_v44, %v2307_v22  ;;  %v2290_v63 = vpop.permute.xlu1 %2289  ;;  %v2328_v51 = vpop.permute.xlu0 %2327  ;;  %v5666_v33 = vpack.c.bf16 %v2312_v40, %v2308_v38  ;;  %v11175_v44 = vmov 1.0  }
 0x65b   :  { %v2292_v59 = vsel %vm364_vm7, %v11153_v26, %v2290_v63  ;;  %v2298_v25 = vsel %vm364_vm7, %v2290_v63, %v11154_v29  ;;  %v2341_v48 = vsel %vm414_vm8, %v2328_v51, %v11163_v3  ;;  %v2343_v47 = vsel %vm414_vm8, %v11164_v12, %v2328_v51  ;;  %v11171_v26 = vld [vmem:[#allocation58_spill] sm:$0xff]  ;;  %v11172_v29 = vld [vmem:[#allocation29_spill] sm:$0xff] }
 0x65c   :  { %v2313_v56 = vmul.f32 %v11161_v41, %v2292_v59  ;;  %v2314_v5 = vmul.f32 %v11162_v10, %v2298_v25  ;;  %5667 = vmatprep.subr.bf16.mxu0 %v5666_v33  ;;  %v2355_v36 = vmul.f32 %v11167_v23, %v2343_v47  ;;  %v2356_v46 = vmul.f32 %v11168_v30, %v2341_v48 }
 0x65d   :  { %5669 = vmatpush1.bf16.msra.mxu0 %v5668_v35  ;;  %v5107_v35 = vld [vmem:[%s10722_s2 + $0x70] sm:$0xff] }
 0x65e   :  { %v5704_v37 = vpack.c.bf16 %v2313_v56, %v2309_v49  ;;  %v2330_v2 = vpop.permute.xlu1 %2329  ;;  %v2336_v43 = vpop.permute.xlu0 %2335  ;;  %v5702_v32 = vpack.c.bf16 %v2314_v5, %v2310_v53 }
 0x65f   :  { %v2342_v15 = vsel %vm414_vm8, %v2330_v2, %v11165_v8  ;;  %v2344_v62 = vsel %vm414_vm8, %v11166_v18, %v2330_v2  ;;  %v2339_v6 = vsel %vm414_vm8, %v11163_v3, %v2336_v43  ;;  %v2345_v60 = vsel %vm414_vm8, %v2336_v43, %v11164_v12 }
 0x660   :  { %v2359_v34 = vmul.f32 %v11169_v1, %v2344_v62  ;;  %v2360_v45 = vmul.f32 %v11170_v58, %v2342_v15  ;;  %5703 = vmatprep.subr.bf16.mxu1 %v5702_v32  ;;  %v2357_v61 = vmul.f32 %v11171_v26, %v2339_v6  ;;  %v2358_v7 = vmul.f32 %v11172_v29, %v2345_v60 }
 0x661   :  { %5705 = vmatpush1.bf16.msra.mxu1 %v5704_v37 }
 0x662   :  { %v5672_v55 = vpack.c.bf16 %v2359_v34, %v2355_v36  ;;  %v2338_v50 = vpop.permute.xlu1 %2337  ;;  %v5670_v39 = vpack.c.bf16 %v2360_v45, %v2356_v46 }
 0x663   :  { %v2340_v13 = vsel %vm414_vm8, %v11165_v8, %v2338_v50  ;;  %v2346_v52 = vsel %vm414_vm8, %v2338_v50, %v11166_v18  ;;  %v5170_v8 = vld [vmem:[%s10722_s2 + $0x88] sm:$0xff] }
 0x664   :  { %v2361_v22 = vmul.f32 %v11173_v57, %v2340_v13  ;;  %v2362_v38 = vmul.f32 %v11174_v0, %v2346_v52  ;;  %5671 = vmatprep.subr.bf16.mxu0 %v5670_v39 }
 0x665   :  { %5673 = vmatpush1.bf16.msra.mxu0 %v5672_v55 }
 0x666   :  { %v5708_v21 = vpack.c.bf16 %v2361_v22, %v2357_v61  ;;  %5319 = vmatprep.subr.msk.mxu0 %vm25_vm9, %v11175_v44  ;;  %v5706_v40 = vpack.c.bf16 %v2362_v38, %v2358_v7 }
 0x668   :  { %5707 = vmatprep.subr.bf16.mxu1 %v5706_v40 }
 0x669   :  { %5320 = vmatpush1.msk.msra.mxu0 %vm25_vm9, %v11175_v44  ;;  %5709 = vmatpush1.bf16.msra.mxu1 %v5708_v21 }
 0x66a   :  { %2523 = vmatmul.mubr.f32.vlgmr.msra.gmra.mrb[12].mxu0 %v5105_v20  ;;  %5321 = vmatprep.subr.msk.mxu1 %vm25_vm9, %v11175_v44 }
 0x66b   :  { %5110 = vmatprep.mubr.msk.f32.mxu0 %vm528_vm1, %v5108_v28 }
 0x66d   :  { %5322 = vmatpush1.msk.msra.mxu1 %vm25_vm9, %v11175_v44 }
 0x66e   :  { %2529 = vmatmul.mubr.f32.gmra.mrb[14].mxu0 %v5107_v35  ;;  %2600 = vmatmul.mubr.f32.vlgmr.msra.gmra.mrb[12].mxu1 %v5105_v20 }
 0x66f   :  { %5112 = vmatprep.mubr.msk.f32.mxu1 %vm528_vm1, %v5108_v28  ;;  %5173 = vmatprep.mubr.msk.f32.mxu0 %vm528_vm1, %v5170_v8 }
 0x672   :  { %2606 = vmatmul.mubr.f32.gmra.mrb[14].mxu1 %v5107_v35  ;;  %v8786_v35 = vld [vmem:[%s10721_s1 + $0x8] sm:$0xff] }
 0x673   :  { %5175 = vmatprep.mubr.msk.f32.mxu1 %vm528_vm1, %v5170_v8  ;;  %11177 = vst [vmem:[#allocation3_spill] sm:$0xff] %v8786_v35 }
 0x73d   :  { %v2524_v63 = vpop.f32.mrb[12].mxu0 }
 0x73e   :  { %v8572_v51 = vmax.f32 %v2524_v63, 0.0  ;;  %v2526_v33 = vpop.f32.mrb[13].mxu0 }
 0x73f   :  { %v8646_v48 = vmax.f32 %v2526_v33, 0.0  ;;  %v8793_v33 = vld [vmem:[%s10721_s1 + $0x28] sm:$0xff] }
 0x740   :  { %2620 = vrot.lane.b32.xlu0 %v8572_v51, %s6006_s25  ;;  %11178 = vst [vmem:[#allocation48_spill] sm:$0xff] %v8793_v33 }
 0x741   :  { %v2530_v59 = vpop.f32.mrb[14].mxu0  ;;  %v2601_v25 = vpop.f32.mrb[12].mxu1 }
 0x742   :  { %v8576_v4 = vmax.f32 %v2530_v59, 0.0  ;;  %v8578_v49 = vmax.f32 %v2601_v25, 0.0  ;;  %v2532_v16 = vpop.f32.mrb[15].mxu0  ;;  %v2603_v53 = vpop.f32.mrb[13].mxu1 }
 0x743   :  { %v8652_v12 = vmax.f32 %v2532_v16, 0.0  ;;  %v8654_v47 = vmax.f32 %v2603_v53, 0.0 }
 0x744   :  { %2628 = vrot.lane.b32.xlu0 %v8578_v49, %s6006_s25  ;;  %2622 = vrot.lane.b32.xlu1 %v8576_v4, %s6006_s25 }
 0x745   :  { %v2607_v56 = vpop.f32.mrb[14].mxu1 }
 0x746   :  { %v8586_v10 = vmax.f32 %v2607_v56, 0.0  ;;  %v2609_v5 = vpop.f32.mrb[15].mxu1  ;;  %v8802_v56 = vld [vmem:[%s10721_s1] sm:$0xff] }
 0x747   :  { %v8660_v37 = vmax.f32 %v2609_v5, 0.0  ;;  %v8807_v5 = vld [vmem:[%s10721_s1 + $0x18] sm:$0xff] }
 0x748   :  { %2668 = vrot.lane.b32.xlu0 %v8572_v51, %s6007_s14  ;;  %2630 = vrot.lane.b32.xlu1 %v8586_v10, %s6006_s25 }
 0x74c   :  { %2676 = vrot.lane.b32.xlu0 %v8578_v49, %s6007_s14  ;;  %2670 = vrot.lane.b32.xlu1 %v8576_v4, %s6007_s14 }
 0x750   :  { %2716 = vrot.lane.b32.xlu0 %v8572_v51, %s6008_s0  ;;  %2678 = vrot.lane.b32.xlu1 %v8586_v10, %s6007_s14 }
 0x754   :  { %2724 = vrot.lane.b32.xlu0 %v8578_v49, %s6008_s0  ;;  %2718 = vrot.lane.b32.xlu1 %v8576_v4, %s6008_s0 }
 0x758   :  { %2764 = vrot.lane.b32.xlu0 %v8572_v51, %s6009_s15  ;;  %2726 = vrot.lane.b32.xlu1 %v8586_v10, %s6008_s0 }
 0x75c   :  { %2772 = vrot.lane.b32.xlu0 %v8578_v49, %s6009_s15  ;;  %2766 = vrot.lane.b32.xlu1 %v8576_v4, %s6009_s15 }
 0x760   :  { %2820 = vrot.lane.b32.xlu0 %v8572_v51, %s6010_s16  ;;  %2774 = vrot.lane.b32.xlu1 %v8586_v10, %s6009_s15 }
 0x764   :  { %2828 = vrot.lane.b32.xlu0 %v8578_v49, %s6010_s16  ;;  %2822 = vrot.lane.b32.xlu1 %v8576_v4, %s6010_s16 }
 0x768   :  { %2868 = vrot.lane.b32.xlu0 %v8572_v51, %s6011_s17  ;;  %2830 = vrot.lane.b32.xlu1 %v8586_v10, %s6010_s16 }
 0x76c   :  { %2876 = vrot.lane.b32.xlu0 %v8578_v49, %s6011_s17  ;;  %2870 = vrot.lane.b32.xlu1 %v8576_v4, %s6011_s17 }
 0x770   :  { %2916 = vrot.lane.b32.xlu0 %v8572_v51, %s6012_s18  ;;  %2878 = vrot.lane.b32.xlu1 %v8586_v10, %s6011_s17 }
 0x774   :  { %2924 = vrot.lane.b32.xlu0 %v8578_v49, %s6012_s18  ;;  %2918 = vrot.lane.b32.xlu1 %v8576_v4, %s6012_s18 }
 0x778   :  { %2964 = vrot.lane.b32.xlu0 %v8572_v51, %s6013_s19  ;;  %2926 = vrot.lane.b32.xlu1 %v8586_v10, %s6012_s18 }
 0x77c   :  { %2972 = vrot.lane.b32.xlu0 %v8578_v49, %s6013_s19  ;;  %2966 = vrot.lane.b32.xlu1 %v8576_v4, %s6013_s19 }
 0x780   :  { %2624 = vrot.lane.b32.xlu0 %v8646_v48, %s6006_s25  ;;  %2974 = vrot.lane.b32.xlu1 %v8586_v10, %s6013_s19 }
 0x784   :  { %2632 = vrot.lane.b32.xlu0 %v8654_v47, %s6006_s25  ;;  %2626 = vrot.lane.b32.xlu1 %v8652_v12, %s6006_s25 }
 0x788   :  { %2672 = vrot.lane.b32.xlu0 %v8646_v48, %s6007_s14  ;;  %2634 = vrot.lane.b32.xlu1 %v8660_v37, %s6006_s25 }
 0x78c   :  { %2680 = vrot.lane.b32.xlu0 %v8654_v47, %s6007_s14  ;;  %2674 = vrot.lane.b32.xlu1 %v8652_v12, %s6007_s14 }
 0x790   :  { %2720 = vrot.lane.b32.xlu0 %v8646_v48, %s6008_s0  ;;  %2682 = vrot.lane.b32.xlu1 %v8660_v37, %s6007_s14 }
 0x794   :  { %2728 = vrot.lane.b32.xlu0 %v8654_v47, %s6008_s0  ;;  %2722 = vrot.lane.b32.xlu1 %v8652_v12, %s6008_s0 }
 0x798   :  { %2768 = vrot.lane.b32.xlu0 %v8646_v48, %s6009_s15  ;;  %2730 = vrot.lane.b32.xlu1 %v8660_v37, %s6008_s0 }
 0x79c   :  { %2776 = vrot.lane.b32.xlu0 %v8654_v47, %s6009_s15  ;;  %2770 = vrot.lane.b32.xlu1 %v8652_v12, %s6009_s15 }
 0x7a0   :  { %2824 = vrot.lane.b32.xlu0 %v8646_v48, %s6010_s16  ;;  %2778 = vrot.lane.b32.xlu1 %v8660_v37, %s6009_s15 }
 0x7a4   :  { %2832 = vrot.lane.b32.xlu0 %v8654_v47, %s6010_s16  ;;  %2826 = vrot.lane.b32.xlu1 %v8652_v12, %s6010_s16 }
 0x7a8   :  { %2872 = vrot.lane.b32.xlu0 %v8646_v48, %s6011_s17  ;;  %2834 = vrot.lane.b32.xlu1 %v8660_v37, %s6010_s16 }
 0x7ac   :  { %2880 = vrot.lane.b32.xlu0 %v8654_v47, %s6011_s17  ;;  %2874 = vrot.lane.b32.xlu1 %v8652_v12, %s6011_s17 }
 0x7b0   :  { %2920 = vrot.lane.b32.xlu0 %v8646_v48, %s6012_s18  ;;  %2882 = vrot.lane.b32.xlu1 %v8660_v37, %s6011_s17 }
 0x7b2   :  { %v2621_v2 = vpop.permute.xlu0 %2620 }
 0x7b4   :  { %2928 = vrot.lane.b32.xlu0 %v8654_v47, %s6012_s18  ;;  %2922 = vrot.lane.b32.xlu1 %v8652_v12, %s6012_s18 }
 0x7b6   :  { %v2629_v43 = vpop.permute.xlu0 %2628  ;;  %v8710_v32 = vpop.permute.xlu1 %2622 }
 0x7b8   :  { %2968 = vrot.lane.b32.xlu0 %v8646_v48, %s6013_s19  ;;  %2930 = vrot.lane.b32.xlu1 %v8660_v37, %s6012_s18 }
 0x7ba   :  { %v8719_v15 = vpop.permute.xlu0 %2668  ;;  %v2631_v18 = vpop.permute.xlu1 %2630 }
 0x7bc   :  { %2976 = vrot.lane.b32.xlu0 %v8654_v47, %s6013_s19  ;;  %2970 = vrot.lane.b32.xlu1 %v8652_v12, %s6013_s19 }
 0x7be   :  { %v8727_v62 = vpop.permute.xlu0 %2676  ;;  %v8729_v23 = vpop.permute.xlu1 %2670 }
 0x7c0   :  { %2978 = vrot.lane.b32.xlu1 %v8660_v37, %s6013_s19 }
 0x7c2   :  { %v8733_v36 = vpop.permute.xlu0 %2716  ;;  %v8735_v30 = vpop.permute.xlu1 %2678 }
 0x7c6   :  { %v8737_v46 = vpop.permute.xlu0 %2724  ;;  %v8739_v1 = vpop.permute.xlu1 %2718 }
 0x7ca   :  { %v8741_v34 = vpop.permute.xlu0 %2764  ;;  %v8743_v58 = vpop.permute.xlu1 %2726 }
 0x7ce   :  { %v8745_v45 = vpop.permute.xlu0 %2772  ;;  %v8747_v6 = vpop.permute.xlu1 %2766 }
 0x7d2   :  { %v8749_v60 = vpop.permute.xlu0 %2820  ;;  %v8751_v55 = vpop.permute.xlu1 %2774 }
 0x7d6   :  { %v8753_v50 = vpop.permute.xlu0 %2828  ;;  %v8755_v39 = vpop.permute.xlu1 %2822 }
 0x7da   :  { %v8757_v13 = vpop.permute.xlu0 %2868  ;;  %v8759_v52 = vpop.permute.xlu1 %2830 }
 0x7de   :  { %v8761_v26 = vpop.permute.xlu0 %2876  ;;  %v8763_v61 = vpop.permute.xlu1 %2870 }
 0x7e2   :  { %v8765_v29 = vpop.permute.xlu0 %2916  ;;  %v8767_v7 = vpop.permute.xlu1 %2878 }
 0x7e6   :  { %v8769_v57 = vpop.permute.xlu0 %2924  ;;  %v8771_v22 = vpop.permute.xlu1 %2918 }
 0x7ea   :  { %v8773_v0 = vpop.permute.xlu0 %2964  ;;  %v8775_v38 = vpop.permute.xlu1 %2926 }
 0x7ee   :  { %v8777_v21 = vpop.permute.xlu0 %2972  ;;  %v8779_v40 = vpop.permute.xlu1 %2966 }
 0x7f2   :  { %v2625_v20 = vpop.permute.xlu0 %2624  ;;  %v8781_v28 = vpop.permute.xlu1 %2974 }
 0x7f3   :  { %v2640_v63 = vsel %vm57_vm0, %v2621_v2, %v2625_v20 }
 0x7f4   :  { %v2653_v53 = vmul.f32 %v8786_v35, %v2640_v63  ;;  %v8817_v63 = vld [vmem:[%s10721_s1 + $0x30] sm:$0xff] }
 0x7f6   :  { %v2633_v59 = vpop.permute.xlu0 %2632  ;;  %v2627_v25 = vpop.permute.xlu1 %2626 }
 0x7f7   :  { %v2641_v16 = vsel %vm57_vm0, %v8710_v32, %v2627_v25  ;;  %v2642_v8 = vsel %vm57_vm0, %v2633_v59, %v2621_v2  ;;  %v2636_v41 = vsel %vm57_vm0, %v2629_v43, %v2633_v59  ;;  %v2639_v35 = vsel %vm57_vm0, %v2627_v25, %v2631_v18  ;;  %v8829_v2 = vld [vmem:[%s10721_s1 + $0x38] sm:$0xff] }
 0x7f8   :  { %v2657_v3 = vmul.f32 %v8793_v33, %v2641_v16  ;;  %11179 = vst [vmem:[#allocation46_spill] sm:$0xff] %v8829_v2  ;;  %v2638_v25 = vsel %vm57_vm0, %v2625_v20, %v2629_v43  ;;  %v2652_v54 = vmul.f32 %v8802_v56, %v2642_v8  ;;  %v2655_v31 = vmul.f32 %v8807_v5, %v2636_v41  ;;  %v8851_v43 = vld [vmem:[%s10721_s1 + $0x48] sm:$0xff] }
 0x7f9   :  { %11181 = vst [vmem:[#allocation7_spill] sm:$0xff] %v8851_v43  ;;  %v8859_v41 = vld [vmem:[%s10721_s1 + $0x68] sm:$0xff] }
 0x7fa   :  { %v2673_v16 = vpop.permute.xlu0 %2672  ;;  %v2635_v59 = vpop.permute.xlu1 %2634  ;;  %v5710_v33 = vpack.c.bf16 %v2657_v3, %v2653_v53  ;;  %v2658_v3 = vmul.f32 %v8817_v63, %v2639_v35  ;;  %11182 = vst [vmem:[#allocation6_spill] sm:$0xff] %v8859_v41 }
 0x7fb   :  { %v2637_v27 = vsel %vm57_vm0, %v2631_v18, %v2635_v59  ;;  %v2643_v11 = vsel %vm57_vm0, %v2635_v59, %v8710_v32  ;;  %v2688_v18 = vsel %vm106_vm2, %v8719_v15, %v2673_v16  ;;  %v2654_v32 = vmul.f32 %v8834_v14, %v2638_v25  ;;  %v8874_v25 = vld [vmem:[%s10721_s1 + $0x58] sm:$0xff] }
 0x7fc   :  { %v2656_v53 = vmul.f32 %v8824_v19, %v2643_v11  ;;  %v2659_v24 = vmul.f32 %v8829_v2, %v2637_v27  ;;  %5711 = vmatprep.subr.bf16.mxu0 %v5710_v33  ;;  %v2701_v59 = vmul.f32 %v8851_v43, %v2688_v18  ;;  %v8869_v2 = vld [vmem:[%s10721_s1 + $0x40] sm:$0xff]  ;;  %v8899_v18 = vld [vmem:[%s10721_s1 + $0x78] sm:$0xff] }
 0x7fd   :  { %v5748_v8 = vpack.c.bf16 %v2658_v3, %v2654_v32  ;;  %v8886_v3 = vld [vmem:[%s10721_s1 + $0x70] sm:$0xff]  ;;  %11183 = vst [vmem:[#allocation4_spill] sm:$0xff] %v8899_v18 }
 0x7fe   :  { %v5712_v11 = vpack.c.bf16 %v2656_v53, %v2652_v54  ;;  %v2681_v20 = vpop.permute.xlu0 %2680  ;;  %v2675_v27 = vpop.permute.xlu1 %2674  ;;  %v5746_v35 = vpack.c.bf16 %v2659_v24, %v2655_v31 }
 0x7ff   :  { %v2689_v33 = vsel %vm106_vm2, %v8729_v23, %v2675_v27  ;;  %v2690_v24 = vsel %vm106_vm2, %v2681_v20, %v8719_v15  ;;  %v2684_v31 = vsel %vm106_vm2, %v8727_v62, %v2681_v20  ;;  %v2687_v53 = vsel %vm106_vm2, %v2675_v27, %v8735_v30  ;;  %v8894_v15 = vld [vmem:[%s10721_s1 + $0x60] sm:$0xff] }
 0x800   :  { %v2705_v54 = vmul.f32 %v8859_v41, %v2689_v33  ;;  %5713 = vmatpush1.bf16.msra.mxu0 %v5712_v11  ;;  %5747 = vmatprep.subr.bf16.mxu1 %v5746_v35  ;;  %v8904_v33 = vld [vmem:[%s10721_s1 + $0x50] sm:$0xff]  ;;  %v2686_v27 = vsel %vm106_vm2, %v2673_v16, %v8727_v62  ;;  %v2700_v35 = vmul.f32 %v8869_v2, %v2690_v24  ;;  %v8923_v62 = vld [vmem:[%s10721_s1 + $0x88] sm:$0xff] }
 0x801   :  { %5749 = vmatpush1.bf16.msra.mxu1 %v5748_v8  ;;  %11184 = vst [vmem:[#allocation37_spill] sm:$0xff] %v8904_v33  ;;  %11185 = vst [vmem:[#allocation5_spill] sm:$0xff] %v8923_v62  ;;  %v2702_v16 = vmul.f32 %v8904_v33, %v2686_v27  ;;  %v8946_v27 = vld [vmem:[%s10721_s1 + $0x98] sm:$0xff] }
 0x802   :  { %v2721_v32 = vpop.permute.xlu0 %2720  ;;  %v2683_v11 = vpop.permute.xlu1 %2682  ;;  %v5714_v20 = vpack.c.bf16 %v2705_v54, %v2701_v59  ;;  %v2703_v59 = vmul.f32 %v8874_v25, %v2684_v31  ;;  %v2706_v54 = vmul.f32 %v8886_v3, %v2687_v53 }
 0x803   :  { %v2685_v41 = vsel %vm106_vm2, %v8735_v30, %v2683_v11  ;;  %v2691_v8 = vsel %vm106_vm2, %v2683_v11, %v8729_v23  ;;  %v2736_v30 = vsel %vm156_vm3, %v8733_v36, %v2721_v32  ;;  %v8931_v23 = vld [vmem:[%s10721_s1 + $0xa8] sm:$0xff] }
 0x804   :  { %v2704_v43 = vmul.f32 %v8894_v15, %v2691_v8  ;;  %v2707_v14 = vmul.f32 %v8899_v18, %v2685_v41  ;;  %5715 = vmatprep.subr.bf16.mxu0 %v5714_v20  ;;  %11186 = vst [vmem:[#allocation10_spill] sm:$0xff] %v8931_v23  ;;  %v5752_v20 = vpack.c.bf16 %v2706_v54, %v2702_v16  ;;  %v8941_v18 = vld [vmem:[%s10721_s1 + $0x80] sm:$0xff] }
 0x805   :  { %v2749_v8 = vmul.f32 %v8923_v62, %v2736_v30  ;;  %v8971_v30 = vld [vmem:[%s10721_s1 + $0xb8] sm:$0xff] }
 0x806   :  { %v5716_v24 = vpack.c.bf16 %v2704_v43, %v2700_v35  ;;  %v2729_v31 = vpop.permute.xlu0 %2728  ;;  %v2723_v41 = vpop.permute.xlu1 %2722  ;;  %v5750_v53 = vpack.c.bf16 %v2707_v14, %v2703_v59  ;;  %v8958_v59 = vld [vmem:[%s10721_s1 + $0xb0] sm:$0xff]  ;;  %11187 = vst [vmem:[#allocation11_spill] sm:$0xff] %v8971_v30 }
 0x807   :  { %v2737_v11 = vsel %vm156_vm3, %v8739_v1, %v2723_v41  ;;  %v2738_v14 = vsel %vm156_vm3, %v2729_v31, %v8733_v36  ;;  %v2732_v35 = vsel %vm156_vm3, %v8737_v46, %v2729_v31  ;;  %v2735_v54 = vsel %vm156_vm3, %v2723_v41, %v8743_v58  ;;  %v8966_v36 = vld [vmem:[%s10721_s1 + $0xa0] sm:$0xff] }
 0x808   :  { %v2753_v43 = vmul.f32 %v8931_v23, %v2737_v11  ;;  %5717 = vmatpush1.bf16.msra.mxu0 %v5716_v24  ;;  %5751 = vmatprep.subr.bf16.mxu1 %v5750_v53  ;;  %v8976_v11 = vld [vmem:[%s10721_s1 + $0x90] sm:$0xff]  ;;  %v2734_v41 = vsel %vm156_vm3, %v2721_v32, %v8737_v46  ;;  %v2748_v53 = vmul.f32 %v8941_v18, %v2738_v14  ;;  %v8995_v46 = vld [vmem:[%s10721_s1 + $0xc8] sm:$0xff] }
 0x809   :  { %5753 = vmatpush1.bf16.msra.mxu1 %v5752_v20  ;;  %11188 = vst [vmem:[#allocation8_spill] sm:$0xff] %v8976_v11  ;;  %11189 = vst [vmem:[#allocation9_spill] sm:$0xff] %v8995_v46  ;;  %v2750_v32 = vmul.f32 %v8976_v11, %v2734_v41  ;;  %v9018_v41 = vld [vmem:[%s10721_s1 + $0xd8] sm:$0xff] }
 0x80a   :  { %v2769_v16 = vpop.permute.xlu0 %2768  ;;  %v2731_v24 = vpop.permute.xlu1 %2730  ;;  %v5718_v31 = vpack.c.bf16 %v2753_v43, %v2749_v8  ;;  %v2751_v8 = vmul.f32 %v8946_v27, %v2732_v35  ;;  %v2754_v43 = vmul.f32 %v8958_v59, %v2735_v54 }
 0x80b   :  { %v2733_v23 = vsel %vm156_vm3, %v8743_v58, %v2731_v24  ;;  %v2739_v20 = vsel %vm156_vm3, %v2731_v24, %v8739_v1  ;;  %v2784_v58 = vsel %vm206_vm4, %v8741_v34, %v2769_v16  ;;  %v9003_v1 = vld [vmem:[%s10721_s1 + $0xe8] sm:$0xff] }
 0x80c   :  { %v2752_v62 = vmul.f32 %v8966_v36, %v2739_v20  ;;  %v2755_v33 = vmul.f32 %v8971_v30, %v2733_v23  ;;  %5719 = vmatprep.subr.bf16.mxu0 %v5718_v31  ;;  %11190 = vst [vmem:[#allocation49_spill] sm:$0xff] %v9003_v1  ;;  %v5756_v31 = vpack.c.bf16 %v2754_v43, %v2750_v32  ;;  %v9013_v30 = vld [vmem:[%s10721_s1 + $0xc0] sm:$0xff] }
 0x80d   :  { %v2797_v20 = vmul.f32 %v8995_v46, %v2784_v58  ;;  %v9043_v58 = vld [vmem:[%s10721_s1 + $0xf8] sm:$0xff] }
 0x80e   :  { %v5720_v14 = vpack.c.bf16 %v2752_v62, %v2748_v53  ;;  %v2777_v35 = vpop.permute.xlu0 %2776  ;;  %v2771_v23 = vpop.permute.xlu1 %2770  ;;  %v5754_v54 = vpack.c.bf16 %v2755_v33, %v2751_v8  ;;  %v9030_v8 = vld [vmem:[%s10721_s1 + $0xf0] sm:$0xff] }
 0x80f   :  { %v2785_v24 = vsel %vm206_vm4, %v8747_v6, %v2771_v23  ;;  %v2786_v33 = vsel %vm206_vm4, %v2777_v35, %v8741_v34  ;;  %v2780_v53 = vsel %vm206_vm4, %v8745_v45, %v2777_v35  ;;  %v2783_v43 = vsel %vm206_vm4, %v2771_v23, %v8751_v55  ;;  %v9038_v34 = vld [vmem:[%s10721_s1 + $0xe0] sm:$0xff] }
 0x810   :  { %v2801_v62 = vmul.f32 %v9003_v1, %v2785_v24  ;;  %5721 = vmatpush1.bf16.msra.mxu0 %v5720_v14  ;;  %5755 = vmatprep.subr.bf16.mxu1 %v5754_v54  ;;  %v9048_v24 = vld [vmem:[%s10721_s1 + $0xd0] sm:$0xff]  ;;  %v2782_v23 = vsel %vm206_vm4, %v2769_v16, %v8745_v45  ;;  %v2796_v54 = vmul.f32 %v9013_v30, %v2786_v33  ;;  %v9067_v45 = vld [vmem:[%s10721_s1 + $0x148] sm:$0xff] }
 0x811   :  { %5757 = vmatpush1.bf16.msra.mxu1 %v5756_v31  ;;  %11191 = vst [vmem:[#allocation47_spill] sm:$0xff] %v9048_v24  ;;  %v2798_v16 = vmul.f32 %v9048_v24, %v2782_v23  ;;  %v5726_v23 = vpack.c.bf16 %v8652_v12, %v8646_v48  ;;  %v9103_v24 = vld [vmem:[%s10721_s1 + $0x150] sm:$0xff]  ;;  %v9109_v48 = vld [vmem:[%s10721_s1 + $0x158] sm:$0xff] }
 0x812   :  { %v2825_v32 = vpop.permute.xlu0 %2824  ;;  %v2779_v14 = vpop.permute.xlu1 %2778  ;;  %v5722_v35 = vpack.c.bf16 %v2801_v62, %v2797_v20  ;;  %v2799_v20 = vmul.f32 %v9018_v41, %v2780_v53  ;;  %v2802_v62 = vmul.f32 %v9030_v8, %v2783_v43  ;;  %11193 = vst [vmem:[#allocation50_spill] sm:$0xff] %v9103_v24  ;;  %11194 = vst [vmem:[#allocation13_spill] sm:$0xff] %v9109_v48 }
 0x813   :  { %v2781_v1 = vsel %vm206_vm4, %v8751_v55, %v2779_v14  ;;  %v2787_v31 = vsel %vm206_vm4, %v2779_v14, %v8747_v6  ;;  %v2838_v55 = vsel %vm264_vm5, %v2825_v32, %v8753_v50  ;;  %v9075_v6 = vld [vmem:[%s10721_s1 + $0x168] sm:$0xff]  ;;  %v9081_v14 = vld [vmem:[%s10721_s1 + $0x160] sm:$0xff] }
 0x814   :  { %v2800_v46 = vmul.f32 %v9038_v34, %v2787_v31  ;;  %v2803_v11 = vmul.f32 %v9043_v58, %v2781_v1  ;;  %5723 = vmatprep.subr.bf16.mxu0 %v5722_v35 }
 0x816   :  { %v5724_v33 = vpack.c.bf16 %v2800_v46, %v2796_v54  ;;  %v2833_v53 = vpop.permute.xlu0 %2832  ;;  %v2827_v1 = vpop.permute.xlu1 %2826  ;;  %v5758_v43 = vpack.c.bf16 %v2803_v11, %v2799_v20  ;;  %v5760_v46 = vpack.c.bf16 %v2802_v62, %v2798_v16  ;;  %v9094_v11 = vld [vmem:[%s10721_s1 + $0x140] sm:$0xff]  ;;  %v2840_v54 = vsel %vm264_vm5, %v8749_v60, %v2825_v32  ;;  %v9127_v16 = vld [vmem:[%s10721_s1 + $0x178] sm:$0xff] }
 0x817   :  { %v2839_v35 = vsel %vm264_vm5, %v2827_v1, %v8759_v52  ;;  %v2841_v31 = vsel %vm264_vm5, %v8755_v39, %v2827_v1  ;;  %11192 = vst [vmem:[#allocation52_spill] sm:$0xff] %v9094_v11  ;;  %v2853_v20 = vmul.f32 %v9067_v45, %v2838_v55  ;;  %v2836_v12 = vsel %vm264_vm5, %v8753_v50, %v2833_v53  ;;  %v9122_v55 = vld [vmem:[%s10721_s1 + $0x170] sm:$0xff] }
 0x818   :  { %v2857_v1 = vmul.f32 %v9075_v6, %v2839_v35  ;;  %5725 = vmatpush1.bf16.msra.mxu0 %v5724_v33  ;;  %v2842_v32 = vsel %vm264_vm5, %v2833_v53, %v8749_v60  ;;  %5759 = vmatprep.subr.bf16.mxu1 %v5758_v43  ;;  %v5762_v62 = vpack.c.bf16 %v8660_v37, %v8654_v47 }
 0x819   :  { %5727 = vmatprep.subr.bf16.mxu0 %v5726_v23  ;;  %11195 = vst [vmem:[#allocation15_spill] sm:$0xff] %v9122_v55  ;;  %11196 = vst [vmem:[#allocation12_spill] sm:$0xff] %v9127_v16  ;;  %v2856_v50 = vmul.f32 %v9081_v14, %v2841_v31  ;;  %5761 = vmatpush1.bf16.msra.mxu1 %v5760_v46  ;;  %v2852_v43 = vmul.f32 %v9094_v11, %v2840_v54  ;;  %v9142_v31 = vld [vmem:[%s10721_s1 + $0x180] sm:$0xff] }
 0x81a   :  { %v2873_v33 = vpop.permute.xlu0 %2872  ;;  %v2835_v60 = vpop.permute.xlu1 %2834  ;;  %v5730_v53 = vpack.c.bf16 %v2857_v1, %v2853_v20  ;;  %5763 = vmatprep.subr.bf16.mxu1 %v5762_v62  ;;  %v2854_v35 = vmul.f32 %v9103_v24, %v2836_v12  ;;  %v2855_v23 = vmul.f32 %v9109_v48, %v2842_v32  ;;  %11197 = vst [vmem:[#allocation42_spill] sm:$0xff] %v9142_v31  ;;  %v9163_v12 = vld [vmem:[%s10721_s1 + $0x1a0] sm:$0xff] }
 0x81b   :  { %v2837_v47 = vsel %vm264_vm5, %v8759_v52, %v2835_v60  ;;  %v2843_v37 = vsel %vm264_vm5, %v2835_v60, %v8755_v39  ;;  %v11198_v52 = vpack.c.bf16 %v8576_v4, %v8572_v51  ;;  %v9152_v39 = vld [vmem:[%s10721_s1 + $0x188] sm:$0xff]  ;;  %v2886_v20 = vsel %vm314_vm6, %v2873_v33, %v8761_v26  ;;  %11200 = vst [vmem:[#allocation43_spill] sm:$0xff] %v9163_v12 }
 0x81c   :  { %v2858_v46 = vmul.f32 %v9122_v55, %v2837_v47  ;;  %v2859_v54 = vmul.f32 %v9127_v16, %v2843_v37  ;;  %11199 = vst [vmem:[#allocation40_spill] sm:$0xff] %v9152_v39  ;;  %v2888_v1 = vsel %vm314_vm6, %v8757_v13, %v2873_v33  ;;  %v9168_v51 = vld [vmem:[%s10721_s1 + $0x1a8] sm:$0xff]  ;;  %v5732_v4 = vpack.c.bf16 %v2856_v50, %v2852_v43 }
 0x81d   :  { %5729 = vmatpush1.bf16.msra.mxu0 %v11198_v52  ;;  %11201 = vst [vmem:[#allocation41_spill] sm:$0xff] %v9168_v51  ;;  %v11202_v62 = vpack.c.bf16 %v8586_v10, %v8578_v49  ;;  %v2900_v52 = vmul.f32 %v9142_v31, %v2888_v1  ;;  %v2901_v50 = vmul.f32 %v9152_v39, %v2886_v20  ;;  %v9184_v49 = vld [vmem:[%s10721_s1 + $0x190] sm:$0xff]  ;;  %v9207_v20 = vld [vmem:[%s10721_s1 + $0x1b8] sm:$0xff] }
 0x81e   :  { %5731 = vmatprep.subr.bf16.mxu0 %v5730_v53  ;;  %v5768_v32 = vpack.c.bf16 %v2858_v46, %v2854_v35  ;;  %v2881_v60 = vpop.permute.xlu0 %2880  ;;  %v2875_v47 = vpop.permute.xlu1 %2874  ;;  %v5766_v33 = vpack.c.bf16 %v2859_v54, %v2855_v23  ;;  %11203 = vst [vmem:[#allocation14_spill] sm:$0xff] %v9184_v49  ;;  %v9191_v35 = vld [vmem:[%s10721_s1 + $0x198] sm:$0xff]  ;;  %v9202_v54 = vld [vmem:[%s10721_s1 + $0x1b0] sm:$0xff]  ;;  %11206 = vst [vmem:[#allocation16_spill] sm:$0xff] %v9207_v20 }
 0x81f   :  { %5765 = vmatpush1.bf16.msra.mxu1 %v11202_v62  ;;  %v2887_v53 = vsel %vm314_vm6, %v2875_v47, %v8767_v7  ;;  %v2889_v37 = vsel %vm314_vm6, %v8763_v61, %v2875_v47  ;;  %11204 = vst [vmem:[#allocation18_spill] sm:$0xff] %v9191_v35  ;;  %v2884_v23 = vsel %vm314_vm6, %v8761_v26, %v2881_v60  ;;  %11205 = vst [vmem:[#allocation19_spill] sm:$0xff] %v9202_v54 }
 0x820   :  { %v2904_v10 = vmul.f32 %v9163_v12, %v2889_v37  ;;  %v2905_v43 = vmul.f32 %v9168_v51, %v2887_v53  ;;  %v2890_v46 = vsel %vm314_vm6, %v2881_v60, %v8757_v13  ;;  %5767 = vmatprep.subr.bf16.mxu1 %v5766_v33  ;;  %v2902_v47 = vmul.f32 %v9184_v49, %v2884_v23  ;;  %v9220_v53 = vld [vmem:[%s10721_s1 + $0x1c0] sm:$0xff] }
 0x821   :  { %5733 = vmatpush1.bf16.msra.mxu0 %v5732_v4  ;;  %v2903_v33 = vmul.f32 %v9191_v35, %v2890_v46  ;;  %11207 = vst [vmem:[#allocation17_spill] sm:$0xff] %v9220_v53 }
 0x822   :  { %v5736_v1 = vpack.c.bf16 %v2904_v10, %v2900_v52  ;;  %v2921_v4 = vpop.permute.xlu0 %2920  ;;  %v2883_v62 = vpop.permute.xlu1 %2882  ;;  %v5734_v26 = vpack.c.bf16 %v2905_v43, %v2901_v50  ;;  %v9238_v50 = vld [vmem:[%s10721_s1 + $0x1e0] sm:$0xff]  ;;  %v9243_v10 = vld [vmem:[%s10721_s1 + $0x1e8] sm:$0xff] }
 0x823   :  { %5769 = vmatpush1.bf16.msra.mxu1 %v5768_v32  ;;  %v2885_v13 = vsel %vm314_vm6, %v8767_v7, %v2883_v62  ;;  %v2891_v60 = vsel %vm314_vm6, %v2883_v62, %v8763_v61  ;;  %v9227_v7 = vld [vmem:[%s10721_s1 + $0x1c8] sm:$0xff]  ;;  %v2934_v61 = vsel %vm364_vm7, %v2921_v4, %v8769_v57  ;;  %v2936_v52 = vsel %vm364_vm7, %v8765_v29, %v2921_v4 }
 0x824   :  { %v2906_v32 = vmul.f32 %v9202_v54, %v2885_v13  ;;  %v2907_v37 = vmul.f32 %v9207_v20, %v2891_v60  ;;  %5735 = vmatprep.subr.bf16.mxu0 %v5734_v26  ;;  %11208 = vst [vmem:[#allocation53_spill] sm:$0xff] %v9227_v7  ;;  %11209 = vst [vmem:[#allocation51_spill] sm:$0xff] %v9238_v50  ;;  %v2948_v4 = vmul.f32 %v9220_v53, %v2936_v52  ;;  %v9256_v60 = vld [vmem:[%s10721_s1 + $0x1d0] sm:$0xff] }
 0x825   :  { %5737 = vmatpush1.bf16.msra.mxu0 %v5736_v1  ;;  %11210 = vst [vmem:[#allocation56_spill] sm:$0xff] %v9243_v10  ;;  %v2949_v13 = vmul.f32 %v9227_v7, %v2934_v61  ;;  %11211 = vst [vmem:[#allocation61_spill] sm:$0xff] %v9256_v60  ;;  %v9274_v52 = vld [vmem:[%s10721_s1 + $0x1f0] sm:$0xff] }
 0x826   :  { %v5772_v43 = vpack.c.bf16 %v2906_v32, %v2902_v47  ;;  %v2929_v23 = vpop.permute.xlu0 %2928  ;;  %v2923_v46 = vpop.permute.xlu1 %2922  ;;  %v5770_v62 = vpack.c.bf16 %v2907_v37, %v2903_v33  ;;  %v9263_v32 = vld [vmem:[%s10721_s1 + $0x1d8] sm:$0xff]  ;;  %11213 = vst [vmem:[#allocation62_spill] sm:$0xff] %v9274_v52 }
 0x827   :  { %v2935_v26 = vsel %vm364_vm7, %v2923_v46, %v8775_v38  ;;  %v2937_v1 = vsel %vm364_vm7, %v8771_v22, %v2923_v46  ;;  %11212 = vst [vmem:[#allocation44_spill] sm:$0xff] %v9263_v32  ;;  %v2932_v37 = vsel %vm364_vm7, %v8769_v57, %v2929_v23  ;;  %v2938_v61 = vsel %vm364_vm7, %v2929_v23, %v8765_v29  ;;  %v9279_v46 = vld [vmem:[%s10721_s1 + $0x1f8] sm:$0xff] }
 0x828   :  { %v2952_v47 = vmul.f32 %v9238_v50, %v2937_v1  ;;  %v2953_v33 = vmul.f32 %v9243_v10, %v2935_v26  ;;  %5771 = vmatprep.subr.bf16.mxu1 %v5770_v62  ;;  %11214 = vst [vmem:[#allocation60_spill] sm:$0xff] %v9279_v46  ;;  %v2951_v23 = vmul.f32 %v9263_v32, %v2938_v61  ;;  %v9292_v50 = vld [vmem:[%s10721_s1 + $0x200] sm:$0xff] }
 0x829   :  { %5773 = vmatpush1.bf16.msra.mxu1 %v5772_v43  ;;  %v2950_v43 = vmul.f32 %v9256_v60, %v2932_v37  ;;  %11215 = vst [vmem:[#allocation54_spill] sm:$0xff] %v9292_v50 }
 0x82a   :  { %v5740_v62 = vpack.c.bf16 %v2952_v47, %v2948_v4  ;;  %v2969_v26 = vpop.permute.xlu0 %2968  ;;  %v2931_v1 = vpop.permute.xlu1 %2930  ;;  %v5738_v10 = vpack.c.bf16 %v2953_v33, %v2949_v13  ;;  %v9310_v33 = vld [vmem:[%s10721_s1 + $0x220] sm:$0xff] }
 0x82b   :  { %v2933_v57 = vsel %vm364_vm7, %v8775_v38, %v2931_v1  ;;  %v2939_v29 = vsel %vm364_vm7, %v2931_v1, %v8771_v22  ;;  %v9299_v38 = vld [vmem:[%s10721_s1 + $0x208] sm:$0xff]  ;;  %v2982_v22 = vsel %vm414_vm8, %v2969_v26, %v8777_v21  ;;  %v2984_v47 = vsel %vm414_vm8, %v8773_v0, %v2969_v26  ;;  %11217 = vst [vmem:[#allocation23_spill] sm:$0xff] %v9310_v33 }
 0x82c   :  { %v2954_v4 = vmul.f32 %v9274_v52, %v2933_v57  ;;  %v2955_v13 = vmul.f32 %v9279_v46, %v2939_v29  ;;  %5739 = vmatprep.subr.bf16.mxu0 %v5738_v10  ;;  %11216 = vst [vmem:[#allocation21_spill] sm:$0xff] %v9299_v38  ;;  %v9315_v10 = vld [vmem:[%s10721_s1 + $0x228] sm:$0xff]  ;;  %v2996_v26 = vmul.f32 %v9292_v50, %v2984_v47  ;;  %v9328_v52 = vld [vmem:[%s10721_s1 + $0x210] sm:$0xff] }
 0x82d   :  { %5741 = vmatpush1.bf16.msra.mxu0 %v5740_v62  ;;  %11218 = vst [vmem:[#allocation20_spill] sm:$0xff] %v9315_v10  ;;  %v2997_v46 = vmul.f32 %v9299_v38, %v2982_v22  ;;  %11219 = vst [vmem:[#allocation22_spill] sm:$0xff] %v9328_v52  ;;  %v9346_v47 = vld [vmem:[%s10721_s1 + $0x230] sm:$0xff] }
 0x82e   :  { %v5776_v37 = vpack.c.bf16 %v2954_v4, %v2950_v43  ;;  %v2977_v61 = vpop.permute.xlu0 %2976  ;;  %v2971_v1 = vpop.permute.xlu1 %2970  ;;  %v5774_v57 = vpack.c.bf16 %v2955_v13, %v2951_v23  ;;  %v9335_v4 = vld [vmem:[%s10721_s1 + $0x218] sm:$0xff]  ;;  %11221 = vst [vmem:[#allocation27_spill] sm:$0xff] %v9346_v47 }
 0x82f   :  { %v2983_v29 = vsel %vm414_vm8, %v2971_v1, %v8781_v28  ;;  %v2985_v62 = vsel %vm414_vm8, %v8779_v40, %v2971_v1  ;;  %11220 = vst [vmem:[#allocation26_spill] sm:$0xff] %v9335_v4  ;;  %v2980_v13 = vsel %vm414_vm8, %v8777_v21, %v2977_v61  ;;  %v2986_v22 = vsel %vm414_vm8, %v2977_v61, %v8773_v0  ;;  %v9351_v1 = vld [vmem:[%s10721_s1 + $0x238] sm:$0xff] }
 0x830   :  { %v3000_v43 = vmul.f32 %v9310_v33, %v2985_v62  ;;  %v3001_v23 = vmul.f32 %v9315_v10, %v2983_v29  ;;  %5775 = vmatprep.subr.bf16.mxu1 %v5774_v57  ;;  %11222 = vst [vmem:[#allocation24_spill] sm:$0xff] %v9351_v1  ;;  %v2999_v61 = vmul.f32 %v9335_v4, %v2986_v22 }
 0x831   :  { %5777 = vmatpush1.bf16.msra.mxu1 %v5776_v37  ;;  %v2998_v37 = vmul.f32 %v9328_v52, %v2980_v13 }
 0x832   :  { %v5744_v57 = vpack.c.bf16 %v3000_v43, %v2996_v26  ;;  %v2979_v29 = vpop.permute.xlu1 %2978  ;;  %v5742_v62 = vpack.c.bf16 %v3001_v23, %v2997_v46  ;;  %v5172_v46 = vld [vmem:[%s10722_s2 + $0x98] sm:$0xff] }
 0x833   :  { %v2981_v21 = vsel %vm414_vm8, %v8781_v28, %v2979_v29  ;;  %v2987_v0 = vsel %vm414_vm8, %v2979_v29, %v8779_v40  ;;  %v5169_v40 = vld [vmem:[%s10722_s2 + $0x80] sm:$0xff]  ;;  %v11223_v29 = vld [vmem:[#allocation30_spill] sm:$0xff] }
 0x834   :  { %v3002_v10 = vmul.f32 %v9346_v47, %v2981_v21  ;;  %v3003_v33 = vmul.f32 %v9351_v1, %v2987_v0  ;;  %5743 = vmatprep.subr.bf16.mxu0 %v5742_v62  ;;  %v11224_v21 = vld [vmem:[#allocation35_spill] sm:$0xff] }
 0x835   :  { %5745 = vmatpush1.bf16.msra.mxu0 %v5744_v57 }
 0x836   :  { %v5780_v26 = vpack.c.bf16 %v3002_v10, %v2998_v37  ;;  %5323 = vmatprep.subr.msk.mxu0 %vm25_vm9, %v11175_v44  ;;  %v5778_v28 = vpack.c.bf16 %v3003_v33, %v2999_v61  ;;  %v5171_v33 = vld [vmem:[%s10722_s2 + $0x90] sm:$0xff] }
 0x838   :  { %5779 = vmatprep.subr.bf16.mxu1 %v5778_v28 }
 0x839   :  { %5324 = vmatpush1.msk.msra.mxu0 %vm25_vm9, %v11175_v44  ;;  %5781 = vmatpush1.bf16.msra.mxu1 %v5780_v26 }
 0x83a   :  { %3164 = vmatmul.mubr.f32.vlgmr.msra.gmra.mrb[16].mxu0 %v5169_v40  ;;  %5325 = vmatprep.subr.msk.mxu1 %vm25_vm9, %v11175_v44 }
 0x83b   :  { %5174 = vmatprep.mubr.msk.f32.mxu0 %vm528_vm1, %v5172_v46 }
 0x83d   :  { %5326 = vmatpush1.msk.msra.mxu1 %vm25_vm9, %v11175_v44 }
 0x83e   :  { %3170 = vmatmul.mubr.f32.gmra.mrb[18].mxu0 %v5171_v33  ;;  %3241 = vmatmul.mubr.f32.vlgmr.msra.gmra.mrb[16].mxu1 %v5169_v40 }
 0x83f   :  { %5176 = vmatprep.mubr.msk.f32.mxu1 %vm528_vm1, %v5172_v46 }
 0x842   :  { %3247 = vmatmul.mubr.f32.gmra.mrb[18].mxu1 %v5171_v33 }
 0x90d   :  { %v3165_v10 = vpop.f32.mrb[16].mxu0 }
 0x90e   :  { %v3166_v43 = vadd.f32 %v3165_v10, %v8081_v42  ;;  %v3167_v23 = vpop.f32.mrb[17].mxu0  ;;  %v11227_v42 = vld [vmem:[#allocation36_spill] sm:$0xff] }
 0x910   :  { %v9387_v13 = vmax.f32 %v3166_v43, 0.0  ;;  %v11229_v43 = vld [vmem:[#allocation33_spill] sm:$0xff] }
 0x911   :  { %v3171_v22 = vpop.f32.mrb[18].mxu0  ;;  %v3242_v57 = vpop.f32.mrb[16].mxu1 }
 0x912   :  { %v3172_v62 = vadd.f32 %v3171_v22, %v11223_v29  ;;  %v3243_v0 = vadd.f32 %v3242_v57, %v11224_v21  ;;  %v3173_v37 = vpop.f32.mrb[19].mxu0  ;;  %v3244_v61 = vpop.f32.mrb[17].mxu1  ;;  %3261 = vrot.lane.b32.xlu0 %v9387_v13, %s6006_s25  ;;  %v3168_v22 = vadd.f32 %v3167_v23, %v11229_v43  ;;  %v11230_v29 = vld [vmem:[#allocation34_spill] sm:$0xff] }
 0x913   :  { %v11231_v21 = vld [vmem:[#allocation38_spill] sm:$0xff] }
 0x914   :  { %v9393_v26 = vmax.f32 %v3172_v62, 0.0  ;;  %v9395_v28 = vmax.f32 %v3243_v0, 0.0  ;;  %v9461_v57 = vmax.f32 %v3168_v22, 0.0  ;;  %v3174_v62 = vadd.f32 %v3173_v37, %v11230_v29  ;;  %v5234_v22 = vld [vmem:[%s10722_s2 + $0xa8] sm:$0xff] }
 0x915   :  { %v3248_v40 = vpop.f32.mrb[18].mxu1  ;;  %v3245_v0 = vadd.f32 %v3244_v61, %v11231_v21  ;;  %5237 = vmatprep.mubr.msk.f32.mxu0 %vm528_vm1, %v5234_v22  ;;  %5239 = vmatprep.mubr.msk.f32.mxu1 %vm528_vm1, %v5234_v22 }
 0x916   :  { %11225 = vst [vmem:[#allocation65_spill] sm:$0xff] %v9393_v26  ;;  %11226 = vst [vmem:[#allocation63_spill] sm:$0xff] %v9395_v28  ;;  %v3249_v46 = vadd.f32 %v3248_v40, %v11227_v42  ;;  %v3250_v33 = vpop.f32.mrb[19].mxu1  ;;  %3263 = vrot.lane.b32.xlu1 %v9393_v26, %s6006_s25  ;;  %3269 = vrot.lane.b32.xlu0 %v9395_v28, %s6006_s25  ;;  %v9469_v40 = vmax.f32 %v3174_v62, 0.0  ;;  %v11234_v42 = vld [vmem:[#allocation39_spill] sm:$0xff] }
 0x917   :  { %v9471_v23 = vmax.f32 %v3245_v0, 0.0 }
 0x918   :  { %v9402_v10 = vmax.f32 %v3249_v46, 0.0  ;;  %11232 = vst [vmem:[#allocation64_spill] sm:$0xff] %v9469_v40  ;;  %v3251_v46 = vadd.f32 %v3250_v33, %v11234_v42 }
 0x919   :  { %11233 = vst [vmem:[#allocation25_spill] sm:$0xff] %v9471_v23 }
 0x91a   :  { %11228 = vst [vmem:[#allocation66_spill] sm:$0xff] %v9402_v10  ;;  %3271 = vrot.lane.b32.xlu1 %v9402_v10, %s6006_s25  ;;  %3309 = vrot.lane.b32.xlu0 %v9387_v13, %s6007_s14  ;;  %v9478_v37 = vmax.f32 %v3251_v46, 0.0 }
 0x91c   :  { %11235 = vst [vmem:[#allocation57_spill] sm:$0xff] %v9478_v37 }
 0x91e   :  { %3311 = vrot.lane.b32.xlu1 %v9393_v26, %s6007_s14  ;;  %3317 = vrot.lane.b32.xlu0 %v9395_v28, %s6007_s14 }
 0x922   :  { %3319 = vrot.lane.b32.xlu1 %v9402_v10, %s6007_s14  ;;  %3357 = vrot.lane.b32.xlu0 %v9387_v13, %s6008_s0 }
 0x926   :  { %3359 = vrot.lane.b32.xlu1 %v9393_v26, %s6008_s0  ;;  %3365 = vrot.lane.b32.xlu0 %v9395_v28, %s6008_s0 }
 0x92a   :  { %3367 = vrot.lane.b32.xlu1 %v9402_v10, %s6008_s0  ;;  %3405 = vrot.lane.b32.xlu0 %v9387_v13, %s6009_s15 }
 0x92e   :  { %3407 = vrot.lane.b32.xlu1 %v9393_v26, %s6009_s15  ;;  %3413 = vrot.lane.b32.xlu0 %v9395_v28, %s6009_s15 }
 0x932   :  { %3415 = vrot.lane.b32.xlu1 %v9402_v10, %s6009_s15  ;;  %3461 = vrot.lane.b32.xlu0 %v9387_v13, %s6010_s16 }
 0x936   :  { %3463 = vrot.lane.b32.xlu1 %v9393_v26, %s6010_s16  ;;  %3469 = vrot.lane.b32.xlu0 %v9395_v28, %s6010_s16 }
 0x93a   :  { %3471 = vrot.lane.b32.xlu1 %v9402_v10, %s6010_s16  ;;  %3509 = vrot.lane.b32.xlu0 %v9387_v13, %s6011_s17 }
 0x93e   :  { %3511 = vrot.lane.b32.xlu1 %v9393_v26, %s6011_s17  ;;  %3517 = vrot.lane.b32.xlu0 %v9395_v28, %s6011_s17 }
 0x942   :  { %3519 = vrot.lane.b32.xlu1 %v9402_v10, %s6011_s17  ;;  %3557 = vrot.lane.b32.xlu0 %v9387_v13, %s6012_s18 }
 0x946   :  { %3559 = vrot.lane.b32.xlu1 %v9393_v26, %s6012_s18  ;;  %3565 = vrot.lane.b32.xlu0 %v9395_v28, %s6012_s18 }
 0x94a   :  { %3567 = vrot.lane.b32.xlu1 %v9402_v10, %s6012_s18  ;;  %3605 = vrot.lane.b32.xlu0 %v9387_v13, %s6013_s19 }
 0x94e   :  { %3607 = vrot.lane.b32.xlu1 %v9393_v26, %s6013_s19  ;;  %3613 = vrot.lane.b32.xlu0 %v9395_v28, %s6013_s19 }
 0x952   :  { %3615 = vrot.lane.b32.xlu1 %v9402_v10, %s6013_s19  ;;  %3265 = vrot.lane.b32.xlu0 %v9461_v57, %s6006_s25 }
 0x956   :  { %3267 = vrot.lane.b32.xlu1 %v9469_v40, %s6006_s25  ;;  %3273 = vrot.lane.b32.xlu0 %v9471_v23, %s6006_s25 }
 0x95a   :  { %3275 = vrot.lane.b32.xlu1 %v9478_v37, %s6006_s25  ;;  %3313 = vrot.lane.b32.xlu0 %v9461_v57, %s6007_s14 }
 0x95e   :  { %3315 = vrot.lane.b32.xlu1 %v9469_v40, %s6007_s14  ;;  %3321 = vrot.lane.b32.xlu0 %v9471_v23, %s6007_s14 }
 0x962   :  { %3323 = vrot.lane.b32.xlu1 %v9478_v37, %s6007_s14  ;;  %3361 = vrot.lane.b32.xlu0 %v9461_v57, %s6008_s0 }
 0x966   :  { %3363 = vrot.lane.b32.xlu1 %v9469_v40, %s6008_s0  ;;  %3369 = vrot.lane.b32.xlu0 %v9471_v23, %s6008_s0 }
 0x96a   :  { %3371 = vrot.lane.b32.xlu1 %v9478_v37, %s6008_s0  ;;  %3409 = vrot.lane.b32.xlu0 %v9461_v57, %s6009_s15 }
 0x96e   :  { %3411 = vrot.lane.b32.xlu1 %v9469_v40, %s6009_s15  ;;  %3417 = vrot.lane.b32.xlu0 %v9471_v23, %s6009_s15 }
 0x972   :  { %3419 = vrot.lane.b32.xlu1 %v9478_v37, %s6009_s15  ;;  %3465 = vrot.lane.b32.xlu0 %v9461_v57, %s6010_s16 }
 0x976   :  { %3467 = vrot.lane.b32.xlu1 %v9469_v40, %s6010_s16  ;;  %3473 = vrot.lane.b32.xlu0 %v9471_v23, %s6010_s16 }
 0x97a   :  { %3475 = vrot.lane.b32.xlu1 %v9478_v37, %s6010_s16  ;;  %3513 = vrot.lane.b32.xlu0 %v9461_v57, %s6011_s17 }
 0x97e   :  { %3515 = vrot.lane.b32.xlu1 %v9469_v40, %s6011_s17  ;;  %3521 = vrot.lane.b32.xlu0 %v9471_v23, %s6011_s17 }
 0x982   :  { %3523 = vrot.lane.b32.xlu1 %v9478_v37, %s6011_s17  ;;  %3561 = vrot.lane.b32.xlu0 %v9461_v57, %s6012_s18 }
 0x984   :  { %v3262_v61 = vpop.permute.xlu0 %3261 }
 0x986   :  { %3563 = vrot.lane.b32.xlu1 %v9469_v40, %s6012_s18  ;;  %3569 = vrot.lane.b32.xlu0 %v9471_v23, %s6012_s18 }
 0x988   :  { %v3264_v33 = vpop.permute.xlu1 %3263  ;;  %v3270_v43 = vpop.permute.xlu0 %3269 }
 0x98a   :  { %3571 = vrot.lane.b32.xlu1 %v9478_v37, %s6012_s18  ;;  %3609 = vrot.lane.b32.xlu0 %v9461_v57, %s6013_s19 }
 0x98c   :  { %v3272_v29 = vpop.permute.xlu1 %3271  ;;  %v9535_v62 = vpop.permute.xlu0 %3309 }
 0x98e   :  { %3611 = vrot.lane.b32.xlu1 %v9469_v40, %s6013_s19  ;;  %3617 = vrot.lane.b32.xlu0 %v9471_v23, %s6013_s19 }
 0x990   :  { %v9543_v21 = vpop.permute.xlu1 %3311  ;;  %v9545_v0 = vpop.permute.xlu0 %3317 }
 0x992   :  { %3619 = vrot.lane.b32.xlu1 %v9478_v37, %s6013_s19 }
 0x994   :  { %v9549_v42 = vpop.permute.xlu1 %3319  ;;  %v9551_v46 = vpop.permute.xlu0 %3357 }
 0x998   :  { %v9553_v17 = vpop.permute.xlu1 %3359  ;;  %v9555_v22 = vpop.permute.xlu0 %3365 }
 0x99c   :  { %v9557_v44 = vpop.permute.xlu1 %3367  ;;  %v9559_v1 = vpop.permute.xlu0 %3405 }
 0x9a0   :  { %v9561_v47 = vpop.permute.xlu1 %3407  ;;  %v9563_v4 = vpop.permute.xlu0 %3413 }
 0x9a4   :  { %v9565_v52 = vpop.permute.xlu1 %3415  ;;  %v9567_v38 = vpop.permute.xlu0 %3461 }
 0x9a8   :  { %v9569_v50 = vpop.permute.xlu1 %3463  ;;  %v9571_v32 = vpop.permute.xlu0 %3469 }
 0x9ac   :  { %v9573_v60 = vpop.permute.xlu1 %3471  ;;  %v9575_v7 = vpop.permute.xlu0 %3509 }
 0x9ad   :  { %11236 = vst [vmem:[#allocation55_spill] sm:$0xff] %v9575_v7 }
 0x9b0   :  { %v9577_v53 = vpop.permute.xlu1 %3511  ;;  %v9579_v20 = vpop.permute.xlu0 %3517 }
 0x9b1   :  { %11237 = vst [vmem:[#allocation59_spill] sm:$0xff] %v9577_v53  ;;  %11238 = vst [vmem:[#allocation58_spill] sm:$0xff] %v9579_v20 }
 0x9b4   :  { %v9581_v54 = vpop.permute.xlu1 %3519  ;;  %v9583_v35 = vpop.permute.xlu0 %3557 }
 0x9b5   :  { %11239 = vst [vmem:[#allocation29_spill] sm:$0xff] %v9581_v54  ;;  %11240 = vst [vmem:[#allocation31_spill] sm:$0xff] %v9583_v35 }
 0x9b8   :  { %v9585_v49 = vpop.permute.xlu1 %3559  ;;  %v9587_v51 = vpop.permute.xlu0 %3565 }
 0x9b9   :  { %11241 = vst [vmem:[#allocation28_spill] sm:$0xff] %v9585_v49  ;;  %11242 = vst [vmem:[#allocation30_spill] sm:$0xff] %v9587_v51  ;;  %v11248_v51 = vld [vmem:[#allocation3_spill] sm:$0xff] }
 0x9bc   :  { %v9589_v12 = vpop.permute.xlu1 %3567  ;;  %v9591_v39 = vpop.permute.xlu0 %3605 }
 0x9bd   :  { %11243 = vst [vmem:[#allocation35_spill] sm:$0xff] %v9589_v12  ;;  %11244 = vst [vmem:[#allocation36_spill] sm:$0xff] %v9591_v39  ;;  %v11249_v12 = vld [vmem:[#allocation48_spill] sm:$0xff] }
 0x9c0   :  { %v9593_v31 = vpop.permute.xlu1 %3607  ;;  %v9595_v16 = vpop.permute.xlu0 %3613 }
 0x9c1   :  { %11245 = vst [vmem:[#allocation33_spill] sm:$0xff] %v9593_v31  ;;  %11246 = vst [vmem:[#allocation34_spill] sm:$0xff] %v9595_v16 }
 0x9c4   :  { %v9597_v7 = vpop.permute.xlu1 %3615  ;;  %v3266_v53 = vpop.permute.xlu0 %3265 }
 0x9c5   :  { %11247 = vst [vmem:[#allocation38_spill] sm:$0xff] %v9597_v7  ;;  %v3281_v54 = vsel %vm57_vm0, %v3262_v61, %v3266_v53  ;;  %v3279_v28 = vsel %vm57_vm0, %v3266_v53, %v3270_v43 }
 0x9c6   :  { %v3294_v55 = vmul.f32 %v3281_v54, %v11248_v51 }
 0x9c8   :  { %v3268_v20 = vpop.permute.xlu1 %3267  ;;  %v3274_v35 = vpop.permute.xlu0 %3273 }
 0x9c9   :  { %v3282_v49 = vsel %vm57_vm0, %v3264_v33, %v3268_v20  ;;  %v3280_v39 = vsel %vm57_vm0, %v3268_v20, %v3272_v29  ;;  %v3277_v16 = vsel %vm57_vm0, %v3270_v43, %v3274_v35  ;;  %v3283_v7 = vsel %vm57_vm0, %v3274_v35, %v3262_v61  ;;  %v11250_v20 = vld [vmem:[#allocation46_spill] sm:$0xff] }
 0x9ca   :  { %v3298_v31 = vmul.f32 %v3282_v49, %v11249_v12  ;;  %v3299_v11 = vmul.f32 %v3280_v39, %v8817_v63  ;;  %v3293_v49 = vmul.f32 %v3283_v7, %v8802_v56  ;;  %v3296_v54 = vmul.f32 %v3277_v16, %v8807_v5  ;;  %v11251_v63 = vld [vmem:[#allocation45_spill] sm:$0xff]  ;;  %v11253_v7 = vld [vmem:[#allocation6_spill] sm:$0xff] }
 0x9cc   :  { %v3276_v48 = vpop.permute.xlu1 %3275  ;;  %v3314_v24 = vpop.permute.xlu0 %3313  ;;  %v5782_v10 = vpack.c.bf16 %v3298_v31, %v3294_v55  ;;  %v3295_v31 = vmul.f32 %v3279_v28, %v11251_v63  ;;  %v11254_v63 = vld [vmem:[#allocation4_spill] sm:$0xff] }
 0x9cd   :  { %v3278_v51 = vsel %vm57_vm0, %v3272_v29, %v3276_v48  ;;  %v3284_v12 = vsel %vm57_vm0, %v3276_v48, %v3264_v33  ;;  %v3329_v55 = vsel %vm106_vm2, %v9535_v62, %v3314_v24  ;;  %v11252_v48 = vld [vmem:[#allocation7_spill] sm:$0xff] }
 0x9ce   :  { %v3297_v35 = vmul.f32 %v3284_v12, %v8824_v19  ;;  %v3300_v61 = vmul.f32 %v3278_v51, %v11250_v20  ;;  %5783 = vmatprep.subr.bf16.mxu0 %v5782_v10  ;;  %v5820_v5 = vpack.c.bf16 %v3299_v11, %v3295_v31  ;;  %v3342_v19 = vmul.f32 %v11252_v48, %v3329_v55 }
 0x9d0   :  { %v5784_v39 = vpack.c.bf16 %v3297_v35, %v3293_v49  ;;  %v3316_v53 = vpop.permute.xlu1 %3315  ;;  %v3322_v43 = vpop.permute.xlu0 %3321  ;;  %v5818_v29 = vpack.c.bf16 %v3300_v61, %v3296_v54  ;;  %v3327_v49 = vsel %vm106_vm2, %v3314_v24, %v9545_v0  ;;  %v11255_v24 = vld [vmem:[#allocation37_spill] sm:$0xff] }
 0x9d1   :  { %v3330_v56 = vsel %vm106_vm2, %v9543_v21, %v3316_v53  ;;  %v3328_v16 = vsel %vm106_vm2, %v3316_v53, %v9549_v42  ;;  %v3325_v28 = vsel %vm106_vm2, %v9545_v0, %v3322_v43  ;;  %v3331_v33 = vsel %vm106_vm2, %v3322_v43, %v9535_v62 }
 0x9d2   :  { %v3346_v10 = vmul.f32 %v11253_v7, %v3330_v56  ;;  %5785 = vmatpush1.bf16.msra.mxu0 %v5784_v39  ;;  %5819 = vmatprep.subr.bf16.mxu1 %v5818_v29  ;;  %v3347_v54 = vmul.f32 %v8886_v3, %v3328_v16  ;;  %v3341_v62 = vmul.f32 %v8869_v2, %v3331_v33  ;;  %v11257_v56 = vld [vmem:[#allocation10_spill] sm:$0xff] }
 0x9d3   :  { %5821 = vmatpush1.bf16.msra.mxu1 %v5820_v5  ;;  %v3344_v61 = vmul.f32 %v8874_v25, %v3325_v28  ;;  %v3343_v0 = vmul.f32 %v11255_v24, %v3327_v49 }
 0x9d4   :  { %v3324_v11 = vpop.permute.xlu1 %3323  ;;  %v3362_v51 = vpop.permute.xlu0 %3361  ;;  %v5786_v12 = vpack.c.bf16 %v3346_v10, %v3342_v19 }
 0x9d5   :  { %v3326_v35 = vsel %vm106_vm2, %v9549_v42, %v3324_v11  ;;  %v3332_v20 = vsel %vm106_vm2, %v3324_v11, %v9543_v21  ;;  %v3377_v3 = vsel %vm156_vm3, %v9551_v46, %v3362_v51  ;;  %v5824_v25 = vpack.c.bf16 %v3347_v54, %v3343_v0  ;;  %v11256_v21 = vld [vmem:[#allocation5_spill] sm:$0xff] }
 0x9d6   :  { %v3345_v55 = vmul.f32 %v8894_v15, %v3332_v20  ;;  %v3348_v31 = vmul.f32 %v11254_v63, %v3326_v35  ;;  %5787 = vmatprep.subr.bf16.mxu0 %v5786_v12  ;;  %v3390_v15 = vmul.f32 %v11256_v21, %v3377_v3  ;;  %v3375_v28 = vsel %vm156_vm3, %v3362_v51, %v9555_v22  ;;  %v11258_v35 = vld [vmem:[#allocation11_spill] sm:$0xff] }
 0x9d8   :  { %v5788_v42 = vpack.c.bf16 %v3345_v55, %v3341_v62  ;;  %v3364_v39 = vpop.permute.xlu1 %3363  ;;  %v3370_v53 = vpop.permute.xlu0 %3369  ;;  %v5822_v43 = vpack.c.bf16 %v3348_v31, %v3344_v61  ;;  %v11261_v31 = vld [vmem:[#allocation49_spill] sm:$0xff] }
 0x9d9   :  { %v3378_v2 = vsel %vm156_vm3, %v9553_v17, %v3364_v39  ;;  %v3376_v29 = vsel %vm156_vm3, %v3364_v39, %v9557_v44  ;;  %v3373_v48 = vsel %vm156_vm3, %v9555_v22, %v3370_v53  ;;  %v3379_v19 = vsel %vm156_vm3, %v3370_v53, %v9551_v46  ;;  %v11259_v22 = vld [vmem:[#allocation8_spill] sm:$0xff] }
 0x9da   :  { %v3394_v5 = vmul.f32 %v11257_v56, %v3378_v2  ;;  %5789 = vmatpush1.bf16.msra.mxu0 %v5788_v42  ;;  %5823 = vmatprep.subr.bf16.mxu1 %v5822_v43  ;;  %v3395_v33 = vmul.f32 %v8958_v59, %v3376_v29  ;;  %v3389_v46 = vmul.f32 %v8941_v18, %v3379_v19 }
 0x9db   :  { %5825 = vmatpush1.bf16.msra.mxu1 %v5824_v25  ;;  %v3392_v49 = vmul.f32 %v8946_v27, %v3373_v48  ;;  %v3391_v51 = vmul.f32 %v11259_v22, %v3375_v28  ;;  %v11260_v27 = vld [vmem:[#allocation9_spill] sm:$0xff]  ;;  %v11266_v22 = vld [vmem:[#allocation50_spill] sm:$0xff] }
 0x9dc   :  { %v3372_v16 = vpop.permute.xlu1 %3371  ;;  %v3410_v7 = vpop.permute.xlu0 %3409  ;;  %v5790_v10 = vpack.c.bf16 %v3394_v5, %v3390_v15 }
 0x9dd   :  { %v3374_v11 = vsel %vm156_vm3, %v9557_v44, %v3372_v16  ;;  %v3380_v12 = vsel %vm156_vm3, %v3372_v16, %v9553_v17  ;;  %v3425_v59 = vsel %vm206_vm4, %v9559_v1, %v3410_v7  ;;  %v5828_v18 = vpack.c.bf16 %v3395_v33, %v3391_v51 }
 0x9de   :  { %v3393_v54 = vmul.f32 %v8966_v36, %v3380_v12  ;;  %v3396_v20 = vmul.f32 %v11258_v35, %v3374_v11  ;;  %5791 = vmatprep.subr.bf16.mxu0 %v5790_v10  ;;  %v3438_v36 = vmul.f32 %v11260_v27, %v3425_v59  ;;  %v3423_v43 = vsel %vm206_vm4, %v3410_v7, %v9563_v4  ;;  %v11270_v27 = vld [vmem:[#allocation58_spill] sm:$0xff] }
 0x9df   :  { %v5834_v11 = vpack.c.bf16 %v9478_v37, %v9471_v23  ;;  %v3929_v23 = vld [vmem:[%s10721_s1 + $0x18] sm:$0xff] }
 0x9e0   :  { %v5792_v44 = vpack.c.bf16 %v3393_v54, %v3389_v46  ;;  %v3412_v62 = vpop.permute.xlu1 %3411  ;;  %v3418_v61 = vpop.permute.xlu0 %3417  ;;  %v5826_v55 = vpack.c.bf16 %v3396_v20, %v3392_v49  ;;  %v11263_v54 = vld [vmem:[#allocation52_spill] sm:$0xff]  ;;  %v11264_v20 = vld [vmem:[#allocation63_spill] sm:$0xff] }
 0x9e1   :  { %v3426_v17 = vsel %vm206_vm4, %v9561_v47, %v3412_v62  ;;  %v3424_v63 = vsel %vm206_vm4, %v3412_v62, %v9565_v52  ;;  %v3421_v24 = vsel %vm206_vm4, %v9563_v4, %v3418_v61  ;;  %v3427_v0 = vsel %vm206_vm4, %v3418_v61, %v9559_v1  ;;  %v11262_v4 = vld [vmem:[#allocation47_spill] sm:$0xff] }
 0x9e2   :  { %v3442_v3 = vmul.f32 %v11261_v31, %v3426_v17  ;;  %5793 = vmatpush1.bf16.msra.mxu0 %v5792_v44  ;;  %5827 = vmatprep.subr.bf16.mxu1 %v5826_v55  ;;  %v3443_v2 = vmul.f32 %v9030_v8, %v3424_v63  ;;  %v3437_v1 = vmul.f32 %v9013_v30, %v3427_v0  ;;  %v11267_v44 = vld [vmem:[#allocation13_spill] sm:$0xff]  ;;  %v11268_v61 = vld [vmem:[#allocation15_spill] sm:$0xff]  ;;  %v11269_v17 = vld [vmem:[#allocation12_spill] sm:$0xff] }
 0x9e3   :  { %5829 = vmatpush1.bf16.msra.mxu1 %v5828_v18  ;;  %v3440_v15 = vmul.f32 %v9018_v41, %v3421_v24  ;;  %v3439_v5 = vmul.f32 %v11262_v4, %v3423_v43 }
 0x9e4   :  { %v3420_v42 = vpop.permute.xlu1 %3419  ;;  %v3466_v39 = vpop.permute.xlu0 %3465  ;;  %v5794_v53 = vpack.c.bf16 %v3442_v3, %v3438_v36  ;;  %v11271_v36 = vld [vmem:[#allocation55_spill] sm:$0xff] }
 0x9e5   :  { %v3422_v25 = vsel %vm206_vm4, %v9565_v52, %v3420_v42  ;;  %v3428_v21 = vsel %vm206_vm4, %v3420_v42, %v9561_v47  ;;  %v3479_v8 = vsel %vm264_vm5, %v3466_v39, %v9571_v32  ;;  %v3481_v47 = vsel %vm264_vm5, %v9567_v38, %v3466_v39  ;;  %v11272_v42 = vld [vmem:[#allocation29_spill] sm:$0xff] }
 0x9e6   :  { %v3441_v29 = vmul.f32 %v9038_v34, %v3428_v21  ;;  %v3444_v56 = vmul.f32 %v9043_v58, %v3422_v25  ;;  %5795 = vmatprep.subr.bf16.mxu0 %v5794_v53  ;;  %v5798_v34 = vpack.c.bf16 %v9469_v40, %v9461_v57  ;;  %v5832_v58 = vpack.c.bf16 %v3443_v2, %v3439_v5  ;;  %v11273_v53 = vld [vmem:[#allocation59_spill] sm:$0xff]  ;;  %v11274_v2 = vld [vmem:[#allocation42_spill] sm:$0xff]  ;;  %v11275_v21 = vld [vmem:[#allocation40_spill] sm:$0xff] }
 0x9e7   :  { %v3494_v7 = vmul.f32 %v9067_v45, %v3479_v8 }
 0x9e8   :  { %v5796_v52 = vpack.c.bf16 %v3441_v29, %v3437_v1  ;;  %v3468_v48 = vpop.permute.xlu1 %3467  ;;  %v3474_v19 = vpop.permute.xlu0 %3473  ;;  %v5830_v16 = vpack.c.bf16 %v3444_v56, %v3440_v15  ;;  %v11276_v15 = vld [vmem:[#allocation43_spill] sm:$0xff]  ;;  %v11277_v56 = vld [vmem:[#allocation41_spill] sm:$0xff] }
 0x9e9   :  { %v3480_v30 = vsel %vm264_vm5, %v3468_v48, %v9573_v60  ;;  %v3482_v41 = vsel %vm264_vm5, %v9569_v50, %v3468_v48  ;;  %v3477_v28 = vsel %vm264_vm5, %v9571_v32, %v3474_v19  ;;  %v3483_v33 = vsel %vm264_vm5, %v3474_v19, %v9567_v38 }
 0x9ea   :  { %v3498_v10 = vmul.f32 %v9075_v6, %v3480_v30  ;;  %5797 = vmatpush1.bf16.msra.mxu0 %v5796_v52  ;;  %5831 = vmatprep.subr.bf16.mxu1 %v5830_v16  ;;  %v3497_v12 = vmul.f32 %v9081_v14, %v3482_v41  ;;  %v5800_v6 = vpack.c.bf16 %v9393_v26, %v9387_v13  ;;  %v11265_v14 = vld [vmem:[#allocation66_spill] sm:$0xff] }
 0x9eb   :  { %5799 = vmatprep.subr.bf16.mxu0 %v5798_v34  ;;  %5833 = vmatpush1.bf16.msra.mxu1 %v5832_v58  ;;  %v3493_v32 = vmul.f32 %v11263_v54, %v3481_v47  ;;  %v5836_v59 = vpack.c.bf16 %v11265_v14, %v11264_v20  ;;  %v3495_v51 = vmul.f32 %v11266_v22, %v3477_v28  ;;  %v11278_v34 = vld [vmem:[#allocation14_spill] sm:$0xff]  ;;  %v11285_v22 = vld [vmem:[#allocation28_spill] sm:$0xff] }
 0x9ec   :  { %v3476_v45 = vpop.permute.xlu1 %3475  ;;  %v3514_v46 = vpop.permute.xlu0 %3513  ;;  %v5802_v49 = vpack.c.bf16 %v3498_v10, %v3494_v7  ;;  %5835 = vmatprep.subr.bf16.mxu1 %v5834_v11  ;;  %v3496_v62 = vmul.f32 %v11267_v44, %v3483_v33  ;;  %v11279_v47 = vld [vmem:[#allocation18_spill] sm:$0xff]  ;;  %v11280_v10 = vld [vmem:[#allocation19_spill] sm:$0xff]  ;;  %v11281_v33 = vld [vmem:[#allocation16_spill] sm:$0xff] }
 0x9ed   :  { %v3478_v38 = vsel %vm264_vm5, %v9573_v60, %v3476_v45  ;;  %v3484_v35 = vsel %vm264_vm5, %v3476_v45, %v9569_v50  ;;  %v3527_v60 = vsel %vm314_vm6, %v3514_v46, %v11270_v27  ;;  %v3529_v50 = vsel %vm314_vm6, %v11271_v36, %v3514_v46  ;;  %v11283_v46 = vld [vmem:[#allocation31_spill] sm:$0xff]  ;;  %v11286_v44 = vld [vmem:[#allocation17_spill] sm:$0xff] }
 0x9ee   :  { %v3499_v55 = vmul.f32 %v11268_v61, %v3478_v38  ;;  %v3500_v18 = vmul.f32 %v11269_v17, %v3484_v35  ;;  %5801 = vmatpush1.bf16.msra.mxu0 %v5800_v6  ;;  %v5804_v63 = vpack.c.bf16 %v3497_v12, %v3493_v32  ;;  %v3541_v25 = vmul.f32 %v11274_v2, %v3529_v50  ;;  %v11282_v12 = vld [vmem:[#allocation30_spill] sm:$0xff]  ;;  %v11284_v35 = vld [vmem:[#allocation35_spill] sm:$0xff]  ;;  %v11287_v61 = vld [vmem:[#allocation53_spill] sm:$0xff] }
 0x9ef   :  { %5803 = vmatprep.subr.bf16.mxu0 %v5802_v49  ;;  %5837 = vmatpush1.bf16.msra.mxu1 %v5836_v59  ;;  %v3542_v1 = vmul.f32 %v11275_v21, %v3527_v60  ;;  %v11288_v17 = vld [vmem:[#allocation51_spill] sm:$0xff] }
 0x9f0   :  { %v5840_v31 = vpack.c.bf16 %v3499_v55, %v3495_v51  ;;  %v3516_v3 = vpop.permute.xlu1 %3515  ;;  %v3522_v24 = vpop.permute.xlu0 %3521  ;;  %v5838_v0 = vpack.c.bf16 %v3500_v18, %v3496_v62 }
 0x9f1   :  { %v3528_v39 = vsel %vm314_vm6, %v3516_v3, %v11272_v42  ;;  %v3530_v43 = vsel %vm314_vm6, %v11273_v53, %v3516_v3  ;;  %v3525_v4 = vsel %vm314_vm6, %v11270_v27, %v3522_v24  ;;  %v3531_v5 = vsel %vm314_vm6, %v3522_v24, %v11271_v36  ;;  %v11289_v27 = vld [vmem:[#allocation56_spill] sm:$0xff] }
 0x9f2   :  { %v3545_v29 = vmul.f32 %v11276_v15, %v3530_v43  ;;  %v3546_v8 = vmul.f32 %v11277_v56, %v3528_v39  ;;  %5805 = vmatpush1.bf16.msra.mxu0 %v5804_v63  ;;  %5839 = vmatprep.subr.bf16.mxu1 %v5838_v0  ;;  %v3543_v58 = vmul.f32 %v11278_v34, %v3525_v4  ;;  %v11290_v39 = vld [vmem:[#allocation61_spill] sm:$0xff]  ;;  %v11291_v43 = vld [vmem:[#allocation44_spill] sm:$0xff] }
 0x9f3   :  { %5841 = vmatpush1.bf16.msra.mxu1 %v5840_v31  ;;  %v3544_v7 = vmul.f32 %v11279_v47, %v3531_v5 }
 0x9f4   :  { %v5808_v52 = vpack.c.bf16 %v3545_v29, %v3541_v25  ;;  %v3524_v48 = vpop.permute.xlu1 %3523  ;;  %v3562_v19 = vpop.permute.xlu0 %3561  ;;  %v5806_v16 = vpack.c.bf16 %v3546_v8, %v3542_v1  ;;  %v11292_v25 = vld [vmem:[#allocation62_spill] sm:$0xff]  ;;  %v11293_v1 = vld [vmem:[#allocation60_spill] sm:$0xff] }
 0x9f5   :  { %v3526_v30 = vsel %vm314_vm6, %v11272_v42, %v3524_v48  ;;  %v3532_v41 = vsel %vm314_vm6, %v3524_v48, %v11273_v53  ;;  %v3575_v45 = vsel %vm364_vm7, %v3562_v19, %v11282_v12  ;;  %v3577_v6 = vsel %vm364_vm7, %v11283_v46, %v3562_v19  ;;  %v11294_v29 = vld [vmem:[#allocation34_spill] sm:$0xff]  ;;  %v11295_v8 = vld [vmem:[#allocation36_spill] sm:$0xff] }
 0x9f6   :  { %v3547_v28 = vmul.f32 %v11280_v10, %v3526_v30  ;;  %v3548_v11 = vmul.f32 %v11281_v33, %v3532_v41  ;;  %5807 = vmatprep.subr.bf16.mxu0 %v5806_v16  ;;  %v3589_v62 = vmul.f32 %v11286_v44, %v3577_v6  ;;  %v3590_v55 = vmul.f32 %v11287_v61, %v3575_v45  ;;  %v11296_v16 = vld [vmem:[#allocation38_spill] sm:$0xff]  ;;  %v11297_v41 = vld [vmem:[#allocation33_spill] sm:$0xff]  ;;  %v11304_v44 = vld [vmem:[#allocation27_spill] sm:$0xff] }
 0x9f7   :  { %5809 = vmatpush1.bf16.msra.mxu0 %v5808_v52  ;;  %v11305_v61 = vld [vmem:[#allocation24_spill] sm:$0xff] }
 0x9f8   :  { %v5844_v49 = vpack.c.bf16 %v3547_v28, %v3543_v58  ;;  %v3564_v54 = vpop.permute.xlu1 %3563  ;;  %v3570_v32 = vpop.permute.xlu0 %3569  ;;  %v5842_v38 = vpack.c.bf16 %v3548_v11, %v3544_v7  ;;  %v11298_v58 = vld [vmem:[#allocation54_spill] sm:$0xff]  ;;  %v11299_v7 = vld [vmem:[#allocation21_spill] sm:$0xff]  ;;  %v11300_v28 = vld [vmem:[#allocation23_spill] sm:$0xff] }
 0x9f9   :  { %v3576_v59 = vsel %vm364_vm7, %v3564_v54, %v11284_v35  ;;  %v3578_v51 = vsel %vm364_vm7, %v11285_v22, %v3564_v54  ;;  %v3573_v36 = vsel %vm364_vm7, %v11282_v12, %v3570_v32  ;;  %v3579_v50 = vsel %vm364_vm7, %v3570_v32, %v11283_v46  ;;  %v11301_v11 = vld [vmem:[#allocation20_spill] sm:$0xff] }
 0x9fa   :  { %v3593_v18 = vmul.f32 %v11288_v17, %v3578_v51  ;;  %v3594_v60 = vmul.f32 %v11289_v27, %v3576_v59  ;;  %5843 = vmatprep.subr.bf16.mxu1 %v5842_v38  ;;  %v3591_v53 = vmul.f32 %v11290_v39, %v3573_v36  ;;  %v3592_v2 = vmul.f32 %v11291_v43, %v3579_v50  ;;  %v5233_v36 = vld [vmem:[%s10722_s2 + $0xa0] sm:$0xff]  ;;  %v5236_v50 = vld [vmem:[%s10722_s2 + $0xb8] sm:$0xff] }
 0x9fb   :  { %5845 = vmatpush1.bf16.msra.mxu1 %v5844_v49  ;;  %v4595_v27 = vld [vmem:[%s10723_s3 + $0x1a0] sm:$0xff] }
 0x9fc   :  { %v5812_v63 = vpack.c.bf16 %v3593_v18, %v3589_v62  ;;  %v3572_v31 = vpop.permute.xlu1 %3571  ;;  %v3610_v3 = vpop.permute.xlu0 %3609  ;;  %v5810_v24 = vpack.c.bf16 %v3594_v60, %v3590_v55  ;;  %v11306_v18 = vmov 1.0  }
 0x9fd   :  { %v3574_v0 = vsel %vm364_vm7, %v11284_v35, %v3572_v31  ;;  %v3580_v42 = vsel %vm364_vm7, %v3572_v31, %v11285_v22  ;;  %v3623_v56 = vsel %vm414_vm8, %v3610_v3, %v11294_v29  ;;  %v3625_v4 = vsel %vm414_vm8, %v11295_v8, %v3610_v3  ;;  %v11302_v35 = vld [vmem:[#allocation22_spill] sm:$0xff] }
 0x9fe   :  { %v3595_v21 = vmul.f32 %v11292_v25, %v3574_v0  ;;  %v3596_v15 = vmul.f32 %v11293_v1, %v3580_v42  ;;  %5811 = vmatprep.subr.bf16.mxu0 %v5810_v24  ;;  %v3637_v47 = vmul.f32 %v11298_v58, %v3625_v4  ;;  %v3638_v10 = vmul.f32 %v11299_v7, %v3623_v56  ;;  %v11303_v22 = vld [vmem:[#allocation26_spill] sm:$0xff] }
 0x9ff   :  { %5813 = vmatpush1.bf16.msra.mxu0 %v5812_v63  ;;  %v5235_v63 = vld [vmem:[%s10722_s2 + $0xb0] sm:$0xff] }
 0xa00   :  { %v5848_v5 = vpack.c.bf16 %v3595_v21, %v3591_v53  ;;  %v3612_v52 = vpop.permute.xlu1 %3611  ;;  %v3618_v48 = vpop.permute.xlu0 %3617  ;;  %v5846_v19 = vpack.c.bf16 %v3596_v15, %v3592_v2 }
 0xa01   :  { %v3624_v30 = vsel %vm414_vm8, %v3612_v52, %v11296_v16  ;;  %v3626_v34 = vsel %vm414_vm8, %v11297_v41, %v3612_v52  ;;  %v3621_v45 = vsel %vm414_vm8, %v11294_v29, %v3618_v48  ;;  %v3627_v46 = vsel %vm414_vm8, %v3618_v48, %v11295_v8 }
 0xa02   :  { %v3641_v33 = vmul.f32 %v11300_v28, %v3626_v34  ;;  %v3642_v12 = vmul.f32 %v11301_v11, %v3624_v30  ;;  %5847 = vmatprep.subr.bf16.mxu1 %v5846_v19  ;;  %v3639_v59 = vmul.f32 %v11302_v35, %v3621_v45  ;;  %v3640_v51 = vmul.f32 %v11303_v22, %v3627_v46 }
 0xa03   :  { %5849 = vmatpush1.bf16.msra.mxu1 %v5848_v5 }
 0xa04   :  { %v5816_v6 = vpack.c.bf16 %v3641_v33, %v3637_v47  ;;  %v3620_v49 = vpop.permute.xlu1 %3619  ;;  %v5814_v54 = vpack.c.bf16 %v3642_v12, %v3638_v10 }
 0xa05   :  { %v3622_v32 = vsel %vm414_vm8, %v11296_v16, %v3620_v49  ;;  %v3628_v38 = vsel %vm414_vm8, %v3620_v49, %v11297_v41  ;;  %v5298_v16 = vld [vmem:[%s10722_s2 + $0xc8] sm:$0xff] }
 0xa06   :  { %v3643_v62 = vmul.f32 %v11304_v44, %v3622_v32  ;;  %v3644_v55 = vmul.f32 %v11305_v61, %v3628_v38  ;;  %5815 = vmatprep.subr.bf16.mxu0 %v5814_v54 }
 0xa07   :  { %5817 = vmatpush1.bf16.msra.mxu0 %v5816_v6 }
 0xa08   :  { %v5852_v17 = vpack.c.bf16 %v3643_v62, %v3639_v59  ;;  %5327 = vmatprep.subr.msk.mxu0 %vm25_vm9, %v11306_v18  ;;  %v5850_v60 = vpack.c.bf16 %v3644_v55, %v3640_v51 }
 0xa0a   :  { %5851 = vmatprep.subr.bf16.mxu1 %v5850_v60 }
 0xa0b   :  { %5328 = vmatpush1.msk.msra.mxu0 %vm25_vm9, %v11306_v18  ;;  %5853 = vmatpush1.bf16.msra.mxu1 %v5852_v17 }
 0xa0c   :  { %3805 = vmatmul.mubr.f32.vlgmr.msra.gmra.mrb[20].mxu0 %v5233_v36  ;;  %5329 = vmatprep.subr.msk.mxu1 %vm25_vm9, %v11306_v18 }
 0xa0d   :  { %5238 = vmatprep.mubr.msk.f32.mxu0 %vm528_vm1, %v5236_v50 }
 0xa0f   :  { %5330 = vmatpush1.msk.msra.mxu1 %vm25_vm9, %v11306_v18 }
 0xa10   :  { %3811 = vmatmul.mubr.f32.gmra.mrb[22].mxu0 %v5235_v63  ;;  %3882 = vmatmul.mubr.f32.vlgmr.msra.gmra.mrb[20].mxu1 %v5233_v36 }
 0xa11   :  { %5240 = vmatprep.mubr.msk.f32.mxu1 %vm528_vm1, %v5236_v50  ;;  %5301 = vmatprep.mubr.msk.f32.mxu0 %vm528_vm1, %v5298_v16 }
 0xa14   :  { %3888 = vmatmul.mubr.f32.gmra.mrb[22].mxu1 %v5235_v63  ;;  %v3927_v63 = vld [vmem:[%s10721_s1 + $0x8] sm:$0xff] }
 0xa15   :  { %5303 = vmatprep.mubr.msk.f32.mxu1 %vm528_vm1, %v5298_v16 }
 0xadf   :  { %v3806_v31 = vpop.f32.mrb[20].mxu0 }
 0xae0   :  { %v9878_v3 = vmax.f32 %v3806_v31, 0.0  ;;  %v3808_v24 = vpop.f32.mrb[21].mxu0  ;;  %v3928_v31 = vld [vmem:[%s10721_s1 + $0x10] sm:$0xff] }
 0xae1   :  { %v9952_v56 = vmax.f32 %v3808_v24, 0.0 }
 0xae2   :  { %3902 = vrot.lane.b32.xlu0 %v9878_v3, %s6006_s25 }
 0xae3   :  { %v3812_v0 = vpop.f32.mrb[22].mxu0  ;;  %v3883_v42 = vpop.f32.mrb[20].mxu1 }
 0xae4   :  { %v9882_v39 = vmax.f32 %v3812_v0, 0.0  ;;  %v9884_v53 = vmax.f32 %v3883_v42, 0.0  ;;  %v3814_v43 = vpop.f32.mrb[23].mxu0  ;;  %v3885_v2 = vpop.f32.mrb[21].mxu1  ;;  %v3931_v42 = vld [vmem:[%s10721_s1 + $0x28] sm:$0xff] }
 0xae5   :  { %v9958_v8 = vmax.f32 %v3814_v43, 0.0  ;;  %v9960_v4 = vmax.f32 %v3885_v2, 0.0  ;;  %v3932_v43 = vld [vmem:[%s10721_s1 + $0x30] sm:$0xff] }
 0xae6   :  { %3910 = vrot.lane.b32.xlu0 %v9884_v53, %s6006_s25  ;;  %3904 = vrot.lane.b32.xlu1 %v9882_v39, %s6006_s25 }
 0xae7   :  { %v3889_v21 = vpop.f32.mrb[22].mxu1 }
 0xae8   :  { %v9892_v1 = vmax.f32 %v3889_v21, 0.0  ;;  %v3891_v15 = vpop.f32.mrb[23].mxu1 }
 0xae9   :  { %v9966_v5 = vmax.f32 %v3891_v15, 0.0 }
 0xaea   :  { %3950 = vrot.lane.b32.xlu0 %v9878_v3, %s6007_s14  ;;  %3912 = vrot.lane.b32.xlu1 %v9892_v1, %s6006_s25 }
 0xaee   :  { %3958 = vrot.lane.b32.xlu0 %v9884_v53, %s6007_s14  ;;  %3952 = vrot.lane.b32.xlu1 %v9882_v39, %s6007_s14 }
 0xaf2   :  { %3998 = vrot.lane.b32.xlu0 %v9878_v3, %s6008_s0  ;;  %3960 = vrot.lane.b32.xlu1 %v9892_v1, %s6007_s14 }
 0xaf6   :  { %4006 = vrot.lane.b32.xlu0 %v9884_v53, %s6008_s0  ;;  %4000 = vrot.lane.b32.xlu1 %v9882_v39, %s6008_s0 }
 0xafa   :  { %4046 = vrot.lane.b32.xlu0 %v9878_v3, %s6009_s15  ;;  %4008 = vrot.lane.b32.xlu1 %v9892_v1, %s6008_s0 }
 0xafe   :  { %4054 = vrot.lane.b32.xlu0 %v9884_v53, %s6009_s15  ;;  %4048 = vrot.lane.b32.xlu1 %v9882_v39, %s6009_s15 }
 0xb02   :  { %4102 = vrot.lane.b32.xlu0 %v9878_v3, %s6010_s16  ;;  %4056 = vrot.lane.b32.xlu1 %v9892_v1, %s6009_s15 }
 0xb06   :  { %4110 = vrot.lane.b32.xlu0 %v9884_v53, %s6010_s16  ;;  %4104 = vrot.lane.b32.xlu1 %v9882_v39, %s6010_s16 }
 0xb0a   :  { %4150 = vrot.lane.b32.xlu0 %v9878_v3, %s6011_s17  ;;  %4112 = vrot.lane.b32.xlu1 %v9892_v1, %s6010_s16 }
 0xb0e   :  { %4158 = vrot.lane.b32.xlu0 %v9884_v53, %s6011_s17  ;;  %4152 = vrot.lane.b32.xlu1 %v9882_v39, %s6011_s17 }
 0xb12   :  { %4198 = vrot.lane.b32.xlu0 %v9878_v3, %s6012_s18  ;;  %4160 = vrot.lane.b32.xlu1 %v9892_v1, %s6011_s17 }
 0xb16   :  { %4206 = vrot.lane.b32.xlu0 %v9884_v53, %s6012_s18  ;;  %4200 = vrot.lane.b32.xlu1 %v9882_v39, %s6012_s18 }
 0xb1a   :  { %4246 = vrot.lane.b32.xlu0 %v9878_v3, %s6013_s19  ;;  %4208 = vrot.lane.b32.xlu1 %v9892_v1, %s6012_s18 }
 0xb1e   :  { %4254 = vrot.lane.b32.xlu0 %v9884_v53, %s6013_s19  ;;  %4248 = vrot.lane.b32.xlu1 %v9882_v39, %s6013_s19 }
 0xb22   :  { %3906 = vrot.lane.b32.xlu0 %v9952_v56, %s6006_s25  ;;  %4256 = vrot.lane.b32.xlu1 %v9892_v1, %s6013_s19 }
 0xb26   :  { %3914 = vrot.lane.b32.xlu0 %v9960_v4, %s6006_s25  ;;  %3908 = vrot.lane.b32.xlu1 %v9958_v8, %s6006_s25 }
 0xb2a   :  { %3954 = vrot.lane.b32.xlu0 %v9952_v56, %s6007_s14  ;;  %3916 = vrot.lane.b32.xlu1 %v9966_v5, %s6006_s25 }
 0xb2e   :  { %3962 = vrot.lane.b32.xlu0 %v9960_v4, %s6007_s14  ;;  %3956 = vrot.lane.b32.xlu1 %v9958_v8, %s6007_s14 }
 0xb32   :  { %4002 = vrot.lane.b32.xlu0 %v9952_v56, %s6008_s0  ;;  %3964 = vrot.lane.b32.xlu1 %v9966_v5, %s6007_s14 }
 0xb36   :  { %4010 = vrot.lane.b32.xlu0 %v9960_v4, %s6008_s0  ;;  %4004 = vrot.lane.b32.xlu1 %v9958_v8, %s6008_s0 }
 0xb3a   :  { %4050 = vrot.lane.b32.xlu0 %v9952_v56, %s6009_s15  ;;  %4012 = vrot.lane.b32.xlu1 %v9966_v5, %s6008_s0 }
 0xb3e   :  { %4058 = vrot.lane.b32.xlu0 %v9960_v4, %s6009_s15  ;;  %4052 = vrot.lane.b32.xlu1 %v9958_v8, %s6009_s15 }
 0xb42   :  { %4106 = vrot.lane.b32.xlu0 %v9952_v56, %s6010_s16  ;;  %4060 = vrot.lane.b32.xlu1 %v9966_v5, %s6009_s15 }
 0xb46   :  { %4114 = vrot.lane.b32.xlu0 %v9960_v4, %s6010_s16  ;;  %4108 = vrot.lane.b32.xlu1 %v9958_v8, %s6010_s16 }
 0xb4a   :  { %4154 = vrot.lane.b32.xlu0 %v9952_v56, %s6011_s17  ;;  %4116 = vrot.lane.b32.xlu1 %v9966_v5, %s6010_s16 }
 0xb4e   :  { %4162 = vrot.lane.b32.xlu0 %v9960_v4, %s6011_s17  ;;  %4156 = vrot.lane.b32.xlu1 %v9958_v8, %s6011_s17 }
 0xb52   :  { %4202 = vrot.lane.b32.xlu0 %v9952_v56, %s6012_s18  ;;  %4164 = vrot.lane.b32.xlu1 %v9966_v5, %s6011_s17 }
 0xb54   :  { %v3903_v52 = vpop.permute.xlu0 %3902 }
 0xb56   :  { %4210 = vrot.lane.b32.xlu0 %v9960_v4, %s6012_s18  ;;  %4204 = vrot.lane.b32.xlu1 %v9958_v8, %s6012_s18 }
 0xb58   :  { %v3911_v48 = vpop.permute.xlu0 %3910  ;;  %v10016_v19 = vpop.permute.xlu1 %3904 }
 0xb5a   :  { %4250 = vrot.lane.b32.xlu0 %v9952_v56, %s6013_s19  ;;  %4212 = vrot.lane.b32.xlu1 %v9966_v5, %s6012_s18 }
 0xb5c   :  { %v10025_v30 = vpop.permute.xlu0 %3950  ;;  %v3913_v41 = vpop.permute.xlu1 %3912 }
 0xb5e   :  { %4258 = vrot.lane.b32.xlu0 %v9960_v4, %s6013_s19  ;;  %4252 = vrot.lane.b32.xlu1 %v9958_v8, %s6013_s19 }
 0xb60   :  { %v10033_v34 = vpop.permute.xlu0 %3958  ;;  %v10035_v58 = vpop.permute.xlu1 %3952 }
 0xb62   :  { %4260 = vrot.lane.b32.xlu1 %v9966_v5, %s6013_s19 }
 0xb64   :  { %v10039_v47 = vpop.permute.xlu0 %3998  ;;  %v10041_v7 = vpop.permute.xlu1 %3960 }
 0xb68   :  { %v10043_v10 = vpop.permute.xlu0 %4006  ;;  %v10045_v28 = vpop.permute.xlu1 %4000 }
 0xb6c   :  { %v10047_v33 = vpop.permute.xlu0 %4046  ;;  %v10049_v11 = vpop.permute.xlu1 %4008 }
 0xb70   :  { %v10051_v12 = vpop.permute.xlu0 %4054  ;;  %v10053_v45 = vpop.permute.xlu1 %4048 }
 0xb74   :  { %v10055_v46 = vpop.permute.xlu0 %4102  ;;  %v10057_v6 = vpop.permute.xlu1 %4056 }
 0xb78   :  { %v10059_v49 = vpop.permute.xlu0 %4110  ;;  %v10061_v54 = vpop.permute.xlu1 %4104 }
 0xb7c   :  { %v10063_v32 = vpop.permute.xlu0 %4150  ;;  %v10065_v38 = vpop.permute.xlu1 %4112 }
 0xb80   :  { %v10067_v35 = vpop.permute.xlu0 %4158  ;;  %v10069_v59 = vpop.permute.xlu1 %4152 }
 0xb84   :  { %v10071_v22 = vpop.permute.xlu0 %4198  ;;  %v10073_v51 = vpop.permute.xlu1 %4160 }
 0xb88   :  { %v10075_v44 = vpop.permute.xlu0 %4206  ;;  %v10077_v62 = vpop.permute.xlu1 %4200 }
 0xb8c   :  { %v10079_v61 = vpop.permute.xlu0 %4246  ;;  %v10081_v55 = vpop.permute.xlu1 %4208 }
 0xb90   :  { %v10083_v17 = vpop.permute.xlu0 %4254  ;;  %v10085_v60 = vpop.permute.xlu1 %4248 }
 0xb94   :  { %v3907_v36 = vpop.permute.xlu0 %3906  ;;  %v10087_v50 = vpop.permute.xlu1 %4256 }
 0xb95   :  { %v3920_v24 = vsel %vm57_vm0, %v3907_v36, %v3911_v48  ;;  %v3922_v0 = vsel %vm57_vm0, %v3903_v52, %v3907_v36  ;;  %v3926_v36 = vld [vmem:[%s10721_s1] sm:$0xff] }
 0xb96   :  { %v3935_v29 = vmul.f32 %v3927_v63, %v3922_v0  ;;  %v3936_v25 = vmul.f32 %v3928_v31, %v3920_v24  ;;  %v3930_v63 = vld [vmem:[%s10721_s1 + $0x20] sm:$0xff]  ;;  %v3933_v31 = vld [vmem:[%s10721_s1 + $0x38] sm:$0xff] }
 0xb98   :  { %v3915_v2 = vpop.permute.xlu0 %3914  ;;  %v3909_v21 = vpop.permute.xlu1 %3908 }
 0xb99   :  { %v3921_v15 = vsel %vm57_vm0, %v3909_v21, %v3913_v41  ;;  %v3923_v16 = vsel %vm57_vm0, %v10016_v19, %v3909_v21  ;;  %v3918_v40 = vsel %vm57_vm0, %v3911_v48, %v3915_v2  ;;  %v3924_v20 = vsel %vm57_vm0, %v3915_v2, %v3903_v52 }
 0xb9a   :  { %v3939_v37 = vmul.f32 %v3931_v42, %v3923_v16  ;;  %v3940_v14 = vmul.f32 %v3932_v43, %v3921_v15  ;;  %v3934_v52 = vmul.f32 %v3926_v36, %v3924_v20  ;;  %v3937_v2 = vmul.f32 %v3929_v23, %v3918_v40  ;;  %v5242_v15 = vld [vmem:[%s10721_s1 + $0x48] sm:$0xff]  ;;  %v5247_v23 = vld [vmem:[%s10721_s1 + $0x70] sm:$0xff] }
 0xb9b   :  { %v5246_v40 = vld [vmem:[%s10721_s1 + $0x68] sm:$0xff] }
 0xb9c   :  { %v5892_v24 = vpack.c.bf16 %v3940_v14, %v3936_v25  ;;  %v3955_v0 = vpop.permute.xlu0 %3954  ;;  %v3917_v42 = vpop.permute.xlu1 %3916  ;;  %v5854_v43 = vpack.c.bf16 %v3939_v37, %v3935_v29  ;;  %v5243_v37 = vld [vmem:[%s10721_s1 + $0x50] sm:$0xff] }
 0xb9d   :  { %v3919_v21 = vsel %vm57_vm0, %v3913_v41, %v3917_v42  ;;  %v3925_v48 = vsel %vm57_vm0, %v3917_v42, %v10016_v19  ;;  %v3968_v14 = vsel %vm106_vm2, %v3955_v0, %v10033_v34  ;;  %v3970_v20 = vsel %vm106_vm2, %v10025_v30, %v3955_v0  ;;  %v5241_v42 = vld [vmem:[%s10721_s1 + $0x40] sm:$0xff] }
 0xb9e   :  { %v3938_v16 = vmul.f32 %v3930_v63, %v3925_v48  ;;  %v3941_v26 = vmul.f32 %v3933_v31, %v3919_v21  ;;  %5855 = vmatprep.subr.bf16.mxu0 %v5854_v43  ;;  %v3983_v31 = vmul.f32 %v5242_v15, %v3970_v20  ;;  %v3984_v0 = vmul.f32 %v5243_v37, %v3968_v14  ;;  %v5248_v15 = vld [vmem:[%s10721_s1 + $0x78] sm:$0xff] }
 0xba0   :  { %v5856_v25 = vpack.c.bf16 %v3938_v16, %v3934_v52  ;;  %v3963_v29 = vpop.permute.xlu0 %3962  ;;  %v3957_v19 = vpop.permute.xlu1 %3956  ;;  %v5890_v41 = vpack.c.bf16 %v3941_v26, %v3937_v2  ;;  %v5244_v26 = vld [vmem:[%s10721_s1 + $0x58] sm:$0xff]  ;;  %v5245_v2 = vld [vmem:[%s10721_s1 + $0x60] sm:$0xff] }
 0xba1   :  { %v3969_v36 = vsel %vm106_vm2, %v3957_v19, %v10041_v7  ;;  %v3971_v63 = vsel %vm106_vm2, %v10035_v58, %v3957_v19  ;;  %v3966_v48 = vsel %vm106_vm2, %v10033_v34, %v3963_v29  ;;  %v3972_v52 = vsel %vm106_vm2, %v3963_v29, %v10025_v30 }
 0xba2   :  { %v3987_v43 = vmul.f32 %v5246_v40, %v3971_v63  ;;  %v3988_v21 = vmul.f32 %v5247_v23, %v3969_v36  ;;  %5857 = vmatpush1.bf16.msra.mxu0 %v5856_v25  ;;  %5891 = vmatprep.subr.bf16.mxu1 %v5890_v41  ;;  %v3982_v40 = vmul.f32 %v5241_v42, %v3972_v52  ;;  %v5250_v25 = vld [vmem:[%s10721_s1 + $0x88] sm:$0xff]  ;;  %v5255_v36 = vld [vmem:[%s10721_s1 + $0xb0] sm:$0xff]  ;;  %v5249_v52 = vld [vmem:[%s10721_s1 + $0x80] sm:$0xff] }
 0xba3   :  { %5893 = vmatpush1.bf16.msra.mxu1 %v5892_v24  ;;  %v3985_v23 = vmul.f32 %v5244_v26, %v3966_v48  ;;  %v5251_v24 = vld [vmem:[%s10721_s1 + $0x90] sm:$0xff]  ;;  %v5254_v41 = vld [vmem:[%s10721_s1 + $0xa8] sm:$0xff] }
 0xba4   :  { %v5896_v16 = vpack.c.bf16 %v3988_v21, %v3984_v0  ;;  %v4003_v37 = vpop.permute.xlu0 %4002  ;;  %v3965_v14 = vpop.permute.xlu1 %3964  ;;  %v5858_v20 = vpack.c.bf16 %v3987_v43, %v3983_v31 }
 0xba5   :  { %v3967_v34 = vsel %vm106_vm2, %v10041_v7, %v3965_v14  ;;  %v3973_v30 = vsel %vm106_vm2, %v3965_v14, %v10035_v58  ;;  %v4016_v7 = vsel %vm156_vm3, %v4003_v37, %v10043_v10  ;;  %v4018_v58 = vsel %vm156_vm3, %v10039_v47, %v4003_v37  ;;  %v5252_v37 = vld [vmem:[%s10721_s1 + $0x98] sm:$0xff] }
 0xba6   :  { %v3986_v29 = vmul.f32 %v5245_v2, %v3973_v30  ;;  %v3989_v19 = vmul.f32 %v5248_v15, %v3967_v34  ;;  %5859 = vmatprep.subr.bf16.mxu0 %v5858_v20  ;;  %v4031_v26 = vmul.f32 %v5250_v25, %v4018_v58  ;;  %v4032_v48 = vmul.f32 %v5251_v24, %v4016_v7  ;;  %v5253_v34 = vld [vmem:[%s10721_s1 + $0xa0] sm:$0xff]  ;;  %v5256_v30 = vld [vmem:[%s10721_s1 + $0xb8] sm:$0xff]  ;;  %v5258_v7 = vld [vmem:[%s10721_s1 + $0xc8] sm:$0xff] }
 0xba8   :  { %v5860_v63 = vpack.c.bf16 %v3986_v29, %v3982_v40  ;;  %v4011_v31 = vpop.permute.xlu0 %4010  ;;  %v4005_v0 = vpop.permute.xlu1 %4004  ;;  %v5894_v42 = vpack.c.bf16 %v3989_v19, %v3985_v23 }
 0xba9   :  { %v4017_v43 = vsel %vm156_vm3, %v4005_v0, %v10049_v11  ;;  %v4019_v21 = vsel %vm156_vm3, %v10045_v28, %v4005_v0  ;;  %v4014_v14 = vsel %vm156_vm3, %v10043_v10, %v4011_v31  ;;  %v4020_v20 = vsel %vm156_vm3, %v4011_v31, %v10039_v47 }
 0xbaa   :  { %v4035_v2 = vmul.f32 %v5254_v41, %v4019_v21  ;;  %v4036_v15 = vmul.f32 %v5255_v36, %v4017_v43  ;;  %5861 = vmatpush1.bf16.msra.mxu0 %v5860_v63  ;;  %5895 = vmatprep.subr.bf16.mxu1 %v5894_v42  ;;  %v4030_v19 = vmul.f32 %v5249_v52, %v4020_v20  ;;  %v5262_v36 = vld [vmem:[%s10721_s1 + $0xe8] sm:$0xff]  ;;  %v5263_v63 = vld [vmem:[%s10721_s1 + $0xf0] sm:$0xff] }
 0xbab   :  { %5897 = vmatpush1.bf16.msra.mxu1 %v5896_v16  ;;  %v4033_v24 = vmul.f32 %v5252_v37, %v4014_v14  ;;  %v5259_v16 = vld [vmem:[%s10721_s1 + $0xd0] sm:$0xff]  ;;  %v5260_v14 = vld [vmem:[%s10721_s1 + $0xd8] sm:$0xff] }
 0xbac   :  { %v5900_v40 = vpack.c.bf16 %v4036_v15, %v4032_v48  ;;  %v4051_v23 = vpop.permute.xlu0 %4050  ;;  %v4013_v25 = vpop.permute.xlu1 %4012  ;;  %v5862_v29 = vpack.c.bf16 %v4035_v2, %v4031_v26  ;;  %v5257_v2 = vld [vmem:[%s10721_s1 + $0xc0] sm:$0xff] }
 0xbad   :  { %v4015_v10 = vsel %vm156_vm3, %v10049_v11, %v4013_v25  ;;  %v4021_v47 = vsel %vm156_vm3, %v4013_v25, %v10045_v28  ;;  %v4064_v11 = vsel %vm206_vm4, %v4051_v23, %v10051_v12  ;;  %v4066_v28 = vsel %vm206_vm4, %v10047_v33, %v4051_v23  ;;  %v5264_v23 = vld [vmem:[%s10721_s1 + $0xf8] sm:$0xff] }
 0xbae   :  { %v4034_v58 = vmul.f32 %v5253_v34, %v4021_v47  ;;  %v4037_v41 = vmul.f32 %v5256_v30, %v4015_v10  ;;  %5863 = vmatprep.subr.bf16.mxu0 %v5862_v29  ;;  %v4079_v48 = vmul.f32 %v5258_v7, %v4066_v28  ;;  %v4080_v52 = vmul.f32 %v5259_v16, %v4064_v11  ;;  %v5261_v30 = vld [vmem:[%s10721_s1 + $0xe0] sm:$0xff] }
 0xbb0   :  { %v5864_v31 = vpack.c.bf16 %v4034_v58, %v4030_v19  ;;  %v4059_v0 = vpop.permute.xlu0 %4058  ;;  %v4053_v42 = vpop.permute.xlu1 %4052  ;;  %v5898_v43 = vpack.c.bf16 %v4037_v41, %v4033_v24 }
 0xbb1   :  { %v4065_v21 = vsel %vm206_vm4, %v4053_v42, %v10057_v6  ;;  %v4067_v26 = vsel %vm206_vm4, %v10053_v45, %v4053_v42  ;;  %v4062_v20 = vsel %vm206_vm4, %v10051_v12, %v4059_v0  ;;  %v4068_v34 = vsel %vm206_vm4, %v4059_v0, %v10047_v33  ;;  %v5265_v42 = vld [vmem:[%s10721_s1 + $0x140] sm:$0xff] }
 0xbb2   :  { %v4083_v15 = vmul.f32 %v5262_v36, %v4067_v26  ;;  %v4084_v37 = vmul.f32 %v5263_v63, %v4065_v21  ;;  %5865 = vmatpush1.bf16.msra.mxu0 %v5864_v31  ;;  %5899 = vmatprep.subr.bf16.mxu1 %v5898_v43  ;;  %v4078_v19 = vmul.f32 %v5257_v2, %v4068_v34  ;;  %v5269_v36 = vld [vmem:[%s10721_s1 + $0x160] sm:$0xff]  ;;  %v5267_v26 = vld [vmem:[%s10721_s1 + $0x150] sm:$0xff] }
 0xbb3   :  { %5901 = vmatpush1.bf16.msra.mxu1 %v5900_v40  ;;  %v4081_v24 = vmul.f32 %v5260_v14, %v4062_v20  ;;  %v5266_v40 = vld [vmem:[%s10721_s1 + $0x148] sm:$0xff]  ;;  %v5870_v0 = vpack.c.bf16 %v9958_v8, %v9952_v56  ;;  %v5906_v2 = vpack.c.bf16 %v9966_v5, %v9960_v4 }
 0xbb4   :  { %v5904_v25 = vpack.c.bf16 %v4084_v37, %v4080_v52  ;;  %v4107_v29 = vpop.permute.xlu0 %4106  ;;  %v4061_v10 = vpop.permute.xlu1 %4060  ;;  %v5866_v47 = vpack.c.bf16 %v4083_v15, %v4079_v48  ;;  %v5268_v52 = vld [vmem:[%s10721_s1 + $0x158] sm:$0xff]  ;;  %v5271_v15 = vld [vmem:[%s10721_s1 + $0x170] sm:$0xff] }
 0xbb5   :  { %v4063_v12 = vsel %vm206_vm4, %v10057_v6, %v4061_v10  ;;  %v4069_v33 = vsel %vm206_vm4, %v4061_v10, %v10053_v45  ;;  %v4120_v41 = vsel %vm264_vm5, %v4107_v29, %v10059_v49  ;;  %v5270_v6 = vld [vmem:[%s10721_s1 + $0x168] sm:$0xff]  ;;  %v4122_v43 = vsel %vm264_vm5, %v10055_v46, %v4107_v29  ;;  %v5272_v37 = vld [vmem:[%s10721_s1 + $0x178] sm:$0xff]  ;;  %v5273_v29 = vld [vmem:[%s10721_s1 + $0x180] sm:$0xff] }
 0xbb6   :  { %v4082_v7 = vmul.f32 %v5261_v30, %v4069_v33  ;;  %v4085_v58 = vmul.f32 %v5264_v23, %v4063_v12  ;;  %5867 = vmatprep.subr.bf16.mxu0 %v5866_v47  ;;  %v4135_v21 = vmul.f32 %v5266_v40, %v4120_v41  ;;  %v4134_v30 = vmul.f32 %v5265_v42, %v4122_v43  ;;  %v5277_v33 = vld [vmem:[%s10721_s1 + $0x1a0] sm:$0xff] }
 0xbb7   :  { %v11308_v47 = vpack.c.bf16 %v9882_v39, %v9878_v3  ;;  %v5278_v3 = vld [vmem:[%s10721_s1 + $0x1a8] sm:$0xff] }
 0xbb8   :  { %v5868_v16 = vpack.c.bf16 %v4082_v7, %v4078_v19  ;;  %v4115_v11 = vpop.permute.xlu0 %4114  ;;  %v4109_v45 = vpop.permute.xlu1 %4108  ;;  %v5902_v28 = vpack.c.bf16 %v4085_v58, %v4081_v24  ;;  %v11309_v24 = vpack.c.bf16 %v9892_v1, %v9884_v53  ;;  %v5276_v1 = vld [vmem:[%s10721_s1 + $0x198] sm:$0xff] }
 0xbb9   :  { %v4121_v63 = vsel %vm264_vm5, %v4109_v45, %v10065_v38  ;;  %v4123_v31 = vsel %vm264_vm5, %v10061_v54, %v4109_v45  ;;  %v4118_v56 = vsel %vm264_vm5, %v10059_v49, %v4115_v11  ;;  %v4124_v8 = vsel %vm264_vm5, %v4115_v11, %v10055_v46  ;;  %v5275_v45 = vld [vmem:[%s10721_s1 + $0x190] sm:$0xff] }
 0xbba   :  { %v4139_v48 = vmul.f32 %v5270_v6, %v4121_v63  ;;  %5869 = vmatpush1.bf16.msra.mxu0 %v5868_v16  ;;  %5903 = vmatprep.subr.bf16.mxu1 %v5902_v28  ;;  %v4138_v14 = vmul.f32 %v5269_v36, %v4123_v31  ;;  %v4136_v5 = vmul.f32 %v5267_v26, %v4118_v56  ;;  %v5279_v31 = vld [vmem:[%s10721_s1 + $0x1b0] sm:$0xff]  ;;  %v5281_v56 = vld [vmem:[%s10721_s1 + $0x1c0] sm:$0xff] }
 0xbbb   :  { %5871 = vmatprep.subr.bf16.mxu0 %v5870_v0  ;;  %5905 = vmatpush1.bf16.msra.mxu1 %v5904_v25  ;;  %v4137_v23 = vmul.f32 %v5268_v52, %v4124_v8  ;;  %v5280_v0 = vld [vmem:[%s10721_s1 + $0x1b8] sm:$0xff] }
 0xbbc   :  { %v4155_v49 = vpop.permute.xlu0 %4154  ;;  %v4117_v20 = vpop.permute.xlu1 %4116  ;;  %v5874_v34 = vpack.c.bf16 %v4139_v48, %v4135_v21  ;;  %5907 = vmatprep.subr.bf16.mxu1 %v5906_v2  ;;  %v5876_v39 = vpack.c.bf16 %v4138_v14, %v4134_v30  ;;  %v5286_v14 = vld [vmem:[%s10721_s1 + $0x1e8] sm:$0xff] }
 0xbbd   :  { %v4119_v46 = vsel %vm264_vm5, %v10065_v38, %v4117_v20  ;;  %v4125_v4 = vsel %vm264_vm5, %v4117_v20, %v10061_v54  ;;  %v5274_v38 = vld [vmem:[%s10721_s1 + $0x188] sm:$0xff]  ;;  %v4168_v54 = vsel %vm314_vm6, %v4155_v49, %v10067_v35  ;;  %v4170_v12 = vsel %vm314_vm6, %v10063_v32, %v4155_v49 }
 0xbbe   :  { %v4140_v25 = vmul.f32 %v5271_v15, %v4119_v46  ;;  %v4141_v10 = vmul.f32 %v5272_v37, %v4125_v4  ;;  %5873 = vmatpush1.bf16.msra.mxu0 %v11308_v47  ;;  %v4182_v16 = vmul.f32 %v5273_v29, %v4170_v12  ;;  %v4183_v11 = vmul.f32 %v5274_v38, %v4168_v54  ;;  %v5282_v15 = vld [vmem:[%s10721_s1 + $0x1c8] sm:$0xff]  ;;  %v5285_v37 = vld [vmem:[%s10721_s1 + $0x1e0] sm:$0xff]  ;;  %v5283_v29 = vld [vmem:[%s10721_s1 + $0x1d0] sm:$0xff] }
 0xbbf   :  { %5875 = vmatprep.subr.bf16.mxu0 %v5874_v34  ;;  %5909 = vmatpush1.bf16.msra.mxu1 %v11309_v24  ;;  %v5284_v47 = vld [vmem:[%s10721_s1 + $0x1d8] sm:$0xff]  ;;  %v5287_v12 = vld [vmem:[%s10721_s1 + $0x1f0] sm:$0xff] }
 0xbc0   :  { %v5912_v19 = vpack.c.bf16 %v4140_v25, %v4136_v5  ;;  %v4163_v7 = vpop.permute.xlu0 %4162  ;;  %v4157_v58 = vpop.permute.xlu1 %4156  ;;  %v5910_v40 = vpack.c.bf16 %v4141_v10, %v4137_v23 }
 0xbc1   :  { %v4169_v41 = vsel %vm314_vm6, %v4157_v58, %v10073_v51  ;;  %v4171_v6 = vsel %vm314_vm6, %v10069_v59, %v4157_v58  ;;  %v4166_v36 = vsel %vm314_vm6, %v10067_v35, %v4163_v7  ;;  %v4172_v63 = vsel %vm314_vm6, %v4163_v7, %v10063_v32 }
 0xbc2   :  { %v4186_v28 = vmul.f32 %v5277_v33, %v4171_v6  ;;  %v4187_v53 = vmul.f32 %v5278_v3, %v4169_v41  ;;  %5877 = vmatpush1.bf16.msra.mxu0 %v5876_v39  ;;  %5911 = vmatprep.subr.bf16.mxu1 %v5910_v40  ;;  %v4184_v48 = vmul.f32 %v5275_v45, %v4166_v36  ;;  %v5288_v33 = vld [vmem:[%s10721_s1 + $0x1f8] sm:$0xff]  ;;  %v5289_v40 = vld [vmem:[%s10721_s1 + $0x200] sm:$0xff]  ;;  %v5294_v45 = vld [vmem:[%s10721_s1 + $0x228] sm:$0xff] }
 0xbc3   :  { %5913 = vmatpush1.bf16.msra.mxu1 %v5912_v19  ;;  %v4185_v52 = vmul.f32 %v5276_v1, %v4172_v63 }
 0xbc4   :  { %v5880_v42 = vpack.c.bf16 %v4186_v28, %v4182_v16  ;;  %v4203_v43 = vpop.permute.xlu0 %4202  ;;  %v4165_v21 = vpop.permute.xlu1 %4164  ;;  %v5878_v26 = vpack.c.bf16 %v4187_v53, %v4183_v11  ;;  %v5290_v16 = vld [vmem:[%s10721_s1 + $0x208] sm:$0xff]  ;;  %v5293_v11 = vld [vmem:[%s10721_s1 + $0x220] sm:$0xff] }
 0xbc5   :  { %v4167_v35 = vsel %vm314_vm6, %v10073_v51, %v4165_v21  ;;  %v4173_v32 = vsel %vm314_vm6, %v4165_v21, %v10069_v59  ;;  %v4216_v51 = vsel %vm364_vm7, %v4203_v43, %v10075_v44  ;;  %v4218_v59 = vsel %vm364_vm7, %v10071_v22, %v4203_v43  ;;  %v5291_v43 = vld [vmem:[%s10721_s1 + $0x210] sm:$0xff] }
 0xbc6   :  { %v4188_v8 = vmul.f32 %v5279_v31, %v4167_v35  ;;  %v4189_v2 = vmul.f32 %v5280_v0, %v4173_v32  ;;  %5879 = vmatprep.subr.bf16.mxu0 %v5878_v26  ;;  %v4230_v5 = vmul.f32 %v5281_v56, %v4218_v59  ;;  %v4231_v23 = vmul.f32 %v5282_v15, %v4216_v51  ;;  %v5292_v35 = vld [vmem:[%s10721_s1 + $0x218] sm:$0xff] }
 0xbc7   :  { %5881 = vmatpush1.bf16.msra.mxu0 %v5880_v42  ;;  %v5296_v56 = vld [vmem:[%s10721_s1 + $0x238] sm:$0xff] }
 0xbc8   :  { %v5916_v49 = vpack.c.bf16 %v4188_v8, %v4184_v48  ;;  %v4211_v20 = vpop.permute.xlu0 %4210  ;;  %v4205_v34 = vpop.permute.xlu1 %4204  ;;  %v5914_v30 = vpack.c.bf16 %v4189_v2, %v4185_v52  ;;  %v5295_v52 = vld [vmem:[%s10721_s1 + $0x230] sm:$0xff] }
 0xbc9   :  { %v4217_v46 = vsel %vm364_vm7, %v4205_v34, %v10081_v55  ;;  %v4219_v4 = vsel %vm364_vm7, %v10077_v62, %v4205_v34  ;;  %v4214_v38 = vsel %vm364_vm7, %v10075_v44, %v4211_v20  ;;  %v4220_v54 = vsel %vm364_vm7, %v4211_v20, %v10071_v22  ;;  %v4560_v20 = vld [vmem:[%s10723_s3 + $0x88] sm:$0xff] }
 0xbca   :  { %v4234_v25 = vmul.f32 %v5285_v37, %v4219_v4  ;;  %v4235_v10 = vmul.f32 %v5286_v14, %v4217_v46  ;;  %5915 = vmatprep.subr.bf16.mxu1 %v5914_v30  ;;  %v4232_v7 = vmul.f32 %v5283_v29, %v4214_v38  ;;  %v4233_v58 = vmul.f32 %v5284_v47, %v4220_v54  ;;  %v4561_v30 = vld [vmem:[%s10723_s3 + $0x90] sm:$0xff]  ;;  %v4562_v46 = vld [vmem:[%s10723_s3 + $0x98] sm:$0xff]  ;;  %v5297_v4 = vld [vmem:[%s10722_s2 + $0xc0] sm:$0xff] }
 0xbcb   :  { %5917 = vmatpush1.bf16.msra.mxu1 %v5916_v49  ;;  %v4559_v49 = vld [vmem:[%s10723_s3 + $0x80] sm:$0xff]  ;;  %v4545_v47 = vld [vmem:[%s10723_s3 + $0x10] sm:$0xff]  ;;  %v4546_v38 = vld [vmem:[%s10723_s3 + $0x18] sm:$0xff]  ;;  %v5930_v54 = vpack.c.bf16 %v4562_v46, %v4561_v30 }
 0xbcc   :  { %v5884_v3 = vpack.c.bf16 %v4234_v25, %v4230_v5  ;;  %v4251_v39 = vpop.permute.xlu0 %4250  ;;  %v4213_v19 = vpop.permute.xlu1 %4212  ;;  %v5882_v24 = vpack.c.bf16 %v4235_v10, %v4231_v23  ;;  %v5300_v5 = vld [vmem:[%s10722_s2 + $0xd8] sm:$0xff]  ;;  %v5926_v23 = vpack.c.bf16 %v4560_v20, %v4559_v49  ;;  %v4591_v29 = vld [vmem:[%s10723_s3 + $0x180] sm:$0xff]  ;;  %v4592_v10 = vld [vmem:[%s10723_s3 + $0x188] sm:$0xff] }
 0xbcd   :  { %v4215_v44 = vsel %vm364_vm7, %v10081_v55, %v4213_v19  ;;  %v4221_v22 = vsel %vm364_vm7, %v4213_v19, %v10077_v62  ;;  %v4264_v55 = vsel %vm414_vm8, %v4251_v39, %v10083_v17  ;;  %v4266_v62 = vsel %vm414_vm8, %v10079_v61, %v4251_v39  ;;  %v4564_v39 = vld [vmem:[%s10723_s3 + $0xa8] sm:$0xff]  ;;  %v4593_v19 = vld [vmem:[%s10723_s3 + $0x190] sm:$0xff]  ;;  %v4571_v46 = vld [vmem:[%s10723_s3 + $0xe0] sm:$0xff] }
 0xbce   :  { %v4236_v41 = vmul.f32 %v5287_v12, %v4215_v44  ;;  %v4237_v6 = vmul.f32 %v5288_v33, %v4221_v22  ;;  %5883 = vmatprep.subr.bf16.mxu0 %v5882_v24  ;;  %v4278_v0 = vmul.f32 %v5289_v40, %v4266_v62  ;;  %v4279_v42 = vmul.f32 %v5290_v16, %v4264_v55  ;;  %v4575_v12 = vld [vmem:[%s10723_s3 + $0x100] sm:$0xff]  ;;  %v4576_v33 = vld [vmem:[%s10723_s3 + $0x108] sm:$0xff]  ;;  %v4594_v24 = vld [vmem:[%s10723_s3 + $0x198] sm:$0xff] }
 0xbcf   :  { %5885 = vmatpush1.bf16.msra.mxu0 %v5884_v3  ;;  %v4563_v3 = vld [vmem:[%s10723_s3 + $0xa0] sm:$0xff]  ;;  %v5299_v44 = vld [vmem:[%s10722_s2 + $0xd0] sm:$0xff]  ;;  %v5958_v22 = vpack.c.bf16 %v4592_v10, %v4591_v29  ;;  %v5962_v16 = vpack.c.bf16 %v4594_v24, %v4593_v19  ;;  %v4578_v62 = vld [vmem:[%s10723_s3 + $0x118] sm:$0xff] }
 0xbd0   :  { %v5920_v28 = vpack.c.bf16 %v4236_v41, %v4232_v7  ;;  %v4259_v53 = vpop.permute.xlu0 %4258  ;;  %v4253_v1 = vpop.permute.xlu1 %4252  ;;  %v5918_v36 = vpack.c.bf16 %v4237_v6, %v4233_v58  ;;  %v5932_v7 = vpack.c.bf16 %v4546_v38, %v4545_v47  ;;  %v5960_v58 = vpack.c.bf16 %v4576_v33, %v4575_v12  ;;  %v4547_v40 = vld [vmem:[%s10723_s3 + $0x20] sm:$0xff]  ;;  %v4548_v41 = vld [vmem:[%s10723_s3 + $0x28] sm:$0xff]  ;;  %v4577_v55 = vld [vmem:[%s10723_s3 + $0x110] sm:$0xff] }
 0xbd1   :  { %v4265_v63 = vsel %vm414_vm8, %v4253_v1, %v10087_v50  ;;  %v4267_v31 = vsel %vm414_vm8, %v10085_v60, %v4253_v1  ;;  %v4262_v32 = vsel %vm414_vm8, %v10083_v17, %v4259_v53  ;;  %v4268_v48 = vsel %vm414_vm8, %v4259_v53, %v10079_v61  ;;  %v4549_v1 = vld [vmem:[%s10723_s3 + $0x30] sm:$0xff]  ;;  %v4584_v30 = vld [vmem:[%s10723_s3 + $0x148] sm:$0xff]  ;;  %v4555_v38 = vld [vmem:[%s10723_s3 + $0x60] sm:$0xff] }
 0xbd2   :  { %v4282_v21 = vmul.f32 %v5293_v11, %v4267_v31  ;;  %v4283_v26 = vmul.f32 %v5294_v45, %v4265_v63  ;;  %5919 = vmatprep.subr.bf16.mxu1 %v5918_v36  ;;  %v4280_v51 = vmul.f32 %v5291_v43, %v4262_v32  ;;  %v4281_v59 = vmul.f32 %v5292_v35, %v4268_v48  ;;  %v4565_v11 = vld [vmem:[%s10723_s3 + $0xb0] sm:$0xff]  ;;  %v4596_v45 = vld [vmem:[%s10723_s3 + $0x1a8] sm:$0xff]  ;;  %v4550_v36 = vld [vmem:[%s10723_s3 + $0x38] sm:$0xff] }
 0xbd3   :  { %5921 = vmatpush1.bf16.msra.mxu1 %v5920_v28  ;;  %v5934_v6 = vpack.c.bf16 %v4564_v39, %v4563_v3  ;;  %v5936_v28 = vpack.c.bf16 %v4548_v41, %v4547_v40  ;;  %v5964_v53 = vpack.c.bf16 %v4578_v62, %v4577_v55  ;;  %v5966_v31 = vpack.c.bf16 %v4596_v45, %v4595_v27  ;;  %v4567_v43 = vld [vmem:[%s10723_s3 + $0xc0] sm:$0xff]  ;;  %v4598_v35 = vld [vmem:[%s10723_s3 + $0x1b8] sm:$0xff]  ;;  %v4553_v20 = vld [vmem:[%s10723_s3 + $0x50] sm:$0xff] }
 0xbd4   :  { %v5888_v8 = vpack.c.bf16 %v4282_v21, %v4278_v0  ;;  %v4261_v2 = vpop.permute.xlu1 %4260  ;;  %v5886_v15 = vpack.c.bf16 %v4283_v26, %v4279_v42  ;;  %v4579_v0 = vld [vmem:[%s10723_s3 + $0x120] sm:$0xff]  ;;  %v4580_v42 = vld [vmem:[%s10723_s3 + $0x128] sm:$0xff]  ;;  %v4597_v26 = vld [vmem:[%s10723_s3 + $0x1b0] sm:$0xff]  ;;  %v5940_v32 = vpack.c.bf16 %v4550_v36, %v4549_v1 }
 0xbd5   :  { %v4263_v17 = vsel %vm414_vm8, %v10087_v50, %v4261_v2  ;;  %v4269_v61 = vsel %vm414_vm8, %v4261_v2, %v10085_v60  ;;  %v4543_v50 = vld [vmem:[%s10723_s3] sm:$0xff]  ;;  %v4568_v21 = vld [vmem:[%s10723_s3 + $0xc8] sm:$0xff]  ;;  %v5968_v48 = vpack.c.bf16 %v4580_v42, %v4579_v0  ;;  %v5970_v2 = vpack.c.bf16 %v4598_v35, %v4597_v26  ;;  %v4585_v12 = vld [vmem:[%s10723_s3 + $0x150] sm:$0xff] }
 0xbd6   :  { %v4284_v37 = vmul.f32 %v5295_v52, %v4263_v17  ;;  %v4285_v14 = vmul.f32 %v5296_v56, %v4269_v61  ;;  %5887 = vmatprep.subr.bf16.mxu0 %v5886_v15  ;;  %v5928_v25 = vpack.c.bf16 %v4544_v9, %v4543_v50  ;;  %v4551_v52 = vld [vmem:[%s10723_s3 + $0x40] sm:$0xff]  ;;  %v4552_v56 = vld [vmem:[%s10723_s3 + $0x48] sm:$0xff]  ;;  %v4581_v15 = vld [vmem:[%s10723_s3 + $0x130] sm:$0xff] }
 0xbd7   :  { %5889 = vmatpush1.bf16.msra.mxu0 %v5888_v8  ;;  %v5942_v8 = vpack.c.bf16 %v4568_v21, %v4567_v43  ;;  %v4582_v17 = vld [vmem:[%s10723_s3 + $0x138] sm:$0xff]  ;;  %v4569_v61 = vld [vmem:[%s10723_s3 + $0xd0] sm:$0xff]  ;;  %v4588_v55 = vld [vmem:[%s10723_s3 + $0x168] sm:$0xff] }
 0xbd8   :  { %v5924_v60 = vpack.c.bf16 %v4284_v37, %v4280_v51  ;;  %5331 = vmatprep.subr.msk.mxu0 %vm25_vm9, %v11306_v18  ;;  %v5922_v34 = vpack.c.bf16 %v4285_v14, %v4281_v59  ;;  %v4570_v51 = vld [vmem:[%s10723_s3 + $0xd8] sm:$0xff]  ;;  %v4599_v59 = vld [vmem:[%s10723_s3 + $0x1c0] sm:$0xff]  ;;  %v4600_v37 = vld [vmem:[%s10723_s3 + $0x1c8] sm:$0xff]  ;;  %v5944_v14 = vpack.c.bf16 %v4552_v56, %v4551_v52  ;;  %v5972_v49 = vpack.c.bf16 %v4582_v17, %v4581_v15 }
 0xbd9   :  { %v4554_v50 = vld [vmem:[%s10723_s3 + $0x58] sm:$0xff]  ;;  %v5946_v9 = vpack.c.bf16 %v4570_v51, %v4569_v61  ;;  %v4573_v19 = vld [vmem:[%s10723_s3 + $0xf0] sm:$0xff] }
 0xbda   :  { %5923 = vmatprep.subr.bf16.mxu1 %v5922_v34  ;;  %v4583_v34 = vld [vmem:[%s10723_s3 + $0x140] sm:$0xff]  ;;  %v5948_v29 = vpack.c.bf16 %v4554_v50, %v4553_v20  ;;  %v4586_v3 = vld [vmem:[%s10723_s3 + $0x158] sm:$0xff]  ;;  %v4589_v45 = vld [vmem:[%s10723_s3 + $0x170] sm:$0xff] }
 0xbdb   :  { %5332 = vmatpush1.msk.msra.mxu0 %vm25_vm9, %v11306_v18  ;;  %5925 = vmatpush1.bf16.msra.mxu1 %v5924_v60  ;;  %v5974_v60 = vpack.c.bf16 %v4600_v37, %v4599_v59  ;;  %v5980_v39 = vpack.c.bf16 %v4586_v3, %v4585_v12  ;;  %v4574_v24 = vld [vmem:[%s10723_s3 + $0xf8] sm:$0xff]  ;;  %v11310_v26 = vld [vmem:[#allocation65_spill] sm:$0xff] }
 0xbdc   :  { %4446 = vmatmul.mubr.f32.vlgmr.msra.gmra.mrb[24].mxu0 %v5297_v4  ;;  %5333 = vmatprep.subr.msk.mxu1 %vm25_vm9, %v11306_v18  ;;  %v4558_v40 = vld [vmem:[%s10723_s3 + $0x78] sm:$0xff]  ;;  %v11313_v15 = vld [vmem:[#allocation25_spill] sm:$0xff] }
 0xbdd   :  { %5302 = vmatprep.mubr.msk.f32.mxu0 %vm528_vm1, %v5300_v5  ;;  %5927 = vmatprep.subr.bf16.mxu0 %v5926_v23  ;;  %v4602_v23 = vld [vmem:[%s10723_s3 + $0x1d8] sm:$0xff]  ;;  %v11315_v20 = vld [vmem:[#allocation57_spill] sm:$0xff] }
 0xbde   :  { %5929 = vmatpush3.bf16.msra.mxu0 %v5928_v25  ;;  %v5976_v25 = vpack.c.bf16 %v4584_v30, %v4583_v34  ;;  %v11314_v37 = vld [vmem:[#allocation66_spill] sm:$0xff]  ;;  %v4757_v34 = vld [vmem:[%s10724_s4] sm:$0xff]  ;;  %v6015_v30 = vmov 0  }
 0xbdf   :  { %5334 = vmatpush1.msk.msra.mxu1 %vm25_vm9, %v11306_v18  ;;  %5931 = vmatprep.subr.bf16.mxu0 %v5930_v54  ;;  %v4566_v18 = vld [vmem:[%s10723_s3 + $0xb8] sm:$0xff]  ;;  %v4556_v54 = vld [vmem:[%s10723_s3 + $0x68] sm:$0xff] }
 0xbe0   :  { %4452 = vmatmul.mubr.f32.gmra.mrb[26].mxu0 %v5299_v44  ;;  %4523 = vmatmul.mubr.f32.vlgmr.msra.gmra.mrb[24].mxu1 %v5297_v4  ;;  %v5938_v63 = vpack.c.bf16 %v4566_v18, %v4565_v11  ;;  %v4572_v4 = vld [vmem:[%s10723_s3 + $0xe8] sm:$0xff]  ;;  %v5952_v33 = vpack.c.bf16 %v4556_v54, %v4555_v38  ;;  %v4605_v11 = vld [vmem:[%s10723_s3 + $0x1f0] sm:$0xff]  ;;  %v4606_v18 = vld [vmem:[%s10723_s3 + $0x1f8] sm:$0xff] }
 0xbe1   :  { %5304 = vmatprep.mubr.msk.f32.mxu1 %vm528_vm1, %v5300_v5  ;;  %5959 = vmatprep.subr.bf16.mxu1 %v5958_v22  ;;  %v4601_v5 = vld [vmem:[%s10723_s3 + $0x1d0] sm:$0xff]  ;;  %v5950_v10 = vpack.c.bf16 %v4572_v4, %v4571_v46  ;;  %v5954_v22 = vpack.c.bf16 %v4574_v24, %v4573_v19  ;;  %v5986_v27 = vpack.c.bf16 %v4606_v18, %v4605_v11  ;;  %v4759_v46 = vld [vmem:[%s10725_s5] sm:$0xff]  ;;  %v4760_v4 = vld [vmem:[%s10725_s5 + $0x8] sm:$0x3] }
 0xbe2   :  { %5933 = vmatpush3.bf16.msra.mxu0 %v5932_v7  ;;  %5961 = vmatpush3.bf16.msra.mxu1 %v5960_v58  ;;  %v5978_v47 = vpack.c.bf16 %v4602_v23, %v4601_v5  ;;  %v4604_v7 = vld [vmem:[%s10723_s3 + $0x1e8] sm:$0xff]  ;;  %v4557_v58 = vld [vmem:[%s10723_s3 + $0x70] sm:$0xff] }
 0xbe3   :  { %5935 = vmatprep.subr.bf16.mxu0 %v5934_v6  ;;  %5963 = vmatprep.subr.bf16.mxu1 %v5962_v16  ;;  %v5956_v6 = vpack.c.bf16 %v4558_v40, %v4557_v58  ;;  %v4587_v16 = vld [vmem:[%s10723_s3 + $0x160] sm:$0xff] }
 0xbe4   :  { %4529 = vmatmul.mubr.f32.gmra.mrb[26].mxu1 %v5299_v44  ;;  %v4603_v44 = vld [vmem:[%s10723_s3 + $0x1e0] sm:$0xff]  ;;  %v5984_v62 = vpack.c.bf16 %v4588_v55, %v4587_v16  ;;  %6005 = vset.pattern.permute.xlu1 %v6015_v30 }
 0xbe5   :  { %v5982_v41 = vpack.c.bf16 %v4604_v7, %v4603_v44  ;;  %6004 = vset.pattern.permute.xlu0 %v6015_v30  ;;  %4768 = vperm.xlu1 %6005, %v4760_v4  }
 0xbe6   :  { %5937 = vmatpush3.bf16.msra.mxu0 %v5936_v28  ;;  %5965 = vmatpush3.bf16.msra.mxu1 %v5964_v53  ;;  %v4590_v28 = vld [vmem:[%s10723_s3 + $0x178] sm:$0xff] }
 0xbe7   :  { %5939 = vmatprep.subr.bf16.mxu0 %v5938_v63  ;;  %5967 = vmatprep.subr.bf16.mxu1 %v5966_v31  ;;  %v5988_v53 = vpack.c.bf16 %v4590_v28, %v4589_v45 }
 0xbe8   :  { %4763 = vperm.xlu0 %6004, %v4759_v46  }
 0xbea   :  { %5941 = vmatpush3.bf16.msra.mxu0 %v5940_v32  ;;  %5969 = vmatpush3.bf16.msra.mxu1 %v5968_v48  ;;  %v11311_v32 = vld [vmem:[#allocation63_spill] sm:$0xff] }
 0xbeb   :  { %5943 = vmatprep.subr.bf16.mxu0 %v5942_v8  ;;  %5971 = vmatprep.subr.bf16.mxu1 %v5970_v2  ;;  %v11312_v8 = vld [vmem:[#allocation64_spill] sm:$0xff] }
 0xbee   :  { %5945 = vmatpush3.bf16.msra.mxu0 %v5944_v14  ;;  %5973 = vmatpush3.bf16.msra.mxu1 %v5972_v49 }
 0xbef   :  { %5947 = vmatprep.subr.bf16.mxu0 %v5946_v9  ;;  %5975 = vmatprep.subr.bf16.mxu1 %v5974_v60 }
 0xbf2   :  { %5949 = vmatpush3.bf16.msra.mxu0 %v5948_v29  ;;  %5977 = vmatpush3.bf16.msra.mxu1 %v5976_v25 }
 0xbf3   :  { %5951 = vmatprep.subr.bf16.mxu0 %v5950_v10  ;;  %5979 = vmatprep.subr.bf16.mxu1 %v5978_v47 }
 0xbf6   :  { %5953 = vmatpush3.bf16.msra.mxu0 %v5952_v33  ;;  %5981 = vmatpush3.bf16.msra.mxu1 %v5980_v39 }
 0xbf7   :  { %5955 = vmatprep.subr.bf16.mxu0 %v5954_v22  ;;  %5983 = vmatprep.subr.bf16.mxu1 %v5982_v41  ;;  %v4758_v22 = vld [vmem:[%s10724_s4 + $0x8] sm:$0x3] }
 0xbfa   :  { %5957 = vmatpush3.bf16.msra.mxu0 %v5956_v6  ;;  %5985 = vmatpush3.bf16.msra.mxu1 %v5984_v62 }
 0xbfb   :  { %5987 = vmatprep.subr.bf16.mxu1 %v5986_v27 }
 0xbfe   :  { %5989 = vmatpush3.bf16.msra.mxu1 %v5988_v53 }
 0xc64   :  { %v4769_v7 = vpop.permute.xlu1 %4768 }
 0xc67   :  { %v4764_v58 = vpop.permute.xlu0 %4763 }
 0xcaf   :  { %v4447_v1 = vpop.f32.mrb[24].mxu0 }
 0xcb0   :  { %v4448_v36 = vadd.f32 %v4447_v1, %v9387_v13  ;;  %v4449_v63 = vpop.f32.mrb[25].mxu0 }
 0xcb1   :  { %v4450_v31 = vadd.f32 %v4449_v63, %v9461_v57 }
 0xcb2   :  { %v4535_v21 = vmax.f32 %v4448_v36, 0.0 }
 0xcb3   :  { %v4536_v0 = vmax.f32 %v4450_v31, 0.0  ;;  %v4453_v42 = vpop.f32.mrb[26].mxu0  ;;  %v4524_v43 = vpop.f32.mrb[24].mxu1 }
 0xcb4   :  { %v4454_v35 = vadd.f32 %v4453_v42, %v11310_v26  ;;  %v4525_v48 = vadd.f32 %v4524_v43, %v11311_v32  ;;  %v4455_v52 = vpop.f32.mrb[27].mxu0  ;;  %v4526_v56 = vpop.f32.mrb[25].mxu1 }
 0xcb5   :  { %v4456_v2 = vadd.f32 %v4455_v52, %v11312_v8  ;;  %v4527_v17 = vadd.f32 %v4526_v56, %v11313_v15  ;;  %4671 = vmatprep.mubr.f32.mxu0 %v4536_v0 }
 0xcb6   :  { %4672 = vmatmul.mubr.f32.vlgmr.msra.gmra.mrb[28].mxu0 %v4535_v21  ;;  %v4539_v57 = vmax.f32 %v4454_v35, 0.0  ;;  %v4537_v59 = vmax.f32 %v4525_v48, 0.0 }
 0xcb7   :  { %v4540_v13 = vmax.f32 %v4456_v2, 0.0  ;;  %v4538_v61 = vmax.f32 %v4527_v17, 0.0  ;;  %v4530_v51 = vpop.f32.mrb[26].mxu1 }
 0xcb8   :  { %v4531_v14 = vadd.f32 %v4530_v51, %v11314_v37  ;;  %v4532_v49 = vpop.f32.mrb[27].mxu1 }
 0xcb9   :  { %v4533_v50 = vadd.f32 %v4532_v49, %v11315_v20  ;;  %4676 = vmatprep.mubr.f32.mxu0 %v4540_v13  ;;  %4746 = vmatprep.mubr.f32.mxu1 %v4538_v61 }
 0xcba   :  { %4677 = vmatmul.mubr.f32.gmra.mrb[30].mxu0 %v4539_v57  ;;  %4747 = vmatmul.mubr.f32.vlgmr.msra.gmra.mrb[28].mxu1 %v4537_v59  ;;  %v4541_v60 = vmax.f32 %v4531_v14, 0.0 }
 0xcbb   :  { %v4542_v9 = vmax.f32 %v4533_v50, 0.0  ;;  %5419 = vmatprep.mubr.msk.f32.mxu0 %vm4771_vm10, %v4757_v34 }
 0xcbd   :  { %4751 = vmatprep.mubr.f32.mxu1 %v4542_v9 }
 0xcbe   :  { %4752 = vmatmul.mubr.f32.gmra.mrb[30].mxu1 %v4541_v60 }
 0xd89   :  { %v5367_v5 = vpop.f32.mrb[28].mxu0 }
 0xd8a   :  { %v5368_v23 = vpop.f32.mrb[29].mxu0 }
 0xd8b   :  { %v5369_v29 = vadd.f32 %v5368_v23, %v5367_v5 }
 0xd8d   :  { %v5370_v25 = vpop.f32.mrb[30].mxu0  ;;  %v5405_v10 = vpop.f32.mrb[28].mxu1 }
 0xd8e   :  { %v5371_v47 = vpop.f32.mrb[31].mxu0  ;;  %v5406_v38 = vpop.f32.mrb[29].mxu1 }
 0xd8f   :  { %v5372_v54 = vadd.f32 %v5371_v47, %v5370_v25  ;;  %v5407_v12 = vadd.f32 %v5406_v38, %v5405_v10 }
 0xd91   :  { %v4749_v33 = vadd.f32 %v5407_v12, %v5369_v29  ;;  %v5408_v3 = vpop.f32.mrb[30].mxu1 }
 0xd92   :  { %v5409_v39 = vpop.f32.mrb[31].mxu1 }
 0xd93   :  { %v5410_v19 = vadd.f32 %v5409_v39, %v5408_v3 }
 0xd95   :  { %v4754_v24 = vadd.f32 %v5410_v19, %v5372_v54 }
 0xd97   :  { %v5990_v44 = vpack.c.bf16 %v4754_v24, %v4749_v33 }
 0xd99   :  { %5991 = vmatprep.subr.bf16.mxu0 %v5990_v44 }
 0xd9a   :  { %5993 = vmatpush3.bf16.msra.mxu0 %v5990_v44 }
 0xd9d   :  { %5420 = vmatmul.mubr.msk.f32.vlgmr.msra.gmra.mrb[32].mxu0 %vm4771_vm10, %v4758_v22 }
 0xe70   :  { %v5421_v40 = vpop.f32.mrb[32].mxu0 }
 0xe71   :  { %v4850_v41 = vadd.f32 %v5421_v40, %v4769_v7  ;;  %v4844_v6 = vpop.f32.mrb[33].mxu0 }
 0xe72   :  { %v4845_v16 = vadd.f32 %v4844_v6, %v4764_v58 }
 0xe73   :  { %4856 = vst.msk [vmem:[%s10726_s6 + $0x8] sm:$0x3] %vm4855_vm11, %v4850_v41 }
 0xe74   :  { %4854 = vst.msk [vmem:[%s10726_s6] sm:$0xff] %vm4853_vm12, %v4845_v16 }

</bundles_post_ra>
